<compile_context>
chip_gen: v6e
topology: v6e:2x2x1
jax: 0.10.0
libtpu: 0.0.40
codegen_flags: <defaults>
</compile_context>

<pallas_src>
import functools
import math

import jax
import jax.numpy as jnp
from jax.experimental import pallas as pl
from jax.experimental.pallas import tpu as pltpu

HIDDEN_DIM = 300
H_HALF = HIDDEN_DIM // 2          # 150  (LSTM hidden size / densenet bottleneck)
HPAD = 256                        # per-gate lane padding (128-aligned, >= 150)
GATES = 4                         # PyTorch LSTM gate order: i, f, g, o


def _sigmoid(z):
    # logistic(z) == 0.5 * (tanh(z/2) + 1); stays on the well-supported tanh path.
    return 0.5 * (jnp.tanh(0.5 * z) + 1.0)


# --------------------------------------------------------------------------
# Fused Actor kernel (one grid step = one batch chunk, full agent axis).
# --------------------------------------------------------------------------
def _actor_fused_kernel(
    x_ref,
    pw1_ref, pb1_ref, pw2_ref, pb2_ref, pw3_ref, pb3_ref, pw4_ref, pb4_ref,
    fwi_ref, fwh_ref, fb_ref,
    bwi_ref, bwh_ref, bb_ref,
    qw1f_ref, qw1b_ref, qw1x_ref, qb1_ref,
    qw2_ref, qb2_ref, qw3_ref, qb3_ref, qw4_ref, qb4_ref,
    o_ref,
    comm_f_ref, comm_b_ref,
    *, n_agents, batch_block):
    A, Bb = n_agents, batch_block
    f32 = jnp.float32
    bf16 = jnp.bfloat16

    def mm(act_f32, w_ref):
        # Weights live as bf16 (halves the dominant weight DMA); activations are
        # cast to bf16 only at the MXU input, accumulation stays f32.
        return jnp.dot(act_f32.astype(bf16), w_ref[...], preferred_element_type=f32)

    x = x_ref[0]                                    # (A*Bb, s_dim) f32, agent-major rows

    # ---- prev DenseNet: s -> 300 -> 300 -> 300 -> 150 (ReLU hidden, no out act) ----
    h = jnp.maximum(mm(x, pw1_ref) + pb1_ref[...], 0.0)
    h = jnp.maximum(mm(h, pw2_ref) + pb2_ref[...], 0.0)
    h = jnp.maximum(mm(h, pw3_ref) + pb3_ref[...], 0.0)
    h = mm(h, pw4_ref) + pb4_ref[...]               # (A*Bb, 150)

    # ---- bidirectional LSTM over the agent (time) axis ----
    # Input projections hoisted out of the recurrence: ONE fused matmul per
    # direction; gates live at 128-aligned lane offsets 0/256/512/768.
    pre_f = mm(h, fwi_ref) + fb_ref[...]            # (A*Bb, 4*HPAD) f32
    pre_b = mm(h, bwi_ref) + bb_ref[...]

    def gates(z):
        i_g = _sigmoid(z[:, 0 * HPAD:1 * HPAD])
        f_g = _sigmoid(z[:, 1 * HPAD:2 * HPAD])
        g_g = jnp.tanh(z[:, 2 * HPAD:3 * HPAD])
        o_g = _sigmoid(z[:, 3 * HPAD:4 * HPAD])
        return i_g, f_g, g_g, o_g

    hf = jnp.zeros((Bb, HPAD), f32)
    cf = jnp.zeros((Bb, HPAD), f32)
    hb = jnp.zeros((Bb, HPAD), f32)
    cb = jnp.zeros((Bb, HPAD), f32)

    # Fully unrolled (A is a small static constant); fwd/bwd interleaved so the
    # MXU sees two independent recurrent dependence chains per step.  Pad lanes
    # (150:256) of h/c stay exactly zero throughout.
    for s in range(A):
        t_f = s
        t_b = A - 1 - s

        z_f = pre_f[t_f * Bb:(t_f + 1) * Bb, :] + mm(hf, fwh_ref)   # (Bb, 1024)
        z_b = pre_b[t_b * Bb:(t_b + 1) * Bb, :] + mm(hb, bwh_ref)

        i_f, f_f, g_f, o_f = gates(z_f)
        cf = f_f * cf + i_f * g_f
        hf = o_f * jnp.tanh(cf)
        comm_f_ref[t_f * Bb:(t_f + 1) * Bb, :] = hf                 # static row-slice store

        i_b, f_b, g_b, o_b = gates(z_b)
        cb = f_b * cb + i_b * g_b
        hb = o_b * jnp.tanh(cb)
        comm_b_ref[t_b * Bb:(t_b + 1) * Bb, :] = hb

    # ---- post DenseNet: (300 + s) -> 150 -> 150 -> 150 -> a_dim (tanh out) ----
    # First layer consumes [comm_fwd, comm_bwd, x] through split weight blocks,
    # so no lane-concat is ever materialized (pad lanes contribute exactly 0).
    y = (mm(comm_f_ref[...], qw1f_ref)
         + mm(comm_b_ref[...], qw1b_ref)
         + mm(x, qw1x_ref)
         + qb1_ref[...])
    y = jnp.maximum(y, 0.0)
    y = jnp.maximum(mm(y, qw2_ref) + qb2_ref[...], 0.0)
    y = jnp.maximum(mm(y, qw3_ref) + qb3_ref[...], 0.0)
    y = jnp.tanh(mm(y, qw4_ref) + qb4_ref[...])     # (A*Bb, out_pad) lane-dense
    o_ref[0] = y.astype(o_ref.dtype)


# --------------------------------------------------------------------------
# Parameter construction (deterministic, in-script).
# Linear weights stored pre-transposed as (in, out) and cast to bf16; biases f32.
# --------------------------------------------------------------------------
def _uniform(key, shape, scale):
    return jax.random.uniform(key, shape, jnp.float32, -scale, scale)


def make_densenet_params(key, in_dim, hidden_dim, out_dim):
    # Matches the PyTorch DenseNet init: dense1/dense2 weights fanin_init,
    # dense3 weight uniform(-0.003, 0.003), dense4 default nn.Linear init;
    # biases keep the default +-1/sqrt(fan_in).
    ks = jax.random.split(key, 8)

    def lin(kw, kb, i, o, w_scale=None):
        s = 1.0 / math.sqrt(i)
        w = _uniform(kw, (i, o), s if w_scale is None else w_scale)
        b = _uniform(kb, (1, o), s)
        return w, b

    w1, b1 = lin(ks[0], ks[1], in_dim, hidden_dim)
    w2, b2 = lin(ks[2], ks[3], hidden_dim, hidden_dim)
    w3, b3 = lin(ks[4], ks[5], hidden_dim, hidden_dim, w_scale=0.003)
    w4, b4 = lin(ks[6], ks[7], hidden_dim, out_dim)
    return dict(w1=w1, b1=b1, w2=w2, b2=b2, w3=w3, b3=b3, w4=w4, b4=b4)


def make_lstm_dir_params(key, input_size, hidden_size, hpad=HPAD):
    # PyTorch nn.LSTM init: every tensor uniform(+-1/sqrt(hidden)); gate order i,f,g,o.
    scale = 1.0 / math.sqrt(hidden_size)
    ks = jax.random.split(key, 4)
    wi = _uniform(ks[0], (GATES, input_size, hidden_size), scale)
    wh = _uniform(ks[1], (GATES, hidden_size, hidden_size), scale)
    b = (_uniform(ks[2], (GATES, 1, hidden_size), scale)
         + _uniform(ks[3], (GATES, 1, hidden_size), scale))   # b_ih + b_hh folded

    # Fuse the 4 gate blocks along the output axis, each zero-padded to HPAD lanes
    # so post-matmul gate slices are 128-aligned and pad lanes stay exactly zero.
    pad_o = hpad - hidden_size
    wi_f = jnp.concatenate([jnp.pad(wi[g], ((0, 0), (0, pad_o))) for g in range(GATES)], axis=1)
    wh_f = jnp.concatenate([jnp.pad(wh[g], ((0, 0), (0, pad_o))) for g in range(GATES)], axis=1)
    wh_f = jnp.pad(wh_f, ((0, pad_o), (0, 0)))      # extra rows multiply zero pad lanes of h
    b_f = jnp.concatenate([jnp.pad(b[g], ((0, 0), (0, pad_o))) for g in range(GATES)], axis=1)
    return dict(wi=wi_f, wh=wh_f, b=b_f)


def make_actor_params(key, s_dim, a_dim):
    k_prev, k_lf, k_lb, k_post = jax.random.split(key, 4)
    prev = make_densenet_params(k_prev, s_dim, HIDDEN_DIM, H_HALF)
    lstm_f = make_lstm_dir_params(k_lf, H_HALF, H_HALF)
    lstm_b = make_lstm_dir_params(k_lb, H_HALF, H_HALF)
    post = make_densenet_params(k_post, HIDDEN_DIM + s_dim, H_HALF, a_dim)

    # Split post.w1 into [comm_fwd | comm_bwd | x] input blocks; pad the comm
    # blocks' input rows 150 -> HPAD with zeros (comm pad lanes are zero anyway).
    w1 = post.pop("w1")
    pad_rows = HPAD - H_HALF
    post["w1f"] = jnp.pad(w1[:H_HALF], ((0, pad_rows), (0, 0)))
    post["w1b"] = jnp.pad(w1[H_HALF:2 * H_HALF], ((0, pad_rows), (0, 0)))
    post["w1x"] = w1[2 * H_HALF:]

    # Lane-pad the output layer to a multiple of 128 columns for a dense store
    # (zero pad; tanh(0)=0 in pad lanes, sliced off in the wrapper).
    out_pad = max(128, ((a_dim + 127) // 128) * 128)
    w4 = post.pop("w4")
    b4 = post.pop("b4")
    post["w4"] = jnp.pad(w4, ((0, 0), (0, out_pad - a_dim)))
    post["b4"] = jnp.pad(b4, ((0, 0), (0, out_pad - a_dim)))

    def cast_weights(d):
        # keys starting with 'w' are matmul weights -> bf16; biases stay f32
        return {k: (v.astype(jnp.bfloat16) if k.startswith("w") else v) for k, v in d.items()}

    return dict(prev=cast_weights(prev),
                lstm_f=cast_weights(lstm_f),
                lstm_b=cast_weights(lstm_b),
                post=cast_weights(post),
                a_dim=a_dim, out_pad=out_pad)


# --------------------------------------------------------------------------
# Actor forward (single fused pallas_call, batch-chunk grid).
# --------------------------------------------------------------------------
def actor_forward(params, x, n_agents, batch_block=None):
    """x: (B, n_agents, s_dim) float32 -> (B, n_agents, a_dim).

    For throughput, stack many independent (B, n_agents) problems along the batch
    axis before calling (amortizes the weight DMA); pick batch_block so each chunk
    has >= 256 rows and the grid can split across both TensorCores on v7x.
    """
    B, A, s_dim = x.shape
    assert A == n_agents
    a_dim = params["a_dim"]
    out_pad = params["out_pad"]
    prev, lf, lb, post = params["prev"], params["lstm_f"], params["lstm_b"], params["post"]

    bb = B if batch_block is None else batch_block
    assert B % bb == 0
    n_chunks = B // bb
    rows = A * bb

    # agent(time)-major rows inside each chunk so every LSTM step is a contiguous
    # static row block — no in-kernel gather/transpose.
    x_cm = (x.reshape(n_chunks, bb, A, s_dim)
              .transpose(0, 2, 1, 3)
              .reshape(n_chunks, rows, s_dim))

    weights = (
        prev["w1"], prev["b1"], prev["w2"], prev["b2"],
        prev["w3"], prev["b3"], prev["w4"], prev["b4"],
        lf["wi"], lf["wh"], lf["b"],
        lb["wi"], lb["wh"], lb["b"],
        post["w1f"], post["w1b"], post["w1x"], post["b1"],
        post["w2"], post["b2"], post["w3"], post["b3"],
        post["w4"], post["b4"],
    )

    # Weights: full-array blocks with a constant index map -> fetched once, kept
    # resident in VMEM across all grid steps.
    in_specs = ([pl.BlockSpec((1, rows, s_dim), lambda i: (i, 0, 0))]
                + [pl.BlockSpec(w.shape, lambda i: (0, 0)) for w in weights])

    out = pl.pallas_call(
        functools.partial(_actor_fused_kernel, n_agents=A, batch_block=bb),
        out_shape=jax.ShapeDtypeStruct((n_chunks, rows, out_pad), jnp.float32),
        grid=(n_chunks,),
        in_specs=in_specs,
        out_specs=pl.BlockSpec((1, rows, out_pad), lambda i: (i, 0, 0)),
        scratch_shapes=[pltpu.VMEM((rows, HPAD), jnp.float32),   # comm_fwd
                        pltpu.VMEM((rows, HPAD), jnp.float32)],  # comm_bwd
        compiler_params=pltpu.CompilerParams(
            dimension_semantics=("parallel",)),
    )(x_cm, *weights)

    out = (out[..., :a_dim]
           .reshape(n_chunks, A, bb, a_dim)
           .transpose(0, 2, 1, 3)
           .reshape(B, A, a_dim))
    return out


if __name__ == "__main__":
    B, n_agents, s_dim, a_dim = 2, 4, 16, 8

    key = jax.random.PRNGKey(0)
    k_params, k_x = jax.random.split(key)
    params = make_actor_params(k_params, s_dim, a_dim)
    x = jax.random.normal(k_x, (B, n_agents, s_dim), jnp.float32)

    out = actor_forward(params, x, n_agents)
    out = jax.block_until_ready(out)

    assert out.shape == (B, n_agents, a_dim)
    assert bool(jnp.all(jnp.isfinite(out)))
    assert bool(jnp.all(jnp.abs(out) <= 1.0))  # tanh output activation
    print("KERNEL_OK")
</pallas_src>

<mosaic_0001>
module attributes {stable_mosaic.version = 11 : i64} {
  func.func @_actor_fused_kernel(%arg0: i32, %arg1: memref<1x8x16xf32, #tpu.memory_space<vmem>>, %arg2: memref<16x300xbf16, #tpu.memory_space<vmem>>, %arg3: memref<1x300xf32, #tpu.memory_space<vmem>>, %arg4: memref<300x300xbf16, #tpu.memory_space<vmem>>, %arg5: memref<1x300xf32, #tpu.memory_space<vmem>>, %arg6: memref<300x300xbf16, #tpu.memory_space<vmem>>, %arg7: memref<1x300xf32, #tpu.memory_space<vmem>>, %arg8: memref<300x150xbf16, #tpu.memory_space<vmem>>, %arg9: memref<1x150xf32, #tpu.memory_space<vmem>>, %arg10: memref<150x1024xbf16, #tpu.memory_space<vmem>>, %arg11: memref<256x1024xbf16, #tpu.memory_space<vmem>>, %arg12: memref<1x1024xf32, #tpu.memory_space<vmem>>, %arg13: memref<150x1024xbf16, #tpu.memory_space<vmem>>, %arg14: memref<256x1024xbf16, #tpu.memory_space<vmem>>, %arg15: memref<1x1024xf32, #tpu.memory_space<vmem>>, %arg16: memref<256x150xbf16, #tpu.memory_space<vmem>>, %arg17: memref<256x150xbf16, #tpu.memory_space<vmem>>, %arg18: memref<16x150xbf16, #tpu.memory_space<vmem>>, %arg19: memref<1x150xf32, #tpu.memory_space<vmem>>, %arg20: memref<150x150xbf16, #tpu.memory_space<vmem>>, %arg21: memref<1x150xf32, #tpu.memory_space<vmem>>, %arg22: memref<150x150xbf16, #tpu.memory_space<vmem>>, %arg23: memref<1x150xf32, #tpu.memory_space<vmem>>, %arg24: memref<150x128xbf16, #tpu.memory_space<vmem>>, %arg25: memref<1x128xf32, #tpu.memory_space<vmem>>, %arg26: memref<1x8x128xf32, #tpu.memory_space<vmem>>, %arg27: memref<8x256xf32, #tpu.memory_space<vmem>>, %arg28: memref<8x256xf32, #tpu.memory_space<vmem>>) attributes {dimension_semantics = [#tpu.dimension_semantics<parallel>], iteration_bounds = array<i64: 1>, scalar_prefetch = 0 : i64, scratch_operands = 2 : i64, tpu.core_type = #tpu.core_type<tc>, window_params = [{transform_indices = @transform_0, window_bounds = array<i64: 1, 8, 16>}, {pipeline_mode = #tpu.pipeline_mode<synchronous>, transform_indices = @transform_1, window_bounds = array<i64: 16, 300>}, {pipeline_mode = #tpu.pipeline_mode<synchronous>, transform_indices = @transform_2, window_bounds = array<i64: 1, 300>}, {pipeline_mode = #tpu.pipeline_mode<synchronous>, transform_indices = @transform_3, window_bounds = array<i64: 300, 300>}, {pipeline_mode = #tpu.pipeline_mode<synchronous>, transform_indices = @transform_4, window_bounds = array<i64: 1, 300>}, {pipeline_mode = #tpu.pipeline_mode<synchronous>, transform_indices = @transform_5, window_bounds = array<i64: 300, 300>}, {pipeline_mode = #tpu.pipeline_mode<synchronous>, transform_indices = @transform_6, window_bounds = array<i64: 1, 300>}, {pipeline_mode = #tpu.pipeline_mode<synchronous>, transform_indices = @transform_7, window_bounds = array<i64: 300, 150>}, {pipeline_mode = #tpu.pipeline_mode<synchronous>, transform_indices = @transform_8, window_bounds = array<i64: 1, 150>}, {pipeline_mode = #tpu.pipeline_mode<synchronous>, transform_indices = @transform_9, window_bounds = array<i64: 150, 1024>}, {pipeline_mode = #tpu.pipeline_mode<synchronous>, transform_indices = @transform_10, window_bounds = array<i64: 256, 1024>}, {pipeline_mode = #tpu.pipeline_mode<synchronous>, transform_indices = @transform_11, window_bounds = array<i64: 1, 1024>}, {pipeline_mode = #tpu.pipeline_mode<synchronous>, transform_indices = @transform_12, window_bounds = array<i64: 150, 1024>}, {pipeline_mode = #tpu.pipeline_mode<synchronous>, transform_indices = @transform_13, window_bounds = array<i64: 256, 1024>}, {pipeline_mode = #tpu.pipeline_mode<synchronous>, transform_indices = @transform_14, window_bounds = array<i64: 1, 1024>}, {pipeline_mode = #tpu.pipeline_mode<synchronous>, transform_indices = @transform_15, window_bounds = array<i64: 256, 150>}, {pipeline_mode = #tpu.pipeline_mode<synchronous>, transform_indices = @transform_16, window_bounds = array<i64: 256, 150>}, {pipeline_mode = #tpu.pipeline_mode<synchronous>, transform_indices = @transform_17, window_bounds = array<i64: 16, 150>}, {pipeline_mode = #tpu.pipeline_mode<synchronous>, transform_indices = @transform_18, window_bounds = array<i64: 1, 150>}, {pipeline_mode = #tpu.pipeline_mode<synchronous>, transform_indices = @transform_19, window_bounds = array<i64: 150, 150>}, {pipeline_mode = #tpu.pipeline_mode<synchronous>, transform_indices = @transform_20, window_bounds = array<i64: 1, 150>}, {pipeline_mode = #tpu.pipeline_mode<synchronous>, transform_indices = @transform_21, window_bounds = array<i64: 150, 150>}, {pipeline_mode = #tpu.pipeline_mode<synchronous>, transform_indices = @transform_22, window_bounds = array<i64: 1, 150>}, {pipeline_mode = #tpu.pipeline_mode<synchronous>, transform_indices = @transform_23, window_bounds = array<i64: 150, 128>}, {pipeline_mode = #tpu.pipeline_mode<synchronous>, transform_indices = @transform_24, window_bounds = array<i64: 1, 128>}, {transform_indices = @transform_25, window_bounds = array<i64: 1, 8, 128>}]} {
    %c0 = arith.constant 0 : index
    %c0_0 = arith.constant 0 : index
    %c0_1 = arith.constant 0 : index
    %0 = vector.load %arg1[%c0, %c0_0, %c0_1] : memref<1x8x16xf32, #tpu.memory_space<vmem>>, vector<1x8x16xf32>
    %1 = vector.shape_cast %0 : vector<1x8x16xf32> to vector<8x16xf32>
    %2 = arith.truncf %1 : vector<8x16xf32> to vector<8x16xbf16>
    %c0_2 = arith.constant 0 : index
    %c0_3 = arith.constant 0 : index
    %3 = vector.load %arg2[%c0_2, %c0_3] : memref<16x300xbf16, #tpu.memory_space<vmem>>, vector<16x300xbf16>
    %cst = arith.constant dense<0.000000e+00> : vector<8x300xf32>
    %4 = tpu.matmul %2, %3, %cst {dimension_numbers = #tpu.dot_dimension_numbers<[1], [0], [0], [1], [0, 0, 1, 1], [], []>} : vector<8x16xbf16>, vector<16x300xbf16>, vector<8x300xf32> -> vector<8x300xf32>
    %c0_4 = arith.constant 0 : index
    %c0_5 = arith.constant 0 : index
    %5 = vector.load %arg3[%c0_4, %c0_5] : memref<1x300xf32, #tpu.memory_space<vmem>>, vector<1x300xf32>
    %6 = vector.broadcast %5 : vector<1x300xf32> to vector<8x300xf32>
    %7 = arith.addf %4, %6 : vector<8x300xf32>
    %cst_6 = arith.constant 0.000000e+00 : f32
    %8 = vector.broadcast %cst_6 : f32 to vector<8x300xf32>
    %9 = arith.maximumf %7, %8 : vector<8x300xf32>
    %10 = arith.truncf %9 : vector<8x300xf32> to vector<8x300xbf16>
    %c0_7 = arith.constant 0 : index
    %c0_8 = arith.constant 0 : index
    %11 = vector.load %arg4[%c0_7, %c0_8] : memref<300x300xbf16, #tpu.memory_space<vmem>>, vector<300x300xbf16>
    %cst_9 = arith.constant dense<0.000000e+00> : vector<8x300xf32>
    %12 = tpu.matmul %10, %11, %cst_9 {dimension_numbers = #tpu.dot_dimension_numbers<[1], [0], [0], [1], [0, 0, 1, 1], [], []>} : vector<8x300xbf16>, vector<300x300xbf16>, vector<8x300xf32> -> vector<8x300xf32>
    %c0_10 = arith.constant 0 : index
    %c0_11 = arith.constant 0 : index
    %13 = vector.load %arg5[%c0_10, %c0_11] : memref<1x300xf32, #tpu.memory_space<vmem>>, vector<1x300xf32>
    %14 = vector.broadcast %13 : vector<1x300xf32> to vector<8x300xf32>
    %15 = arith.addf %12, %14 : vector<8x300xf32>
    %cst_12 = arith.constant 0.000000e+00 : f32
    %16 = vector.broadcast %cst_12 : f32 to vector<8x300xf32>
    %17 = arith.maximumf %15, %16 : vector<8x300xf32>
    %18 = arith.truncf %17 : vector<8x300xf32> to vector<8x300xbf16>
    %c0_13 = arith.constant 0 : index
    %c0_14 = arith.constant 0 : index
    %19 = vector.load %arg6[%c0_13, %c0_14] : memref<300x300xbf16, #tpu.memory_space<vmem>>, vector<300x300xbf16>
    %cst_15 = arith.constant dense<0.000000e+00> : vector<8x300xf32>
    %20 = tpu.matmul %18, %19, %cst_15 {dimension_numbers = #tpu.dot_dimension_numbers<[1], [0], [0], [1], [0, 0, 1, 1], [], []>} : vector<8x300xbf16>, vector<300x300xbf16>, vector<8x300xf32> -> vector<8x300xf32>
    %c0_16 = arith.constant 0 : index
    %c0_17 = arith.constant 0 : index
    %21 = vector.load %arg7[%c0_16, %c0_17] : memref<1x300xf32, #tpu.memory_space<vmem>>, vector<1x300xf32>
    %22 = vector.broadcast %21 : vector<1x300xf32> to vector<8x300xf32>
    %23 = arith.addf %20, %22 : vector<8x300xf32>
    %cst_18 = arith.constant 0.000000e+00 : f32
    %24 = vector.broadcast %cst_18 : f32 to vector<8x300xf32>
    %25 = arith.maximumf %23, %24 : vector<8x300xf32>
    %26 = arith.truncf %25 : vector<8x300xf32> to vector<8x300xbf16>
    %c0_19 = arith.constant 0 : index
    %c0_20 = arith.constant 0 : index
    %27 = vector.load %arg8[%c0_19, %c0_20] : memref<300x150xbf16, #tpu.memory_space<vmem>>, vector<300x150xbf16>
    %cst_21 = arith.constant dense<0.000000e+00> : vector<8x150xf32>
    %28 = tpu.matmul %26, %27, %cst_21 {dimension_numbers = #tpu.dot_dimension_numbers<[1], [0], [0], [1], [0, 0, 1, 1], [], []>} : vector<8x300xbf16>, vector<300x150xbf16>, vector<8x150xf32> -> vector<8x150xf32>
    %c0_22 = arith.constant 0 : index
    %c0_23 = arith.constant 0 : index
    %29 = vector.load %arg9[%c0_22, %c0_23] : memref<1x150xf32, #tpu.memory_space<vmem>>, vector<1x150xf32>
    %30 = vector.broadcast %29 : vector<1x150xf32> to vector<8x150xf32>
    %31 = arith.addf %28, %30 : vector<8x150xf32>
    %32 = arith.truncf %31 : vector<8x150xf32> to vector<8x150xbf16>
    %c0_24 = arith.constant 0 : index
    %c0_25 = arith.constant 0 : index
    %33 = vector.load %arg10[%c0_24, %c0_25] : memref<150x1024xbf16, #tpu.memory_space<vmem>>, vector<150x1024xbf16>
    %cst_26 = arith.constant dense<0.000000e+00> : vector<8x1024xf32>
    %34 = tpu.matmul %32, %33, %cst_26 {dimension_numbers = #tpu.dot_dimension_numbers<[1], [0], [0], [1], [0, 0, 1, 1], [], []>} : vector<8x150xbf16>, vector<150x1024xbf16>, vector<8x1024xf32> -> vector<8x1024xf32>
    %c0_27 = arith.constant 0 : index
    %c0_28 = arith.constant 0 : index
    %35 = vector.load %arg12[%c0_27, %c0_28] : memref<1x1024xf32, #tpu.memory_space<vmem>>, vector<1x1024xf32>
    %36 = vector.broadcast %35 : vector<1x1024xf32> to vector<8x1024xf32>
    %37 = arith.addf %34, %36 : vector<8x1024xf32>
    %38 = arith.truncf %31 : vector<8x150xf32> to vector<8x150xbf16>
    %c0_29 = arith.constant 0 : index
    %c0_30 = arith.constant 0 : index
    %39 = vector.load %arg13[%c0_29, %c0_30] : memref<150x1024xbf16, #tpu.memory_space<vmem>>, vector<150x1024xbf16>
    %cst_31 = arith.constant dense<0.000000e+00> : vector<8x1024xf32>
    %40 = tpu.matmul %38, %39, %cst_31 {dimension_numbers = #tpu.dot_dimension_numbers<[1], [0], [0], [1], [0, 0, 1, 1], [], []>} : vector<8x150xbf16>, vector<150x1024xbf16>, vector<8x1024xf32> -> vector<8x1024xf32>
    %c0_32 = arith.constant 0 : index
    %c0_33 = arith.constant 0 : index
    %41 = vector.load %arg15[%c0_32, %c0_33] : memref<1x1024xf32, #tpu.memory_space<vmem>>, vector<1x1024xf32>
    %42 = vector.broadcast %41 : vector<1x1024xf32> to vector<8x1024xf32>
    %43 = arith.addf %40, %42 : vector<8x1024xf32>
    %cst_34 = arith.constant 0.000000e+00 : f32
    %44 = vector.broadcast %cst_34 : f32 to vector<2x256xf32>
    %cst_35 = arith.constant 0.000000e+00 : f32
    %45 = vector.broadcast %cst_35 : f32 to vector<2x256xf32>
    %cst_36 = arith.constant 0.000000e+00 : f32
    %46 = vector.broadcast %cst_36 : f32 to vector<2x256xf32>
    %cst_37 = arith.constant 0.000000e+00 : f32
    %47 = vector.broadcast %cst_37 : f32 to vector<2x256xf32>
    %48 = vector.extract_strided_slice %37 {offsets = [0, 0], sizes = [2, 1024], strides = [1, 1]} : vector<8x1024xf32> to vector<2x1024xf32>
    %49 = arith.truncf %44 : vector<2x256xf32> to vector<2x256xbf16>
    %c0_38 = arith.constant 0 : index
    %c0_39 = arith.constant 0 : index
    %50 = vector.load %arg11[%c0_38, %c0_39] : memref<256x1024xbf16, #tpu.memory_space<vmem>>, vector<256x1024xbf16>
    %cst_40 = arith.constant dense<0.000000e+00> : vector<2x1024xf32>
    %51 = tpu.matmul %49, %50, %cst_40 {dimension_numbers = #tpu.dot_dimension_numbers<[1], [0], [0], [1], [0, 0, 1, 1], [], []>} : vector<2x256xbf16>, vector<256x1024xbf16>, vector<2x1024xf32> -> vector<2x1024xf32>
    %52 = arith.addf %48, %51 : vector<2x1024xf32>
    %53 = vector.extract_strided_slice %43 {offsets = [6, 0], sizes = [2, 1024], strides = [1, 1]} : vector<8x1024xf32> to vector<2x1024xf32>
    %54 = arith.truncf %46 : vector<2x256xf32> to vector<2x256xbf16>
    %c0_41 = arith.constant 0 : index
    %c0_42 = arith.constant 0 : index
    %55 = vector.load %arg14[%c0_41, %c0_42] : memref<256x1024xbf16, #tpu.memory_space<vmem>>, vector<256x1024xbf16>
    %cst_43 = arith.constant dense<0.000000e+00> : vector<2x1024xf32>
    %56 = tpu.matmul %54, %55, %cst_43 {dimension_numbers = #tpu.dot_dimension_numbers<[1], [0], [0], [1], [0, 0, 1, 1], [], []>} : vector<2x256xbf16>, vector<256x1024xbf16>, vector<2x1024xf32> -> vector<2x1024xf32>
    %57 = arith.addf %53, %56 : vector<2x1024xf32>
    %58 = vector.extract_strided_slice %52 {offsets = [0, 0], sizes = [2, 256], strides = [1, 1]} : vector<2x1024xf32> to vector<2x256xf32>
    %cst_44 = arith.constant 5.000000e-01 : f32
    %59 = vector.broadcast %cst_44 : f32 to vector<2x256xf32>
    %60 = arith.mulf %59, %58 : vector<2x256xf32>
    %61 = math.tanh %60 : vector<2x256xf32>
    %cst_45 = arith.constant 1.000000e+00 : f32
    %62 = vector.broadcast %cst_45 : f32 to vector<2x256xf32>
    %63 = arith.addf %61, %62 : vector<2x256xf32>
    %cst_46 = arith.constant 5.000000e-01 : f32
    %64 = vector.broadcast %cst_46 : f32 to vector<2x256xf32>
    %65 = arith.mulf %64, %63 : vector<2x256xf32>
    %66 = vector.extract_strided_slice %52 {offsets = [0, 256], sizes = [2, 256], strides = [1, 1]} : vector<2x1024xf32> to vector<2x256xf32>
    %cst_47 = arith.constant 5.000000e-01 : f32
    %67 = vector.broadcast %cst_47 : f32 to vector<2x256xf32>
    %68 = arith.mulf %67, %66 : vector<2x256xf32>
    %69 = math.tanh %68 : vector<2x256xf32>
    %cst_48 = arith.constant 1.000000e+00 : f32
    %70 = vector.broadcast %cst_48 : f32 to vector<2x256xf32>
    %71 = arith.addf %69, %70 : vector<2x256xf32>
    %cst_49 = arith.constant 5.000000e-01 : f32
    %72 = vector.broadcast %cst_49 : f32 to vector<2x256xf32>
    %73 = arith.mulf %72, %71 : vector<2x256xf32>
    %74 = vector.extract_strided_slice %52 {offsets = [0, 512], sizes = [2, 256], strides = [1, 1]} : vector<2x1024xf32> to vector<2x256xf32>
    %75 = math.tanh %74 : vector<2x256xf32>
    %76 = vector.extract_strided_slice %52 {offsets = [0, 768], sizes = [2, 256], strides = [1, 1]} : vector<2x1024xf32> to vector<2x256xf32>
    %cst_50 = arith.constant 5.000000e-01 : f32
    %77 = vector.broadcast %cst_50 : f32 to vector<2x256xf32>
    %78 = arith.mulf %77, %76 : vector<2x256xf32>
    %79 = math.tanh %78 : vector<2x256xf32>
    %cst_51 = arith.constant 1.000000e+00 : f32
    %80 = vector.broadcast %cst_51 : f32 to vector<2x256xf32>
    %81 = arith.addf %79, %80 : vector<2x256xf32>
    %cst_52 = arith.constant 5.000000e-01 : f32
    %82 = vector.broadcast %cst_52 : f32 to vector<2x256xf32>
    %83 = arith.mulf %82, %81 : vector<2x256xf32>
    %84 = arith.mulf %73, %45 : vector<2x256xf32>
    %85 = arith.mulf %65, %75 : vector<2x256xf32>
    %86 = arith.addf %84, %85 : vector<2x256xf32>
    %87 = math.tanh %86 : vector<2x256xf32>
    %88 = arith.mulf %83, %87 : vector<2x256xf32>
    %c0_53 = arith.constant 0 : index
    %c0_54 = arith.constant 0 : index
    %89 = vector.load %arg27[%c0_53, %c0_54] : memref<8x256xf32, #tpu.memory_space<vmem>>, vector<2x256xf32>
    tpu.vector_store %arg27[%c0_53, %c0_54], %88 {strides = array<i32>} : memref<8x256xf32, #tpu.memory_space<vmem>>, vector<2x256xf32>,
    %90 = vector.extract_strided_slice %57 {offsets = [0, 0], sizes = [2, 256], strides = [1, 1]} : vector<2x1024xf32> to vector<2x256xf32>
    %cst_55 = arith.constant 5.000000e-01 : f32
    %91 = vector.broadcast %cst_55 : f32 to vector<2x256xf32>
    %92 = arith.mulf %91, %90 : vector<2x256xf32>
    %93 = math.tanh %92 : vector<2x256xf32>
    %cst_56 = arith.constant 1.000000e+00 : f32
    %94 = vector.broadcast %cst_56 : f32 to vector<2x256xf32>
    %95 = arith.addf %93, %94 : vector<2x256xf32>
    %cst_57 = arith.constant 5.000000e-01 : f32
    %96 = vector.broadcast %cst_57 : f32 to vector<2x256xf32>
    %97 = arith.mulf %96, %95 : vector<2x256xf32>
    %98 = vector.extract_strided_slice %57 {offsets = [0, 256], sizes = [2, 256], strides = [1, 1]} : vector<2x1024xf32> to vector<2x256xf32>
    %cst_58 = arith.constant 5.000000e-01 : f32
    %99 = vector.broadcast %cst_58 : f32 to vector<2x256xf32>
    %100 = arith.mulf %99, %98 : vector<2x256xf32>
    %101 = math.tanh %100 : vector<2x256xf32>
    %cst_59 = arith.constant 1.000000e+00 : f32
    %102 = vector.broadcast %cst_59 : f32 to vector<2x256xf32>
    %103 = arith.addf %101, %102 : vector<2x256xf32>
    %cst_60 = arith.constant 5.000000e-01 : f32
    %104 = vector.broadcast %cst_60 : f32 to vector<2x256xf32>
    %105 = arith.mulf %104, %103 : vector<2x256xf32>
    %106 = vector.extract_strided_slice %57 {offsets = [0, 512], sizes = [2, 256], strides = [1, 1]} : vector<2x1024xf32> to vector<2x256xf32>
    %107 = math.tanh %106 : vector<2x256xf32>
    %108 = vector.extract_strided_slice %57 {offsets = [0, 768], sizes = [2, 256], strides = [1, 1]} : vector<2x1024xf32> to vector<2x256xf32>
    %cst_61 = arith.constant 5.000000e-01 : f32
    %109 = vector.broadcast %cst_61 : f32 to vector<2x256xf32>
    %110 = arith.mulf %109, %108 : vector<2x256xf32>
    %111 = math.tanh %110 : vector<2x256xf32>
    %cst_62 = arith.constant 1.000000e+00 : f32
    %112 = vector.broadcast %cst_62 : f32 to vector<2x256xf32>
    %113 = arith.addf %111, %112 : vector<2x256xf32>
    %cst_63 = arith.constant 5.000000e-01 : f32
    %114 = vector.broadcast %cst_63 : f32 to vector<2x256xf32>
    %115 = arith.mulf %114, %113 : vector<2x256xf32>
    %116 = arith.mulf %105, %47 : vector<2x256xf32>
    %117 = arith.mulf %97, %107 : vector<2x256xf32>
    %118 = arith.addf %116, %117 : vector<2x256xf32>
    %119 = math.tanh %118 : vector<2x256xf32>
    %120 = arith.mulf %115, %119 : vector<2x256xf32>
    %c6 = arith.constant 6 : index
    %c0_64 = arith.constant 0 : index
    %121 = vector.load %arg28[%c6, %c0_64] : memref<8x256xf32, #tpu.memory_space<vmem>>, vector<2x256xf32>
    tpu.vector_store %arg28[%c6, %c0_64], %120 {strides = array<i32>} : memref<8x256xf32, #tpu.memory_space<vmem>>, vector<2x256xf32>,
    %122 = vector.extract_strided_slice %37 {offsets = [2, 0], sizes = [2, 1024], strides = [1, 1]} : vector<8x1024xf32> to vector<2x1024xf32>
    %123 = arith.truncf %88 : vector<2x256xf32> to vector<2x256xbf16>
    %c0_65 = arith.constant 0 : index
    %c0_66 = arith.constant 0 : index
    %124 = vector.load %arg11[%c0_65, %c0_66] : memref<256x1024xbf16, #tpu.memory_space<vmem>>, vector<256x1024xbf16>
    %cst_67 = arith.constant dense<0.000000e+00> : vector<2x1024xf32>
    %125 = tpu.matmul %123, %124, %cst_67 {dimension_numbers = #tpu.dot_dimension_numbers<[1], [0], [0], [1], [0, 0, 1, 1], [], []>} : vector<2x256xbf16>, vector<256x1024xbf16>, vector<2x1024xf32> -> vector<2x1024xf32>
    %126 = arith.addf %122, %125 : vector<2x1024xf32>
    %127 = vector.extract_strided_slice %43 {offsets = [4, 0], sizes = [2, 1024], strides = [1, 1]} : vector<8x1024xf32> to vector<2x1024xf32>
    %128 = arith.truncf %120 : vector<2x256xf32> to vector<2x256xbf16>
    %c0_68 = arith.constant 0 : index
    %c0_69 = arith.constant 0 : index
    %129 = vector.load %arg14[%c0_68, %c0_69] : memref<256x1024xbf16, #tpu.memory_space<vmem>>, vector<256x1024xbf16>
    %cst_70 = arith.constant dense<0.000000e+00> : vector<2x1024xf32>
    %130 = tpu.matmul %128, %129, %cst_70 {dimension_numbers = #tpu.dot_dimension_numbers<[1], [0], [0], [1], [0, 0, 1, 1], [], []>} : vector<2x256xbf16>, vector<256x1024xbf16>, vector<2x1024xf32> -> vector<2x1024xf32>
    %131 = arith.addf %127, %130 : vector<2x1024xf32>
    %132 = vector.extract_strided_slice %126 {offsets = [0, 0], sizes = [2, 256], strides = [1, 1]} : vector<2x1024xf32> to vector<2x256xf32>
    %cst_71 = arith.constant 5.000000e-01 : f32
    %133 = vector.broadcast %cst_71 : f32 to vector<2x256xf32>
    %134 = arith.mulf %133, %132 : vector<2x256xf32>
    %135 = math.tanh %134 : vector<2x256xf32>
    %cst_72 = arith.constant 1.000000e+00 : f32
    %136 = vector.broadcast %cst_72 : f32 to vector<2x256xf32>
    %137 = arith.addf %135, %136 : vector<2x256xf32>
    %cst_73 = arith.constant 5.000000e-01 : f32
    %138 = vector.broadcast %cst_73 : f32 to vector<2x256xf32>
    %139 = arith.mulf %138, %137 : vector<2x256xf32>
    %140 = vector.extract_strided_slice %126 {offsets = [0, 256], sizes = [2, 256], strides = [1, 1]} : vector<2x1024xf32> to vector<2x256xf32>
    %cst_74 = arith.constant 5.000000e-01 : f32
    %141 = vector.broadcast %cst_74 : f32 to vector<2x256xf32>
    %142 = arith.mulf %141, %140 : vector<2x256xf32>
    %143 = math.tanh %142 : vector<2x256xf32>
    %cst_75 = arith.constant 1.000000e+00 : f32
    %144 = vector.broadcast %cst_75 : f32 to vector<2x256xf32>
    %145 = arith.addf %143, %144 : vector<2x256xf32>
    %cst_76 = arith.constant 5.000000e-01 : f32
    %146 = vector.broadcast %cst_76 : f32 to vector<2x256xf32>
    %147 = arith.mulf %146, %145 : vector<2x256xf32>
    %148 = vector.extract_strided_slice %126 {offsets = [0, 512], sizes = [2, 256], strides = [1, 1]} : vector<2x1024xf32> to vector<2x256xf32>
    %149 = math.tanh %148 : vector<2x256xf32>
    %150 = vector.extract_strided_slice %126 {offsets = [0, 768], sizes = [2, 256], strides = [1, 1]} : vector<2x1024xf32> to vector<2x256xf32>
    %cst_77 = arith.constant 5.000000e-01 : f32
    %151 = vector.broadcast %cst_77 : f32 to vector<2x256xf32>
    %152 = arith.mulf %151, %150 : vector<2x256xf32>
    %153 = math.tanh %152 : vector<2x256xf32>
    %cst_78 = arith.constant 1.000000e+00 : f32
    %154 = vector.broadcast %cst_78 : f32 to vector<2x256xf32>
    %155 = arith.addf %153, %154 : vector<2x256xf32>
    %cst_79 = arith.constant 5.000000e-01 : f32
    %156 = vector.broadcast %cst_79 : f32 to vector<2x256xf32>
    %157 = arith.mulf %156, %155 : vector<2x256xf32>
    %158 = arith.mulf %147, %86 : vector<2x256xf32>
    %159 = arith.mulf %139, %149 : vector<2x256xf32>
    %160 = arith.addf %158, %159 : vector<2x256xf32>
    %161 = math.tanh %160 : vector<2x256xf32>
    %162 = arith.mulf %157, %161 : vector<2x256xf32>
    %c2 = arith.constant 2 : index
    %c0_80 = arith.constant 0 : index
    %163 = vector.load %arg27[%c2, %c0_80] : memref<8x256xf32, #tpu.memory_space<vmem>>, vector<2x256xf32>
    tpu.vector_store %arg27[%c2, %c0_80], %162 {strides = array<i32>} : memref<8x256xf32, #tpu.memory_space<vmem>>, vector<2x256xf32>,
    %164 = vector.extract_strided_slice %131 {offsets = [0, 0], sizes = [2, 256], strides = [1, 1]} : vector<2x1024xf32> to vector<2x256xf32>
    %cst_81 = arith.constant 5.000000e-01 : f32
    %165 = vector.broadcast %cst_81 : f32 to vector<2x256xf32>
    %166 = arith.mulf %165, %164 : vector<2x256xf32>
    %167 = math.tanh %166 : vector<2x256xf32>
    %cst_82 = arith.constant 1.000000e+00 : f32
    %168 = vector.broadcast %cst_82 : f32 to vector<2x256xf32>
    %169 = arith.addf %167, %168 : vector<2x256xf32>
    %cst_83 = arith.constant 5.000000e-01 : f32
    %170 = vector.broadcast %cst_83 : f32 to vector<2x256xf32>
    %171 = arith.mulf %170, %169 : vector<2x256xf32>
    %172 = vector.extract_strided_slice %131 {offsets = [0, 256], sizes = [2, 256], strides = [1, 1]} : vector<2x1024xf32> to vector<2x256xf32>
    %cst_84 = arith.constant 5.000000e-01 : f32
    %173 = vector.broadcast %cst_84 : f32 to vector<2x256xf32>
    %174 = arith.mulf %173, %172 : vector<2x256xf32>
    %175 = math.tanh %174 : vector<2x256xf32>
    %cst_85 = arith.constant 1.000000e+00 : f32
    %176 = vector.broadcast %cst_85 : f32 to vector<2x256xf32>
    %177 = arith.addf %175, %176 : vector<2x256xf32>
    %cst_86 = arith.constant 5.000000e-01 : f32
    %178 = vector.broadcast %cst_86 : f32 to vector<2x256xf32>
    %179 = arith.mulf %178, %177 : vector<2x256xf32>
    %180 = vector.extract_strided_slice %131 {offsets = [0, 512], sizes = [2, 256], strides = [1, 1]} : vector<2x1024xf32> to vector<2x256xf32>
    %181 = math.tanh %180 : vector<2x256xf32>
    %182 = vector.extract_strided_slice %131 {offsets = [0, 768], sizes = [2, 256], strides = [1, 1]} : vector<2x1024xf32> to vector<2x256xf32>
    %cst_87 = arith.constant 5.000000e-01 : f32
    %183 = vector.broadcast %cst_87 : f32 to vector<2x256xf32>
    %184 = arith.mulf %183, %182 : vector<2x256xf32>
    %185 = math.tanh %184 : vector<2x256xf32>
    %cst_88 = arith.constant 1.000000e+00 : f32
    %186 = vector.broadcast %cst_88 : f32 to vector<2x256xf32>
    %187 = arith.addf %185, %186 : vector<2x256xf32>
    %cst_89 = arith.constant 5.000000e-01 : f32
    %188 = vector.broadcast %cst_89 : f32 to vector<2x256xf32>
    %189 = arith.mulf %188, %187 : vector<2x256xf32>
    %190 = arith.mulf %179, %118 : vector<2x256xf32>
    %191 = arith.mulf %171, %181 : vector<2x256xf32>
    %192 = arith.addf %190, %191 : vector<2x256xf32>
    %193 = math.tanh %192 : vector<2x256xf32>
    %194 = arith.mulf %189, %193 : vector<2x256xf32>
    %c4 = arith.constant 4 : index
    %c0_90 = arith.constant 0 : index
    %195 = vector.load %arg28[%c4, %c0_90] : memref<8x256xf32, #tpu.memory_space<vmem>>, vector<2x256xf32>
    tpu.vector_store %arg28[%c4, %c0_90], %194 {strides = array<i32>} : memref<8x256xf32, #tpu.memory_space<vmem>>, vector<2x256xf32>,
    %196 = vector.extract_strided_slice %37 {offsets = [4, 0], sizes = [2, 1024], strides = [1, 1]} : vector<8x1024xf32> to vector<2x1024xf32>
    %197 = arith.truncf %162 : vector<2x256xf32> to vector<2x256xbf16>
    %c0_91 = arith.constant 0 : index
    %c0_92 = arith.constant 0 : index
    %198 = vector.load %arg11[%c0_91, %c0_92] : memref<256x1024xbf16, #tpu.memory_space<vmem>>, vector<256x1024xbf16>
    %cst_93 = arith.constant dense<0.000000e+00> : vector<2x1024xf32>
    %199 = tpu.matmul %197, %198, %cst_93 {dimension_numbers = #tpu.dot_dimension_numbers<[1], [0], [0], [1], [0, 0, 1, 1], [], []>} : vector<2x256xbf16>, vector<256x1024xbf16>, vector<2x1024xf32> -> vector<2x1024xf32>
    %200 = arith.addf %196, %199 : vector<2x1024xf32>
    %201 = vector.extract_strided_slice %43 {offsets = [2, 0], sizes = [2, 1024], strides = [1, 1]} : vector<8x1024xf32> to vector<2x1024xf32>
    %202 = arith.truncf %194 : vector<2x256xf32> to vector<2x256xbf16>
    %c0_94 = arith.constant 0 : index
    %c0_95 = arith.constant 0 : index
    %203 = vector.load %arg14[%c0_94, %c0_95] : memref<256x1024xbf16, #tpu.memory_space<vmem>>, vector<256x1024xbf16>
    %cst_96 = arith.constant dense<0.000000e+00> : vector<2x1024xf32>
    %204 = tpu.matmul %202, %203, %cst_96 {dimension_numbers = #tpu.dot_dimension_numbers<[1], [0], [0], [1], [0, 0, 1, 1], [], []>} : vector<2x256xbf16>, vector<256x1024xbf16>, vector<2x1024xf32> -> vector<2x1024xf32>
    %205 = arith.addf %201, %204 : vector<2x1024xf32>
    %206 = vector.extract_strided_slice %200 {offsets = [0, 0], sizes = [2, 256], strides = [1, 1]} : vector<2x1024xf32> to vector<2x256xf32>
    %cst_97 = arith.constant 5.000000e-01 : f32
    %207 = vector.broadcast %cst_97 : f32 to vector<2x256xf32>
    %208 = arith.mulf %207, %206 : vector<2x256xf32>
    %209 = math.tanh %208 : vector<2x256xf32>
    %cst_98 = arith.constant 1.000000e+00 : f32
    %210 = vector.broadcast %cst_98 : f32 to vector<2x256xf32>
    %211 = arith.addf %209, %210 : vector<2x256xf32>
    %cst_99 = arith.constant 5.000000e-01 : f32
    %212 = vector.broadcast %cst_99 : f32 to vector<2x256xf32>
    %213 = arith.mulf %212, %211 : vector<2x256xf32>
    %214 = vector.extract_strided_slice %200 {offsets = [0, 256], sizes = [2, 256], strides = [1, 1]} : vector<2x1024xf32> to vector<2x256xf32>
    %cst_100 = arith.constant 5.000000e-01 : f32
    %215 = vector.broadcast %cst_100 : f32 to vector<2x256xf32>
    %216 = arith.mulf %215, %214 : vector<2x256xf32>
    %217 = math.tanh %216 : vector<2x256xf32>
    %cst_101 = arith.constant 1.000000e+00 : f32
    %218 = vector.broadcast %cst_101 : f32 to vector<2x256xf32>
    %219 = arith.addf %217, %218 : vector<2x256xf32>
    %cst_102 = arith.constant 5.000000e-01 : f32
    %220 = vector.broadcast %cst_102 : f32 to vector<2x256xf32>
    %221 = arith.mulf %220, %219 : vector<2x256xf32>
    %222 = vector.extract_strided_slice %200 {offsets = [0, 512], sizes = [2, 256], strides = [1, 1]} : vector<2x1024xf32> to vector<2x256xf32>
    %223 = math.tanh %222 : vector<2x256xf32>
    %224 = vector.extract_strided_slice %200 {offsets = [0, 768], sizes = [2, 256], strides = [1, 1]} : vector<2x1024xf32> to vector<2x256xf32>
    %cst_103 = arith.constant 5.000000e-01 : f32
    %225 = vector.broadcast %cst_103 : f32 to vector<2x256xf32>
    %226 = arith.mulf %225, %224 : vector<2x256xf32>
    %227 = math.tanh %226 : vector<2x256xf32>
    %cst_104 = arith.constant 1.000000e+00 : f32
    %228 = vector.broadcast %cst_104 : f32 to vector<2x256xf32>
    %229 = arith.addf %227, %228 : vector<2x256xf32>
    %cst_105 = arith.constant 5.000000e-01 : f32
    %230 = vector.broadcast %cst_105 : f32 to vector<2x256xf32>
    %231 = arith.mulf %230, %229 : vector<2x256xf32>
    %232 = arith.mulf %221, %160 : vector<2x256xf32>
    %233 = arith.mulf %213, %223 : vector<2x256xf32>
    %234 = arith.addf %232, %233 : vector<2x256xf32>
    %235 = math.tanh %234 : vector<2x256xf32>
    %236 = arith.mulf %231, %235 : vector<2x256xf32>
    %c4_106 = arith.constant 4 : index
    %c0_107 = arith.constant 0 : index
    %237 = vector.load %arg27[%c4_106, %c0_107] : memref<8x256xf32, #tpu.memory_space<vmem>>, vector<2x256xf32>
    tpu.vector_store %arg27[%c4_106, %c0_107], %236 {strides = array<i32>} : memref<8x256xf32, #tpu.memory_space<vmem>>, vector<2x256xf32>,
    %238 = vector.extract_strided_slice %205 {offsets = [0, 0], sizes = [2, 256], strides = [1, 1]} : vector<2x1024xf32> to vector<2x256xf32>
    %cst_108 = arith.constant 5.000000e-01 : f32
    %239 = vector.broadcast %cst_108 : f32 to vector<2x256xf32>
    %240 = arith.mulf %239, %238 : vector<2x256xf32>
    %241 = math.tanh %240 : vector<2x256xf32>
    %cst_109 = arith.constant 1.000000e+00 : f32
    %242 = vector.broadcast %cst_109 : f32 to vector<2x256xf32>
    %243 = arith.addf %241, %242 : vector<2x256xf32>
    %cst_110 = arith.constant 5.000000e-01 : f32
    %244 = vector.broadcast %cst_110 : f32 to vector<2x256xf32>
    %245 = arith.mulf %244, %243 : vector<2x256xf32>
    %246 = vector.extract_strided_slice %205 {offsets = [0, 256], sizes = [2, 256], strides = [1, 1]} : vector<2x1024xf32> to vector<2x256xf32>
    %cst_111 = arith.constant 5.000000e-01 : f32
    %247 = vector.broadcast %cst_111 : f32 to vector<2x256xf32>
    %248 = arith.mulf %247, %246 : vector<2x256xf32>
    %249 = math.tanh %248 : vector<2x256xf32>
    %cst_112 = arith.constant 1.000000e+00 : f32
    %250 = vector.broadcast %cst_112 : f32 to vector<2x256xf32>
    %251 = arith.addf %249, %250 : vector<2x256xf32>
    %cst_113 = arith.constant 5.000000e-01 : f32
    %252 = vector.broadcast %cst_113 : f32 to vector<2x256xf32>
    %253 = arith.mulf %252, %251 : vector<2x256xf32>
    %254 = vector.extract_strided_slice %205 {offsets = [0, 512], sizes = [2, 256], strides = [1, 1]} : vector<2x1024xf32> to vector<2x256xf32>
    %255 = math.tanh %254 : vector<2x256xf32>
    %256 = vector.extract_strided_slice %205 {offsets = [0, 768], sizes = [2, 256], strides = [1, 1]} : vector<2x1024xf32> to vector<2x256xf32>
    %cst_114 = arith.constant 5.000000e-01 : f32
    %257 = vector.broadcast %cst_114 : f32 to vector<2x256xf32>
    %258 = arith.mulf %257, %256 : vector<2x256xf32>
    %259 = math.tanh %258 : vector<2x256xf32>
    %cst_115 = arith.constant 1.000000e+00 : f32
    %260 = vector.broadcast %cst_115 : f32 to vector<2x256xf32>
    %261 = arith.addf %259, %260 : vector<2x256xf32>
    %cst_116 = arith.constant 5.000000e-01 : f32
    %262 = vector.broadcast %cst_116 : f32 to vector<2x256xf32>
    %263 = arith.mulf %262, %261 : vector<2x256xf32>
    %264 = arith.mulf %253, %192 : vector<2x256xf32>
    %265 = arith.mulf %245, %255 : vector<2x256xf32>
    %266 = arith.addf %264, %265 : vector<2x256xf32>
    %267 = math.tanh %266 : vector<2x256xf32>
    %268 = arith.mulf %263, %267 : vector<2x256xf32>
    %c2_117 = arith.constant 2 : index
    %c0_118 = arith.constant 0 : index
    %269 = vector.load %arg28[%c2_117, %c0_118] : memref<8x256xf32, #tpu.memory_space<vmem>>, vector<2x256xf32>
    tpu.vector_store %arg28[%c2_117, %c0_118], %268 {strides = array<i32>} : memref<8x256xf32, #tpu.memory_space<vmem>>, vector<2x256xf32>,
    %270 = vector.extract_strided_slice %37 {offsets = [6, 0], sizes = [2, 1024], strides = [1, 1]} : vector<8x1024xf32> to vector<2x1024xf32>
    %271 = arith.truncf %236 : vector<2x256xf32> to vector<2x256xbf16>
    %c0_119 = arith.constant 0 : index
    %c0_120 = arith.constant 0 : index
    %272 = vector.load %arg11[%c0_119, %c0_120] : memref<256x1024xbf16, #tpu.memory_space<vmem>>, vector<256x1024xbf16>
    %cst_121 = arith.constant dense<0.000000e+00> : vector<2x1024xf32>
    %273 = tpu.matmul %271, %272, %cst_121 {dimension_numbers = #tpu.dot_dimension_numbers<[1], [0], [0], [1], [0, 0, 1, 1], [], []>} : vector<2x256xbf16>, vector<256x1024xbf16>, vector<2x1024xf32> -> vector<2x1024xf32>
    %274 = arith.addf %270, %273 : vector<2x1024xf32>
    %275 = vector.extract_strided_slice %43 {offsets = [0, 0], sizes = [2, 1024], strides = [1, 1]} : vector<8x1024xf32> to vector<2x1024xf32>
    %276 = arith.truncf %268 : vector<2x256xf32> to vector<2x256xbf16>
    %c0_122 = arith.constant 0 : index
    %c0_123 = arith.constant 0 : index
    %277 = vector.load %arg14[%c0_122, %c0_123] : memref<256x1024xbf16, #tpu.memory_space<vmem>>, vector<256x1024xbf16>
    %cst_124 = arith.constant dense<0.000000e+00> : vector<2x1024xf32>
    %278 = tpu.matmul %276, %277, %cst_124 {dimension_numbers = #tpu.dot_dimension_numbers<[1], [0], [0], [1], [0, 0, 1, 1], [], []>} : vector<2x256xbf16>, vector<256x1024xbf16>, vector<2x1024xf32> -> vector<2x1024xf32>
    %279 = arith.addf %275, %278 : vector<2x1024xf32>
    %280 = vector.extract_strided_slice %274 {offsets = [0, 0], sizes = [2, 256], strides = [1, 1]} : vector<2x1024xf32> to vector<2x256xf32>
    %cst_125 = arith.constant 5.000000e-01 : f32
    %281 = vector.broadcast %cst_125 : f32 to vector<2x256xf32>
    %282 = arith.mulf %281, %280 : vector<2x256xf32>
    %283 = math.tanh %282 : vector<2x256xf32>
    %cst_126 = arith.constant 1.000000e+00 : f32
    %284 = vector.broadcast %cst_126 : f32 to vector<2x256xf32>
    %285 = arith.addf %283, %284 : vector<2x256xf32>
    %cst_127 = arith.constant 5.000000e-01 : f32
    %286 = vector.broadcast %cst_127 : f32 to vector<2x256xf32>
    %287 = arith.mulf %286, %285 : vector<2x256xf32>
    %288 = vector.extract_strided_slice %274 {offsets = [0, 256], sizes = [2, 256], strides = [1, 1]} : vector<2x1024xf32> to vector<2x256xf32>
    %cst_128 = arith.constant 5.000000e-01 : f32
    %289 = vector.broadcast %cst_128 : f32 to vector<2x256xf32>
    %290 = arith.mulf %289, %288 : vector<2x256xf32>
    %291 = math.tanh %290 : vector<2x256xf32>
    %cst_129 = arith.constant 1.000000e+00 : f32
    %292 = vector.broadcast %cst_129 : f32 to vector<2x256xf32>
    %293 = arith.addf %291, %292 : vector<2x256xf32>
    %cst_130 = arith.constant 5.000000e-01 : f32
    %294 = vector.broadcast %cst_130 : f32 to vector<2x256xf32>
    %295 = arith.mulf %294, %293 : vector<2x256xf32>
    %296 = vector.extract_strided_slice %274 {offsets = [0, 512], sizes = [2, 256], strides = [1, 1]} : vector<2x1024xf32> to vector<2x256xf32>
    %297 = math.tanh %296 : vector<2x256xf32>
    %298 = vector.extract_strided_slice %274 {offsets = [0, 768], sizes = [2, 256], strides = [1, 1]} : vector<2x1024xf32> to vector<2x256xf32>
    %cst_131 = arith.constant 5.000000e-01 : f32
    %299 = vector.broadcast %cst_131 : f32 to vector<2x256xf32>
    %300 = arith.mulf %299, %298 : vector<2x256xf32>
    %301 = math.tanh %300 : vector<2x256xf32>
    %cst_132 = arith.constant 1.000000e+00 : f32
    %302 = vector.broadcast %cst_132 : f32 to vector<2x256xf32>
    %303 = arith.addf %301, %302 : vector<2x256xf32>
    %cst_133 = arith.constant 5.000000e-01 : f32
    %304 = vector.broadcast %cst_133 : f32 to vector<2x256xf32>
    %305 = arith.mulf %304, %303 : vector<2x256xf32>
    %306 = arith.mulf %295, %234 : vector<2x256xf32>
    %307 = arith.mulf %287, %297 : vector<2x256xf32>
    %308 = arith.addf %306, %307 : vector<2x256xf32>
    %309 = math.tanh %308 : vector<2x256xf32>
    %310 = arith.mulf %305, %309 : vector<2x256xf32>
    %c6_134 = arith.constant 6 : index
    %c0_135 = arith.constant 0 : index
    %311 = vector.load %arg27[%c6_134, %c0_135] : memref<8x256xf32, #tpu.memory_space<vmem>>, vector<2x256xf32>
    tpu.vector_store %arg27[%c6_134, %c0_135], %310 {strides = array<i32>} : memref<8x256xf32, #tpu.memory_space<vmem>>, vector<2x256xf32>,
    %312 = vector.extract_strided_slice %279 {offsets = [0, 0], sizes = [2, 256], strides = [1, 1]} : vector<2x1024xf32> to vector<2x256xf32>
    %cst_136 = arith.constant 5.000000e-01 : f32
    %313 = vector.broadcast %cst_136 : f32 to vector<2x256xf32>
    %314 = arith.mulf %313, %312 : vector<2x256xf32>
    %315 = math.tanh %314 : vector<2x256xf32>
    %cst_137 = arith.constant 1.000000e+00 : f32
    %316 = vector.broadcast %cst_137 : f32 to vector<2x256xf32>
    %317 = arith.addf %315, %316 : vector<2x256xf32>
    %cst_138 = arith.constant 5.000000e-01 : f32
    %318 = vector.broadcast %cst_138 : f32 to vector<2x256xf32>
    %319 = arith.mulf %318, %317 : vector<2x256xf32>
    %320 = vector.extract_strided_slice %279 {offsets = [0, 256], sizes = [2, 256], strides = [1, 1]} : vector<2x1024xf32> to vector<2x256xf32>
    %cst_139 = arith.constant 5.000000e-01 : f32
    %321 = vector.broadcast %cst_139 : f32 to vector<2x256xf32>
    %322 = arith.mulf %321, %320 : vector<2x256xf32>
    %323 = math.tanh %322 : vector<2x256xf32>
    %cst_140 = arith.constant 1.000000e+00 : f32
    %324 = vector.broadcast %cst_140 : f32 to vector<2x256xf32>
    %325 = arith.addf %323, %324 : vector<2x256xf32>
    %cst_141 = arith.constant 5.000000e-01 : f32
    %326 = vector.broadcast %cst_141 : f32 to vector<2x256xf32>
    %327 = arith.mulf %326, %325 : vector<2x256xf32>
    %328 = vector.extract_strided_slice %279 {offsets = [0, 512], sizes = [2, 256], strides = [1, 1]} : vector<2x1024xf32> to vector<2x256xf32>
    %329 = math.tanh %328 : vector<2x256xf32>
    %330 = vector.extract_strided_slice %279 {offsets = [0, 768], sizes = [2, 256], strides = [1, 1]} : vector<2x1024xf32> to vector<2x256xf32>
    %cst_142 = arith.constant 5.000000e-01 : f32
    %331 = vector.broadcast %cst_142 : f32 to vector<2x256xf32>
    %332 = arith.mulf %331, %330 : vector<2x256xf32>
    %333 = math.tanh %332 : vector<2x256xf32>
    %cst_143 = arith.constant 1.000000e+00 : f32
    %334 = vector.broadcast %cst_143 : f32 to vector<2x256xf32>
    %335 = arith.addf %333, %334 : vector<2x256xf32>
    %cst_144 = arith.constant 5.000000e-01 : f32
    %336 = vector.broadcast %cst_144 : f32 to vector<2x256xf32>
    %337 = arith.mulf %336, %335 : vector<2x256xf32>
    %338 = arith.mulf %327, %266 : vector<2x256xf32>
    %339 = arith.mulf %319, %329 : vector<2x256xf32>
    %340 = arith.addf %338, %339 : vector<2x256xf32>
    %341 = math.tanh %340 : vector<2x256xf32>
    %342 = arith.mulf %337, %341 : vector<2x256xf32>
    %c0_145 = arith.constant 0 : index
    %c0_146 = arith.constant 0 : index
    %343 = vector.load %arg28[%c0_145, %c0_146] : memref<8x256xf32, #tpu.memory_space<vmem>>, vector<2x256xf32>
    tpu.vector_store %arg28[%c0_145, %c0_146], %342 {strides = array<i32>} : memref<8x256xf32, #tpu.memory_space<vmem>>, vector<2x256xf32>,
    %c0_147 = arith.constant 0 : index
    %c0_148 = arith.constant 0 : index
    %344 = vector.load %arg27[%c0_147, %c0_148] : memref<8x256xf32, #tpu.memory_space<vmem>>, vector<8x256xf32>
    %345 = arith.truncf %344 : vector<8x256xf32> to vector<8x256xbf16>
    %c0_149 = arith.constant 0 : index
    %c0_150 = arith.constant 0 : index
    %346 = vector.load %arg16[%c0_149, %c0_150] : memref<256x150xbf16, #tpu.memory_space<vmem>>, vector<256x150xbf16>
    %cst_151 = arith.constant dense<0.000000e+00> : vector<8x150xf32>
    %347 = tpu.matmul %345, %346, %cst_151 {dimension_numbers = #tpu.dot_dimension_numbers<[1], [0], [0], [1], [0, 0, 1, 1], [], []>} : vector<8x256xbf16>, vector<256x150xbf16>, vector<8x150xf32> -> vector<8x150xf32>
    %c0_152 = arith.constant 0 : index
    %c0_153 = arith.constant 0 : index
    %348 = vector.load %arg28[%c0_152, %c0_153] : memref<8x256xf32, #tpu.memory_space<vmem>>, vector<8x256xf32>
    %349 = arith.truncf %348 : vector<8x256xf32> to vector<8x256xbf16>
    %c0_154 = arith.constant 0 : index
    %c0_155 = arith.constant 0 : index
    %350 = vector.load %arg17[%c0_154, %c0_155] : memref<256x150xbf16, #tpu.memory_space<vmem>>, vector<256x150xbf16>
    %cst_156 = arith.constant dense<0.000000e+00> : vector<8x150xf32>
    %351 = tpu.matmul %349, %350, %cst_156 {dimension_numbers = #tpu.dot_dimension_numbers<[1], [0], [0], [1], [0, 0, 1, 1], [], []>} : vector<8x256xbf16>, vector<256x150xbf16>, vector<8x150xf32> -> vector<8x150xf32>
    %352 = arith.addf %347, %351 : vector<8x150xf32>
    %353 = arith.truncf %1 : vector<8x16xf32> to vector<8x16xbf16>
    %c0_157 = arith.constant 0 : index
    %c0_158 = arith.constant 0 : index
    %354 = vector.load %arg18[%c0_157, %c0_158] : memref<16x150xbf16, #tpu.memory_space<vmem>>, vector<16x150xbf16>
    %cst_159 = arith.constant dense<0.000000e+00> : vector<8x150xf32>
    %355 = tpu.matmul %353, %354, %cst_159 {dimension_numbers = #tpu.dot_dimension_numbers<[1], [0], [0], [1], [0, 0, 1, 1], [], []>} : vector<8x16xbf16>, vector<16x150xbf16>, vector<8x150xf32> -> vector<8x150xf32>
    %356 = arith.addf %352, %355 : vector<8x150xf32>
    %c0_160 = arith.constant 0 : index
    %c0_161 = arith.constant 0 : index
    %357 = vector.load %arg19[%c0_160, %c0_161] : memref<1x150xf32, #tpu.memory_space<vmem>>, vector<1x150xf32>
    %358 = vector.broadcast %357 : vector<1x150xf32> to vector<8x150xf32>
    %359 = arith.addf %356, %358 : vector<8x150xf32>
    %cst_162 = arith.constant 0.000000e+00 : f32
    %360 = vector.broadcast %cst_162 : f32 to vector<8x150xf32>
    %361 = arith.maximumf %359, %360 : vector<8x150xf32>
    %362 = arith.truncf %361 : vector<8x150xf32> to vector<8x150xbf16>
    %c0_163 = arith.constant 0 : index
    %c0_164 = arith.constant 0 : index
    %363 = vector.load %arg20[%c0_163, %c0_164] : memref<150x150xbf16, #tpu.memory_space<vmem>>, vector<150x150xbf16>
    %cst_165 = arith.constant dense<0.000000e+00> : vector<8x150xf32>
    %364 = tpu.matmul %362, %363, %cst_165 {dimension_numbers = #tpu.dot_dimension_numbers<[1], [0], [0], [1], [0, 0, 1, 1], [], []>} : vector<8x150xbf16>, vector<150x150xbf16>, vector<8x150xf32> -> vector<8x150xf32>
    %c0_166 = arith.constant 0 : index
    %c0_167 = arith.constant 0 : index
    %365 = vector.load %arg21[%c0_166, %c0_167] : memref<1x150xf32, #tpu.memory_space<vmem>>, vector<1x150xf32>
    %366 = vector.broadcast %365 : vector<1x150xf32> to vector<8x150xf32>
    %367 = arith.addf %364, %366 : vector<8x150xf32>
    %cst_168 = arith.constant 0.000000e+00 : f32
    %368 = vector.broadcast %cst_168 : f32 to vector<8x150xf32>
    %369 = arith.maximumf %367, %368 : vector<8x150xf32>
    %370 = arith.truncf %369 : vector<8x150xf32> to vector<8x150xbf16>
    %c0_169 = arith.constant 0 : index
    %c0_170 = arith.constant 0 : index
    %371 = vector.load %arg22[%c0_169, %c0_170] : memref<150x150xbf16, #tpu.memory_space<vmem>>, vector<150x150xbf16>
    %cst_171 = arith.constant dense<0.000000e+00> : vector<8x150xf32>
    %372 = tpu.matmul %370, %371, %cst_171 {dimension_numbers = #tpu.dot_dimension_numbers<[1], [0], [0], [1], [0, 0, 1, 1], [], []>} : vector<8x150xbf16>, vector<150x150xbf16>, vector<8x150xf32> -> vector<8x150xf32>
    %c0_172 = arith.constant 0 : index
    %c0_173 = arith.constant 0 : index
    %373 = vector.load %arg23[%c0_172, %c0_173] : memref<1x150xf32, #tpu.memory_space<vmem>>, vector<1x150xf32>
    %374 = vector.broadcast %373 : vector<1x150xf32> to vector<8x150xf32>
    %375 = arith.addf %372, %374 : vector<8x150xf32>
    %cst_174 = arith.constant 0.000000e+00 : f32
    %376 = vector.broadcast %cst_174 : f32 to vector<8x150xf32>
    %377 = arith.maximumf %375, %376 : vector<8x150xf32>
    %378 = arith.truncf %377 : vector<8x150xf32> to vector<8x150xbf16>
    %c0_175 = arith.constant 0 : index
    %c0_176 = arith.constant 0 : index
    %379 = vector.load %arg24[%c0_175, %c0_176] : memref<150x128xbf16, #tpu.memory_space<vmem>>, vector<150x128xbf16>
    %cst_177 = arith.constant dense<0.000000e+00> : vector<8x128xf32>
    %380 = tpu.matmul %378, %379, %cst_177 {dimension_numbers = #tpu.dot_dimension_numbers<[1], [0], [0], [1], [0, 0, 1, 1], [], []>} : vector<8x150xbf16>, vector<150x128xbf16>, vector<8x128xf32> -> vector<8x128xf32>
    %c0_178 = arith.constant 0 : index
    %c0_179 = arith.constant 0 : index
    %381 = vector.load %arg25[%c0_178, %c0_179] : memref<1x128xf32, #tpu.memory_space<vmem>>, vector<1x128xf32>
    %382 = vector.broadcast %381 : vector<1x128xf32> to vector<8x128xf32>
    %383 = arith.addf %380, %382 : vector<8x128xf32>
    %384 = math.tanh %383 : vector<8x128xf32>
    %c0_180 = arith.constant 0 : index
    %c0_181 = arith.constant 0 : index
    %c0_182 = arith.constant 0 : index
    %385 = vector.load %arg26[%c0_180, %c0_181, %c0_182] : memref<1x8x128xf32, #tpu.memory_space<vmem>>, vector<1x8x128xf32>
    %386 = vector.shape_cast %385 : vector<1x8x128xf32> to vector<8x128xf32>
    %387 = vector.shape_cast %384 : vector<8x128xf32> to vector<1x8x128xf32>
    tpu.vector_store %arg26[%c0_180, %c0_181, %c0_182], %387 {strides = array<i32>} : memref<1x8x128xf32, #tpu.memory_space<vmem>>, vector<1x8x128xf32>,
    return
  }
  func.func @transform_0(%arg0: i32) -> (i32, i32, i32) {
    %c0_i32 = arith.constant 0 : i32
    %c0_i32_0 = arith.constant 0 : i32
    %c0_i32_1 = arith.constant 0 : i32
    return %arg0, %c0_i32, %c0_i32_0 : i32, i32, i32
  }
  func.func @transform_1(%arg0: i32) -> (i32, i32) {
    %c0_i32 = arith.constant 0 : i32
    %c0_i32_0 = arith.constant 0 : i32
    %c0_i32_1 = arith.constant 0 : i32
    return %c0_i32, %c0_i32_0 : i32, i32
  }
  func.func @transform_2(%arg0: i32) -> (i32, i32) {
    %c0_i32 = arith.constant 0 : i32
    %c0_i32_0 = arith.constant 0 : i32
    %c0_i32_1 = arith.constant 0 : i32
    return %c0_i32, %c0_i32_0 : i32, i32
  }
  func.func @transform_3(%arg0: i32) -> (i32, i32) {
    %c0_i32 = arith.constant 0 : i32
    %c0_i32_0 = arith.constant 0 : i32
    %c0_i32_1 = arith.constant 0 : i32
    return %c0_i32, %c0_i32_0 : i32, i32
  }
  func.func @transform_4(%arg0: i32) -> (i32, i32) {
    %c0_i32 = arith.constant 0 : i32
    %c0_i32_0 = arith.constant 0 : i32
    %c0_i32_1 = arith.constant 0 : i32
    return %c0_i32, %c0_i32_0 : i32, i32
  }
  func.func @transform_5(%arg0: i32) -> (i32, i32) {
    %c0_i32 = arith.constant 0 : i32
    %c0_i32_0 = arith.constant 0 : i32
    %c0_i32_1 = arith.constant 0 : i32
    return %c0_i32, %c0_i32_0 : i32, i32
  }
  func.func @transform_6(%arg0: i32) -> (i32, i32) {
    %c0_i32 = arith.constant 0 : i32
    %c0_i32_0 = arith.constant 0 : i32
    %c0_i32_1 = arith.constant 0 : i32
    return %c0_i32, %c0_i32_0 : i32, i32
  }
  func.func @transform_7(%arg0: i32) -> (i32, i32) {
    %c0_i32 = arith.constant 0 : i32
    %c0_i32_0 = arith.constant 0 : i32
    %c0_i32_1 = arith.constant 0 : i32
    return %c0_i32, %c0_i32_0 : i32, i32
  }
  func.func @transform_8(%arg0: i32) -> (i32, i32) {
    %c0_i32 = arith.constant 0 : i32
    %c0_i32_0 = arith.constant 0 : i32
    %c0_i32_1 = arith.constant 0 : i32
    return %c0_i32, %c0_i32_0 : i32, i32
  }
  func.func @transform_9(%arg0: i32) -> (i32, i32) {
    %c0_i32 = arith.constant 0 : i32
    %c0_i32_0 = arith.constant 0 : i32
    %c0_i32_1 = arith.constant 0 : i32
    return %c0_i32, %c0_i32_0 : i32, i32
  }
  func.func @transform_10(%arg0: i32) -> (i32, i32) {
    %c0_i32 = arith.constant 0 : i32
    %c0_i32_0 = arith.constant 0 : i32
    %c0_i32_1 = arith.constant 0 : i32
    return %c0_i32, %c0_i32_0 : i32, i32
  }
  func.func @transform_11(%arg0: i32) -> (i32, i32) {
    %c0_i32 = arith.constant 0 : i32
    %c0_i32_0 = arith.constant 0 : i32
    %c0_i32_1 = arith.constant 0 : i32
    return %c0_i32, %c0_i32_0 : i32, i32
  }
  func.func @transform_12(%arg0: i32) -> (i32, i32) {
    %c0_i32 = arith.constant 0 : i32
    %c0_i32_0 = arith.constant 0 : i32
    %c0_i32_1 = arith.constant 0 : i32
    return %c0_i32, %c0_i32_0 : i32, i32
  }
  func.func @transform_13(%arg0: i32) -> (i32, i32) {
    %c0_i32 = arith.constant 0 : i32
    %c0_i32_0 = arith.constant 0 : i32
    %c0_i32_1 = arith.constant 0 : i32
    return %c0_i32, %c0_i32_0 : i32, i32
  }
  func.func @transform_14(%arg0: i32) -> (i32, i32) {
    %c0_i32 = arith.constant 0 : i32
    %c0_i32_0 = arith.constant 0 : i32
    %c0_i32_1 = arith.constant 0 : i32
    return %c0_i32, %c0_i32_0 : i32, i32
  }
  func.func @transform_15(%arg0: i32) -> (i32, i32) {
    %c0_i32 = arith.constant 0 : i32
    %c0_i32_0 = arith.constant 0 : i32
    %c0_i32_1 = arith.constant 0 : i32
    return %c0_i32, %c0_i32_0 : i32, i32
  }
  func.func @transform_16(%arg0: i32) -> (i32, i32) {
    %c0_i32 = arith.constant 0 : i32
    %c0_i32_0 = arith.constant 0 : i32
    %c0_i32_1 = arith.constant 0 : i32
    return %c0_i32, %c0_i32_0 : i32, i32
  }
  func.func @transform_17(%arg0: i32) -> (i32, i32) {
    %c0_i32 = arith.constant 0 : i32
    %c0_i32_0 = arith.constant 0 : i32
    %c0_i32_1 = arith.constant 0 : i32
    return %c0_i32, %c0_i32_0 : i32, i32
  }
  func.func @transform_18(%arg0: i32) -> (i32, i32) {
    %c0_i32 = arith.constant 0 : i32
    %c0_i32_0 = arith.constant 0 : i32
    %c0_i32_1 = arith.constant 0 : i32
    return %c0_i32, %c0_i32_0 : i32, i32
  }
  func.func @transform_19(%arg0: i32) -> (i32, i32) {
    %c0_i32 = arith.constant 0 : i32
    %c0_i32_0 = arith.constant 0 : i32
    %c0_i32_1 = arith.constant 0 : i32
    return %c0_i32, %c0_i32_0 : i32, i32
  }
  func.func @transform_20(%arg0: i32) -> (i32, i32) {
    %c0_i32 = arith.constant 0 : i32
    %c0_i32_0 = arith.constant 0 : i32
    %c0_i32_1 = arith.constant 0 : i32
    return %c0_i32, %c0_i32_0 : i32, i32
  }
  func.func @transform_21(%arg0: i32) -> (i32, i32) {
    %c0_i32 = arith.constant 0 : i32
    %c0_i32_0 = arith.constant 0 : i32
    %c0_i32_1 = arith.constant 0 : i32
    return %c0_i32, %c0_i32_0 : i32, i32
  }
  func.func @transform_22(%arg0: i32) -> (i32, i32) {
    %c0_i32 = arith.constant 0 : i32
    %c0_i32_0 = arith.constant 0 : i32
    %c0_i32_1 = arith.constant 0 : i32
    return %c0_i32, %c0_i32_0 : i32, i32
  }
  func.func @transform_23(%arg0: i32) -> (i32, i32) {
    %c0_i32 = arith.constant 0 : i32
    %c0_i32_0 = arith.constant 0 : i32
    %c0_i32_1 = arith.constant 0 : i32
    return %c0_i32, %c0_i32_0 : i32, i32
  }
  func.func @transform_24(%arg0: i32) -> (i32, i32) {
    %c0_i32 = arith.constant 0 : i32
    %c0_i32_0 = arith.constant 0 : i32
    %c0_i32_1 = arith.constant 0 : i32
    return %c0_i32, %c0_i32_0 : i32, i32
  }
  func.func @transform_25(%arg0: i32) -> (i32, i32, i32) {
    %c0_i32 = arith.constant 0 : i32
    %c0_i32_0 = arith.constant 0 : i32
    %c0_i32_1 = arith.constant 0 : i32
    return %arg0, %c0_i32, %c0_i32_0 : i32, i32, i32
  }
}

</mosaic_0001>

<bundles_post_ra>
// kernel: tpu_custom_call.1
= control target key start
LH: loop header
LB: loop body
LE: loop exit
PB: predicated region body
PF: predicated region fallthrough
CT: control target
= control target key end

     0   :  { %s17617_s0 = inlined_call_operand.vmem [shape: f32[1,8,16], index: 0, kind: input, shape index: {}]   ;;  %s17618_s1 = inlined_call_operand.vmem [shape: bf16[16,300], index: 1, kind: input, shape index: {}]   ;;  %s17619_s2 = inlined_call_operand.hbm [shape: f32[1,300], index: 2, kind: input, shape index: {}]   ;;  %s17620_s3 = inlined_call_operand.hbm [shape: bf16[300,300], index: 3, kind: input, shape index: {}]   ;;  %s17621_s4 = inlined_call_operand.hbm [shape: f32[1,300], index: 4, kind: input, shape index: {}]   ;;  %s17622_s5 = inlined_call_operand.hbm [shape: bf16[300,300], index: 5, kind: input, shape index: {}]   ;;  %s17623_s6 = inlined_call_operand.hbm [shape: f32[1,300], index: 6, kind: input, shape index: {}]   ;;  %s17624_s7 = inlined_call_operand.vmem [shape: bf16[300,150], index: 7, kind: input, shape index: {}]   ;;  %s17625_s8 = inlined_call_operand.hbm [shape: f32[1,150], index: 8, kind: input, shape index: {}]   ;;  %s17626_s9 = inlined_call_operand.hbm [shape: bf16[150,1024], index: 9, kind: input, shape index: {}]   ;;  %s17627_s10 = inlined_call_operand.vmem [shape: bf16[256,1024], index: 10, kind: input, shape index: {}]   ;;  %s17628_s11 = inlined_call_operand.hbm [shape: f32[1,1024], index: 11, kind: input, shape index: {}]   ;;  %s17629_s12 = inlined_call_operand.hbm [shape: bf16[150,1024], index: 12, kind: input, shape index: {}]   ;;  %s17630_s13 = inlined_call_operand.hbm [shape: bf16[256,1024], index: 13, kind: input, shape index: {}]   ;;  %s17631_s14 = inlined_call_operand.hbm [shape: f32[1,1024], index: 14, kind: input, shape index: {}]   ;;  %s17632_s15 = inlined_call_operand.vmem [shape: bf16[256,150], index: 15, kind: input, shape index: {}]   ;;  %s17633_s16 = inlined_call_operand.vmem [shape: bf16[256,150], index: 16, kind: input, shape index: {}]   ;;  %s17634_s17 = inlined_call_operand.vmem [shape: bf16[16,150], index: 17, kind: input, shape index: {}]   ;;  %s17635_s18 = inlined_call_operand.hbm [shape: f32[1,150], index: 18, kind: input, shape index: {}]   ;;  %s17636_s19 = inlined_call_operand.vmem [shape: bf16[150,150], index: 19, kind: input, shape index: {}]   ;;  %s17637_s20 = inlined_call_operand.hbm [shape: f32[1,150], index: 20, kind: input, shape index: {}]   ;;  %s17638_s21 = inlined_call_operand.vmem [shape: bf16[150,150], index: 21, kind: input, shape index: {}]   ;;  %s17639_s22 = inlined_call_operand.hbm [shape: f32[1,150], index: 22, kind: input, shape index: {}]   ;;  %s17640_s23 = inlined_call_operand.hbm [shape: bf16[150,128], index: 23, kind: input, shape index: {}]   ;;  %s17641_s24 = inlined_call_operand.vmem [shape: f32[1,128], index: 24, kind: input, shape index: {}]   ;;  %s17642_s25 = inlined_call_operand.hbm [shape: f32[1,8,128], index: 25, kind: output, shape index: {}]  }
   0x1   :  { %17645 = sst [smem:[#allocation38_spill]] %s17617_s0 }
   0x2   :  { %17646 = sst [smem:[#allocation39_spill]] %s17618_s1 }
   0x3   :  { %17647 = sst [smem:[#allocation40_spill]] %s17619_s2 }
   0x4   :  { %17648 = sst [smem:[#allocation41_spill]] %s17620_s3 }
   0x5   :  { %17649 = sst [smem:[#allocation42_spill]] %s17621_s4 }
   0x6   :  { %17650 = sst [smem:[#allocation43_spill]] %s17622_s5 }
   0x7   :  { %17651 = sst [smem:[#allocation44_spill]] %s17623_s6 }
   0x8   :  { %17652 = sst [smem:[#allocation45_spill]] %s17624_s7 }
   0x9   :  { %17653 = sst [smem:[#allocation46_spill]] %s17625_s8 }
   0xa   :  { %17654 = sst [smem:[#allocation47_spill]] %s17626_s9 }
   0xb   :  { %30 = vsyncpa [#allocation5], 0 }
   0xc   :  { %31 = vsyncpa [#allocation8], 0 }
   0xd   :  { %32 = vsyncpa [#allocation11], 0 }
   0xe   :  { %33 = vsyncpa [#allocation14], 0 }
   0xf   :  { %34 = vsyncpa [#allocation17], 0 }
  0x10   :  { %35 = vsyncpa [#allocation20], 0 }
  0x11   :  { %36 = vsyncpa [#allocation23], 0 }
  0x12   :  { %37 = vsyncpa [#allocation26], 0 }
  0x13   :  { %38 = vsyncpa [#allocation6], 0  ;;  %s14850_s29 = smov [#allocation7]  }
  0x14   :  { %s58_s2 = sshll.u32 %s14850_s29, 4  ;;  %s59_s2 = int_to_ptr.vmem [resolvable:$true] %s58_s2 }
  0x15   :  { %s14520_s6 = scalar_lea.vmem %s59_s2, 7296  ;;  %p14525_p1 = scmp.lt.s32.totalorder %s59_s2, %s59_s2 }
  0x16   :  { %p14521_p0 = scmp.ne.s32.totalorder %s59_s2, %s14520_s6  ;;  %p14526_p2 = scmp.lt.s32.totalorder %s14520_s6, %s14520_s6 }
  0x18   :  { %p14527_p3 = por %p14526_p2, %p14525_p1 }
  0x1a   :  { %p14528_p4 = pnand %p14527_p3, %p14521_p0 }
  0x1c   :  { %14531 = shalt.err (!%p14528_p4)
}
  0x1d   :  { %s14851_s30 = smov 192   ;;  %s14852_s7 = smov 12  }
  0x1e   :  { %s17655_s1 = sld [smem:[#allocation41_spill]]  ;;  %s14853_s8 = smov [#allocation10]  }
  0x1f   :  { %s80_s27 = sshll.u32 %s14853_s8, 4  ;;  %s14854_s4 = smov [#allocation13]   ;;  %s81_s27 = int_to_ptr.vmem [resolvable:$true] %s80_s27 }
  0x20   :  { %s105_s28 = sshll.u32 %s14854_s4, 4  ;;  %s14540_s9 = scalar_lea.vmem %s81_s27, 7296  ;;  %s106_s28 = int_to_ptr.vmem [resolvable:$true] %s105_s28 }
  0x21   :  { %p14541_p5 = scmp.ne.s32.totalorder %s81_s27, %s14540_s9  ;;  %p14545_p6 = scmp.lt.s32.totalorder %s81_s27, %s81_s27 }
  0x22   :  { %p14546_p7 = scmp.lt.s32.totalorder %s14540_s9, %s14540_s9 }
  0x24   :  { %64 = dma.hbm_to_vmem [thread:$0]  %s17655_s1, 7296, %s59_s2, [#allocation8], %s14851_s30, %s14851_s30, %s14852_s7  }
  0x25   :  { %p14547_p8 = por %p14546_p7, %p14545_p6 }
  0x27   :  { %p14548_p9 = pnand %p14547_p8, %p14541_p5 }
  0x29   :  { %14551 = shalt.err (!%p14548_p9)
}
  0x2a   :  { %s17656_s29 = sld [smem:[#allocation43_spill]]  ;;  %s14560_s6 = scalar_lea.vmem %s106_s28, 32 }
  0x2b   :  { %p14561_p10 = scmp.ne.s32.totalorder %s106_s28, %s14560_s6  ;;  %p14565_p11 = scmp.lt.s32.totalorder %s106_s28, %s106_s28 }
  0x2c   :  { %p14566_p12 = scmp.lt.s32.totalorder %s14560_s6, %s14560_s6 }
  0x2e   :  { %p14567_p13 = por %p14566_p12, %p14565_p11 }
  0x30   :  { %86 = dma.hbm_to_vmem [thread:$0]  %s17656_s29, 7296, %s81_s27, [#allocation11], %s14851_s30, %s14851_s30, %s14852_s7  }
  0x31   :  { %p14568_p0 = pnand %p14567_p13, %p14561_p10 }
  0x33   :  { %14571 = shalt.err (!%p14568_p0)
}
  0x34   :  { %s17657_s26 = sld [smem:[#allocation46_spill]]  ;;  %s14855_s1 = smov [#allocation16]  }
  0x35   :  { %s129_s8 = sshll.u32 %s14855_s1, 4  ;;  %s130_s8 = int_to_ptr.vmem [resolvable:$true] %s129_s8 }
  0x36   :  { %s14580_s4 = scalar_lea.vmem %s130_s8, 128  ;;  %p14585_p2 = scmp.lt.s32.totalorder %s130_s8, %s130_s8 }
  0x37   :  { %p14581_p1 = scmp.ne.s32.totalorder %s130_s8, %s14580_s4  ;;  %p14586_p3 = scmp.lt.s32.totalorder %s14580_s4, %s14580_s4 }
  0x39   :  { %p14587_p4 = por %p14586_p3, %p14585_p2 }
  0x3a   :  { %108 = dma.hbm_to_vmem [thread:$0]  %s17657_s26, 32, %s106_s28, [#allocation14]  }
  0x3b   :  { %p14588_p5 = pnand %p14587_p4, %p14581_p1 }
  0x3d   :  { %14591 = shalt.err (!%p14588_p5)
}
  0x3e   :  { %132 = dma.hbm_to_vmem [thread:$0]  %s17628_s11, 128, %s130_s8, [#allocation17]  }
  0x3f   :  { %s14856_s27 = smov [#allocation19]   ;;  %s14857_s5 = smov [#allocation22]  }
  0x40   :  { %s150_s9 = sshll.u32 %s14856_s27, 4  ;;  %s179_s0 = sshll.u32 %s14857_s5, 4  ;;  %s151_s9 = int_to_ptr.vmem [resolvable:$true] %s150_s9  ;;  %s180_s0 = int_to_ptr.vmem [resolvable:$true] %s179_s0 }
  0x41   :  { %s14600_s28 = scalar_lea.vmem %s151_s9, 16384  ;;  %p14605_p7 = scmp.lt.s32.totalorder %s151_s9, %s151_s9 }
  0x42   :  { %p14601_p6 = scmp.ne.s32.totalorder %s151_s9, %s14600_s28  ;;  %p14606_p8 = scmp.lt.s32.totalorder %s14600_s28, %s14600_s28 }
  0x44   :  { %p14607_p9 = por %p14606_p8, %p14605_p7 }
  0x46   :  { %p14608_p10 = pnand %p14607_p9, %p14601_p6 }
  0x48   :  { %14611 = shalt.err (!%p14608_p10)
}
  0x49   :  { %s14858_s29 = smov 512   ;;  %s14859_s6 = smov 32  }
  0x4a   :  { %156 = dma.hbm_to_vmem [thread:$0]  %s17630_s13, 16384, %s151_s9, [#allocation20], %s14858_s29, %s14858_s29, %s14859_s6  }
  0x4b   :  { %s14620_s3 = scalar_lea.vmem %s180_s0, 32  ;;  %p14625_p12 = scmp.lt.s32.totalorder %s180_s0, %s180_s0 }
  0x4c   :  { %p14621_p11 = scmp.ne.s32.totalorder %s180_s0, %s14620_s3  ;;  %p14626_p13 = scmp.lt.s32.totalorder %s14620_s3, %s14620_s3 }
  0x4e   :  { %p14627_p0 = por %p14626_p13, %p14625_p12 }
  0x50   :  { %p14628_p1 = pnand %p14627_p0, %p14621_p11 }
  0x52   :  { %14631 = shalt.err (!%p14628_p1)
}
  0x53   :  { %182 = dma.hbm_to_vmem [thread:$0]  %s17635_s18, 32, %s180_s0, [#allocation23]  }
  0x54   :  { %s14860_s8 = smov [#allocation25]   ;;  %s14861_s30 = smov [#allocation4]  }
  0x55   :  { %s203_s4 = sshll.u32 %s14860_s8, 4  ;;  %s49_s7 = sshll.u32 %s14861_s30, 4  ;;  %s204_s4 = int_to_ptr.vmem [resolvable:$true] %s203_s4  ;;  %s50_s7 = int_to_ptr.vmem [resolvable:$true] %s49_s7 }
  0x56   :  { %s14640_s27 = scalar_lea.vmem %s204_s4, 32  ;;  %p14645_p3 = scmp.lt.s32.totalorder %s204_s4, %s204_s4 }
  0x57   :  { %p14641_p2 = scmp.ne.s32.totalorder %s204_s4, %s14640_s27  ;;  %p14646_p4 = scmp.lt.s32.totalorder %s14640_s27, %s14640_s27 }
  0x59   :  { %p14647_p5 = por %p14646_p4, %p14645_p3 }
  0x5b   :  { %p14648_p6 = pnand %p14647_p5, %p14641_p2 }
  0x5d   :  { %14651 = shalt.err (!%p14648_p6)
}
  0x5e   :  { %206 = dma.hbm_to_vmem [thread:$0]  %s17639_s22, 32, %s204_s4, [#allocation26]  }
  0x5f   :  { %s14660_s5 = scalar_lea.vmem %s50_s7, 48  ;;  %s14664_s18 = scalar_lea.vmem %s50_s7, 64 }
  0x60   :  { %p14661_p7 = scmp.ne.s32.totalorder %s50_s7, %s14660_s5  ;;  %p14665_p8 = scmp.lt.s32.totalorder %s50_s7, %s50_s7 }
  0x61   :  { %p14666_p9 = scmp.lt.s32.totalorder %s14664_s18, %s14660_s5 }
  0x63   :  { %p14667_p10 = por %p14666_p9, %p14665_p8 }
  0x65   :  { %p14668_p11 = pnand %p14667_p10, %p14661_p7 }
  0x67   :  { %14671 = shalt.err (!%p14668_p11)
}
  0x68   :  { %s17658_s2 = sld [smem:[#allocation40_spill]]  ;;  %s14862_s11 = smov [#allocation9]  }
  0x69   :  { %s71_s3 = sshll.u32 %s14862_s11, 4  ;;  %s14863_s26 = smov [#allocation12]   ;;  %s72_s3 = int_to_ptr.vmem [resolvable:$true] %s71_s3 }
  0x6a   :  { %s93_s1 = sshll.u32 %s14863_s26, 4  ;;  %s14680_s8 = scalar_lea.vmem %s72_s3, 48  ;;  %s94_s1 = int_to_ptr.vmem [resolvable:$true] %s93_s1 }
  0x6b   :  { %p14681_p12 = scmp.ne.s32.totalorder %s72_s3, %s14680_s8  ;;  %s14684_s22 = scalar_lea.vmem %s72_s3, 64 }
  0x6c   :  { %p14685_p13 = scmp.lt.s32.totalorder %s72_s3, %s72_s3  ;;  %p14686_p0 = scmp.lt.s32.totalorder %s14684_s22, %s14680_s8 }
  0x6e   :  { %52 = dma.hbm_to_vmem [thread:$0]  %s17658_s2, 48, %s50_s7, [#allocation5]  }
  0x6f   :  { %p14687_p1 = por %p14686_p0, %p14685_p13 }
  0x71   :  { %p14688_p2 = pnand %p14687_p1, %p14681_p12 }
  0x73   :  { %14691 = shalt.err (!%p14688_p2)
}
  0x74   :  { %s17659_s27 = sld [smem:[#allocation42_spill]]  ;;  %s14700_s13 = scalar_lea.vmem %s94_s1, 48 }
  0x75   :  { %p14701_p3 = scmp.ne.s32.totalorder %s94_s1, %s14700_s13  ;;  %s14704_s7 = scalar_lea.vmem %s94_s1, 64 }
  0x76   :  { %p14705_p4 = scmp.lt.s32.totalorder %s94_s1, %s94_s1  ;;  %p14706_p5 = scmp.lt.s32.totalorder %s14704_s7, %s14700_s13 }
  0x78   :  { %p14707_p6 = por %p14706_p5, %p14705_p4 }
  0x7a   :  { %74 = dma.hbm_to_vmem [thread:$0]  %s17659_s27, 48, %s72_s3, [#allocation8]  }
  0x7b   :  { %p14708_p7 = pnand %p14707_p6, %p14701_p3 }
  0x7d   :  { %14711 = shalt.err (!%p14708_p7)
}
  0x7e   :  { %s17660_s18 = sld [smem:[#allocation44_spill]]  ;;  %s14864_s0 = smov [#allocation15]  }
  0x7f   :  { %s114_s28 = sshll.u32 %s14864_s0, 4  ;;  %s14865_s2 = smov [#allocation18]   ;;  %s115_s28 = int_to_ptr.vmem [resolvable:$true] %s114_s28 }
  0x80   :  { %s138_s11 = sshll.u32 %s14865_s2, 4  ;;  %s14720_s26 = scalar_lea.vmem %s115_s28, 9728  ;;  %s139_s11 = int_to_ptr.vmem [resolvable:$true] %s138_s11 }
  0x81   :  { %p14721_p8 = scmp.ne.s32.totalorder %s115_s28, %s14720_s26  ;;  %p14725_p9 = scmp.lt.s32.totalorder %s115_s28, %s115_s28 }
  0x82   :  { %p14726_p10 = scmp.lt.s32.totalorder %s14720_s26, %s14720_s26 }
  0x84   :  { %96 = dma.hbm_to_vmem [thread:$0]  %s17660_s18, 48, %s94_s1, [#allocation11]  }
  0x85   :  { %p14727_p11 = por %p14726_p10, %p14725_p9 }
  0x87   :  { %p14728_p12 = pnand %p14727_p11, %p14721_p8 }
  0x89   :  { %14731 = shalt.err (!%p14728_p12)
}
  0x8a   :  { %s17661_s22 = sld [smem:[#allocation47_spill]]  ;;  %s14740_s1 = scalar_lea.vmem %s139_s11, 9728 }
  0x8b   :  { %p14741_p13 = scmp.ne.s32.totalorder %s139_s11, %s14740_s1  ;;  %p14745_p0 = scmp.lt.s32.totalorder %s139_s11, %s139_s11 }
  0x8c   :  { %p14746_p1 = scmp.lt.s32.totalorder %s14740_s1, %s14740_s1 }
  0x8e   :  { %p14747_p2 = por %p14746_p1, %p14745_p0 }
  0x90   :  { %120 = dma.hbm_to_vmem [thread:$0]  %s17661_s22, 9728, %s115_s28, [#allocation14], %s14858_s29, %s14858_s29, %s14859_s6  }
  0x91   :  { %p14748_p3 = pnand %p14747_p2, %p14741_p13 }
  0x93   :  { %14751 = shalt.err (!%p14748_p3)
}
  0x94   :  { %144 = dma.hbm_to_vmem [thread:$0]  %s17629_s12, 9728, %s139_s11, [#allocation17], %s14858_s29, %s14858_s29, %s14859_s6  }
  0x95   :  { %s14866_s27 = smov [#allocation21]   ;;  %s14867_s7 = smov [#allocation24]  }
  0x96   :  { %s163_s13 = sshll.u32 %s14866_s27, 4  ;;  %s191_s9 = sshll.u32 %s14867_s7, 4  ;;  %s164_s13 = int_to_ptr.vmem [resolvable:$true] %s163_s13  ;;  %s192_s9 = int_to_ptr.vmem [resolvable:$true] %s191_s9 }
  0x97   :  { %s14760_s5 = scalar_lea.vmem %s164_s13, 128  ;;  %p14765_p5 = scmp.lt.s32.totalorder %s164_s13, %s164_s13 }
  0x98   :  { %p14761_p4 = scmp.ne.s32.totalorder %s164_s13, %s14760_s5  ;;  %p14766_p6 = scmp.lt.s32.totalorder %s14760_s5, %s14760_s5 }
  0x9a   :  { %p14767_p7 = por %p14766_p6, %p14765_p5 }
  0x9c   :  { %p14768_p8 = pnand %p14767_p7, %p14761_p4 }
  0x9e   :  { %14771 = shalt.err (!%p14768_p8)
}
  0x9f   :  { %166 = dma.hbm_to_vmem [thread:$0]  %s17631_s14, 128, %s164_s13, [#allocation20]  }
  0xa0   :  { %s14780_s28 = scalar_lea.vmem %s192_s9, 32  ;;  %p14785_p10 = scmp.lt.s32.totalorder %s192_s9, %s192_s9 }
  0xa1   :  { %p14781_p9 = scmp.ne.s32.totalorder %s192_s9, %s14780_s28  ;;  %p14786_p11 = scmp.lt.s32.totalorder %s14780_s28, %s14780_s28 }
  0xa3   :  { %p14787_p12 = por %p14786_p11, %p14785_p10 }
  0xa5   :  { %p14788_p13 = pnand %p14787_p12, %p14781_p9 }
  0xa7   :  { %14791 = shalt.err (!%p14788_p13)
}
  0xa8   :  { %194 = dma.hbm_to_vmem [thread:$0]  %s17637_s20, 32, %s192_s9, [#allocation23]  }
  0xa9   :  { %s14868_s6 = smov [#allocation27]  }
  0xaa   :  { %s212_s2 = sshll.u32 %s14868_s6, 4  ;;  %s213_s2 = int_to_ptr.vmem [resolvable:$true] %s212_s2 }
  0xab   :  { %s14800_s11 = scalar_lea.vmem %s213_s2, 1216  ;;  %p14805_p1 = scmp.lt.s32.totalorder %s213_s2, %s213_s2 }
  0xac   :  { %p14801_p0 = scmp.ne.s32.totalorder %s213_s2, %s14800_s11  ;;  %p14806_p2 = scmp.lt.s32.totalorder %s14800_s11, %s14800_s11 }
  0xae   :  { %p14807_p3 = por %p14806_p2, %p14805_p1 }
  0xb0   :  { %p14808_p4 = pnand %p14807_p3, %p14801_p0 }
  0xb2   :  { %14811 = shalt.err (!%p14808_p4)
}
  0xb3   :  { %s14869_s14 = smov 64   ;;  %s14870_s26 = smov 4  }
  0xb4   :  { %218 = dma.hbm_to_vmem [thread:$0]  %s17640_s23, 1216, %s213_s2, [#allocation26], %s14869_s14, %s14869_s14, %s14870_s26  }
  0xb5   :  { %14832 = dma.done.wait [#allocation5], 48  }
  0xb6   :  { %14833 = vsyncadd [#allocation5], 4294967248 }
  0xb7   :  { %14834 = dma.done.wait [#allocation8], 7344  }
  0xb8   :  { %14835 = vsyncadd [#allocation8], 4294959952 }
  0xb9   :  { %14836 = dma.done.wait [#allocation11], 7344  }
  0xba   :  { %14837 = vsyncadd [#allocation11], 4294959952 }
  0xbb   :  { %14838 = dma.done.wait [#allocation14], 9760  }
  0xbc   :  { %14839 = vsyncadd [#allocation14], 4294957536 }
  0xbd   :  { %14840 = dma.done.wait [#allocation17], 9856  }
  0xbe   :  { %14841 = vsyncadd [#allocation17], 4294957440 }
  0xbf   :  { %14842 = dma.done.wait [#allocation20], 16512  }
  0xc0   :  { %14843 = vsyncadd [#allocation20], 4294950784 }
  0xc1   :  { %14844 = dma.done.wait [#allocation23], 64  }
  0xc2   :  { %14845 = vsyncadd [#allocation23], 4294967232 }
  0xc3   :  { %14846 = dma.done.wait [#allocation26], 1248  }
  0xc4   :  { %14847 = vsyncadd [#allocation26], 4294966048  ;;  %v14871_v0 = vmov 0.0   ;;  %vm14872_vm0 = vmmov 0   ;;  %v14873_v1 = vmov 0   ;;  %s17662_s22 = sld [smem:[#allocation39_spill]]  ;;  %v275_v48 = vlaneseq }
  0xc5   :  { %13903 = vmatprep.subr.bf16.mxu1 %v14871_v0  ;;  %13905 = vmatprep.mubr.msk.bf16.mxu1 %vm14872_vm0, %v14871_v0  ;;  %s17663_s9 = sld [smem:[#allocation38_spill]]  ;;  %vm306_vm1 = vcmask 130048   ;;  %v13960_v7 = vld [vmem:[#allocation7 + $0xac] ss:$12 sps:$4 sm:$0xff]   ;;  %v13958_v8 = vld [vmem:[#allocation7 + $0xa8] ss:$12 sps:$4 sm:$0xff]  }
  0xc6   :  { %342 = vmatprep.mubr.bf16.mxu0 %v14873_v1  ;;  %v13963_v9 = vld [vmem:[#allocation7 + $0x94] ss:$12 sps:$4 sm:$0xff]   ;;  %v13961_v10 = vld [vmem:[#allocation7 + $0x90] ss:$12 sps:$4 sm:$0xff]   ;;  %v13964_v12 = vld [vmem:[#allocation7 + $0x78] ss:$12 sps:$4 sm:$0xff]  }
  0xc7   :  { %v13966_v11 = vld [vmem:[#allocation7 + $0x7c] ss:$12 sps:$4 sm:$0xff]   ;;  %v13969_v13 = vld [vmem:[#allocation7 + $0x64] ss:$12 sps:$4 sm:$0xff]   ;;  %v13967_v14 = vld [vmem:[#allocation7 + $0x60] ss:$12 sps:$4 sm:$0xff]  }
  0xc8   :  { %v13972_v15 = vld [vmem:[#allocation7 + $0x4c] ss:$12 sps:$4 sm:$0xff]   ;;  %vm795_vm2 = vcmask 1045504   ;;  %v13994_v16 = vld [vmem:[#allocation7 + $0x1b4] ss:$12 sps:$4 sm:$0x3f]  }
  0xc9   :  { %v13970_v17 = vld [vmem:[#allocation7 + $0x48] ss:$12 sps:$4 sm:$0xff]   ;;  %v13999_v19 = vld [vmem:[#allocation7 + $0x1b0] ss:$12 sps:$4 sm:$0x3f]   ;;  %v15084_v49 = vshrl.u32 %v275_v48, 7 }
  0xca   :  { %v13954_v2 = vld [vmem:[%s17662_s22 + $0x4] ss:$12 sps:$4 sm:$0xff]   ;;  %v13956_v3 = vld [vmem:[%s17662_s22 + $0x8] ss:$12 sps:$4 sm:$0xff]   ;;  %v13957_v4 = vld [vmem:[%s17662_s22] ss:$12 sps:$4 sm:$0xff]  }
  0xcb   :  { %324 = vmatprep.subr.bf16.mxu0 %v13954_v2  ;;  %v267_v5 = vld [vmem:[%s17663_s9] sm:$0xff]  ;;  %13904 = vmatpush3.bf16.msra.mxu1 %v13956_v3  ;;  %v797_v23 = vsel %vm795_vm2, %v13999_v19, 0  ;;  %v14000_v24 = vld [vmem:[#allocation7 + $0x198] ss:$12 sps:$4 sm:$0xff]   ;;  %v13982_v29 = vld [vmem:[#allocation7 + $0x168] ss:$12 sps:$4 sm:$0xff]  }
  0xcc   :  { %v15075_v6 = vpack.c.bf16 %v267_v5, %v267_v5  ;;  %325 = vmatpush1.bf16.msra.mxu0 %v13957_v4  ;;  %v13975_v18 = vld [vmem:[#allocation7 + $0x34] ss:$12 sps:$4 sm:$0xff]   ;;  %12423 = vmatprep.subr.msk.bf16.mxu1 %vm795_vm2, %v13994_v16  ;;  %v14002_v20 = vld [vmem:[#allocation7 + $0x19c] ss:$12 sps:$4 sm:$0xff]   ;;  %v13976_v25 = vld [vmem:[#allocation7 + $0x18] ss:$12 sps:$4 sm:$0xff]  }
  0xcd   :  { %805 = vmatprep.subr.bf16.mxu0 %v13960_v7  ;;  %v13973_v21 = vld [vmem:[#allocation7 + $0x30] ss:$12 sps:$4 sm:$0xff]   ;;  %v13979_v27 = vld [vmem:[#allocation7] ss:$12 sps:$4 sm:$0xff]   ;;  %v13988_v33 = vld [vmem:[#allocation7 + $0x138] ss:$12 sps:$4 sm:$0xff]  }
  0xce   :  { %13906 = vmatmul.mubr.msk.bf16.vlgmr.msra.gmra.mxu1 %vm306_vm1, %v15075_v6  ;;  %v13978_v22 = vld [vmem:[#allocation7 + $0x1c] ss:$12 sps:$4 sm:$0xff]   ;;  %v13981_v26 = vld [vmem:[#allocation7 + $0x4] ss:$12 sps:$4 sm:$0xff]   ;;  %v13984_v28 = vld [vmem:[#allocation7 + $0x16c] ss:$12 sps:$4 sm:$0xff]  }
  0xcf   :  { %12364 = vmatmul.mubr.msk.bf16.vlgmr.msra.gmra.mxu0 %vm306_vm1, %v15075_v6  ;;  %878 = vmatprep.mubr.bf16.mxu1 %v14873_v1  ;;  %v13987_v30 = vld [vmem:[#allocation7 + $0x154] ss:$12 sps:$4 sm:$0xff]   ;;  %v13985_v31 = vld [vmem:[#allocation7 + $0x150] ss:$12 sps:$4 sm:$0xff]   ;;  %v13998_v36 = vld [vmem:[#allocation7 + $0x10c] ss:$12 sps:$4 sm:$0xff]  }
  0xd0   :  { %806 = vmatpush1.bf16.msra.mxu0 %v13958_v8  ;;  %857 = vmatpush1.bf16.msra.mxu1 %v797_v23  ;;  %v13990_v32 = vld [vmem:[#allocation7 + $0x13c] ss:$12 sps:$4 sm:$0xff]   ;;  %v13993_v34 = vld [vmem:[#allocation7 + $0x124] ss:$12 sps:$4 sm:$0xff]   ;;  %v13991_v35 = vld [vmem:[#allocation7 + $0x120] ss:$12 sps:$4 sm:$0xff]  }
  0xd1   :  { %807 = vmatprep.subr.bf16.mxu0 %v13963_v9  ;;  %858 = vmatprep.subr.bf16.mxu1 %v14002_v20  ;;  %v13996_v37 = vld [vmem:[#allocation7 + $0x108] ss:$12 sps:$4 sm:$0xff]   ;;  %v14003_v39 = vld [vmem:[#allocation7 + $0xf0] ss:$12 sps:$4 sm:$0xff]   ;;  %v14006_v41 = vld [vmem:[#allocation7 + $0x180] ss:$12 sps:$4 sm:$0xff]  }
  0xd2   :  { %v14005_v38 = vld [vmem:[#allocation7 + $0xf4] ss:$12 sps:$4 sm:$0xff]   ;;  %v14008_v40 = vld [vmem:[#allocation7 + $0x184] ss:$12 sps:$4 sm:$0xff]   ;;  %v14011_v42 = vld [vmem:[#allocation7 + $0xdc] ss:$12 sps:$4 sm:$0xff]  }
  0xd3   :  { %v14009_v43 = vld [vmem:[#allocation7 + $0xd8] ss:$12 sps:$4 sm:$0xff]   ;;  %v14012_v44 = vld [vmem:[#allocation7 + $0x170] ss:$12 sps:$4 sm:$0xff]   ;;  %v14013_v46 = vld [vmem:[#allocation7 + $0xc0] ss:$12 sps:$4 sm:$0xff]  }
  0xd4   :  { %808 = vmatpush1.bf16.msra.mxu0 %v13961_v10  ;;  %859 = vmatpush1.bf16.msra.mxu1 %v14000_v24  ;;  %v14015_v45 = vld [vmem:[#allocation7 + $0xc4] ss:$12 sps:$4 sm:$0xff]   ;;  %v14061_v47 = vld [vmem:[#allocation10 + $0x170] ss:$12 sps:$4 sm:$0xff]   ;;  %v15087_v50 = vsub.s32 2, %v15084_v49  ;;  %v15090_v52 = vsub.s32 0, %v15084_v49 }
  0xd5   :  { %809 = vmatprep.subr.bf16.mxu0 %v13966_v11  ;;  %860 = vmatprep.subr.bf16.mxu1 %v14008_v40  ;;  %v273_v51 = vld [vmem:[#allocation4] sm:$0x7]  ;;  %v15093_v53 = vsub.s32 1, %v15084_v49  ;;  %vm791_vm3 = vcmask 359424   ;;  %v14017_v8 = vld [vmem:[#allocation7 + $0x158] ss:$12 sps:$4 sm:$0xff]  }
  0xd6   :  { %v286_v54 = vrot.slane %v273_v51, %v15087_v50  ;;  %v278_v55 = vrot.slane %v273_v51, %v15090_v52  ;;  %v14016_v5 = vld [vmem:[#allocation7 + $0xb0] ss:$12 sps:$4 sm:$0xff]   ;;  %v14020_v19 = vld [vmem:[#allocation7 + $0x80] ss:$12 sps:$4 sm:$0xff]   ;;  %v14022_v23 = vld [vmem:[#allocation7 + $0x68] ss:$12 sps:$4 sm:$0xff]  }
  0xd7   :  { %v282_v57 = vrot.slane %v273_v51, %v15093_v53  ;;  %v14062_v16 = vld [vmem:[#allocation10 + $0xb0] ss:$12 sps:$4 sm:$0xff]   ;;  %v14067_v20 = vld [vmem:[#allocation10 + $0x98] ss:$12 sps:$4 sm:$0xff]   ;;  %v14072_v24 = vld [vmem:[#allocation10 + $0x80] ss:$12 sps:$4 sm:$0xff]  }
  0xd8   :  { %810 = vmatpush1.bf16.msra.mxu0 %v13964_v12  ;;  %861 = vmatpush1.bf16.msra.mxu1 %v14006_v41  ;;  %v14034_v40 = vld [vmem:[#allocation10 + $0xa8] ss:$12 sps:$4 sm:$0xff]   ;;  %s17664_s0 = sld [smem:[#allocation45_spill]]  ;;  %vm2380_vm4 = vcmask 1042432   ;;  %vm2376_vm5 = vcmask 179200   ;;  %s14874_s28 = smov [#allocation28]  }
  0xd9   :  { %811 = vmatprep.subr.bf16.mxu0 %v13969_v13  ;;  %13851 = vmatprep.subr.bf16.mxu1 %v14012_v44  ;;  %v14039_v41 = vld [vmem:[#allocation10 + $0x94] ss:$12 sps:$4 sm:$0xff]   ;;  %v14040_v44 = vld [vmem:[#allocation10 + $0x78] ss:$12 sps:$4 sm:$0xff]   ;;  %s12345_s12 = sshll.u32 %s14874_s28, 4  ;;  %s12346_s12 = int_to_ptr.vmem [resolvable:$true] %s12345_s12 }
  0xda   :  { %v14046_v48 = vld [vmem:[#allocation10 + $0x48] ss:$12 sps:$4 sm:$0xff]   ;;  %s14812_s29 = scalar_lea.vmem %s12346_s12, 128  ;;  %p14817_p6 = scmp.lt.s32.totalorder %s12346_s12, %s12346_s12 }
  0xdb   :  { %v14051_v51 = vld [vmem:[#allocation10 + $0x34] ss:$12 sps:$4 sm:$0xff]   ;;  %p14813_p5 = scmp.ne.s32.totalorder %s12346_s12, %s14812_s29  ;;  %p14818_p7 = scmp.lt.s32.totalorder %s14812_s29, %s14812_s29 }
  0xdc   :  { %812 = vmatpush1.bf16.msra.mxu0 %v13967_v14 }
  0xdd   :  { %813 = vmatprep.subr.bf16.mxu0 %v13972_v15  ;;  %v14018_v15 = vld [vmem:[#allocation7 + $0x98] ss:$12 sps:$4 sm:$0xff]   ;;  %p14819_p8 = por %p14818_p7, %p14817_p6 }
  0xdf   :  { %p14820_p9 = pnand %p14819_p8, %p14813_p5 }
  0xe0   :  { %814 = vmatpush1.bf16.msra.mxu0 %v13970_v17  ;;  %v14019_v17 = vld [vmem:[#allocation7 + $0x140] ss:$12 sps:$4 sm:$0xff]  }
  0xe1   :  { %815 = vmatprep.subr.bf16.mxu0 %v13975_v18  ;;  %v14066_v18 = vld [vmem:[#allocation10 + $0x158] ss:$12 sps:$4 sm:$0xff]  }
  0xe4   :  { %816 = vmatpush1.bf16.msra.mxu0 %v13973_v21  ;;  %v14021_v21 = vld [vmem:[#allocation7 + $0x128] ss:$12 sps:$4 sm:$0xff]  }
  0xe5   :  { %817 = vmatprep.subr.bf16.mxu0 %v13978_v22  ;;  %v14071_v22 = vld [vmem:[#allocation10 + $0x140] ss:$12 sps:$4 sm:$0xff]  }
  0xe8   :  { %818 = vmatpush1.bf16.msra.mxu0 %v13976_v25  ;;  %v14023_v25 = vld [vmem:[#allocation7 + $0x110] ss:$12 sps:$4 sm:$0xff]  }
  0xe9   :  { %819 = vmatprep.subr.bf16.mxu0 %v13981_v26  ;;  %v14076_v26 = vld [vmem:[#allocation10 + $0x128] ss:$12 sps:$4 sm:$0xff]  }
  0xec   :  { %820 = vmatpush1.bf16.msra.mxu0 %v13979_v27  ;;  %v14024_v27 = vld [vmem:[#allocation7 + $0x50] ss:$12 sps:$4 sm:$0xff]  }
  0xed   :  { %821 = vmatprep.subr.bf16.mxu0 %v13984_v28  ;;  %v14077_v28 = vld [vmem:[#allocation10 + $0x68] ss:$12 sps:$4 sm:$0xff]  }
  0xf0   :  { %822 = vmatpush2.bf16.msra.mxu0 %v13982_v29  ;;  %v14025_v29 = vld [vmem:[#allocation7 + $0xf8] ss:$12 sps:$4 sm:$0xff]  }
  0xf1   :  { %823 = vmatprep.subr.bf16.mxu0 %v13987_v30  ;;  %v14026_v30 = vld [vmem:[#allocation7 + $0x38] ss:$12 sps:$4 sm:$0xff]  }
  0xf4   :  { %824 = vmatpush2.bf16.msra.mxu0 %v13985_v31  ;;  %v14027_v31 = vld [vmem:[#allocation7 + $0xe0] ss:$12 sps:$4 sm:$0xff]  }
  0xf5   :  { %825 = vmatprep.subr.bf16.mxu0 %v13990_v32  ;;  %v14028_v32 = vld [vmem:[#allocation7 + $0x20] ss:$12 sps:$4 sm:$0xff]  }
  0xf8   :  { %826 = vmatpush2.bf16.msra.mxu0 %v13988_v33  ;;  %v14029_v33 = vld [vmem:[#allocation7 + $0xc8] ss:$12 sps:$4 sm:$0xff]  }
  0xf9   :  { %827 = vmatprep.subr.bf16.mxu0 %v13993_v34  ;;  %v14030_v34 = vld [vmem:[#allocation7 + $0x8] ss:$12 sps:$4 sm:$0xff]  }
  0xfc   :  { %828 = vmatpush2.bf16.msra.mxu0 %v13991_v35  ;;  %v14031_v35 = vld [vmem:[#allocation7 + $0x1b8] ss:$12 sps:$4 sm:$0x3f]  }
  0xfd   :  { %829 = vmatprep.subr.bf16.mxu0 %v13998_v36  ;;  %v803_v36 = vsel %vm795_vm2, %v14031_v35, 0 }
 0x100   :  { %830 = vmatpush2.bf16.msra.mxu0 %v13996_v37  ;;  %v14032_v37 = vld [vmem:[#allocation7 + $0x1a0] ss:$12 sps:$4 sm:$0xff]  }
 0x101   :  { %831 = vmatprep.subr.bf16.mxu0 %v14005_v38  ;;  %v14033_v38 = vld [vmem:[#allocation7 + $0x188] ss:$12 sps:$4 sm:$0xff]  }
 0x104   :  { %832 = vmatpush2.bf16.msra.mxu0 %v14003_v39  ;;  %v14036_v39 = vld [vmem:[#allocation10 + $0xac] ss:$12 sps:$4 sm:$0xff]  }
 0x105   :  { %833 = vmatprep.subr.bf16.mxu0 %v14011_v42  ;;  %v14037_v42 = vld [vmem:[#allocation10 + $0x90] ss:$12 sps:$4 sm:$0xff]  }
 0x108   :  { %834 = vmatpush2.bf16.msra.mxu0 %v14009_v43  ;;  %v14042_v43 = vld [vmem:[#allocation10 + $0x7c] ss:$12 sps:$4 sm:$0xff]  }
 0x109   :  { %835 = vmatprep.subr.bf16.mxu0 %v14015_v45  ;;  %v14045_v45 = vld [vmem:[#allocation10 + $0x64] ss:$12 sps:$4 sm:$0xff]  }
 0x10c   :  { %836 = vmatpush2.bf16.msra.mxu0 %v14013_v46  ;;  %v14043_v46 = vld [vmem:[#allocation10 + $0x60] ss:$12 sps:$4 sm:$0xff]  }
 0x10d   :  { %13877 = vmatprep.subr.bf16.mxu0 %v14061_v47  ;;  %v14048_v47 = vld [vmem:[#allocation10 + $0x4c] ss:$12 sps:$4 sm:$0xff]  }
 0x18e   :  { %v385_v56 = vpop.f32.mrf.mxu1 }
 0x18f   :  { %v386_v58 = vadd.f32 %v385_v56, %v286_v54  ;;  %v344_v59 = vpop.f32.mrf.mxu0  ;;  %v14049_v54 = vld [vmem:[#allocation10 + $0x30] ss:$12 sps:$4 sm:$0xff]  }
 0x190   :  { %v345_v60 = vadd.f32 %v344_v59, %v278_v55  ;;  %v13907_v61 = vpop.f32.mrf.mxu1  ;;  %v14054_v55 = vld [vmem:[#allocation10 + $0x1c] ss:$12 sps:$4 sm:$0xff]   ;;  %v14057_v59 = vld [vmem:[#allocation10 + $0x4] ss:$12 sps:$4 sm:$0xff]  }
 0x191   :  { %v393_v62 = vmax.f32 %v386_v58, 0.0  ;;  %v346_v63 = vpop.f32.mrf.mxu0  ;;  %v14081_v56 = vld [vmem:[#allocation10 + $0x110] ss:$12 sps:$4 sm:$0xff]   ;;  %v14052_v58 = vld [vmem:[#allocation10 + $0x18] ss:$12 sps:$4 sm:$0xff]  }
 0x192   :  { %v391_v2 = vmax.f32 %v345_v60, 0.0  ;;  %v347_v3 = vadd.f32 %v346_v63, %v282_v57  ;;  %v388_v4 = vpop.f32.mrf.mxu1  ;;  %v14082_v57 = vld [vmem:[#allocation10 + $0x50] ss:$12 sps:$4 sm:$0xff]   ;;  %v14086_v60 = vld [vmem:[#allocation10 + $0xf8] ss:$12 sps:$4 sm:$0xff]  }
 0x193   :  { %v15098_v7 = vpack.c.bf16 %v393_v62, %v393_v62  ;;  %v348_v9 = vpop.f32.mrf.mxu0  ;;  %v14087_v61 = vld [vmem:[#allocation10 + $0x38] ss:$12 sps:$4 sm:$0xff]   ;;  %v14055_v62 = vld [vmem:[#allocation10] ss:$12 sps:$4 sm:$0xff]   ;;  %v14058_v4 = vld [vmem:[#allocation10 + $0x168] ss:$12 sps:$4 sm:$0xff]  }
 0x194   :  { %v392_v10 = vmax.f32 %v347_v3, 0.0  ;;  %v13908_v11 = vpop.f32.mrf.mxu1  ;;  %v394_v12 = vpack.c.bf16 %v391_v2, %v391_v2  ;;  %v14060_v63 = vld [vmem:[#allocation10 + $0x16c] ss:$12 sps:$4 sm:$0xff]   ;;  %v14063_v9 = vld [vmem:[#allocation10 + $0x150] ss:$12 sps:$4 sm:$0xff]  }
 0x195   :  { %12424 = vmatmul.mubr.msk.bf16.vlgmr.msra.gmra.mxu1 %vm791_vm3, %v15098_v7  ;;  %v349_v13 = vpop.f32.mrf.mxu0  ;;  %v14091_v2 = vld [vmem:[#allocation10 + $0xe0] ss:$12 sps:$4 sm:$0xff]   ;;  %v14068_v11 = vld [vmem:[#allocation10 + $0x138] ss:$12 sps:$4 sm:$0xff]  }
 0x196   :  { %v395_v14 = vpack.c.bf16 %v392_v10, %v392_v10  ;;  %13852 = vmatpush3.bf16.msra.mxu1 %v14016_v5  ;;  %v14092_v3 = vld [vmem:[#allocation10 + $0x20] ss:$12 sps:$4 sm:$0xff]   ;;  %v14070_v10 = vld [vmem:[#allocation10 + $0x13c] ss:$12 sps:$4 sm:$0xff]  }
 0x197   :  { %13853 = vmatprep.subr.bf16.mxu1 %v14017_v8  ;;  %v14065_v5 = vld [vmem:[#allocation10 + $0x154] ss:$12 sps:$4 sm:$0xff]  }
 0x198   :  { %837 = vmatprep.mubr.bf16.mxu0 %v395_v14  ;;  %919 = vmatprep.mubr.bf16.mxu1 %v395_v14  ;;  %v14097_v8 = vld [vmem:[#allocation10 + $0x8] ss:$12 sps:$4 sm:$0xff]   ;;  %v14073_v13 = vld [vmem:[#allocation10 + $0x120] ss:$12 sps:$4 sm:$0xff]  }
 0x199   :  { %838 = vmatmul.mubr.bf16.vlgmr.msra.gmra.mxu0 %v394_v12  ;;  %v14080_v14 = vld [vmem:[#allocation10 + $0x10c] ss:$12 sps:$4 sm:$0xff]  }
 0x19a   :  { %13854 = vmatpush3.bf16.msra.mxu1 %v14018_v15  ;;  %13878 = vmatpush3.bf16.msra.mxu0 %v14062_v16  ;;  %v14078_v15 = vld [vmem:[#allocation10 + $0x108] ss:$12 sps:$4 sm:$0xff]  }
 0x19b   :  { %13855 = vmatprep.subr.bf16.mxu1 %v14019_v17  ;;  %13879 = vmatprep.subr.bf16.mxu0 %v14066_v18  ;;  %v14085_v16 = vld [vmem:[#allocation10 + $0xf4] ss:$12 sps:$4 sm:$0xff]   ;;  %v14083_v17 = vld [vmem:[#allocation10 + $0xf0] ss:$12 sps:$4 sm:$0xff]  }
 0x19c   :  { %v14090_v18 = vld [vmem:[#allocation10 + $0xdc] ss:$12 sps:$4 sm:$0xff]  }
 0x19e   :  { %13856 = vmatpush3.bf16.msra.mxu1 %v14020_v19  ;;  %13880 = vmatpush3.bf16.msra.mxu0 %v14067_v20  ;;  %v14088_v19 = vld [vmem:[#allocation10 + $0xd8] ss:$12 sps:$4 sm:$0xff]  }
 0x19f   :  { %13857 = vmatprep.subr.bf16.mxu1 %v14021_v21  ;;  %13881 = vmatprep.subr.bf16.mxu0 %v14071_v22  ;;  %v14095_v20 = vld [vmem:[#allocation10 + $0xc4] ss:$12 sps:$4 sm:$0xff]   ;;  %v14093_v21 = vld [vmem:[#allocation10 + $0xc0] ss:$12 sps:$4 sm:$0xff]  }
 0x1a0   :  { %v14098_v22 = vld [vmem:[#allocation10 + $0x1b4] ss:$12 sps:$4 sm:$0x3f]  }
 0x1a2   :  { %13858 = vmatpush3.bf16.msra.mxu1 %v14022_v23  ;;  %13882 = vmatpush3.bf16.msra.mxu0 %v14072_v24  ;;  %v473_v23 = vld [vmem:[#allocation9] sm:$0x7] }
 0x1a3   :  { %13859 = vmatprep.subr.bf16.mxu1 %v14023_v25  ;;  %13883 = vmatprep.subr.bf16.mxu0 %v14076_v26  ;;  %v478_v25 = vrot.slane %v473_v23, %v15090_v52 }
 0x1a6   :  { %13860 = vmatpush3.bf16.msra.mxu1 %v14024_v27  ;;  %13884 = vmatpush3.bf16.msra.mxu0 %v14077_v28  ;;  %v482_v27 = vrot.slane %v473_v23, %v15093_v53 }
 0x1a7   :  { %13861 = vmatprep.subr.bf16.mxu1 %v14025_v29  ;;  %13885 = vmatprep.subr.bf16.mxu0 %v14081_v56  ;;  %v14112_v56 = vld [vmem:[%s17664_s0 + $0x74] ss:$8 sps:$4 sm:$0xff]  }
 0x1aa   :  { %13862 = vmatpush3.bf16.msra.mxu1 %v14026_v30  ;;  %13886 = vmatpush3.bf16.msra.mxu0 %v14082_v57 }
 0x1ab   :  { %13863 = vmatprep.subr.bf16.mxu1 %v14027_v31  ;;  %13887 = vmatprep.subr.bf16.mxu0 %v14086_v60 }
 0x1ae   :  { %13864 = vmatpush3.bf16.msra.mxu1 %v14028_v32  ;;  %13888 = vmatpush3.bf16.msra.mxu0 %v14087_v61 }
 0x1af   :  { %13865 = vmatprep.subr.bf16.mxu1 %v14029_v33  ;;  %13889 = vmatprep.subr.bf16.mxu0 %v14091_v2 }
 0x1b2   :  { %13866 = vmatpush3.bf16.msra.mxu1 %v14030_v34  ;;  %13890 = vmatpush3.bf16.msra.mxu0 %v14092_v3 }
 0x1b3   :  { %13909 = vmatprep.subr.bf16.mxu1 %v14871_v0 }
 0x1b5   :  { %920 = vmatmul.mubr.bf16.vlgmr.msra.gmra.mxu1 %v394_v12  ;;  %v14075_v12 = vld [vmem:[#allocation10 + $0x124] ss:$12 sps:$4 sm:$0xff]  }
 0x1b6   :  { %13910 = vmatpush3.bf16.msra.mxu1 %v803_v36  ;;  %13915 = vmatprep.mubr.msk.bf16.mxu1 %vm14872_vm0, %v14871_v0 }
 0x1b7   :  { %13911 = vmatprep.subr.bf16.mxu1 %v14871_v0 }
 0x1ba   :  { %13912 = vmatpush3.bf16.msra.mxu1 %v14032_v37  ;;  %v14100_v37 = vld [vmem:[#allocation10 + $0x1b0] ss:$12 sps:$4 sm:$0x3f]  }
 0x1bb   :  { %13913 = vmatprep.subr.bf16.mxu1 %v14871_v0 }
 0x1be   :  { %13914 = vmatpush3.bf16.msra.mxu1 %v14033_v38 }
 0x1bf   :  { %1379 = vmatprep.subr.bf16.mxu1 %v14036_v39 }
 0x1c1   :  { %13916 = vmatmul.mubr.msk.bf16.vlgmr.msra.gmra.mxu1 %vm791_vm3, %v15098_v7  ;;  %v14096_v7 = vld [vmem:[#allocation10 + $0xc8] ss:$12 sps:$4 sm:$0xff]  }
 0x1c2   :  { %1380 = vmatpush1.bf16.msra.mxu1 %v14034_v40  ;;  %13891 = vmatprep.subr.bf16.mxu0 %v14096_v7  ;;  %v14101_v40 = vld [vmem:[#allocation10 + $0x1b8] ss:$12 sps:$4 sm:$0x3f]   ;;  %v14110_v7 = vld [vmem:[%s17664_s0 + $0x70] ss:$8 sps:$4 sm:$0xff]  }
 0x1c3   :  { %1381 = vmatprep.subr.bf16.mxu1 %v14039_v41  ;;  %13892 = vmatpush3.bf16.msra.mxu0 %v14097_v8 }
 0x1c4   :  { %13919 = vmatprep.subr.bf16.mxu0 %v14871_v0 }
 0x1c6   :  { %1382 = vmatpush1.bf16.msra.mxu1 %v14037_v42 }
 0x1c7   :  { %1383 = vmatprep.subr.bf16.mxu1 %v14042_v43 }
 0x1ca   :  { %1384 = vmatpush1.bf16.msra.mxu1 %v14040_v44  ;;  %v1371_v44 = vsel %vm795_vm2, %v14100_v37, 0  ;;  %v14148_v37 = vld [vmem:[%s17664_s0 + $0xb4] ss:$8 sps:$4 sm:$0xff]  }
 0x1cb   :  { %1385 = vmatprep.subr.bf16.mxu1 %v14045_v45  ;;  %v1377_v45 = vsel %vm795_vm2, %v14101_v40, 0  ;;  %v14152_v40 = vld [vmem:[%s17664_s0 + $0xa0] ss:$8 sps:$4 sm:$0xff]  }
 0x1ce   :  { %1386 = vmatpush1.bf16.msra.mxu1 %v14043_v46  ;;  %v14104_v46 = vld [vmem:[#allocation10 + $0x19c] ss:$12 sps:$4 sm:$0xff]  }
 0x1cf   :  { %1387 = vmatprep.subr.bf16.mxu1 %v14048_v47  ;;  %v14102_v47 = vld [vmem:[#allocation10 + $0x198] ss:$12 sps:$4 sm:$0xff]  }
 0x1d2   :  { %1388 = vmatpush1.bf16.msra.mxu1 %v14046_v48  ;;  %v14105_v48 = vld [vmem:[#allocation10 + $0x1a0] ss:$12 sps:$4 sm:$0xff]  }
 0x1d3   :  { %1389 = vmatprep.subr.bf16.mxu1 %v14051_v51  ;;  %v14108_v51 = vld [vmem:[#allocation10 + $0x184] ss:$12 sps:$4 sm:$0xff]  }
 0x1d6   :  { %1390 = vmatpush1.bf16.msra.mxu1 %v14049_v54  ;;  %v14106_v54 = vld [vmem:[#allocation10 + $0x180] ss:$12 sps:$4 sm:$0xff]  }
 0x1d7   :  { %1391 = vmatprep.subr.bf16.mxu1 %v14054_v55  ;;  %v14109_v55 = vld [vmem:[#allocation10 + $0x188] ss:$12 sps:$4 sm:$0xff]  }
 0x1da   :  { %1392 = vmatpush1.bf16.msra.mxu1 %v14052_v58 }
 0x1db   :  { %1393 = vmatprep.subr.bf16.mxu1 %v14057_v59 }
 0x1de   :  { %1394 = vmatpush1.bf16.msra.mxu1 %v14055_v62  ;;  %v486_v62 = vrot.slane %v473_v23, %v15087_v50  ;;  %v14133_v23 = vld [vmem:[%s17664_s0 + $0x4] ss:$8 sps:$4 sm:$0xff]  }
 0x1df   :  { %1395 = vmatprep.subr.bf16.mxu1 %v14060_v63 }
 0x1e2   :  { %1396 = vmatpush2.bf16.msra.mxu1 %v14058_v4 }
 0x1e3   :  { %1397 = vmatprep.subr.bf16.mxu1 %v14065_v5 }
 0x1e6   :  { %1398 = vmatpush2.bf16.msra.mxu1 %v14063_v9  ;;  %v14115_v9 = vld [vmem:[%s17664_s0 + $0x64] ss:$8 sps:$4 sm:$0xff]  }
 0x1e7   :  { %1399 = vmatprep.subr.bf16.mxu1 %v14070_v10 }
 0x1ea   :  { %1400 = vmatpush2.bf16.msra.mxu1 %v14068_v11  ;;  %v14113_v11 = vld [vmem:[%s17664_s0 + $0x60] ss:$8 sps:$4 sm:$0xff]  }
 0x1eb   :  { %1401 = vmatprep.subr.bf16.mxu1 %v14075_v12  ;;  %v14118_v12 = vld [vmem:[%s17664_s0 + $0x54] ss:$8 sps:$4 sm:$0xff]  }
 0x1ee   :  { %1402 = vmatpush2.bf16.msra.mxu1 %v14073_v13  ;;  %v14116_v13 = vld [vmem:[%s17664_s0 + $0x50] ss:$8 sps:$4 sm:$0xff]  }
 0x1ef   :  { %1403 = vmatprep.subr.bf16.mxu1 %v14080_v14  ;;  %v14121_v14 = vld [vmem:[%s17664_s0 + $0x44] ss:$8 sps:$4 sm:$0xff]  }
 0x1f2   :  { %1404 = vmatpush2.bf16.msra.mxu1 %v14078_v15  ;;  %v14119_v15 = vld [vmem:[%s17664_s0 + $0x40] ss:$8 sps:$4 sm:$0xff]  }
 0x1f3   :  { %1405 = vmatprep.subr.bf16.mxu1 %v14085_v16  ;;  %v14124_v16 = vld [vmem:[%s17664_s0 + $0x34] ss:$8 sps:$4 sm:$0xff]  }
 0x1f6   :  { %1406 = vmatpush2.bf16.msra.mxu1 %v14083_v17  ;;  %v14122_v17 = vld [vmem:[%s17664_s0 + $0x30] ss:$8 sps:$4 sm:$0xff]  }
 0x1f7   :  { %1407 = vmatprep.subr.bf16.mxu1 %v14090_v18  ;;  %v14127_v18 = vld [vmem:[%s17664_s0 + $0x24] ss:$8 sps:$4 sm:$0xff]  }
 0x1fa   :  { %1408 = vmatpush2.bf16.msra.mxu1 %v14088_v19  ;;  %v14125_v19 = vld [vmem:[%s17664_s0 + $0x20] ss:$8 sps:$4 sm:$0xff]  }
 0x1fb   :  { %1409 = vmatprep.subr.bf16.mxu1 %v14095_v20  ;;  %v14130_v20 = vld [vmem:[%s17664_s0 + $0x14] ss:$8 sps:$4 sm:$0xff]  }
 0x1fe   :  { %1410 = vmatpush2.bf16.msra.mxu1 %v14093_v21  ;;  %v14128_v21 = vld [vmem:[%s17664_s0 + $0x10] ss:$8 sps:$4 sm:$0xff]  }
 0x1ff   :  { %12483 = vmatprep.subr.msk.bf16.mxu1 %vm795_vm2, %v14098_v22  ;;  %v14131_v22 = vld [vmem:[%s17664_s0] ss:$8 sps:$4 sm:$0xff]  }
 0x255   :  { %v880_v24 = vpop.f32.mrf.mxu1 }
 0x257   :  { %v882_v26 = vpop.f32.mrf.mxu1 }
 0x259   :  { %v839_v28 = vpop.f32.mrf.mxu0  ;;  %v884_v29 = vpop.f32.mrf.mxu1 }
 0x25a   :  { %v840_v30 = vadd.f32 %v839_v28, %v478_v25  ;;  %v14134_v25 = vld [vmem:[%s17664_s0 + $0xf0] ss:$8 sps:$4 sm:$0xff]   ;;  %v14139_v28 = vld [vmem:[%s17664_s0 + $0xe4] ss:$8 sps:$4 sm:$0xff]  }
 0x25b   :  { %v841_v31 = vpop.f32.mrf.mxu0  ;;  %v885_v32 = vpop.f32.mrf.mxu1 }
 0x25c   :  { %v881_v33 = vadd.f32 %v880_v24, %v840_v30  ;;  %v842_v34 = vadd.f32 %v841_v31, %v482_v27  ;;  %v14136_v24 = vld [vmem:[%s17664_s0 + $0xf4] ss:$8 sps:$4 sm:$0xff]   ;;  %v14151_v27 = vld [vmem:[%s17664_s0 + $0x120] ss:$8 sps:$4 sm:$0x3f]  }
 0x25d   :  { %v843_v35 = vpop.f32.mrf.mxu0  ;;  %v1789_v29 = vsel %vm795_vm2, %v14151_v27, 0  ;;  %v14157_v30 = vld [vmem:[%s17664_s0 + $0x114] ss:$8 sps:$4 sm:$0xff]   ;;  %v14155_v31 = vld [vmem:[%s17664_s0 + $0x110] ss:$8 sps:$4 sm:$0xff]  }
 0x25e   :  { %v883_v36 = vadd.f32 %v882_v26, %v842_v34  ;;  %v967_v38 = vmax.f32 %v881_v33, 0.0  ;;  %v14149_v26 = vld [vmem:[%s17664_s0 + $0x124] ss:$8 sps:$4 sm:$0x3f]   ;;  %v14137_v32 = vld [vmem:[%s17664_s0 + $0xe0] ss:$8 sps:$4 sm:$0xff]  }
 0x25f   :  { %v844_v39 = vpop.f32.mrf.mxu0  ;;  %v14142_v33 = vld [vmem:[%s17664_s0 + $0xd4] ss:$8 sps:$4 sm:$0xff]   ;;  %v14140_v34 = vld [vmem:[%s17664_s0 + $0xd0] ss:$8 sps:$4 sm:$0xff]   ;;  %v14145_v35 = vld [vmem:[%s17664_s0 + $0xc4] ss:$8 sps:$4 sm:$0xff]  }
 0x260   :  { %v968_v41 = vmax.f32 %v883_v36, 0.0  ;;  %v970_v43 = vpack.c.bf16 %v967_v38, %v967_v38  ;;  %v14143_v36 = vld [vmem:[%s17664_s0 + $0xc0] ss:$8 sps:$4 sm:$0xff]   ;;  %v14146_v38 = vld [vmem:[%s17664_s0 + $0xb0] ss:$8 sps:$4 sm:$0xff]  }
 0x261   :  { %v14154_v39 = vld [vmem:[%s17664_s0 + $0xa4] ss:$8 sps:$4 sm:$0xff]  }
 0x262   :  { %v971_v42 = vpack.c.bf16 %v968_v41, %v968_v41  ;;  %v14160_v41 = vld [vmem:[%s17664_s0 + $0x94] ss:$8 sps:$4 sm:$0xff]  }
 0x264   :  { %1411 = vmatprep.mubr.bf16.mxu1 %v971_v42  ;;  %1493 = vmatprep.mubr.bf16.mxu0 %v971_v42  ;;  %v14158_v42 = vld [vmem:[%s17664_s0 + $0x90] ss:$8 sps:$4 sm:$0xff]  }
 0x265   :  { %1412 = vmatmul.mubr.bf16.vlgmr.msra.gmra.mxu1 %v970_v43  ;;  %1494 = vmatmul.mubr.bf16.vlgmr.msra.gmra.mxu0 %v970_v43  ;;  %v14163_v43 = vld [vmem:[%s17664_s0 + $0x104] ss:$8 sps:$4 sm:$0xff]  }
 0x266   :  { %1431 = vmatpush1.bf16.msra.mxu1 %v1371_v44  ;;  %13920 = vmatpush3.bf16.msra.mxu0 %v1377_v45  ;;  %v14161_v44 = vld [vmem:[%s17664_s0 + $0x100] ss:$8 sps:$4 sm:$0xff]   ;;  %v14166_v45 = vld [vmem:[%s17664_s0 + $0x84] ss:$8 sps:$4 sm:$0xff]  }
 0x267   :  { %1432 = vmatprep.subr.bf16.mxu1 %v14104_v46  ;;  %13921 = vmatprep.subr.bf16.mxu0 %v14871_v0  ;;  %v14164_v46 = vld [vmem:[%s17664_s0 + $0x80] ss:$8 sps:$4 sm:$0xff]  }
 0x268   :  { %1452 = vmatprep.mubr.bf16.mxu1 %v14873_v1  ;;  %13925 = vmatprep.mubr.msk.bf16.mxu0 %vm14872_vm0, %v14871_v0 }
 0x26a   :  { %1433 = vmatpush1.bf16.msra.mxu1 %v14102_v47  ;;  %13922 = vmatpush3.bf16.msra.mxu0 %v14105_v48  ;;  %v1934_v47 = vld [vmem:[#allocation15 + $0x1c0] sm:$0xff] }
 0x26b   :  { %1434 = vmatprep.subr.bf16.mxu1 %v14108_v51  ;;  %13923 = vmatprep.subr.bf16.mxu0 %v14871_v0  ;;  %v1938_v48 = vld [vmem:[#allocation15 + $0x1e0] sm:$0xff]  ;;  %v1936_v51 = vld [vmem:[#allocation15 + $0x1d0] sm:$0xff] }
 0x26e   :  { %1435 = vmatpush1.bf16.msra.mxu1 %v14106_v54  ;;  %13924 = vmatpush3.bf16.msra.mxu0 %v14109_v55  ;;  %v12582_v54 = vcombine.low %v1934_v47, %v1938_v48  ;;  %v12583_v55 = vcombine.high %v1934_v47, %v1938_v48  ;;  %v1912_v48 = vld [vmem:[#allocation15 + $0x110] sm:$0xff] }
 0x26f   :  { %1794 = vmatprep.subr.bf16.mxu0 %v14112_v56  ;;  %12524 = vmatprep.subr.msk.bf16.mxu1 %vm795_vm2, %v14149_v26  ;;  %v1940_v56 = vld [vmem:[#allocation15 + $0x1f0] sm:$0xff] }
 0x275   :  { %v13867_v57 = vpop.f32.mrf.mxu1 }
 0x277   :  { %v13868_v58 = vpop.f32.mrf.mxu1 }
 0x278   :  { %v13869_v61 = vadd.f32 %v13868_v58, %v13867_v57  ;;  %v12586_v57 = vcombine.low %v1936_v51, %v1940_v56  ;;  %v12587_v58 = vcombine.high %v1936_v51, %v1940_v56  ;;  %v1916_v51 = vld [vmem:[#allocation15 + $0x130] sm:$0xff] }
 0x279   :  { %v13870_v59 = vpop.f32.mrf.mxu1 }
 0x27a   :  { %v922_v63 = vadd.f32 %v13869_v61, %v486_v62 }
 0x27b   :  { %v13871_v60 = vpop.f32.mrf.mxu1 }
 0x281   :  { %v961_v2 = vpop.f32.mrf.mxu1 }
 0x282   :  { %v962_v3 = vadd.f32 %v961_v2, %v922_v63 }
 0x283   :  { %v13917_v4 = vpop.f32.mrf.mxu1 }
 0x284   :  { %v969_v5 = vmax.f32 %v962_v3, 0.0 }
 0x285   :  { %v964_v0 = vpop.f32.mrf.mxu1 }
 0x286   :  { %v972_v8 = vpack.c.bf16 %v969_v5, %v969_v5  ;;  %v1049_v5 = vld [vmem:[#allocation12] sm:$0x7] }
 0x287   :  { %v13918_v10 = vpop.f32.mrf.mxu1  ;;  %v1054_v0 = vrot.slane %v1049_v5, %v15090_v52 }
 0x288   :  { %12484 = vmatmul.mubr.msk.bf16.vlgmr.msra.gmra.mxu1 %vm791_vm3, %v972_v8  ;;  %13926 = vmatmul.mubr.msk.bf16.vlgmr.msra.gmra.mxu0 %vm791_vm3, %v972_v8  ;;  %v1062_v8 = vrot.slane %v1049_v5, %v15087_v50 }
 0x289   :  { %1795 = vmatpush1.bf16.msra.mxu0 %v14110_v7  ;;  %1867 = vmatprep.mubr.bf16.mxu1 %v14873_v1 }
 0x28a   :  { %1796 = vmatprep.subr.bf16.mxu0 %v14115_v9  ;;  %1846 = vmatpush1.bf16.msra.mxu1 %v1789_v29  ;;  %v1058_v9 = vrot.slane %v1049_v5, %v15093_v53  ;;  %v1928_v29 = vld [vmem:[#allocation15 + $0x190] sm:$0xff] }
 0x28b   :  { %1847 = vmatprep.subr.bf16.mxu1 %v14157_v30  ;;  %v1932_v30 = vld [vmem:[#allocation15 + $0x1b0] sm:$0xff] }
 0x28d   :  { %1797 = vmatpush1.bf16.msra.mxu0 %v14113_v11 }
 0x28e   :  { %1798 = vmatprep.subr.bf16.mxu0 %v14118_v12  ;;  %1848 = vmatpush1.bf16.msra.mxu1 %v14155_v31 }
 0x28f   :  { %1849 = vmatprep.subr.bf16.mxu1 %v14163_v43  ;;  %v1914_v43 = vld [vmem:[#allocation15 + $0x120] sm:$0xff] }
 0x291   :  { %1799 = vmatpush1.bf16.msra.mxu0 %v14116_v13 }
 0x292   :  { %1800 = vmatprep.subr.bf16.mxu0 %v14121_v14  ;;  %1850 = vmatpush1.bf16.msra.mxu1 %v14161_v44  ;;  %v12578_v44 = vcombine.low %v1928_v29, %v1932_v30 }
 0x293   :  { %2405 = vmatprep.subr.bf16.mxu1 %v12583_v55  ;;  %v1906_v55 = vld [vmem:[#allocation15 + $0xe0] sm:$0xff] }
 0x295   :  { %1801 = vmatpush1.bf16.msra.mxu0 %v14119_v15 }
 0x296   :  { %1802 = vmatprep.subr.bf16.mxu0 %v14124_v16 }
 0x299   :  { %1803 = vmatpush1.bf16.msra.mxu0 %v14122_v17 }
 0x29a   :  { %1804 = vmatprep.subr.bf16.mxu0 %v14127_v18 }
 0x29d   :  { %1805 = vmatpush1.bf16.msra.mxu0 %v14125_v19  ;;  %v1926_v19 = vld [vmem:[#allocation15 + $0x180] sm:$0xff] }
 0x29e   :  { %1806 = vmatprep.subr.bf16.mxu0 %v14130_v20  ;;  %v1930_v20 = vld [vmem:[#allocation15 + $0x1a0] sm:$0xff] }
 0x2a1   :  { %1807 = vmatpush1.bf16.msra.mxu0 %v14128_v21 }
 0x2a2   :  { %1808 = vmatprep.subr.bf16.mxu0 %v14133_v23 }
 0x2a5   :  { %1809 = vmatpush1.bf16.msra.mxu0 %v14131_v22 }
 0x2a6   :  { %1810 = vmatprep.subr.bf16.mxu0 %v14136_v24 }
 0x2a9   :  { %1811 = vmatpush2.bf16.msra.mxu0 %v14134_v25 }
 0x2aa   :  { %1812 = vmatprep.subr.bf16.mxu0 %v14139_v28  ;;  %v12575_v28 = vcombine.high %v1926_v19, %v1930_v20 }
 0x2ad   :  { %1813 = vmatpush2.bf16.msra.mxu0 %v14137_v32 }
 0x2ae   :  { %1814 = vmatprep.subr.bf16.mxu0 %v14142_v33  ;;  %v1918_v33 = vld [vmem:[#allocation15 + $0x140] sm:$0xff] }
 0x2b1   :  { %1815 = vmatpush2.bf16.msra.mxu0 %v14140_v34  ;;  %v1922_v34 = vld [vmem:[#allocation15 + $0x160] sm:$0xff] }
 0x2b2   :  { %1816 = vmatprep.subr.bf16.mxu0 %v14145_v35 }
 0x2b5   :  { %1817 = vmatpush2.bf16.msra.mxu0 %v14143_v36 }
 0x2b6   :  { %1818 = vmatprep.subr.bf16.mxu0 %v14148_v37  ;;  %v12574_v37 = vcombine.low %v1926_v19, %v1930_v20  ;;  %v1878_v20 = vld [vmem:[#allocation15] sm:$0xff] }
 0x2b9   :  { %1819 = vmatpush2.bf16.msra.mxu0 %v14146_v38  ;;  %v12579_v38 = vcombine.high %v1928_v29, %v1932_v30  ;;  %v1952_v29 = vld [vmem:[#allocation15 + $0x250] sm:$0x77] }
 0x2ba   :  { %1820 = vmatprep.subr.bf16.mxu0 %v14154_v39  ;;  %v12567_v39 = vcombine.high %v1918_v33, %v1922_v34 }
 0x2bd   :  { %1821 = vmatpush2.bf16.msra.mxu0 %v14152_v40  ;;  %v1920_v40 = vld [vmem:[#allocation15 + $0x150] sm:$0xff] }
 0x2be   :  { %1822 = vmatprep.subr.bf16.mxu0 %v14160_v41  ;;  %v1924_v41 = vld [vmem:[#allocation15 + $0x170] sm:$0xff] }
 0x2bf   :  { %v12570_v56 = vcombine.low %v1920_v40, %v1924_v41 }
 0x2c1   :  { %1823 = vmatpush2.bf16.msra.mxu0 %v14158_v42  ;;  %v1910_v42 = vld [vmem:[#allocation15 + $0x100] sm:$0xff] }
 0x2c2   :  { %1824 = vmatprep.subr.bf16.mxu0 %v14166_v45  ;;  %v12566_v45 = vcombine.low %v1918_v33, %v1922_v34  ;;  %v12559_v47 = vcombine.high %v1910_v42, %v1914_v43  ;;  %v12602_v33 = vcombine.low %v1952_v29, %v1952_v29 }
 0x2c5   :  { %1825 = vmatpush2.bf16.msra.mxu0 %v14164_v46  ;;  %v12571_v46 = vcombine.high %v1920_v40, %v1924_v41  ;;  %v1948_v40 = vld [vmem:[#allocation15 + $0x230] sm:$0xff] }
 0x2c6   :  { %2487 = vmatprep.subr.bf16.mxu0 %v12587_v58  ;;  %v12558_v58 = vcombine.low %v1910_v42, %v1914_v43 }
 0x325   :  { %v1413_v59 = vpop.f32.mrf.mxu1  ;;  %v13893_v60 = vpop.f32.mrf.mxu0 }
 0x326   :  { %v1414_v10 = vadd.f32 %v1413_v59, %v1054_v0  ;;  %v12563_v59 = vcombine.high %v1912_v48, %v1916_v51  ;;  %v1896_v0 = vld [vmem:[#allocation15 + $0x90] sm:$0xff] }
 0x327   :  { %v1415_v61 = vpop.f32.mrf.mxu1  ;;  %v13894_v62 = vpop.f32.mrf.mxu0 }
 0x328   :  { %v13895_v7 = vadd.f32 %v13894_v62, %v13893_v60  ;;  %v1416_v14 = vadd.f32 %v1415_v61, %v1058_v9  ;;  %v1908_v61 = vld [vmem:[#allocation15 + $0xf0] sm:$0xff]  ;;  %v1894_v62 = vld [vmem:[#allocation15 + $0x80] sm:$0xff] }
 0x329   :  { %v1417_v63 = vpop.f32.mrf.mxu1  ;;  %v13896_v2 = vpop.f32.mrf.mxu0  ;;  %v1890_v9 = vld [vmem:[#allocation15 + $0x60] sm:$0xff] }
 0x32a   :  { %v1496_v11 = vadd.f32 %v13895_v7, %v1062_v8  ;;  %v1898_v63 = vld [vmem:[#allocation15 + $0xa0] sm:$0xff]  ;;  %v12562_v2 = vcombine.low %v1912_v48, %v1916_v51  ;;  %v1900_v7 = vld [vmem:[#allocation15 + $0xb0] sm:$0xff]  ;;  %v2629_v48 = vld [vmem:[#allocation18 + $0x1e0] sm:$0xff] }
 0x32b   :  { %v1418_v3 = vpop.f32.mrf.mxu1  ;;  %v13897_v4 = vpop.f32.mrf.mxu0  ;;  %v12543_v5 = vcombine.high %v1894_v62, %v1898_v63  ;;  %v1886_v8 = vld [vmem:[#allocation15 + $0x40] sm:$0xff] }
 0x348   :  { %v1454_v12 = vpop.f32.mrf.mxu1  ;;  %v1535_v13 = vpop.f32.mrf.mxu0 }
 0x349   :  { %v1455_v15 = vadd.f32 %v1454_v12, %v1414_v10  ;;  %v1536_v16 = vadd.f32 %v1535_v13, %v1496_v11  ;;  %v12542_v11 = vcombine.low %v1894_v62, %v1898_v63  ;;  %v12547_v12 = vcombine.high %v1896_v0, %v1900_v7 }
 0x34a   :  { %v1456_v17 = vpop.f32.mrf.mxu1  ;;  %v13927_v18 = vpop.f32.mrf.mxu0  ;;  %v12535_v13 = vcombine.high %v1886_v8, %v1890_v9 }
 0x34b   :  { %v1543_v21 = vmax.f32 %v1536_v16, 0.0  ;;  %v1457_v22 = vadd.f32 %v1456_v17, %v1416_v14  ;;  %v1541_v23 = vmax.f32 %v1455_v15, 0.0  ;;  %v1888_v14 = vld [vmem:[#allocation15 + $0x50] sm:$0xff]  ;;  %v12546_v16 = vcombine.low %v1896_v0, %v1900_v7 }
 0x34c   :  { %v1458_v24 = vpop.f32.mrf.mxu1  ;;  %v1538_v25 = vpop.f32.mrf.mxu0  ;;  %v1892_v15 = vld [vmem:[#allocation15 + $0x70] sm:$0xff]  ;;  %v12534_v17 = vcombine.low %v1886_v8, %v1890_v9  ;;  %v1927_v8 = vld [vmem:[#allocation15 + $0x188] sm:$0xff] }
 0x34d   :  { %v1546_v26 = vpack.c.bf16 %v1543_v21, %v1543_v21  ;;  %v1542_v27 = vmax.f32 %v1457_v22, 0.0  ;;  %v1544_v36 = vpack.c.bf16 %v1541_v23, %v1541_v23  ;;  %v12539_v18 = vcombine.high %v1888_v14, %v1892_v15  ;;  %v1882_v21 = vld [vmem:[#allocation15 + $0x20] sm:$0xff]  ;;  %v1880_v22 = vld [vmem:[#allocation15 + $0x10] sm:$0xff] }
 0x34e   :  { %v1459_v31 = vpop.f32.mrf.mxu1  ;;  %v13928_v32 = vpop.f32.mrf.mxu0  ;;  %v12538_v19 = vcombine.low %v1888_v14, %v1892_v15  ;;  %v12527_v23 = vcombine.high %v1878_v20, %v1882_v21  ;;  %v1884_v24 = vld [vmem:[#allocation15 + $0x30] sm:$0xff]  ;;  %v12526_v25 = vcombine.low %v1878_v20, %v1882_v21  ;;  %v1919_v15 = vld [vmem:[#allocation15 + $0x148] sm:$0xff] }
 0x34f   :  { %v1545_v35 = vpack.c.bf16 %v1542_v27, %v1542_v27  ;;  %12525 = vmatmul.mubr.msk.bf16.vlgmr.msra.gmra.mxu1 %vm791_vm3, %v1546_v26  ;;  %v12530_v26 = vcombine.low %v1880_v22, %v1884_v24  ;;  %v12531_v27 = vcombine.high %v1880_v22, %v1884_v24  ;;  %v12603_v31 = vcombine.high %v1952_v29, %v1952_v29  ;;  %v2613_v20 = vld [vmem:[#allocation18 + $0x160] sm:$0xff] }
 0x350   :  { %2406 = vmatpush1.bf16.msra.mxu1 %v12582_v54  ;;  %v1902_v54 = vld [vmem:[#allocation15 + $0xc0] sm:$0xff] }
 0x351   :  { %1826 = vmatprep.mubr.bf16.mxu0 %v1545_v35  ;;  %2407 = vmatprep.subr.bf16.mxu1 %v12575_v28  ;;  %v12551_v60 = vcombine.high %v1902_v54, %v1906_v55  ;;  %v12550_v3 = vcombine.low %v1902_v54, %v1906_v55  ;;  %v1950_v28 = vld [vmem:[#allocation15 + $0x240] sm:$0x77]  ;;  %v2394_v35 = vsel %vm2380_vm4, %v12602_v33, 0  ;;  %v1903_v33 = vld [vmem:[#allocation15 + $0xc8] sm:$0xff] }
 0x352   :  { %1827 = vmatmul.mubr.bf16.vlgmr.msra.gmra.mxu0 %v1544_v36  ;;  %v12599_v30 = vcombine.high %v1950_v28, %v1950_v28  ;;  %v12598_v32 = vcombine.low %v1950_v28, %v1950_v28  ;;  %v1942_v36 = vld [vmem:[#allocation15 + $0x200] sm:$0xff]  ;;  %v2605_v28 = vld [vmem:[#allocation18 + $0x120] sm:$0xff] }
 0x353   :  { %2488 = vmatpush1.bf16.msra.mxu0 %v12586_v57  ;;  %v1904_v57 = vld [vmem:[#allocation15 + $0xd0] sm:$0xff] }
 0x354   :  { %2489 = vmatprep.subr.bf16.mxu0 %v12579_v38  ;;  %2408 = vmatpush1.bf16.msra.mxu1 %v12574_v37  ;;  %v12555_v4 = vcombine.high %v1904_v57, %v1908_v61  ;;  %v12554_v10 = vcombine.low %v1904_v57, %v1908_v61  ;;  %v2382_v34 = vsel %vm2380_vm4, %v12598_v32, 0  ;;  %v1946_v37 = vld [vmem:[#allocation15 + $0x220] sm:$0xff]  ;;  %v1944_v38 = vld [vmem:[#allocation15 + $0x210] sm:$0xff] }
 0x355   :  { %2409 = vmatprep.subr.bf16.mxu1 %v12567_v39  ;;  %v12591_v39 = vcombine.high %v1942_v36, %v1946_v37  ;;  %v12590_v41 = vcombine.low %v1942_v36, %v1946_v37  ;;  %v12594_v42 = vcombine.low %v1944_v38, %v1948_v40  ;;  %v12595_v43 = vcombine.high %v1944_v38, %v1948_v40  ;;  %v2597_v36 = vld [vmem:[#allocation18 + $0xe0] sm:$0xff] }
 0x357   :  { %2490 = vmatpush1.bf16.msra.mxu0 %v12578_v44  ;;  %v1935_v44 = vld [vmem:[#allocation15 + $0x1c8] sm:$0xff] }
 0x358   :  { %2491 = vmatprep.subr.bf16.mxu0 %v12571_v46  ;;  %2410 = vmatpush1.bf16.msra.mxu1 %v12566_v45  ;;  %v1939_v45 = vld [vmem:[#allocation15 + $0x1e8] sm:$0xff] }
 0x359   :  { %2411 = vmatprep.subr.bf16.mxu1 %v12559_v47  ;;  %v2625_v46 = vld [vmem:[#allocation18 + $0x1c0] sm:$0xff]  ;;  %v12585_v47 = vcombine.high %v1935_v44, %v1939_v45  ;;  %v12584_v51 = vcombine.low %v1935_v44, %v1939_v45 }
 0x35a   :  { %v12670_v54 = vcombine.low %v2625_v46, %v2629_v48  ;;  %v12671_v55 = vcombine.high %v2625_v46, %v2629_v48  ;;  %v2589_v44 = vld [vmem:[#allocation18 + $0xa0] sm:$0xff] }
 0x35b   :  { %2492 = vmatpush1.bf16.msra.mxu0 %v12570_v56  ;;  %v1585_v56 = vld [vmem:[#allocation13] sm:$0x3] }
 0x35c   :  { %2493 = vmatprep.subr.bf16.mxu0 %v12563_v59  ;;  %2412 = vmatpush1.bf16.msra.mxu1 %v12558_v58  ;;  %v1590_v59 = vrot.slane %v1585_v56, %v15090_v52  ;;  %v1594_v57 = vrot.slane %v1585_v56, %v15093_v53  ;;  %v2581_v56 = vld [vmem:[#allocation18 + $0x60] sm:$0xff] }
 0x35d   :  { %2413 = vmatprep.subr.bf16.mxu1 %v12551_v60 }
 0x35f   :  { %2494 = vmatpush1.bf16.msra.mxu0 %v12562_v2 }
 0x360   :  { %2495 = vmatprep.subr.bf16.mxu0 %v12555_v4  ;;  %2414 = vmatpush1.bf16.msra.mxu1 %v12550_v3 }
 0x361   :  { %2415 = vmatprep.subr.bf16.mxu1 %v12543_v5 }
 0x363   :  { %2496 = vmatpush1.bf16.msra.mxu0 %v12554_v10  ;;  %v1931_v10 = vld [vmem:[#allocation15 + $0x1a8] sm:$0xff] }
 0x364   :  { %2497 = vmatprep.subr.bf16.mxu0 %v12547_v12  ;;  %2416 = vmatpush1.bf16.msra.mxu1 %v12542_v11  ;;  %v2617_v11 = vld [vmem:[#allocation18 + $0x180] sm:$0xff]  ;;  %v12576_v21 = vcombine.low %v1927_v8, %v1931_v10 }
 0x365   :  { %2417 = vmatprep.subr.bf16.mxu1 %v12535_v13  ;;  %v2621_v12 = vld [vmem:[#allocation18 + $0x1a0] sm:$0xff] }
 0x366   :  { %v12662_v22 = vcombine.low %v2617_v11, %v2621_v12 }
 0x367   :  { %2498 = vmatpush1.bf16.msra.mxu0 %v12546_v16  ;;  %v12577_v16 = vcombine.high %v1927_v8, %v1931_v10  ;;  %v2641_v8 = vld [vmem:[#allocation18 + $0x240] sm:$0x77] }
 0x368   :  { %2499 = vmatprep.subr.bf16.mxu0 %v12539_v18  ;;  %2418 = vmatpush1.bf16.msra.mxu1 %v12534_v17  ;;  %v12663_v17 = vcombine.high %v2617_v11, %v2621_v12  ;;  %v1923_v18 = vld [vmem:[#allocation15 + $0x168] sm:$0xff]  ;;  %v12687_v12 = vcombine.high %v2641_v8, %v2641_v8 }
 0x369   :  { %2419 = vmatprep.subr.bf16.mxu1 %v12527_v23  ;;  %v12569_v23 = vcombine.high %v1919_v15, %v1923_v18  ;;  %v12568_v29 = vcombine.low %v1919_v15, %v1923_v18  ;;  %v1947_v18 = vld [vmem:[#allocation15 + $0x228] sm:$0xff] }
 0x36b   :  { %2500 = vmatpush1.bf16.msra.mxu0 %v12538_v19  ;;  %v2609_v19 = vld [vmem:[#allocation18 + $0x140] sm:$0xff] }
 0x36c   :  { %2501 = vmatprep.subr.bf16.mxu0 %v12531_v27  ;;  %2420 = vmatpush1.bf16.msra.mxu1 %v12526_v25  ;;  %v12655_v24 = vcombine.high %v2609_v19, %v2613_v20  ;;  %v1911_v25 = vld [vmem:[#allocation15 + $0x108] sm:$0xff] }
 0x36d   :  { %12606 = vmatprep.subr.msk.bf16.mxu1 %vm2380_vm4, %v12599_v30  ;;  %v2601_v27 = vld [vmem:[#allocation18 + $0x100] sm:$0xff]  ;;  %v12654_v30 = vcombine.low %v2609_v19, %v2613_v20 }
 0x36e   :  { %v12647_v32 = vcombine.high %v2601_v27, %v2605_v28  ;;  %v12646_v38 = vcombine.low %v2601_v27, %v2605_v28  ;;  %v2633_v19 = vld [vmem:[#allocation18 + $0x200] sm:$0xff]  ;;  %v2627_v27 = vld [vmem:[#allocation18 + $0x1d0] sm:$0xff] }
 0x36f   :  { %2502 = vmatpush1.bf16.msra.mxu0 %v12530_v26  ;;  %v1915_v26 = vld [vmem:[#allocation15 + $0x128] sm:$0xff]  ;;  %v2631_v28 = vld [vmem:[#allocation18 + $0x1f0] sm:$0xff] }
 0x370   :  { %12610 = vmatprep.subr.msk.bf16.mxu0 %vm2380_vm4, %v12603_v31  ;;  %2434 = vmatpush2.bf16.msra.mxu1 %v2382_v34  ;;  %v12561_v31 = vcombine.high %v1911_v25, %v1915_v26  ;;  %v1907_v34 = vld [vmem:[#allocation15 + $0xe8] sm:$0xff]  ;;  %v12560_v37 = vcombine.low %v1911_v25, %v1915_v26  ;;  %v1937_v25 = vld [vmem:[#allocation15 + $0x1d8] sm:$0xff] }
 0x371   :  { %2435 = vmatprep.subr.bf16.mxu1 %v12591_v39  ;;  %v12553_v39 = vcombine.high %v1903_v33, %v1907_v34  ;;  %v12552_v45 = vcombine.low %v1903_v33, %v1907_v34  ;;  %v2637_v20 = vld [vmem:[#allocation18 + $0x220] sm:$0xff]  ;;  %v1941_v26 = vld [vmem:[#allocation15 + $0x1f8] sm:$0xff] }
 0x372   :  { %v1929_v33 = vld [vmem:[#allocation15 + $0x198] sm:$0xff] }
 0x373   :  { %2516 = vmatpush2.bf16.msra.mxu0 %v2394_v35  ;;  %v2593_v35 = vld [vmem:[#allocation18 + $0xc0] sm:$0xff]  ;;  %v1933_v34 = vld [vmem:[#allocation15 + $0x1b8] sm:$0xff] }
 0x374   :  { %2517 = vmatprep.subr.bf16.mxu0 %v12595_v43  ;;  %2436 = vmatpush2.bf16.msra.mxu1 %v12590_v41  ;;  %v12639_v40 = vcombine.high %v2593_v35, %v2597_v36  ;;  %v1895_v41 = vld [vmem:[#allocation15 + $0x88] sm:$0xff]  ;;  %v12638_v46 = vcombine.low %v2593_v35, %v2597_v36  ;;  %v2619_v35 = vld [vmem:[#allocation18 + $0x190] sm:$0xff] }
 0x375   :  { %2446 = vmatprep.subr.bf16.mxu1 %v12585_v47  ;;  %v2585_v43 = vld [vmem:[#allocation18 + $0x80] sm:$0xff]  ;;  %v2623_v36 = vld [vmem:[#allocation18 + $0x1b0] sm:$0xff] }
 0x376   :  { %v12631_v48 = vcombine.high %v2585_v43, %v2589_v44 }
 0x377   :  { %2518 = vmatpush2.bf16.msra.mxu0 %v12594_v42  ;;  %v1899_v42 = vld [vmem:[#allocation15 + $0xa8] sm:$0xff] }
 0x378   :  { %3091 = vmatprep.subr.bf16.mxu0 %v12671_v55  ;;  %v12545_v47 = vcombine.high %v1895_v41, %v1899_v42  ;;  %v2577_v55 = vld [vmem:[#allocation18 + $0x40] sm:$0xff] }
 0x40f   :  { %v1869_v58 = vpop.f32.mrf.mxu1 }
 0x411   :  { %v1871_v60 = vpop.f32.mrf.mxu1 }
 0x412   :  { %v1828_v61 = vpop.f32.mrf.mxu0 }
 0x413   :  { %v1829_v62 = vadd.f32 %v1828_v61, %v1590_v59  ;;  %v1873_v63 = vpop.f32.mrf.mxu1  ;;  %v12630_v59 = vcombine.low %v2585_v43, %v2589_v44  ;;  %v1879_v61 = vld [vmem:[#allocation15 + $0x8] sm:$0xff]  ;;  %v2611_v43 = vld [vmem:[#allocation18 + $0x150] sm:$0xff] }
 0x414   :  { %v1830_v2 = vpop.f32.mrf.mxu0  ;;  %v2569_v63 = vld [vmem:[#allocation18] sm:$0xff]  ;;  %v2615_v44 = vld [vmem:[#allocation18 + $0x170] sm:$0xff] }
 0x415   :  { %v1831_v3 = vadd.f32 %v1830_v2, %v1594_v57  ;;  %v1874_v4 = vpop.f32.mrf.mxu1  ;;  %v1870_v5 = vadd.f32 %v1869_v58, %v1829_v62  ;;  %v12544_v58 = vcombine.low %v1895_v41, %v1899_v42  ;;  %v12623_v57 = vcombine.high %v2577_v55, %v2581_v56  ;;  %v1883_v62 = vld [vmem:[#allocation15 + $0x28] sm:$0xff]  ;;  %v1921_v41 = vld [vmem:[#allocation15 + $0x158] sm:$0xff] }
 0x416   :  { %v1832_v0 = vpop.f32.mrf.mxu0  ;;  %v2573_v2 = vld [vmem:[#allocation18 + $0x20] sm:$0xff]  ;;  %v12622_v4 = vcombine.low %v2577_v55, %v2581_v56  ;;  %v1925_v42 = vld [vmem:[#allocation15 + $0x178] sm:$0xff] }
 0x417   :  { %v1872_v7 = vadd.f32 %v1871_v60, %v1831_v3  ;;  %v15253_v14 = vpack.c.bf16 %v1870_v5, %v1870_v5  ;;  %v12529_v5 = vcombine.high %v1879_v61, %v1883_v62  ;;  %v12615_v0 = vcombine.high %v2569_v63, %v2573_v2  ;;  %v2603_v55 = vld [vmem:[#allocation18 + $0x110] sm:$0xff] }
 0x418   :  { %v1833_v9 = vpop.f32.mrf.mxu0  ;;  %v12614_v10 = vcombine.low %v2569_v63, %v2573_v2  ;;  %v2607_v56 = vld [vmem:[#allocation18 + $0x130] sm:$0xff] }
 0x419   :  { %v15251_v13 = vpack.c.bf16 %v1872_v7, %v1872_v7  ;;  %v1951_v7 = vld [vmem:[#allocation15 + $0x248] sm:$0x77]  ;;  %v12528_v9 = vcombine.low %v1879_v61, %v1883_v62  ;;  %v1905_v61 = vld [vmem:[#allocation15 + $0xd8] sm:$0xff] }
 0x41a   :  { %v12601_v11 = vcombine.high %v1951_v7, %v1951_v7  ;;  %v12600_v15 = vcombine.low %v1951_v7, %v1951_v7  ;;  %v1909_v62 = vld [vmem:[#allocation15 + $0xf8] sm:$0xff] }
 0x41b   :  { %12607 = vmatprep.mubr.msk.bf16.mxu1 %vm2376_vm5, %v15251_v13  ;;  %12611 = vmatprep.mubr.msk.bf16.mxu0 %vm2376_vm5, %v15251_v13  ;;  %v2595_v63 = vld [vmem:[#allocation18 + $0xd0] sm:$0xff] }
 0x41c   :  { %2438 = vmatmul.mubr.bf16.vlgmr.msra.gmra.mxu1 %v15253_v14  ;;  %2520 = vmatmul.mubr.bf16.vlgmr.msra.gmra.mxu0 %v15253_v14  ;;  %v2599_v2 = vld [vmem:[#allocation18 + $0xf0] sm:$0xff] }
 0x41d   :  { %2447 = vmatpush1.bf16.msra.mxu1 %v12584_v51  ;;  %3092 = vmatpush1.bf16.msra.mxu0 %v12670_v54  ;;  %v1887_v51 = vld [vmem:[#allocation15 + $0x48] sm:$0xff]  ;;  %v1897_v7 = vld [vmem:[#allocation15 + $0x98] sm:$0xff] }
 0x41e   :  { %12609 = vmatprep.mubr.msk.bf16.mxu1 %vm2376_vm5, %v15251_v13  ;;  %12695 = vmatprep.mubr.msk.bf16.mxu0 %vm2376_vm5, %v15251_v13  ;;  %v1891_v54 = vld [vmem:[#allocation15 + $0x68] sm:$0xff] }
 0x41f   :  { %2448 = vmatprep.subr.bf16.mxu1 %v12577_v16  ;;  %3093 = vmatprep.subr.bf16.mxu0 %v12663_v17  ;;  %v12537_v60 = vcombine.high %v1887_v51, %v1891_v54  ;;  %v12536_v3 = vcombine.low %v1887_v51, %v1891_v54  ;;  %v12686_v16 = vcombine.low %v2641_v8, %v2641_v8  ;;  %v1943_v17 = vld [vmem:[#allocation15 + $0x208] sm:$0xff]  ;;  %v1913_v51 = vld [vmem:[#allocation15 + $0x118] sm:$0xff] }
 0x420   :  { %v1917_v54 = vld [vmem:[#allocation15 + $0x138] sm:$0xff] }
 0x421   :  { %2449 = vmatpush1.bf16.msra.mxu1 %v12576_v21  ;;  %3094 = vmatpush1.bf16.msra.mxu0 %v12662_v22  ;;  %v2388_v21 = vsel %vm2380_vm4, %v12600_v15, 0  ;;  %v3068_v22 = vsel %vm2380_vm4, %v12686_v16, 0  ;;  %v1901_v8 = vld [vmem:[#allocation15 + $0xb8] sm:$0xff] }
 0x422   :  { %2450 = vmatprep.subr.bf16.mxu1 %v12569_v23  ;;  %3095 = vmatprep.subr.bf16.mxu0 %v12655_v24  ;;  %v12593_v23 = vcombine.high %v1943_v17, %v1947_v18  ;;  %v12679_v24 = vcombine.high %v2633_v19, %v2637_v20  ;;  %v12549_v15 = vcombine.high %v1897_v7, %v1901_v8 }
 0x425   :  { %2451 = vmatpush1.bf16.msra.mxu1 %v12568_v29  ;;  %3096 = vmatpush1.bf16.msra.mxu0 %v12654_v30  ;;  %v12592_v29 = vcombine.low %v1943_v17, %v1947_v18  ;;  %v12678_v30 = vcombine.low %v2633_v19, %v2637_v20  ;;  %v1889_v17 = vld [vmem:[#allocation15 + $0x58] sm:$0xff] }
 0x426   :  { %2452 = vmatprep.subr.bf16.mxu1 %v12561_v31  ;;  %3097 = vmatprep.subr.bf16.mxu0 %v12647_v32  ;;  %v12589_v31 = vcombine.high %v1937_v25, %v1941_v26  ;;  %v12675_v32 = vcombine.high %v2627_v27, %v2631_v28  ;;  %v1893_v18 = vld [vmem:[#allocation15 + $0x78] sm:$0xff] }
 0x427   :  { %v2579_v19 = vld [vmem:[#allocation18 + $0x50] sm:$0xff] }
 0x428   :  { %v2583_v20 = vld [vmem:[#allocation18 + $0x70] sm:$0xff] }
 0x429   :  { %2453 = vmatpush1.bf16.msra.mxu1 %v12560_v37  ;;  %3098 = vmatpush1.bf16.msra.mxu0 %v12646_v38  ;;  %v12588_v37 = vcombine.low %v1937_v25, %v1941_v26  ;;  %v12674_v38 = vcombine.low %v2627_v27, %v2631_v28  ;;  %v1881_v25 = vld [vmem:[#allocation15 + $0x18] sm:$0xff] }
 0x42a   :  { %2454 = vmatprep.subr.bf16.mxu1 %v12553_v39  ;;  %3099 = vmatprep.subr.bf16.mxu0 %v12639_v40  ;;  %v12581_v39 = vcombine.high %v1929_v33, %v1933_v34  ;;  %v12667_v40 = vcombine.high %v2619_v35, %v2623_v36  ;;  %v1885_v26 = vld [vmem:[#allocation15 + $0x38] sm:$0xff] }
 0x42b   :  { %v2571_v27 = vld [vmem:[#allocation18 + $0x10] sm:$0xff] }
 0x42c   :  { %v2575_v28 = vld [vmem:[#allocation18 + $0x30] sm:$0xff] }
 0x42d   :  { %2455 = vmatpush1.bf16.msra.mxu1 %v12552_v45  ;;  %3100 = vmatpush1.bf16.msra.mxu0 %v12638_v46  ;;  %v12580_v45 = vcombine.low %v1929_v33, %v1933_v34  ;;  %v12666_v46 = vcombine.low %v2619_v35, %v2623_v36  ;;  %v1953_v33 = vld [vmem:[#allocation15 + $0x258] sm:$0x77]  ;;  %v12532_v35 = vcombine.low %v1881_v25, %v1885_v26 }
 0x42e   :  { %2456 = vmatprep.subr.bf16.mxu1 %v12545_v47  ;;  %3101 = vmatprep.subr.bf16.mxu0 %v12631_v48  ;;  %v12573_v47 = vcombine.high %v1921_v41, %v1925_v42  ;;  %v12659_v48 = vcombine.high %v2611_v43, %v2615_v44  ;;  %v2643_v34 = vld [vmem:[#allocation18 + $0x250] sm:$0x77]  ;;  %v12618_v36 = vcombine.low %v2571_v27, %v2575_v28 }
 0x431   :  { %2457 = vmatpush1.bf16.msra.mxu1 %v12544_v58  ;;  %3102 = vmatpush1.bf16.msra.mxu0 %v12630_v59  ;;  %v12572_v58 = vcombine.low %v1921_v41, %v1925_v42  ;;  %v12658_v59 = vcombine.low %v2611_v43, %v2615_v44  ;;  %v1945_v41 = vld [vmem:[#allocation15 + $0x218] sm:$0xff] }
 0x432   :  { %2458 = vmatprep.subr.bf16.mxu1 %v12537_v60  ;;  %3103 = vmatprep.subr.bf16.mxu0 %v12623_v57  ;;  %v12565_v60 = vcombine.high %v1913_v51, %v1917_v54  ;;  %v12651_v57 = vcombine.high %v2603_v55, %v2607_v56  ;;  %v1949_v42 = vld [vmem:[#allocation15 + $0x238] sm:$0xff] }
 0x433   :  { %v2635_v43 = vld [vmem:[#allocation18 + $0x210] sm:$0xff] }
 0x434   :  { %v2639_v44 = vld [vmem:[#allocation18 + $0x230] sm:$0xff] }
 0x435   :  { %2459 = vmatpush1.bf16.msra.mxu1 %v12536_v3  ;;  %3104 = vmatpush1.bf16.msra.mxu0 %v12622_v4  ;;  %v12564_v3 = vcombine.low %v1913_v51, %v1917_v54  ;;  %v12650_v4 = vcombine.low %v2603_v55, %v2607_v56  ;;  %v2626_v51 = vld [vmem:[#allocation18 + $0x1c8] sm:$0xff]  ;;  %v3311_v55 = vld [vmem:[%s17627_s10 + $0x1c0] sm:$0xff] }
 0x436   :  { %2460 = vmatprep.subr.bf16.mxu1 %v12529_v5  ;;  %3105 = vmatprep.subr.bf16.mxu0 %v12615_v0  ;;  %v12557_v5 = vcombine.high %v1905_v61, %v1909_v62  ;;  %v12643_v0 = vcombine.high %v2595_v63, %v2599_v2  ;;  %v2630_v54 = vld [vmem:[#allocation18 + $0x1e8] sm:$0xff]  ;;  %v3315_v56 = vld [vmem:[%s17627_s10 + $0x1e0] sm:$0xff] }
 0x439   :  { %2461 = vmatpush1.bf16.msra.mxu1 %v12528_v9  ;;  %3106 = vmatpush1.bf16.msra.mxu0 %v12614_v10  ;;  %v2587_v9 = vld [vmem:[#allocation18 + $0x90] sm:$0xff] }
 0x43a   :  { %12608 = vmatprep.subr.msk.bf16.mxu1 %vm2380_vm4, %v12601_v11  ;;  %12694 = vmatprep.subr.msk.bf16.mxu0 %vm2380_vm4, %v12687_v12  ;;  %v2591_v10 = vld [vmem:[#allocation18 + $0xb0] sm:$0xff]  ;;  %v12556_v11 = vcombine.low %v1905_v61, %v1909_v62  ;;  %v12642_v12 = vcombine.low %v2595_v63, %v2599_v2  ;;  %v2618_v61 = vld [vmem:[#allocation18 + $0x188] sm:$0xff]  ;;  %v3303_v63 = vld [vmem:[%s17627_s10 + $0x180] sm:$0xff] }
 0x43b   :  { %v12635_v16 = vcombine.high %v2587_v9, %v2591_v10  ;;  %v2622_v62 = vld [vmem:[#allocation18 + $0x1a8] sm:$0xff]  ;;  %v3307_v2 = vld [vmem:[%s17627_s10 + $0x1a0] sm:$0xff] }
 0x43d   :  { %2475 = vmatpush2.bf16.msra.mxu1 %v2388_v21  ;;  %3120 = vmatpush2.bf16.msra.mxu0 %v3068_v22  ;;  %v12548_v21 = vcombine.low %v1897_v7, %v1901_v8  ;;  %v12634_v22 = vcombine.low %v2587_v9, %v2591_v10  ;;  %v2610_v7 = vld [vmem:[#allocation18 + $0x148] sm:$0xff]  ;;  %v3295_v9 = vld [vmem:[%s17627_s10 + $0x140] sm:$0xff] }
 0x43e   :  { %2476 = vmatprep.subr.bf16.mxu1 %v12593_v23  ;;  %3121 = vmatprep.subr.bf16.mxu0 %v12679_v24  ;;  %v12541_v23 = vcombine.high %v1889_v17, %v1893_v18  ;;  %v12627_v24 = vcombine.high %v2579_v19, %v2583_v20  ;;  %v2614_v8 = vld [vmem:[#allocation18 + $0x168] sm:$0xff]  ;;  %v3299_v10 = vld [vmem:[%s17627_s10 + $0x160] sm:$0xff] }
 0x441   :  { %2477 = vmatpush2.bf16.msra.mxu1 %v12592_v29  ;;  %3122 = vmatpush2.bf16.msra.mxu0 %v12678_v30  ;;  %v12540_v29 = vcombine.low %v1889_v17, %v1893_v18  ;;  %v12626_v30 = vcombine.low %v2579_v19, %v2583_v20  ;;  %v2602_v17 = vld [vmem:[#allocation18 + $0x108] sm:$0xff]  ;;  %v3287_v19 = vld [vmem:[%s17627_s10 + $0x100] sm:$0xff] }
 0x442   :  { %2528 = vmatprep.subr.bf16.mxu1 %v12589_v31  ;;  %3173 = vmatprep.subr.bf16.mxu0 %v12675_v32  ;;  %v12533_v31 = vcombine.high %v1881_v25, %v1885_v26  ;;  %v12619_v32 = vcombine.high %v2571_v27, %v2575_v28  ;;  %v2606_v18 = vld [vmem:[#allocation18 + $0x128] sm:$0xff]  ;;  %v3291_v20 = vld [vmem:[%s17627_s10 + $0x120] sm:$0xff] }
 0x443   :  { %v2594_v25 = vld [vmem:[#allocation18 + $0xc8] sm:$0xff]  ;;  %v3279_v27 = vld [vmem:[%s17627_s10 + $0xc0] sm:$0xff] }
 0x444   :  { %2479 = vmatmul.mubr.bf16.vlgmr.msra.gmra.mxu1 %v15253_v14  ;;  %3124 = vmatmul.mubr.bf16.vlgmr.msra.gmra.mxu0 %v15253_v14  ;;  %v2598_v26 = vld [vmem:[#allocation18 + $0xe8] sm:$0xff]  ;;  %v3283_v28 = vld [vmem:[%s17627_s10 + $0xe0] sm:$0xff] }
 0x445   :  { %2529 = vmatpush1.bf16.msra.mxu1 %v12588_v37  ;;  %12613 = vmatprep.mubr.msk.bf16.mxu1 %vm2376_vm5, %v15251_v13  ;;  %v12605_v37 = vcombine.high %v1953_v33, %v1953_v33 }
 0x446   :  { %3174 = vmatpush1.bf16.msra.mxu0 %v12674_v38  ;;  %12699 = vmatprep.mubr.msk.bf16.mxu0 %vm2376_vm5, %v15251_v13  ;;  %v12604_v38 = vcombine.low %v1953_v33, %v1953_v33  ;;  %v2586_v33 = vld [vmem:[#allocation18 + $0x88] sm:$0xff] }
 0x447   :  { %2530 = vmatprep.subr.bf16.mxu1 %v12581_v39  ;;  %3175 = vmatprep.subr.bf16.mxu0 %v12667_v40  ;;  %v12691_v39 = vcombine.high %v2643_v34, %v2643_v34  ;;  %v12690_v40 = vcombine.low %v2643_v34, %v2643_v34  ;;  %v2590_v34 = vld [vmem:[#allocation18 + $0xa8] sm:$0xff] }
 0x449   :  { %2531 = vmatpush1.bf16.msra.mxu1 %v12580_v45  ;;  %v2400_v45 = vsel %vm2380_vm4, %v12604_v38, 0  ;;  %v12726_v38 = vcombine.low %v3279_v27, %v3283_v28 }
 0x44a   :  { %3176 = vmatpush1.bf16.msra.mxu0 %v12666_v46  ;;  %2532 = vmatprep.subr.bf16.mxu1 %v12573_v47  ;;  %v12597_v46 = vcombine.high %v1945_v41, %v1949_v42  ;;  %v3080_v47 = vsel %vm2380_vm4, %v12690_v40, 0 }
 0x44b   :  { %3177 = vmatprep.subr.bf16.mxu0 %v12659_v48  ;;  %v12683_v48 = vcombine.high %v2635_v43, %v2639_v44 }
 0x44d   :  { %2533 = vmatpush1.bf16.msra.mxu1 %v12572_v58  ;;  %v12596_v58 = vcombine.low %v1945_v41, %v1949_v42  ;;  %v2578_v41 = vld [vmem:[#allocation18 + $0x48] sm:$0xff] }
 0x44e   :  { %3178 = vmatpush1.bf16.msra.mxu0 %v12658_v59  ;;  %2534 = vmatprep.subr.bf16.mxu1 %v12565_v60  ;;  %v12682_v59 = vcombine.low %v2635_v43, %v2639_v44  ;;  %v12673_v60 = vcombine.high %v2626_v51, %v2630_v54  ;;  %v2582_v42 = vld [vmem:[#allocation18 + $0x68] sm:$0xff]  ;;  %v3263_v43 = vld [vmem:[%s17627_s10 + $0x40] sm:$0xff] }
 0x44f   :  { %3179 = vmatprep.subr.bf16.mxu0 %v12651_v57  ;;  %v12759_v57 = vcombine.high %v3311_v55, %v3315_v56  ;;  %v3267_v44 = vld [vmem:[%s17627_s10 + $0x60] sm:$0xff] }
 0x451   :  { %2535 = vmatpush1.bf16.msra.mxu1 %v12564_v3  ;;  %v12672_v3 = vcombine.low %v2626_v51, %v2630_v54  ;;  %v2570_v51 = vld [vmem:[#allocation18 + $0x8] sm:$0xff] }
 0x452   :  { %3180 = vmatpush1.bf16.msra.mxu0 %v12650_v4  ;;  %2536 = vmatprep.subr.bf16.mxu1 %v12557_v5  ;;  %v12758_v4 = vcombine.low %v3311_v55, %v3315_v56  ;;  %v12665_v5 = vcombine.high %v2618_v61, %v2622_v62  ;;  %v2574_v54 = vld [vmem:[#allocation18 + $0x28] sm:$0xff]  ;;  %v3255_v55 = vld [vmem:[%s17627_s10] sm:$0xff] }
 0x453   :  { %3181 = vmatprep.subr.bf16.mxu0 %v12643_v0  ;;  %v12751_v0 = vcombine.high %v3303_v63, %v3307_v2  ;;  %v3259_v56 = vld [vmem:[%s17627_s10 + $0x20] sm:$0xff] }
 0x455   :  { %2537 = vmatpush1.bf16.msra.mxu1 %v12556_v11  ;;  %v12664_v11 = vcombine.low %v2618_v61, %v2622_v62  ;;  %v2642_v61 = vld [vmem:[#allocation18 + $0x248] sm:$0x77]  ;;  %v3375_v62 = vld [vmem:[%s17627_s10 + $0x3c0] sm:$0xff] }
 0x456   :  { %3182 = vmatpush1.bf16.msra.mxu0 %v12642_v12  ;;  %2538 = vmatprep.subr.bf16.mxu1 %v12549_v15  ;;  %v12750_v12 = vcombine.low %v3303_v63, %v3307_v2  ;;  %v12657_v15 = vcombine.high %v2610_v7, %v2614_v8  ;;  %v3379_v63 = vld [vmem:[%s17627_s10 + $0x3e0] sm:$0xff]  ;;  %v12616_v2 = vcombine.low %v2570_v51, %v2574_v54 }
 0x457   :  { %3183 = vmatprep.subr.bf16.mxu0 %v12635_v16  ;;  %v12743_v16 = vcombine.high %v3295_v9, %v3299_v10 }
 0x459   :  { %2539 = vmatpush1.bf16.msra.mxu1 %v12548_v21  ;;  %v12656_v21 = vcombine.low %v2610_v7, %v2614_v8  ;;  %v2634_v7 = vld [vmem:[#allocation18 + $0x208] sm:$0xff] }
 0x45a   :  { %3184 = vmatpush1.bf16.msra.mxu0 %v12634_v22  ;;  %2540 = vmatprep.subr.bf16.mxu1 %v12541_v23  ;;  %v12742_v22 = vcombine.low %v3295_v9, %v3299_v10  ;;  %v12649_v23 = vcombine.high %v2602_v17, %v2606_v18  ;;  %v2638_v8 = vld [vmem:[#allocation18 + $0x228] sm:$0xff]  ;;  %v3367_v9 = vld [vmem:[%s17627_s10 + $0x380] sm:$0xff] }
 0x45b   :  { %3185 = vmatprep.subr.bf16.mxu0 %v12627_v24  ;;  %v12735_v24 = vcombine.high %v3287_v19, %v3291_v20  ;;  %v3371_v10 = vld [vmem:[%s17627_s10 + $0x3a0] sm:$0xff] }
 0x45d   :  { %2541 = vmatpush1.bf16.msra.mxu1 %v12540_v29  ;;  %v12648_v29 = vcombine.low %v2602_v17, %v2606_v18  ;;  %v2628_v17 = vld [vmem:[#allocation18 + $0x1d8] sm:$0xff] }
 0x45e   :  { %3186 = vmatpush1.bf16.msra.mxu0 %v12626_v30  ;;  %2542 = vmatprep.subr.bf16.mxu1 %v12533_v31  ;;  %v12734_v30 = vcombine.low %v3287_v19, %v3291_v20  ;;  %v12641_v31 = vcombine.high %v2594_v25, %v2598_v26  ;;  %v2632_v18 = vld [vmem:[#allocation18 + $0x1f8] sm:$0xff] }
 0x45f   :  { %3187 = vmatprep.subr.bf16.mxu0 %v12619_v32  ;;  %v12727_v32 = vcombine.high %v3279_v27, %v3283_v28  ;;  %v3359_v19 = vld [vmem:[%s17627_s10 + $0x340] sm:$0xff] }
 0x460   :  { %v3363_v20 = vld [vmem:[%s17627_s10 + $0x360] sm:$0xff] }
 0x461   :  { %2543 = vmatpush1.bf16.msra.mxu1 %v12532_v35  ;;  %v3271_v35 = vld [vmem:[%s17627_s10 + $0x80] sm:$0xff] }
 0x462   :  { %3188 = vmatpush1.bf16.msra.mxu0 %v12618_v36  ;;  %12612 = vmatprep.subr.msk.bf16.mxu1 %vm2380_vm4, %v12605_v37  ;;  %v3275_v36 = vld [vmem:[%s17627_s10 + $0xa0] sm:$0xff]  ;;  %v12640_v37 = vcombine.low %v2594_v25, %v2598_v26 }
 0x463   :  { %12698 = vmatprep.subr.msk.bf16.mxu0 %vm2380_vm4, %v12691_v39  ;;  %v12633_v39 = vcombine.high %v2586_v33, %v2590_v34  ;;  %v12719_v40 = vcombine.high %v3271_v35, %v3275_v36  ;;  %v2620_v25 = vld [vmem:[#allocation18 + $0x198] sm:$0xff] }
 0x464   :  { %v2624_v26 = vld [vmem:[#allocation18 + $0x1b8] sm:$0xff] }
 0x465   :  { %2557 = vmatpush2.bf16.msra.mxu1 %v2400_v45  ;;  %v12632_v45 = vcombine.low %v2586_v33, %v2590_v34  ;;  %v3351_v27 = vld [vmem:[%s17627_s10 + $0x300] sm:$0xff] }
 0x466   :  { %3202 = vmatpush2.bf16.msra.mxu0 %v3080_v47  ;;  %2558 = vmatprep.subr.bf16.mxu1 %v12597_v46  ;;  %v12718_v46 = vcombine.low %v3271_v35, %v3275_v36  ;;  %v12625_v47 = vcombine.high %v2578_v41, %v2582_v42  ;;  %v3355_v28 = vld [vmem:[%s17627_s10 + $0x320] sm:$0xff] }
 0x467   :  { %3203 = vmatprep.subr.bf16.mxu0 %v12683_v48  ;;  %v12711_v48 = vcombine.high %v3263_v43, %v3267_v44  ;;  %v2612_v33 = vld [vmem:[#allocation18 + $0x158] sm:$0xff] }
 0x468   :  { %v2616_v34 = vld [vmem:[#allocation18 + $0x178] sm:$0xff] }
 0x469   :  { %2559 = vmatpush2.bf16.msra.mxu1 %v12596_v58  ;;  %v12624_v58 = vcombine.low %v2578_v41, %v2582_v42  ;;  %v3343_v35 = vld [vmem:[%s17627_s10 + $0x2c0] sm:$0xff] }
 0x46a   :  { %3204 = vmatpush2.bf16.msra.mxu0 %v12682_v59  ;;  %3132 = vmatprep.subr.bf16.mxu1 %v12673_v60  ;;  %v12710_v59 = vcombine.low %v3263_v43, %v3267_v44  ;;  %v12617_v60 = vcombine.high %v2570_v51, %v2574_v54  ;;  %v3347_v36 = vld [vmem:[%s17627_s10 + $0x2e0] sm:$0xff] }
 0x46b   :  { %4023 = vmatprep.subr.bf16.mxu0 %v12759_v57  ;;  %v12703_v57 = vcombine.high %v3255_v55, %v3259_v56  ;;  %v2604_v41 = vld [vmem:[#allocation18 + $0x118] sm:$0xff] }
 0x46c   :  { %2561 = vmatmul.mubr.bf16.vlgmr.msra.gmra.mxu1 %v15253_v14  ;;  %v2608_v42 = vld [vmem:[#allocation18 + $0x138] sm:$0xff] }
 0x46d   :  { %3206 = vmatmul.mubr.bf16.vlgmr.msra.gmra.mxu0 %v15253_v14  ;;  %3133 = vmatpush1.bf16.msra.mxu1 %v12672_v3  ;;  %v12702_v3 = vcombine.low %v3255_v55, %v3259_v56  ;;  %v3335_v43 = vld [vmem:[%s17627_s10 + $0x280] sm:$0xff]  ;;  %v12652_v56 = vcombine.low %v2604_v41, %v2608_v42 }
 0x46e   :  { %12697 = vmatprep.mubr.msk.bf16.mxu1 %vm2376_vm5, %v15251_v13  ;;  %4024 = vmatpush1.bf16.msra.mxu0 %v12758_v4  ;;  %v12689_v4 = vcombine.high %v2642_v61, %v2642_v61  ;;  %v3339_v44 = vld [vmem:[%s17627_s10 + $0x2a0] sm:$0xff] }
 0x46f   :  { %3134 = vmatprep.subr.bf16.mxu1 %v12665_v5  ;;  %4025 = vmatprep.subr.bf16.mxu0 %v12751_v0  ;;  %v12688_v5 = vcombine.low %v2642_v61, %v2642_v61  ;;  %v12823_v0 = vcombine.high %v3375_v62, %v3379_v63  ;;  %v2600_v51 = vld [vmem:[#allocation18 + $0xf8] sm:$0xff] }
 0x470   :  { %4055 = vmatprep.mubr.bf16.mxu0 %v14873_v1  ;;  %v3327_v54 = vld [vmem:[%s17627_s10 + $0x240] sm:$0xff] }
 0x471   :  { %3135 = vmatpush1.bf16.msra.mxu1 %v12664_v11  ;;  %v12822_v11 = vcombine.low %v3375_v62, %v3379_v63  ;;  %v3331_v55 = vld [vmem:[%s17627_s10 + $0x260] sm:$0xff] }
 0x472   :  { %4026 = vmatpush1.bf16.msra.mxu0 %v12750_v12  ;;  %3136 = vmatprep.subr.bf16.mxu1 %v12657_v15  ;;  %v3074_v12 = vsel %vm2380_vm4, %v12688_v5, 0  ;;  %v12681_v15 = vcombine.high %v2634_v7, %v2638_v8  ;;  %v2592_v61 = vld [vmem:[#allocation18 + $0xb8] sm:$0xff] }
 0x473   :  { %4027 = vmatprep.subr.bf16.mxu0 %v12743_v16  ;;  %v12815_v16 = vcombine.high %v3367_v9, %v3371_v10  ;;  %v3319_v62 = vld [vmem:[%s17627_s10 + $0x200] sm:$0xff] }
 0x474   :  { %v3323_v63 = vld [vmem:[%s17627_s10 + $0x220] sm:$0xff] }
 0x475   :  { %3137 = vmatpush1.bf16.msra.mxu1 %v12656_v21  ;;  %v12680_v21 = vcombine.low %v2634_v7, %v2638_v8  ;;  %v12767_v5 = vcombine.high %v3319_v62, %v3323_v63  ;;  %v2584_v7 = vld [vmem:[#allocation18 + $0x78] sm:$0xff]  ;;  %v3313_v8 = vld [vmem:[%s17627_s10 + $0x1d0] sm:$0xff] }
 0x476   :  { %4028 = vmatpush1.bf16.msra.mxu0 %v12742_v22  ;;  %3138 = vmatprep.subr.bf16.mxu1 %v12649_v23  ;;  %v12814_v22 = vcombine.low %v3367_v9, %v3371_v10  ;;  %v12677_v23 = vcombine.high %v2628_v17, %v2632_v18  ;;  %v3317_v9 = vld [vmem:[%s17627_s10 + $0x1f0] sm:$0xff] }
 0x477   :  { %4029 = vmatprep.subr.bf16.mxu0 %v12735_v24  ;;  %v12807_v24 = vcombine.high %v3359_v19, %v3363_v20 }
 0x479   :  { %3139 = vmatpush1.bf16.msra.mxu1 %v12648_v29  ;;  %v12676_v29 = vcombine.low %v2628_v17, %v2632_v18  ;;  %v2576_v17 = vld [vmem:[#allocation18 + $0x38] sm:$0xff]  ;;  %v3305_v18 = vld [vmem:[%s17627_s10 + $0x190] sm:$0xff] }
 0x47a   :  { %4030 = vmatpush1.bf16.msra.mxu0 %v12734_v30  ;;  %3140 = vmatprep.subr.bf16.mxu1 %v12641_v31  ;;  %v12806_v30 = vcombine.low %v3359_v19, %v3363_v20  ;;  %v12669_v31 = vcombine.high %v2620_v25, %v2624_v26  ;;  %v3309_v19 = vld [vmem:[%s17627_s10 + $0x1b0] sm:$0xff] }
 0x47b   :  { %4031 = vmatprep.subr.bf16.mxu0 %v12727_v32  ;;  %v12799_v32 = vcombine.high %v3351_v27, %v3355_v28 }
 0x47d   :  { %3141 = vmatpush1.bf16.msra.mxu1 %v12640_v37  ;;  %v12668_v37 = vcombine.low %v2620_v25, %v2624_v26  ;;  %v3297_v25 = vld [vmem:[%s17627_s10 + $0x150] sm:$0xff] }
 0x47e   :  { %4032 = vmatpush1.bf16.msra.mxu0 %v12726_v38  ;;  %3142 = vmatprep.subr.bf16.mxu1 %v12633_v39  ;;  %v12798_v38 = vcombine.low %v3351_v27, %v3355_v28  ;;  %v12661_v39 = vcombine.high %v2612_v33, %v2616_v34  ;;  %v3301_v26 = vld [vmem:[%s17627_s10 + $0x170] sm:$0xff]  ;;  %v12754_v28 = vcombine.low %v3305_v18, %v3309_v19 }
 0x47f   :  { %4033 = vmatprep.subr.bf16.mxu0 %v12719_v40  ;;  %v12791_v40 = vcombine.high %v3343_v35, %v3347_v36 }
 0x481   :  { %3143 = vmatpush1.bf16.msra.mxu1 %v12632_v45  ;;  %v12660_v45 = vcombine.low %v2612_v33, %v2616_v34  ;;  %v2640_v33 = vld [vmem:[#allocation18 + $0x238] sm:$0xff]  ;;  %v3289_v34 = vld [vmem:[%s17627_s10 + $0x110] sm:$0xff] }
 0x482   :  { %4034 = vmatpush1.bf16.msra.mxu0 %v12718_v46  ;;  %3144 = vmatprep.subr.bf16.mxu1 %v12625_v47  ;;  %v12653_v46 = vcombine.high %v2604_v41, %v2608_v42  ;;  %v12783_v47 = vcombine.high %v3335_v43, %v3339_v44  ;;  %v3316_v41 = vld [vmem:[%s17627_s10 + $0x1e8] sm:$0xff]  ;;  %v3281_v42 = vld [vmem:[%s17627_s10 + $0xd0] sm:$0xff] }
 0x483   :  { %4035 = vmatprep.subr.bf16.mxu0 %v12711_v48  ;;  %v2596_v48 = vld [vmem:[#allocation18 + $0xd8] sm:$0xff] }
 0x485   :  { %3145 = vmatpush1.bf16.msra.mxu1 %v12624_v58  ;;  %v12782_v58 = vcombine.low %v3335_v43, %v3339_v44  ;;  %v3285_v43 = vld [vmem:[%s17627_s10 + $0xf0] sm:$0xff] }
 0x486   :  { %4036 = vmatpush1.bf16.msra.mxu0 %v12710_v59  ;;  %3146 = vmatprep.subr.bf16.mxu1 %v12617_v60  ;;  %v12645_v59 = vcombine.high %v2596_v48, %v2600_v51  ;;  %v12775_v60 = vcombine.high %v3327_v54, %v3331_v55 }
 0x487   :  { %4037 = vmatprep.subr.bf16.mxu0 %v12703_v57  ;;  %v2588_v57 = vld [vmem:[#allocation18 + $0x98] sm:$0xff] }
 0x488   :  { %v12636_v10 = vcombine.low %v2588_v57, %v2592_v61 }
 0x489   :  { %3147 = vmatpush1.bf16.msra.mxu1 %v12616_v2  ;;  %v12644_v2 = vcombine.low %v2596_v48, %v2600_v51  ;;  %v3308_v48 = vld [vmem:[%s17627_s10 + $0x1a8] sm:$0xff]  ;;  %v3273_v51 = vld [vmem:[%s17627_s10 + $0x90] sm:$0xff] }
 0x48a   :  { %4038 = vmatpush1.bf16.msra.mxu0 %v12702_v3  ;;  %12696 = vmatprep.subr.msk.bf16.mxu1 %vm2380_vm4, %v12689_v4  ;;  %v12774_v3 = vcombine.low %v3327_v54, %v3331_v55  ;;  %v12637_v4 = vcombine.high %v2588_v57, %v2592_v61  ;;  %v3277_v54 = vld [vmem:[%s17627_s10 + $0xb0] sm:$0xff]  ;;  %v3300_v57 = vld [vmem:[%s17627_s10 + $0x168] sm:$0xff] }
 0x48b   :  { %4039 = vmatprep.subr.bf16.mxu0 %v12823_v0  ;;  %v2580_v0 = vld [vmem:[#allocation18 + $0x58] sm:$0xff]  ;;  %v3265_v61 = vld [vmem:[%s17627_s10 + $0x50] sm:$0xff] }
 0x48c   :  { %v12628_v20 = vcombine.low %v2580_v0, %v2584_v7 }
 0x48d   :  { %3161 = vmatpush2.bf16.msra.mxu1 %v3074_v12  ;;  %v12629_v12 = vcombine.high %v2580_v0, %v2584_v7  ;;  %v3257_v0 = vld [vmem:[%s17627_s10 + $0x10] sm:$0xff] }
 0x48e   :  { %4040 = vmatpush2.bf16.msra.mxu0 %v12822_v11  ;;  %3162 = vmatprep.subr.bf16.mxu1 %v12681_v15  ;;  %v12766_v11 = vcombine.low %v3319_v62, %v3323_v63  ;;  %v12763_v15 = vcombine.high %v3313_v8, %v3317_v9  ;;  %v3269_v62 = vld [vmem:[%s17627_s10 + $0x70] sm:$0xff] }
 0x48f   :  { %4041 = vmatprep.subr.bf16.mxu0 %v12815_v16  ;;  %v2572_v16 = vld [vmem:[#allocation18 + $0x18] sm:$0xff]  ;;  %v3261_v7 = vld [vmem:[%s17627_s10 + $0x30] sm:$0xff] }
 0x490   :  { %v12620_v27 = vcombine.low %v2572_v16, %v2576_v17 }
 0x491   :  { %3163 = vmatpush2.bf16.msra.mxu1 %v12680_v21  ;;  %v12762_v21 = vcombine.low %v3313_v8, %v3317_v9  ;;  %v12714_v9 = vcombine.low %v3265_v61, %v3269_v62 }
 0x492   :  { %4042 = vmatpush2.bf16.msra.mxu0 %v12814_v22  ;;  %3214 = vmatprep.subr.bf16.mxu1 %v12677_v23  ;;  %v12621_v22 = vcombine.high %v2572_v16, %v2576_v17  ;;  %v12755_v23 = vcombine.high %v3305_v18, %v3309_v19  ;;  %v3377_v16 = vld [vmem:[%s17627_s10 + $0x3d0] sm:$0xff]  ;;  %v12706_v19 = vcombine.low %v3257_v0, %v3261_v7 }
 0x493   :  { %4043 = vmatprep.subr.bf16.mxu0 %v12807_v24  ;;  %v2644_v24 = vld [vmem:[#allocation18 + $0x258] sm:$0x77]  ;;  %v3381_v17 = vld [vmem:[%s17627_s10 + $0x3f0] sm:$0xff] }
 0x494   :  { %3165 = vmatmul.mubr.bf16.vlgmr.msra.gmra.mxu1 %v15253_v14 }
 0x495   :  { %3215 = vmatpush1.bf16.msra.mxu1 %v12676_v29  ;;  %12701 = vmatprep.mubr.msk.bf16.mxu1 %vm2376_vm5, %v15251_v13  ;;  %v12790_v13 = vcombine.low %v3343_v35, %v3347_v36  ;;  %v12693_v29 = vcombine.high %v2644_v24, %v2644_v24  ;;  %v3293_v35 = vld [vmem:[%s17627_s10 + $0x130] sm:$0xff]  ;;  %v12746_v36 = vcombine.low %v3297_v25, %v3301_v26 }
 0x496   :  { %4044 = vmatpush2.bf16.msra.mxu0 %v12806_v30  ;;  %3216 = vmatprep.subr.bf16.mxu1 %v12669_v31  ;;  %v12692_v30 = vcombine.low %v2644_v24, %v2644_v24  ;;  %v12747_v31 = vcombine.high %v3297_v25, %v3301_v26  ;;  %v3369_v24 = vld [vmem:[%s17627_s10 + $0x390] sm:$0xff] }
 0x497   :  { %4045 = vmatprep.subr.bf16.mxu0 %v12799_v32  ;;  %v2636_v32 = vld [vmem:[#allocation18 + $0x218] sm:$0xff]  ;;  %v3373_v25 = vld [vmem:[%s17627_s10 + $0x3b0] sm:$0xff] }
 0x498   :  { %v12684_v44 = vcombine.low %v2636_v32, %v2640_v33 }
 0x499   :  { %3217 = vmatpush1.bf16.msra.mxu1 %v12668_v37  ;;  %v3086_v37 = vsel %vm2380_vm4, %v12692_v30, 0  ;;  %v3264_v30 = vld [vmem:[%s17627_s10 + $0x48] sm:$0xff] }
 0x49a   :  { %4046 = vmatpush2.bf16.msra.mxu0 %v12798_v38  ;;  %3218 = vmatprep.subr.bf16.mxu1 %v12661_v39  ;;  %v12685_v38 = vcombine.high %v2636_v32, %v2640_v33  ;;  %v12739_v39 = vcombine.high %v3289_v34, %v3293_v35  ;;  %v3361_v32 = vld [vmem:[%s17627_s10 + $0x350] sm:$0xff] }
 0x49b   :  { %4047 = vmatprep.subr.bf16.mxu0 %v12791_v40  ;;  %v3312_v40 = vld [vmem:[%s17627_s10 + $0x1c8] sm:$0xff]  ;;  %v3365_v33 = vld [vmem:[%s17627_s10 + $0x370] sm:$0xff] }
 0x49c   :  { %v12760_v55 = vcombine.low %v3312_v40, %v3316_v41 }
 0x49d   :  { %3219 = vmatpush1.bf16.msra.mxu1 %v12660_v45  ;;  %v12738_v45 = vcombine.low %v3289_v34, %v3293_v35  ;;  %v12818_v35 = vcombine.low %v3369_v24, %v3373_v25 }
 0x49e   :  { %4048 = vmatpush2.bf16.msra.mxu0 %v12790_v13  ;;  %3220 = vmatprep.subr.bf16.mxu1 %v12653_v46  ;;  %v12761_v13 = vcombine.high %v3312_v40, %v3316_v41  ;;  %v12731_v46 = vcombine.high %v3281_v42, %v3285_v43  ;;  %v3353_v40 = vld [vmem:[%s17627_s10 + $0x310] sm:$0xff] }
 0x49f   :  { %4049 = vmatprep.subr.bf16.mxu0 %v12783_v47  ;;  %v3304_v47 = vld [vmem:[%s17627_s10 + $0x188] sm:$0xff]  ;;  %v3357_v41 = vld [vmem:[%s17627_s10 + $0x330] sm:$0xff] }
 0x4a0   :  { %v12752_v63 = vcombine.low %v3304_v47, %v3308_v48 }
 0x4a1   :  { %3221 = vmatpush1.bf16.msra.mxu1 %v12652_v56  ;;  %v12730_v56 = vcombine.low %v3281_v42, %v3285_v43  ;;  %v12810_v43 = vcombine.low %v3361_v32, %v3365_v33 }
 0x4a2   :  { %4050 = vmatpush2.bf16.msra.mxu0 %v12782_v58  ;;  %3222 = vmatprep.subr.bf16.mxu1 %v12645_v59  ;;  %v12753_v58 = vcombine.high %v3304_v47, %v3308_v48  ;;  %v12723_v59 = vcombine.high %v3273_v51, %v3277_v54  ;;  %v3345_v47 = vld [vmem:[%s17627_s10 + $0x2d0] sm:$0xff] }
 0x4a3   :  { %4051 = vmatprep.subr.bf16.mxu0 %v12775_v60  ;;  %v3296_v60 = vld [vmem:[%s17627_s10 + $0x148] sm:$0xff]  ;;  %v3349_v48 = vld [vmem:[%s17627_s10 + $0x2f0] sm:$0xff] }
 0x4a4   :  { %v12744_v8 = vcombine.low %v3296_v60, %v3300_v57 }
 0x4a5   :  { %3223 = vmatpush1.bf16.msra.mxu1 %v12644_v2  ;;  %v12722_v2 = vcombine.low %v3273_v51, %v3277_v54  ;;  %v12802_v54 = vcombine.low %v3353_v40, %v3357_v41 }
 0x4a6   :  { %4052 = vmatpush2.bf16.msra.mxu0 %v12774_v3  ;;  %3224 = vmatprep.subr.bf16.mxu1 %v12637_v4  ;;  %v12745_v3 = vcombine.high %v3296_v60, %v3300_v57  ;;  %v12715_v4 = vcombine.high %v3265_v61, %v3269_v62  ;;  %v3337_v60 = vld [vmem:[%s17627_s10 + $0x290] sm:$0xff]  ;;  %v12794_v62 = vcombine.low %v3345_v47, %v3349_v48 }
 0x4a7   :  { %4053 = vmatprep.subr.bf16.mxu0 %v12767_v5  ;;  %v3292_v5 = vld [vmem:[%s17627_s10 + $0x128] sm:$0xff]  ;;  %v3341_v57 = vld [vmem:[%s17627_s10 + $0x2b0] sm:$0xff] }
 0x4a9   :  { %3225 = vmatpush1.bf16.msra.mxu1 %v12636_v10 }
 0x4aa   :  { %4054 = vmatpush2.bf16.msra.mxu0 %v12766_v11  ;;  %3226 = vmatprep.subr.bf16.mxu1 %v12629_v12  ;;  %v12707_v11 = vcombine.high %v3257_v0, %v3261_v7  ;;  %v3280_v12 = vld [vmem:[%s17627_s10 + $0xc8] sm:$0xff]  ;;  %v3329_v0 = vld [vmem:[%s17627_s10 + $0x250] sm:$0xff] }
 0x4ab   :  { %4105 = vmatprep.subr.bf16.mxu0 %v12763_v15  ;;  %v3284_v15 = vld [vmem:[%s17627_s10 + $0xe8] sm:$0xff]  ;;  %v3333_v7 = vld [vmem:[%s17627_s10 + $0x270] sm:$0xff] }
 0x4ac   :  { %v12728_v26 = vcombine.low %v3280_v12, %v3284_v15 }
 0x4ad   :  { %4056 = vmatmul.mubr.bf16.vlgmr.msra.gmra.mxu0 %v14873_v1  ;;  %3227 = vmatpush1.bf16.msra.mxu1 %v12628_v20  ;;  %v12729_v20 = vcombine.high %v3280_v12, %v3284_v15  ;;  %v12779_v15 = vcombine.high %v3329_v0, %v3333_v7 }
 0x4ae   :  { %4106 = vmatpush1.bf16.msra.mxu0 %v12762_v21  ;;  %3228 = vmatprep.subr.bf16.mxu1 %v12621_v22  ;;  %v12827_v21 = vcombine.high %v3377_v16, %v3381_v17  ;;  %v3272_v22 = vld [vmem:[%s17627_s10 + $0x88] sm:$0xff] }
 0x4af   :  { %4107 = vmatprep.subr.bf16.mxu0 %v12755_v23  ;;  %4137 = vmatprep.mubr.bf16.mxu0 %v14873_v1  ;;  %v3276_v23 = vld [vmem:[%s17627_s10 + $0xa8] sm:$0xff] }
 0x4b0   :  { %v12720_v34 = vcombine.low %v3272_v22, %v3276_v23 }
 0x4b1   :  { %3229 = vmatpush1.bf16.msra.mxu1 %v12620_v27  ;;  %v12826_v27 = vcombine.low %v3377_v16, %v3381_v17  ;;  %v3352_v16 = vld [vmem:[%s17627_s10 + $0x308] sm:$0xff] }
 0x4b2   :  { %4108 = vmatpush1.bf16.msra.mxu0 %v12754_v28  ;;  %12700 = vmatprep.subr.msk.bf16.mxu1 %vm2380_vm4, %v12693_v29  ;;  %v12721_v28 = vcombine.high %v3272_v22, %v3276_v23  ;;  %v12819_v29 = vcombine.high %v3369_v24, %v3373_v25  ;;  %v3356_v17 = vld [vmem:[%s17627_s10 + $0x328] sm:$0xff]  ;;  %v12778_v25 = vcombine.low %v3329_v0, %v3333_v7 }
 0x4b3   :  { %4109 = vmatprep.subr.bf16.mxu0 %v12747_v31  ;;  %v3268_v31 = vld [vmem:[%s17627_s10 + $0x68] sm:$0xff] }
 0x4b4   :  { %v12712_v42 = vcombine.low %v3264_v30, %v3268_v31 }
 0x4b5   :  { %3243 = vmatpush2.bf16.msra.mxu1 %v3086_v37  ;;  %v12811_v37 = vcombine.high %v3361_v32, %v3365_v33  ;;  %v12800_v32 = vcombine.low %v3352_v16, %v3356_v17 }
 0x4b6   :  { %4110 = vmatpush1.bf16.msra.mxu0 %v12746_v36  ;;  %3244 = vmatprep.subr.bf16.mxu1 %v12685_v38  ;;  %v12713_v36 = vcombine.high %v3264_v30, %v3268_v31  ;;  %v3256_v38 = vld [vmem:[%s17627_s10 + $0x8] sm:$0xff] }
 0x4b7   :  { %4111 = vmatprep.subr.bf16.mxu0 %v12739_v39  ;;  %v3260_v39 = vld [vmem:[%s17627_s10 + $0x28] sm:$0xff] }
 0x4b8   :  { %v12704_v51 = vcombine.low %v3256_v38, %v3260_v39  ;;  %v4251_v30 = vld [vmem:[#allocation19 + $0x1c0] sm:$0xff] }
 0x4b9   :  { %3245 = vmatpush2.bf16.msra.mxu1 %v12684_v44  ;;  %v12705_v44 = vcombine.high %v3256_v38, %v3260_v39  ;;  %v4255_v31 = vld [vmem:[#allocation19 + $0x1e0] sm:$0xff] }
 0x4ba   :  { %4112 = vmatpush1.bf16.msra.mxu0 %v12738_v45  ;;  %4064 = vmatprep.subr.bf16.mxu1 %v12761_v13  ;;  %v12803_v45 = vcombine.high %v3353_v40, %v3357_v41  ;;  %v3376_v13 = vld [vmem:[%s17627_s10 + $0x3c8] sm:$0xff]  ;;  %v12886_v41 = vcombine.low %v4251_v30, %v4255_v31 }
 0x4bb   :  { %4113 = vmatprep.subr.bf16.mxu0 %v12731_v46  ;;  %v3380_v46 = vld [vmem:[%s17627_s10 + $0x3e8] sm:$0xff] }
 0x4bc   :  { %3247 = vmatmul.mubr.bf16.vlgmr.msra.gmra.mxu1 %v15253_v14  ;;  %v3288_v14 = vld [vmem:[%s17627_s10 + $0x108] sm:$0xff]  ;;  %v12824_v61 = vcombine.low %v3376_v13, %v3380_v46 }
 0x4bd   :  { %4065 = vmatpush1.bf16.msra.mxu1 %v12760_v55  ;;  %4096 = vmatprep.mubr.bf16.mxu1 %v14873_v1  ;;  %v12737_v10 = vcombine.high %v3288_v14, %v3292_v5  ;;  %v12736_v18 = vcombine.low %v3288_v14, %v3292_v5  ;;  %v12825_v55 = vcombine.high %v3376_v13, %v3380_v46  ;;  %v4243_v38 = vld [vmem:[#allocation19 + $0x180] sm:$0xff] }
 0x4be   :  { %4114 = vmatpush1.bf16.msra.mxu0 %v12730_v56  ;;  %4066 = vmatprep.subr.bf16.mxu1 %v12753_v58  ;;  %v12795_v56 = vcombine.high %v3345_v47, %v3349_v48  ;;  %v3368_v58 = vld [vmem:[%s17627_s10 + $0x388] sm:$0xff] }
 0x4bf   :  { %4115 = vmatprep.subr.bf16.mxu0 %v12723_v59  ;;  %v3372_v59 = vld [vmem:[%s17627_s10 + $0x3a8] sm:$0xff] }
 0x4c0   :  { %v4247_v39 = vld [vmem:[#allocation19 + $0x1a0] sm:$0xff] }
 0x4c1   :  { %4067 = vmatpush1.bf16.msra.mxu1 %v12752_v63  ;;  %v12817_v63 = vcombine.high %v3368_v58, %v3372_v59  ;;  %v4235_v13 = vld [vmem:[#allocation19 + $0x140] sm:$0xff]  ;;  %v12878_v48 = vcombine.low %v4243_v38, %v4247_v39 }
 0x4c2   :  { %4116 = vmatpush1.bf16.msra.mxu0 %v12722_v2  ;;  %4068 = vmatprep.subr.bf16.mxu1 %v12745_v3  ;;  %v12787_v2 = vcombine.high %v3337_v60, %v3341_v57  ;;  %v3360_v3 = vld [vmem:[%s17627_s10 + $0x348] sm:$0xff] }
 0x4c3   :  { %4117 = vmatprep.subr.bf16.mxu0 %v12715_v4  ;;  %v3364_v4 = vld [vmem:[%s17627_s10 + $0x368] sm:$0xff] }
 0x4c4   :  { %v12809_v12 = vcombine.high %v3360_v3, %v3364_v4  ;;  %v12808_v22 = vcombine.low %v3360_v3, %v3364_v4  ;;  %v4239_v46 = vld [vmem:[#allocation19 + $0x160] sm:$0xff] }
 0x4c5   :  { %4069 = vmatpush1.bf16.msra.mxu1 %v12744_v8  ;;  %v12816_v8 = vcombine.low %v3368_v58, %v3372_v59  ;;  %v4227_v58 = vld [vmem:[#allocation19 + $0x100] sm:$0xff] }
 0x4c6   :  { %4118 = vmatpush1.bf16.msra.mxu0 %v12714_v9  ;;  %4070 = vmatprep.subr.bf16.mxu1 %v12737_v10  ;;  %v4231_v59 = vld [vmem:[#allocation19 + $0x120] sm:$0xff] }
 0x4c7   :  { %4119 = vmatprep.subr.bf16.mxu0 %v12707_v11  ;;  %v12786_v11 = vcombine.low %v3337_v60, %v3341_v57  ;;  %v12870_v57 = vcombine.low %v4235_v13, %v4239_v46  ;;  %v4219_v3 = vld [vmem:[#allocation19 + $0xc0] sm:$0xff]  ;;  %v12862_v7 = vcombine.low %v4227_v58, %v4231_v59 }
 0x4c8   :  { %v4223_v4 = vld [vmem:[#allocation19 + $0xe0] sm:$0xff] }
 0x4c9   :  { %4071 = vmatpush1.bf16.msra.mxu1 %v12736_v18 }
 0x4ca   :  { %4120 = vmatpush1.bf16.msra.mxu0 %v12706_v19  ;;  %4072 = vmatprep.subr.bf16.mxu1 %v12729_v20  ;;  %v3321_v20 = vld [vmem:[%s17627_s10 + $0x210] sm:$0xff] }
 0x4cb   :  { %4121 = vmatprep.subr.bf16.mxu0 %v12827_v21  ;;  %v3325_v21 = vld [vmem:[%s17627_s10 + $0x230] sm:$0xff] }
 0x4cc   :  { %v12770_v33 = vcombine.low %v3321_v20, %v3325_v21 }
 0x4cd   :  { %4073 = vmatpush1.bf16.msra.mxu1 %v12728_v26  ;;  %v12801_v26 = vcombine.high %v3352_v16, %v3356_v17  ;;  %v4211_v16 = vld [vmem:[#allocation19 + $0x80] sm:$0xff] }
 0x4ce   :  { %4122 = vmatpush2.bf16.msra.mxu0 %v12826_v27  ;;  %4074 = vmatprep.subr.bf16.mxu1 %v12721_v28  ;;  %v12771_v27 = vcombine.high %v3321_v20, %v3325_v21  ;;  %v3344_v28 = vld [vmem:[%s17627_s10 + $0x2c8] sm:$0xff] }
 0x4cf   :  { %4123 = vmatprep.subr.bf16.mxu0 %v12819_v29  ;;  %v3348_v29 = vld [vmem:[%s17627_s10 + $0x2e8] sm:$0xff] }
 0x4d0   :  { %v12792_v40 = vcombine.low %v3344_v28, %v3348_v29  ;;  %v4215_v17 = vld [vmem:[#allocation19 + $0xa0] sm:$0xff] }
 0x4d1   :  { %4075 = vmatpush1.bf16.msra.mxu1 %v12720_v34  ;;  %v12793_v34 = vcombine.high %v3344_v28, %v3348_v29  ;;  %v12847_v21 = vcombine.high %v4211_v16, %v4215_v17 }
 0x4d2   :  { %4124 = vmatpush2.bf16.msra.mxu0 %v12818_v35  ;;  %4076 = vmatprep.subr.bf16.mxu1 %v12713_v36  ;;  %v12887_v35 = vcombine.high %v4251_v30, %v4255_v31  ;;  %v3336_v36 = vld [vmem:[%s17627_s10 + $0x288] sm:$0xff]  ;;  %v3290_v30 = vld [vmem:[%s17627_s10 + $0x118] sm:$0xff] }
 0x4d3   :  { %4125 = vmatprep.subr.bf16.mxu0 %v12811_v37  ;;  %v3340_v37 = vld [vmem:[%s17627_s10 + $0x2a8] sm:$0xff]  ;;  %v3294_v31 = vld [vmem:[%s17627_s10 + $0x138] sm:$0xff] }
 0x4d4   :  { %v12784_v47 = vcombine.low %v3336_v36, %v3340_v37 }
 0x4d5   :  { %4077 = vmatpush1.bf16.msra.mxu1 %v12712_v42  ;;  %v12785_v42 = vcombine.high %v3336_v36, %v3340_v37  ;;  %v12741_v36 = vcombine.high %v3290_v30, %v3294_v31 }
 0x4d6   :  { %4126 = vmatpush2.bf16.msra.mxu0 %v12810_v43  ;;  %4078 = vmatprep.subr.bf16.mxu1 %v12705_v44  ;;  %v12879_v43 = vcombine.high %v4243_v38, %v4247_v39  ;;  %v3328_v44 = vld [vmem:[%s17627_s10 + $0x248] sm:$0xff]  ;;  %v3282_v38 = vld [vmem:[%s17627_s10 + $0xd8] sm:$0xff] }
 0x4d7   :  { %4127 = vmatprep.subr.bf16.mxu0 %v12803_v45  ;;  %v3332_v45 = vld [vmem:[%s17627_s10 + $0x268] sm:$0xff]  ;;  %v3286_v39 = vld [vmem:[%s17627_s10 + $0xf8] sm:$0xff] }
 0x4d8   :  { %v12776_v60 = vcombine.low %v3328_v44, %v3332_v45 }
 0x4d9   :  { %4079 = vmatpush1.bf16.msra.mxu1 %v12704_v51  ;;  %v12777_v51 = vcombine.high %v3328_v44, %v3332_v45  ;;  %v12740_v44 = vcombine.low %v3290_v30, %v3294_v31 }
 0x4da   :  { %4128 = vmatpush2.bf16.msra.mxu0 %v12802_v54  ;;  %4080 = vmatprep.subr.bf16.mxu1 %v12825_v55  ;;  %v12871_v54 = vcombine.high %v4235_v13, %v4239_v46  ;;  %v3320_v55 = vld [vmem:[%s17627_s10 + $0x208] sm:$0xff] }
 0x4db   :  { %4129 = vmatprep.subr.bf16.mxu0 %v12795_v56  ;;  %v3324_v56 = vld [vmem:[%s17627_s10 + $0x228] sm:$0xff] }
 0x4dc   :  { %v15541_v14 = vpop.f32.mrf.mxu1  ;;  %v15543_v5 = vpop.f32.mrf.mxu0  ;;  %v12768_v0 = vcombine.low %v3320_v55, %v3324_v56 }
 0x4dd   :  { %4081 = vmatpush2.bf16.msra.mxu1 %v12824_v61  ;;  %v12769_v61 = vcombine.high %v3320_v55, %v3324_v56 }
 0x4de   :  { %4130 = vmatpush2.bf16.msra.mxu0 %v12794_v62  ;;  %v15551_v9 = vpop.f32.mrf.mxu1  ;;  %v15553_v10 = vpop.f32.mrf.mxu0  ;;  %4082 = vmatprep.subr.bf16.mxu1 %v12817_v63  ;;  %v12863_v62 = vcombine.high %v4227_v58, %v4231_v59  ;;  %v3314_v63 = vld [vmem:[%s17627_s10 + $0x1d8] sm:$0xff]  ;;  %v4307_v58 = vld [vmem:[#allocation19 + $0x380] sm:$0xff] }
 0x4df   :  { %4131 = vmatprep.subr.bf16.mxu0 %v12787_v2  ;;  %v3318_v2 = vld [vmem:[%s17627_s10 + $0x1f8] sm:$0xff]  ;;  %v4311_v59 = vld [vmem:[#allocation19 + $0x3a0] sm:$0xff] }
 0x4e0   :  { %v2443_v18 = vpop.f32.mrf.mxu1  ;;  %v2525_v19 = vpop.f32.mrf.mxu0 }
 0x4e1   :  { %4083 = vmatpush2.bf16.msra.mxu1 %v12816_v8  ;;  %v12765_v8 = vcombine.high %v3314_v63, %v3318_v2  ;;  %v12764_v18 = vcombine.low %v3314_v63, %v3318_v2  ;;  %v12854_v19 = vcombine.low %v4219_v3, %v4223_v4  ;;  %v12943_v2 = vcombine.high %v4307_v58, %v4311_v59 }
 0x4e2   :  { %4132 = vmatpush2.bf16.msra.mxu0 %v12786_v11  ;;  %v2444_v23 = vpop.f32.mrf.mxu1  ;;  %v2526_v24 = vpop.f32.mrf.mxu0  ;;  %4084 = vmatprep.subr.bf16.mxu1 %v12809_v12  ;;  %v12855_v11 = vcombine.high %v4219_v3, %v4223_v4  ;;  %v3306_v12 = vld [vmem:[%s17627_s10 + $0x198] sm:$0xff] }
 0x4e3   :  { %4133 = vmatprep.subr.bf16.mxu0 %v12779_v15  ;;  %v3310_v15 = vld [vmem:[%s17627_s10 + $0x1b8] sm:$0xff]  ;;  %v4203_v24 = vld [vmem:[#allocation19 + $0x40] sm:$0xff] }
 0x4e4   :  { %v12757_v20 = vcombine.high %v3306_v12, %v3310_v15  ;;  %v3302_v23 = vld [vmem:[%s17627_s10 + $0x178] sm:$0xff] }
 0x4e5   :  { %4085 = vmatpush2.bf16.msra.mxu1 %v12808_v22  ;;  %v3298_v22 = vld [vmem:[%s17627_s10 + $0x158] sm:$0xff] }
 0x4e6   :  { %4134 = vmatpush2.bf16.msra.mxu0 %v12778_v25  ;;  %4086 = vmatprep.subr.bf16.mxu1 %v12801_v26  ;;  %v4207_v25 = vld [vmem:[#allocation19 + $0x60] sm:$0xff]  ;;  %v12756_v26 = vcombine.low %v3306_v12, %v3310_v15  ;;  %v12749_v28 = vcombine.high %v3298_v22, %v3302_v23  ;;  %v3266_v3 = vld [vmem:[%s17627_s10 + $0x58] sm:$0xff] }
 0x4e7   :  { %4135 = vmatprep.subr.bf16.mxu0 %v12771_v27  ;;  %v12846_v27 = vcombine.low %v4211_v16, %v4215_v17  ;;  %v12839_v29 = vcombine.high %v4203_v24, %v4207_v25  ;;  %v3270_v4 = vld [vmem:[%s17627_s10 + $0x78] sm:$0xff] }
 0x4e8   :  { %v12717_v12 = vcombine.high %v3266_v3, %v3270_v4  ;;  %v3258_v16 = vld [vmem:[%s17627_s10 + $0x18] sm:$0xff] }
 0x4e9   :  { %4087 = vmatpush2.bf16.msra.mxu1 %v12800_v32  ;;  %v4195_v32 = vld [vmem:[#allocation19] sm:$0xff]  ;;  %v3262_v17 = vld [vmem:[%s17627_s10 + $0x38] sm:$0xff] }
 0x4ea   :  { %4136 = vmatpush2.bf16.msra.mxu0 %v12770_v33  ;;  %4088 = vmatprep.subr.bf16.mxu1 %v12793_v34  ;;  %v4199_v33 = vld [vmem:[#allocation19 + $0x20] sm:$0xff]  ;;  %v12748_v34 = vcombine.low %v3298_v22, %v3302_v23  ;;  %v12709_v22 = vcombine.high %v3258_v16, %v3262_v17 }
 0x4eb   :  { %4963 = vmatprep.subr.bf16.mxu0 %v12887_v35  ;;  %v12838_v35 = vcombine.low %v4203_v24, %v4207_v25  ;;  %v12831_v37 = vcombine.high %v4195_v32, %v4199_v33  ;;  %v12830_v46 = vcombine.low %v4195_v32, %v4199_v33  ;;  %v3378_v24 = vld [vmem:[%s17627_s10 + $0x3d8] sm:$0xff] }
 0x4ec   :  { %v3382_v25 = vld [vmem:[%s17627_s10 + $0x3f8] sm:$0xff] }
 0x4ed   :  { %4138 = vmatmul.mubr.bf16.vlgmr.msra.gmra.mxu0 %v14873_v1  ;;  %4089 = vmatpush2.bf16.msra.mxu1 %v12792_v40  ;;  %v12829_v30 = vcombine.high %v3378_v24, %v3382_v25  ;;  %v3370_v32 = vld [vmem:[%s17627_s10 + $0x398] sm:$0xff] }
 0x4ee   :  { %4964 = vmatpush1.bf16.msra.mxu0 %v12886_v41  ;;  %4090 = vmatprep.subr.bf16.mxu1 %v12785_v42  ;;  %v4315_v42 = vld [vmem:[#allocation19 + $0x3c0] sm:$0xff]  ;;  %v3374_v33 = vld [vmem:[%s17627_s10 + $0x3b8] sm:$0xff] }
 0x4ef   :  { %4965 = vmatprep.subr.bf16.mxu0 %v12879_v43  ;;  %4995 = vmatprep.mubr.bf16.mxu0 %v14873_v1  ;;  %v4319_v43 = vld [vmem:[#allocation19 + $0x3e0] sm:$0xff] }
 0x4f1   :  { %4091 = vmatpush2.bf16.msra.mxu1 %v12784_v47  ;;  %v12733_v47 = vcombine.high %v3282_v38, %v3286_v39 }
 0x4f2   :  { %4966 = vmatpush1.bf16.msra.mxu0 %v12878_v48  ;;  %4092 = vmatprep.subr.bf16.mxu1 %v12777_v51  ;;  %v12951_v48 = vcombine.high %v4315_v42, %v4319_v43  ;;  %v3274_v51 = vld [vmem:[%s17627_s10 + $0x98] sm:$0xff] }
 0x4f3   :  { %4967 = vmatprep.subr.bf16.mxu0 %v12871_v54  ;;  %v3278_v54 = vld [vmem:[%s17627_s10 + $0xb8] sm:$0xff] }
 0x4f4   :  { %v12725_v63 = vcombine.high %v3274_v51, %v3278_v54 }
 0x4f5   :  { %4093 = vmatpush2.bf16.msra.mxu1 %v12776_v60  ;;  %v12732_v60 = vcombine.low %v3282_v38, %v3286_v39  ;;  %v12821_v38 = vcombine.high %v3370_v32, %v3374_v33 }
 0x4f6   :  { %4968 = vmatpush1.bf16.msra.mxu0 %v12870_v57  ;;  %4094 = vmatprep.subr.bf16.mxu1 %v12769_v61 }
 0x4f7   :  { %4969 = vmatprep.subr.bf16.mxu0 %v12863_v62  ;;  %v12950_v62 = vcombine.low %v4315_v42, %v4319_v43  ;;  %v3362_v42 = vld [vmem:[%s17627_s10 + $0x358] sm:$0xff] }
 0x4f8   :  { %v3366_v43 = vld [vmem:[%s17627_s10 + $0x378] sm:$0xff] }
 0x4f9   :  { %4095 = vmatpush2.bf16.msra.mxu1 %v12768_v0  ;;  %v4299_v0 = vld [vmem:[#allocation19 + $0x340] sm:$0xff] }
 0x4fa   :  { %4970 = vmatpush1.bf16.msra.mxu0 %v12862_v7  ;;  %4146 = vmatprep.subr.bf16.mxu1 %v12765_v8  ;;  %v4303_v7 = vld [vmem:[#allocation19 + $0x360] sm:$0xff]  ;;  %v12724_v8 = vcombine.low %v3274_v51, %v3278_v54  ;;  %v12813_v51 = vcombine.high %v3362_v42, %v3366_v43 }
 0x4fb   :  { %4971 = vmatprep.subr.bf16.mxu0 %v12855_v11  ;;  %v12942_v11 = vcombine.low %v4307_v58, %v4311_v59  ;;  %v12935_v15 = vcombine.high %v4299_v0, %v4303_v7  ;;  %v4259_v58 = vld [vmem:[#allocation19 + $0x200] sm:$0xff] }
 0x4fc   :  { %4097 = vmatmul.mubr.bf16.vlgmr.msra.gmra.mxu1 %v14873_v1  ;;  %v4263_v59 = vld [vmem:[#allocation19 + $0x220] sm:$0xff] }
 0x4fd   :  { %4147 = vmatpush1.bf16.msra.mxu1 %v12764_v18  ;;  %4178 = vmatprep.mubr.bf16.mxu1 %v14873_v1  ;;  %v4291_v18 = vld [vmem:[#allocation19 + $0x300] sm:$0xff] }
 0x4fe   :  { %4972 = vmatpush1.bf16.msra.mxu0 %v12854_v19  ;;  %4148 = vmatprep.subr.bf16.mxu1 %v12757_v20  ;;  %v4295_v19 = vld [vmem:[#allocation19 + $0x320] sm:$0xff]  ;;  %v12716_v20 = vcombine.low %v3266_v3, %v3270_v4  ;;  %v4253_v3 = vld [vmem:[#allocation19 + $0x1d0] sm:$0xff] }
 0x4ff   :  { %4973 = vmatprep.subr.bf16.mxu0 %v12847_v21  ;;  %v12934_v21 = vcombine.low %v4299_v0, %v4303_v7  ;;  %v12927_v23 = vcombine.high %v4291_v18, %v4295_v19  ;;  %v4257_v4 = vld [vmem:[#allocation19 + $0x1f0] sm:$0xff]  ;;  %v12894_v7 = vcombine.low %v4259_v58, %v4263_v59 }
 0x501   :  { %4149 = vmatpush1.bf16.msra.mxu1 %v12756_v26  ;;  %v4283_v26 = vld [vmem:[#allocation19 + $0x2c0] sm:$0xff] }
 0x502   :  { %4974 = vmatpush1.bf16.msra.mxu0 %v12846_v27  ;;  %4150 = vmatprep.subr.bf16.mxu1 %v12749_v28  ;;  %v4287_v27 = vld [vmem:[#allocation19 + $0x2e0] sm:$0xff]  ;;  %v12708_v28 = vcombine.low %v3258_v16, %v3262_v17  ;;  %v4245_v16 = vld [vmem:[#allocation19 + $0x190] sm:$0xff] }
 0x503   :  { %4975 = vmatprep.subr.bf16.mxu0 %v12839_v29  ;;  %v12926_v29 = vcombine.low %v4291_v18, %v4295_v19  ;;  %v12919_v31 = vcombine.high %v4283_v26, %v4287_v27  ;;  %v4249_v17 = vld [vmem:[#allocation19 + $0x1b0] sm:$0xff]  ;;  %v12890_v19 = vcombine.low %v4253_v3, %v4257_v4 }
 0x504   :  { %v15625_v40 = vpop.f32.mrf.mxu1  ;;  %v15627_v41 = vpop.f32.mrf.mxu0 }
 0x505   :  { %4151 = vmatpush1.bf16.msra.mxu1 %v12748_v34  ;;  %v4275_v34 = vld [vmem:[#allocation19 + $0x280] sm:$0xff] }
 0x506   :  { %4976 = vmatpush1.bf16.msra.mxu0 %v12838_v35  ;;  %v15629_v45 = vpop.f32.mrf.mxu1  ;;  %v15631_v13 = vpop.f32.mrf.mxu0  ;;  %4152 = vmatprep.subr.bf16.mxu1 %v12741_v36  ;;  %v4279_v35 = vld [vmem:[#allocation19 + $0x2a0] sm:$0xff]  ;;  %v12828_v36 = vcombine.low %v3378_v24, %v3382_v25  ;;  %v4237_v25 = vld [vmem:[#allocation19 + $0x150] sm:$0xff] }
 0x507   :  { %4977 = vmatprep.subr.bf16.mxu0 %v12831_v37  ;;  %v12918_v37 = vcombine.low %v4283_v26, %v4287_v27  ;;  %v12911_v39 = vcombine.high %v4275_v34, %v4279_v35  ;;  %v4241_v26 = vld [vmem:[#allocation19 + $0x170] sm:$0xff] }
 0x508   :  { %v2484_v55 = vpop.f32.mrf.mxu1  ;;  %v3129_v56 = vpop.f32.mrf.mxu0 }
 0x509   :  { %4153 = vmatpush1.bf16.msra.mxu1 %v12740_v44  ;;  %v4267_v44 = vld [vmem:[#allocation19 + $0x240] sm:$0xff]  ;;  %v3354_v55 = vld [vmem:[%s17627_s10 + $0x318] sm:$0xff] }
 0x50a   :  { %4978 = vmatpush1.bf16.msra.mxu0 %v12830_v46  ;;  %v2485_v57 = vpop.f32.mrf.mxu1  ;;  %v3130_v61 = vpop.f32.mrf.mxu0  ;;  %4154 = vmatprep.subr.bf16.mxu1 %v12733_v47  ;;  %v4271_v46 = vld [vmem:[#allocation19 + $0x260] sm:$0xff]  ;;  %v12820_v47 = vcombine.low %v3370_v32, %v3374_v33  ;;  %v3358_v56 = vld [vmem:[%s17627_s10 + $0x338] sm:$0xff]  ;;  %v12875_v33 = vcombine.high %v4237_v25, %v4241_v26 }
 0x50b   :  { %4979 = vmatprep.subr.bf16.mxu0 %v12951_v48  ;;  %v12910_v48 = vcombine.low %v4275_v34, %v4279_v35  ;;  %v12903_v54 = vcombine.high %v4267_v44, %v4271_v46  ;;  %v12902_v57 = vcombine.low %v4267_v44, %v4271_v46  ;;  %v12805_v61 = vcombine.high %v3354_v55, %v3358_v56  ;;  %v3322_v34 = vld [vmem:[%s17627_s10 + $0x218] sm:$0xff] }
 0x50c   :  { %v12804_v0 = vcombine.low %v3354_v55, %v3358_v56  ;;  %v3326_v35 = vld [vmem:[%s17627_s10 + $0x238] sm:$0xff]  ;;  %v12874_v44 = vcombine.low %v4237_v25, %v4241_v26 }
 0x50d   :  { %4155 = vmatpush1.bf16.msra.mxu1 %v12732_v60  ;;  %v12812_v60 = vcombine.low %v3362_v42, %v3366_v43  ;;  %v12773_v46 = vcombine.high %v3322_v34, %v3326_v35  ;;  %v4221_v55 = vld [vmem:[#allocation19 + $0xd0] sm:$0xff] }
 0x50e   :  { %4980 = vmatpush2.bf16.msra.mxu0 %v12950_v62  ;;  %4156 = vmatprep.subr.bf16.mxu1 %v12725_v63  ;;  %v12895_v62 = vcombine.high %v4259_v58, %v4263_v59  ;;  %v3346_v63 = vld [vmem:[%s17627_s10 + $0x2d8] sm:$0xff]  ;;  %v12772_v58 = vcombine.low %v3322_v34, %v3326_v35 }
 0x50f   :  { %4981 = vmatprep.subr.bf16.mxu0 %v12943_v2  ;;  %v3350_v2 = vld [vmem:[%s17627_s10 + $0x2f8] sm:$0xff] }
 0x510   :  { %v12796_v18 = vcombine.low %v3346_v63, %v3350_v2  ;;  %v4225_v56 = vld [vmem:[#allocation19 + $0xf0] sm:$0xff] }
 0x511   :  { %4157 = vmatpush1.bf16.msra.mxu1 %v12724_v8  ;;  %v12797_v8 = vcombine.high %v3346_v63, %v3350_v2  ;;  %v4213_v63 = vld [vmem:[#allocation19 + $0x90] sm:$0xff] }
 0x512   :  { %4982 = vmatpush2.bf16.msra.mxu0 %v12942_v11  ;;  %4158 = vmatprep.subr.bf16.mxu1 %v12717_v12  ;;  %v12891_v11 = vcombine.high %v4253_v3, %v4257_v4  ;;  %v3338_v12 = vld [vmem:[%s17627_s10 + $0x298] sm:$0xff]  ;;  %v12858_v4 = vcombine.low %v4221_v55, %v4225_v56 }
 0x513   :  { %4983 = vmatprep.subr.bf16.mxu0 %v12935_v15  ;;  %v3342_v15 = vld [vmem:[%s17627_s10 + $0x2b8] sm:$0xff] }
 0x514   :  { %v4217_v2 = vld [vmem:[#allocation19 + $0xb0] sm:$0xff] }
 0x515   :  { %4159 = vmatpush1.bf16.msra.mxu1 %v12716_v20  ;;  %v12789_v20 = vcombine.high %v3338_v12, %v3342_v15  ;;  %v4317_v34 = vld [vmem:[#allocation19 + $0x3d0] sm:$0xff] }
 0x516   :  { %4984 = vmatpush2.bf16.msra.mxu0 %v12934_v21  ;;  %4160 = vmatprep.subr.bf16.mxu1 %v12709_v22  ;;  %v12883_v21 = vcombine.high %v4245_v16, %v4249_v17  ;;  %v3330_v22 = vld [vmem:[%s17627_s10 + $0x258] sm:$0xff] }
 0x517   :  { %4985 = vmatprep.subr.bf16.mxu0 %v12927_v23  ;;  %v3334_v23 = vld [vmem:[%s17627_s10 + $0x278] sm:$0xff] }
 0x518   :  { %v12780_v42 = vcombine.low %v3330_v22, %v3334_v23  ;;  %v4321_v35 = vld [vmem:[#allocation19 + $0x3f0] sm:$0xff] }
 0x519   :  { %4161 = vmatpush1.bf16.msra.mxu1 %v12708_v28  ;;  %v12788_v28 = vcombine.low %v3338_v12, %v3342_v15  ;;  %v4205_v12 = vld [vmem:[#allocation19 + $0x50] sm:$0xff] }
 0x51a   :  { %4986 = vmatpush2.bf16.msra.mxu0 %v12926_v29  ;;  %4162 = vmatprep.subr.bf16.mxu1 %v12829_v30  ;;  %v12882_v30 = vcombine.low %v4245_v16, %v4249_v17  ;;  %v4209_v15 = vld [vmem:[#allocation19 + $0x70] sm:$0xff]  ;;  %v12850_v17 = vcombine.low %v4213_v63, %v4217_v2 }
 0x51b   :  { %4987 = vmatprep.subr.bf16.mxu0 %v12919_v31  ;;  %v12781_v31 = vcombine.high %v3330_v22, %v3334_v23  ;;  %v4197_v22 = vld [vmem:[#allocation19 + $0x10] sm:$0xff]  ;;  %v12842_v26 = vcombine.low %v4205_v12, %v4209_v15 }
 0x51c   :  { %v4201_v23 = vld [vmem:[#allocation19 + $0x30] sm:$0xff] }
 0x51d   :  { %4163 = vmatpush2.bf16.msra.mxu1 %v12828_v36 }
 0x51e   :  { %4988 = vmatpush2.bf16.msra.mxu0 %v12918_v37  ;;  %4164 = vmatprep.subr.bf16.mxu1 %v12821_v38  ;;  %v4229_v37 = vld [vmem:[#allocation19 + $0x110] sm:$0xff] }
 0x51f   :  { %4989 = vmatprep.subr.bf16.mxu0 %v12911_v39  ;;  %v4233_v38 = vld [vmem:[#allocation19 + $0x130] sm:$0xff] }
 0x520   :  { %v12866_v59 = vcombine.low %v4229_v37, %v4233_v38 }
 0x521   :  { %4165 = vmatpush2.bf16.msra.mxu1 %v12820_v47 }
 0x522   :  { %4990 = vmatpush2.bf16.msra.mxu0 %v12910_v48  ;;  %4166 = vmatprep.subr.bf16.mxu1 %v12813_v51  ;;  %v12867_v48 = vcombine.high %v4229_v37, %v4233_v38  ;;  %v4252_v51 = vld [vmem:[#allocation19 + $0x1c8] sm:$0xff]  ;;  %v12834_v37 = vcombine.low %v4197_v22, %v4201_v23 }
 0x523   :  { %4991 = vmatprep.subr.bf16.mxu0 %v12903_v54  ;;  %v4256_v54 = vld [vmem:[#allocation19 + $0x1e8] sm:$0xff] }
 0x524   :  { %v12888_v3 = vcombine.low %v4252_v51, %v4256_v54 }
 0x525   :  { %4167 = vmatpush2.bf16.msra.mxu1 %v12812_v60  ;;  %v12889_v60 = vcombine.high %v4252_v51, %v4256_v54 }
 0x526   :  { %4992 = vmatpush2.bf16.msra.mxu0 %v12902_v57  ;;  %4168 = vmatprep.subr.bf16.mxu1 %v12805_v61  ;;  %v12859_v57 = vcombine.high %v4221_v55, %v4225_v56  ;;  %v4244_v61 = vld [vmem:[#allocation19 + $0x188] sm:$0xff] }
 0x527   :  { %4993 = vmatprep.subr.bf16.mxu0 %v12895_v62  ;;  %v4248_v62 = vld [vmem:[#allocation19 + $0x1a8] sm:$0xff] }
 0x528   :  { %v12880_v16 = vcombine.low %v4244_v61, %v4248_v62  ;;  %v4204_v55 = vld [vmem:[#allocation19 + $0x48] sm:$0xff] }
 0x529   :  { %4169 = vmatpush2.bf16.msra.mxu1 %v12804_v0  ;;  %v12881_v0 = vcombine.high %v4244_v61, %v4248_v62  ;;  %v4208_v56 = vld [vmem:[#allocation19 + $0x68] sm:$0xff] }
 0x52a   :  { %4994 = vmatpush2.bf16.msra.mxu0 %v12894_v7  ;;  %4170 = vmatprep.subr.bf16.mxu1 %v12797_v8  ;;  %v12851_v7 = vcombine.high %v4213_v63, %v4217_v2  ;;  %v4236_v8 = vld [vmem:[#allocation19 + $0x148] sm:$0xff]  ;;  %v12841_v61 = vcombine.high %v4204_v55, %v4208_v56 }
 0x52b   :  { %5045 = vmatprep.subr.bf16.mxu0 %v12891_v11  ;;  %v4240_v11 = vld [vmem:[#allocation19 + $0x168] sm:$0xff] }
 0x52c   :  { %v15693_v24 = vpop.f32.mrf.mxu1  ;;  %v12872_v25 = vcombine.low %v4236_v8, %v4240_v11  ;;  %v4196_v63 = vld [vmem:[#allocation19 + $0x8] sm:$0xff] }
 0x52d   :  { %v15695_v27 = vpop.f32.mrf.mxu0  ;;  %4996 = vmatmul.mubr.bf16.vlgmr.msra.gmra.mxu0 %v14873_v1  ;;  %4171 = vmatpush2.bf16.msra.mxu1 %v12796_v18  ;;  %v12873_v18 = vcombine.high %v4236_v8, %v4240_v11  ;;  %v4200_v2 = vld [vmem:[#allocation19 + $0x28] sm:$0xff] }
 0x52e   :  { %5046 = vmatpush1.bf16.msra.mxu0 %v12890_v19  ;;  %v15698_v29 = vpop.f32.mrf.mxu1  ;;  %4172 = vmatprep.subr.bf16.mxu1 %v12789_v20  ;;  %v12843_v19 = vcombine.high %v4205_v12, %v4209_v15  ;;  %v4228_v20 = vld [vmem:[#allocation19 + $0x108] sm:$0xff]  ;;  %v12833_v8 = vcombine.high %v4196_v63, %v4200_v2 }
 0x52f   :  { %v15700_v32 = vpop.f32.mrf.mxu0  ;;  %5047 = vmatprep.subr.bf16.mxu0 %v12883_v21  ;;  %5077 = vmatprep.mubr.bf16.mxu0 %v14873_v1  ;;  %v4232_v21 = vld [vmem:[#allocation19 + $0x128] sm:$0xff] }
 0x530   :  { %v2566_v36 = vpop.f32.mrf.mxu1  ;;  %v4316_v12 = vld [vmem:[#allocation19 + $0x3c8] sm:$0xff] }
 0x531   :  { %v3211_v39 = vpop.f32.mrf.mxu0  ;;  %4173 = vmatpush2.bf16.msra.mxu1 %v12788_v28  ;;  %v12865_v28 = vcombine.high %v4228_v20, %v4232_v21  ;;  %v12864_v36 = vcombine.low %v4228_v20, %v4232_v21  ;;  %v4320_v15 = vld [vmem:[#allocation19 + $0x3e8] sm:$0xff] }
 0x532   :  { %5048 = vmatpush1.bf16.msra.mxu0 %v12882_v30  ;;  %v2567_v43 = vpop.f32.mrf.mxu1  ;;  %4174 = vmatprep.subr.bf16.mxu1 %v12781_v31  ;;  %v12835_v30 = vcombine.high %v4197_v22, %v4201_v23  ;;  %v4220_v31 = vld [vmem:[#allocation19 + $0xc8] sm:$0xff]  ;;  %v12955_v39 = vcombine.high %v4317_v34, %v4321_v35  ;;  %v12953_v22 = vcombine.high %v4316_v12, %v4320_v15 }
 0x533   :  { %v3212_v47 = vpop.f32.mrf.mxu0  ;;  %5049 = vmatprep.subr.bf16.mxu0 %v12875_v33  ;;  %v4224_v33 = vld [vmem:[#allocation19 + $0xe8] sm:$0xff] }
 0x534   :  { %v12857_v38 = vcombine.high %v4220_v31, %v4224_v33  ;;  %v4216_v43 = vld [vmem:[#allocation19 + $0xa8] sm:$0xff]  ;;  %v12856_v47 = vcombine.low %v4220_v31, %v4224_v33  ;;  %v4281_v31 = vld [vmem:[#allocation19 + $0x2b0] sm:$0xff]  ;;  %v12952_v33 = vcombine.low %v4316_v12, %v4320_v15  ;;  %v5285_v12 = vld [vmem:[%s17627_s10 + $0x180] sm:$0xff] }
 0x535   :  { %4175 = vmatpush2.bf16.msra.mxu1 %v12780_v42  ;;  %v4212_v42 = vld [vmem:[#allocation19 + $0x88] sm:$0xff]  ;;  %v5289_v15 = vld [vmem:[%s17627_s10 + $0x1a0] sm:$0xff] }
 0x536   :  { %5050 = vmatpush1.bf16.msra.mxu0 %v12874_v44  ;;  %4176 = vmatprep.subr.bf16.mxu1 %v12773_v46  ;;  %v4309_v44 = vld [vmem:[#allocation19 + $0x390] sm:$0xff]  ;;  %v12849_v51 = vcombine.high %v4212_v42, %v4216_v43 }
 0x537   :  { %5051 = vmatprep.subr.bf16.mxu0 %v12867_v48  ;;  %v4313_v46 = vld [vmem:[#allocation19 + $0x3b0] sm:$0xff]  ;;  %v12954_v48 = vcombine.low %v4317_v34, %v4321_v35 }
 0x538   :  { %v12947_v54 = vcombine.high %v4309_v44, %v4313_v46 }
 0x539   :  { %4177 = vmatpush2.bf16.msra.mxu1 %v12772_v58  ;;  %v4301_v58 = vld [vmem:[#allocation19 + $0x350] sm:$0xff] }
 0x53a   :  { %5052 = vmatpush1.bf16.msra.mxu0 %v12866_v59  ;;  %5004 = vmatprep.subr.bf16.mxu1 %v12889_v60  ;;  %v4305_v59 = vld [vmem:[#allocation19 + $0x370] sm:$0xff]  ;;  %v12848_v60 = vcombine.low %v4212_v42, %v4216_v43 }
 0x53b   :  { %5053 = vmatprep.subr.bf16.mxu0 %v12859_v57  ;;  %v12946_v57 = vcombine.low %v4309_v44, %v4313_v46  ;;  %v12939_v62 = vcombine.high %v4301_v58, %v4305_v59  ;;  %v4269_v42 = vld [vmem:[#allocation19 + $0x250] sm:$0xff] }
 0x53c   :  { %4179 = vmatmul.mubr.bf16.vlgmr.msra.gmra.mxu1 %v14873_v1  ;;  %v4273_v43 = vld [vmem:[#allocation19 + $0x270] sm:$0xff] }
 0x53d   :  { %5005 = vmatpush1.bf16.msra.mxu1 %v12888_v3  ;;  %5036 = vmatprep.mubr.bf16.mxu1 %v14873_v1  ;;  %v4293_v3 = vld [vmem:[#allocation19 + $0x310] sm:$0xff] }
 0x53e   :  { %5054 = vmatpush1.bf16.msra.mxu0 %v12858_v4  ;;  %5006 = vmatprep.subr.bf16.mxu1 %v12881_v0  ;;  %v4297_v4 = vld [vmem:[#allocation19 + $0x330] sm:$0xff]  ;;  %v12840_v0 = vcombine.low %v4204_v55, %v4208_v56 }
 0x53f   :  { %5055 = vmatprep.subr.bf16.mxu0 %v12851_v7  ;;  %v12938_v7 = vcombine.low %v4301_v58, %v4305_v59  ;;  %v12931_v11 = vcombine.high %v4293_v3, %v4297_v4  ;;  %v12930_v21 = vcombine.low %v4293_v3, %v4297_v4  ;;  %v4261_v55 = vld [vmem:[#allocation19 + $0x210] sm:$0xff]  ;;  %v12906_v59 = vcombine.low %v4269_v42, %v4273_v43 }
 0x540   :  { %v4265_v56 = vld [vmem:[#allocation19 + $0x230] sm:$0xff] }
 0x541   :  { %5007 = vmatpush1.bf16.msra.mxu1 %v12880_v16  ;;  %v12898_v4 = vcombine.low %v4261_v55, %v4265_v56 }
 0x542   :  { %5056 = vmatpush1.bf16.msra.mxu0 %v12850_v17  ;;  %5008 = vmatprep.subr.bf16.mxu1 %v12873_v18  ;;  %v4285_v17 = vld [vmem:[#allocation19 + $0x2d0] sm:$0xff] }
 0x543   :  { %5057 = vmatprep.subr.bf16.mxu0 %v12843_v19  ;;  %v4289_v18 = vld [vmem:[#allocation19 + $0x2f0] sm:$0xff]  ;;  %v12832_v19 = vcombine.low %v4196_v63, %v4200_v2  ;;  %v5293_v63 = vld [vmem:[%s17627_s10 + $0x1c0] sm:$0xff] }
 0x544   :  { %v12923_v23 = vcombine.high %v4285_v17, %v4289_v18  ;;  %v12922_v35 = vcombine.low %v4285_v17, %v4289_v18  ;;  %v5297_v2 = vld [vmem:[%s17627_s10 + $0x1e0] sm:$0xff] }
 0x545   :  { %5009 = vmatpush1.bf16.msra.mxu1 %v12872_v25  ;;  %v4308_v25 = vld [vmem:[#allocation19 + $0x388] sm:$0xff] }
 0x546   :  { %5058 = vmatpush1.bf16.msra.mxu0 %v12842_v26  ;;  %5010 = vmatprep.subr.bf16.mxu1 %v12865_v28  ;;  %v4312_v26 = vld [vmem:[#allocation19 + $0x3a8] sm:$0xff] }
 0x547   :  { %5059 = vmatprep.subr.bf16.mxu0 %v12835_v30  ;;  %v4277_v30 = vld [vmem:[#allocation19 + $0x290] sm:$0xff]  ;;  %v12944_v44 = vcombine.low %v4308_v25, %v4312_v26 }
 0x548   :  { %v12914_v46 = vcombine.low %v4277_v30, %v4281_v31 }
 0x549   :  { %5011 = vmatpush1.bf16.msra.mxu1 %v12864_v36  ;;  %v12945_v36 = vcombine.high %v4308_v25, %v4312_v26  ;;  %v5277_v25 = vld [vmem:[%s17627_s10 + $0x140] sm:$0xff] }
 0x54a   :  { %5060 = vmatpush1.bf16.msra.mxu0 %v12834_v37  ;;  %5012 = vmatprep.subr.bf16.mxu1 %v12857_v38  ;;  %v12915_v37 = vcombine.high %v4277_v30, %v4281_v31  ;;  %v4300_v38 = vld [vmem:[#allocation19 + $0x348] sm:$0xff]  ;;  %v5281_v26 = vld [vmem:[%s17627_s10 + $0x160] sm:$0xff] }
 0x54b   :  { %5061 = vmatprep.subr.bf16.mxu0 %v12955_v39  ;;  %v4304_v39 = vld [vmem:[#allocation19 + $0x368] sm:$0xff] }
 0x54c   :  { %v12936_v58 = vcombine.low %v4300_v38, %v4304_v39 }
 0x54d   :  { %5013 = vmatpush1.bf16.msra.mxu1 %v12856_v47  ;;  %v12937_v47 = vcombine.high %v4300_v38, %v4304_v39  ;;  %v5269_v38 = vld [vmem:[%s17627_s10 + $0x100] sm:$0xff] }
 0x54e   :  { %5062 = vmatpush2.bf16.msra.mxu0 %v12954_v48  ;;  %5014 = vmatprep.subr.bf16.mxu1 %v12849_v51  ;;  %v12907_v48 = vcombine.high %v4269_v42, %v4273_v43  ;;  %v4292_v51 = vld [vmem:[#allocation19 + $0x308] sm:$0xff]  ;;  %v5273_v39 = vld [vmem:[%s17627_s10 + $0x120] sm:$0xff] }
 0x54f   :  { %5063 = vmatprep.subr.bf16.mxu0 %v12947_v54  ;;  %v4296_v54 = vld [vmem:[#allocation19 + $0x328] sm:$0xff] }
 0x550   :  { %v12928_v3 = vcombine.low %v4292_v51, %v4296_v54 }
 0x551   :  { %5015 = vmatpush1.bf16.msra.mxu1 %v12848_v60  ;;  %v12929_v60 = vcombine.high %v4292_v51, %v4296_v54  ;;  %v12991_v54 = vcombine.high %v5269_v38, %v5273_v39 }
 0x552   :  { %5064 = vmatpush2.bf16.msra.mxu0 %v12946_v57  ;;  %5016 = vmatprep.subr.bf16.mxu1 %v12841_v61  ;;  %v12899_v57 = vcombine.high %v4261_v55, %v4265_v56  ;;  %v4284_v61 = vld [vmem:[#allocation19 + $0x2c8] sm:$0xff]  ;;  %v5261_v55 = vld [vmem:[%s17627_s10 + $0xc0] sm:$0xff] }
 0x553   :  { %5065 = vmatprep.subr.bf16.mxu0 %v12939_v62  ;;  %v4288_v62 = vld [vmem:[#allocation19 + $0x2e8] sm:$0xff]  ;;  %v5265_v56 = vld [vmem:[%s17627_s10 + $0xe0] sm:$0xff] }
 0x554   :  { %v15711_v16 = vpop.f32.mrf.mxu1  ;;  %v12920_v17 = vcombine.low %v4284_v61, %v4288_v62 }
 0x555   :  { %5017 = vmatpush1.bf16.msra.mxu1 %v12840_v0  ;;  %v12921_v0 = vcombine.high %v4284_v61, %v4288_v62  ;;  %v4250_v61 = vld [vmem:[#allocation19 + $0x1b8] sm:$0xff]  ;;  %v12983_v62 = vcombine.high %v5261_v55, %v5265_v56 }
 0x556   :  { %5066 = vmatpush2.bf16.msra.mxu0 %v12938_v7  ;;  %v15713_v20 = vpop.f32.mrf.mxu1  ;;  %5018 = vmatprep.subr.bf16.mxu1 %v12833_v8  ;;  %v4276_v7 = vld [vmem:[#allocation19 + $0x288] sm:$0xff] }
 0x557   :  { %5067 = vmatprep.subr.bf16.mxu0 %v12931_v11  ;;  %v4280_v8 = vld [vmem:[#allocation19 + $0x2a8] sm:$0xff]  ;;  %v13015_v11 = vcombine.high %v5293_v63, %v5297_v2 }
 0x558   :  { %v3170_v28 = vpop.f32.mrf.mxu1  ;;  %v12913_v18 = vcombine.high %v4276_v7, %v4280_v8  ;;  %v12912_v30 = vcombine.low %v4276_v7, %v4280_v8  ;;  %v4238_v7 = vld [vmem:[#allocation19 + $0x158] sm:$0xff] }
 0x559   :  { %5019 = vmatpush1.bf16.msra.mxu1 %v12832_v19  ;;  %v13014_v19 = vcombine.low %v5293_v63, %v5297_v2  ;;  %v5253_v63 = vld [vmem:[%s17627_s10 + $0x80] sm:$0xff] }
 0x55a   :  { %5068 = vmatpush2.bf16.msra.mxu0 %v12930_v21  ;;  %v3171_v34 = vpop.f32.mrf.mxu1  ;;  %5020 = vmatprep.subr.bf16.mxu1 %v12953_v22  ;;  %v4268_v21 = vld [vmem:[#allocation19 + $0x248] sm:$0xff]  ;;  %v5257_v2 = vld [vmem:[%s17627_s10 + $0xa0] sm:$0xff] }
 0x55b   :  { %5069 = vmatprep.subr.bf16.mxu0 %v12923_v23  ;;  %v4272_v22 = vld [vmem:[#allocation19 + $0x268] sm:$0xff]  ;;  %v13007_v23 = vcombine.high %v5285_v12, %v5289_v15  ;;  %v4242_v8 = vld [vmem:[#allocation19 + $0x178] sm:$0xff] }
 0x55c   :  { %v12905_v31 = vcombine.high %v4268_v21, %v4272_v22  ;;  %v12904_v42 = vcombine.low %v4268_v21, %v4272_v22  ;;  %v12877_v21 = vcombine.high %v4238_v7, %v4242_v8  ;;  %v12974_v22 = vcombine.low %v5253_v63, %v5257_v2 }
 0x55d   :  { %5021 = vmatpush2.bf16.msra.mxu1 %v12952_v33  ;;  %v13006_v33 = vcombine.low %v5285_v12, %v5289_v15  ;;  %v5245_v15 = vld [vmem:[%s17627_s10 + $0x40] sm:$0xff] }
 0x55e   :  { %5070 = vmatpush2.bf16.msra.mxu0 %v12922_v35  ;;  %5022 = vmatprep.subr.bf16.mxu1 %v12945_v36  ;;  %v4260_v35 = vld [vmem:[#allocation19 + $0x208] sm:$0xff] }
 0x55f   :  { %5071 = vmatprep.subr.bf16.mxu0 %v12915_v37  ;;  %v4264_v36 = vld [vmem:[#allocation19 + $0x228] sm:$0xff]  ;;  %v12999_v37 = vcombine.high %v5277_v25, %v5281_v26 }
 0x561   :  { %5023 = vmatpush2.bf16.msra.mxu1 %v12944_v44  ;;  %v12897_v44 = vcombine.high %v4260_v35, %v4264_v36 }
 0x562   :  { %5072 = vmatpush2.bf16.msra.mxu0 %v12914_v46  ;;  %5024 = vmatprep.subr.bf16.mxu1 %v12937_v47  ;;  %v12998_v46 = vcombine.low %v5277_v25, %v5281_v26  ;;  %v4254_v47 = vld [vmem:[#allocation19 + $0x1d8] sm:$0xff] }
 0x563   :  { %5073 = vmatprep.subr.bf16.mxu0 %v12907_v48  ;;  %v4258_v48 = vld [vmem:[#allocation19 + $0x1f8] sm:$0xff] }
 0x564   :  { %v4234_v25 = vld [vmem:[#allocation19 + $0x138] sm:$0xff] }
 0x565   :  { %5025 = vmatpush2.bf16.msra.mxu1 %v12936_v58  ;;  %v12896_v58 = vcombine.low %v4260_v35, %v4264_v36  ;;  %v12876_v35 = vcombine.low %v4238_v7, %v4242_v8 }
 0x566   :  { %5074 = vmatpush2.bf16.msra.mxu0 %v12906_v59  ;;  %5026 = vmatprep.subr.bf16.mxu1 %v12929_v60  ;;  %v12893_v59 = vcombine.high %v4254_v47, %v4258_v48  ;;  %v12990_v60 = vcombine.low %v5269_v38, %v5273_v39  ;;  %v4222_v39 = vld [vmem:[#allocation19 + $0xd8] sm:$0xff] }
 0x567   :  { %5075 = vmatprep.subr.bf16.mxu0 %v12899_v57  ;;  %v4246_v57 = vld [vmem:[#allocation19 + $0x198] sm:$0xff] }
 0x569   :  { %5027 = vmatpush2.bf16.msra.mxu1 %v12928_v3  ;;  %v12892_v3 = vcombine.low %v4254_v47, %v4258_v48 }
 0x56a   :  { %5076 = vmatpush2.bf16.msra.mxu0 %v12898_v4  ;;  %5028 = vmatprep.subr.bf16.mxu1 %v12921_v0  ;;  %v12885_v4 = vcombine.high %v4246_v57, %v4250_v61  ;;  %v12982_v0 = vcombine.low %v5261_v55, %v5265_v56  ;;  %v4218_v55 = vld [vmem:[#allocation19 + $0xb8] sm:$0xff] }
 0x56b   :  { %6005 = vmatprep.subr.bf16.mxu0 %v13015_v11  ;;  %v12975_v11 = vcombine.high %v5253_v63, %v5257_v2  ;;  %v4210_v63 = vld [vmem:[#allocation19 + $0x78] sm:$0xff] }
 0x56d   :  { %v15733_v28 = vpop.f32.mrf.mxu0  ;;  %5078 = vmatmul.mubr.bf16.vlgmr.msra.gmra.mxu0 %v14873_v1  ;;  %5029 = vmatpush2.bf16.msra.mxu1 %v12920_v17  ;;  %v5249_v17 = vld [vmem:[%s17627_s10 + $0x60] sm:$0xff] }
 0x56e   :  { %5030 = vmatprep.subr.bf16.mxu1 %v12913_v18  ;;  %6006 = vmatpush1.bf16.msra.mxu0 %v13014_v19  ;;  %v12884_v18 = vcombine.low %v4246_v57, %v4250_v61  ;;  %v12967_v26 = vcombine.high %v5245_v15, %v5249_v17  ;;  %v12966_v38 = vcombine.low %v5245_v15, %v5249_v17  ;;  %v4202_v15 = vld [vmem:[#allocation19 + $0x38] sm:$0xff] }
 0x56f   :  { %v15736_v34 = vpop.f32.mrf.mxu0  ;;  %6007 = vmatprep.subr.bf16.mxu0 %v13007_v23  ;;  %v4230_v23 = vld [vmem:[#allocation19 + $0x118] sm:$0xff] }
 0x570   :  { %v12868_v47 = vcombine.low %v4230_v23, %v4234_v25 }
 0x571   :  { %5031 = vmatpush2.bf16.msra.mxu1 %v12912_v30  ;;  %v4061_v43 = vpop.f32.mrf.mxu0 }
 0x572   :  { %5032 = vmatprep.subr.bf16.mxu1 %v12905_v31  ;;  %6008 = vmatpush1.bf16.msra.mxu0 %v13006_v33  ;;  %v5237_v31 = vld [vmem:[%s17627_s10] sm:$0xff] }
 0x573   :  { %v4062_v51 = vpop.f32.mrf.mxu0  ;;  %6009 = vmatprep.subr.bf16.mxu0 %v12999_v37  ;;  %v5241_v33 = vld [vmem:[%s17627_s10 + $0x20] sm:$0xff]  ;;  %v12869_v37 = vcombine.high %v4230_v23, %v4234_v25 }
 0x574   :  { %v12959_v43 = vcombine.high %v5237_v31, %v5241_v33  ;;  %v12958_v51 = vcombine.low %v5237_v31, %v5241_v33  ;;  %v5325_v33 = vld [vmem:[%s17627_s10 + $0x2c0] sm:$0xff] }
 0x575   :  { %5033 = vmatpush2.bf16.msra.mxu1 %v12904_v42  ;;  %v4226_v42 = vld [vmem:[#allocation19 + $0xf8] sm:$0xff] }
 0x576   :  { %5034 = vmatprep.subr.bf16.mxu1 %v12897_v44  ;;  %6010 = vmatpush1.bf16.msra.mxu0 %v12998_v46  ;;  %v5357_v44 = vld [vmem:[%s17627_s10 + $0x3c0] sm:$0xff]  ;;  %v12861_v48 = vcombine.high %v4222_v39, %v4226_v42 }
 0x577   :  { %6011 = vmatprep.subr.bf16.mxu0 %v12991_v54  ;;  %v5361_v46 = vld [vmem:[%s17627_s10 + $0x3e0] sm:$0xff] }
 0x578   :  { %v4214_v54 = vld [vmem:[#allocation19 + $0x98] sm:$0xff]  ;;  %v13079_v56 = vcombine.high %v5357_v44, %v5361_v46  ;;  %v13078_v61 = vcombine.low %v5357_v44, %v5361_v46  ;;  %v15809_v46 = vld [vmem:[%s17627_s10 + $0x1d0] sm:$0xff] }
 0x579   :  { %5035 = vmatpush2.bf16.msra.mxu1 %v12896_v58  ;;  %v5349_v58 = vld [vmem:[%s17627_s10 + $0x380] sm:$0xff]  ;;  %v12853_v57 = vcombine.high %v4214_v54, %v4218_v55 }
 0x57a   :  { %5086 = vmatprep.subr.bf16.mxu1 %v12893_v59  ;;  %6012 = vmatpush1.bf16.msra.mxu0 %v12990_v60  ;;  %v5353_v59 = vld [vmem:[%s17627_s10 + $0x3a0] sm:$0xff]  ;;  %v12860_v60 = vcombine.low %v4222_v39, %v4226_v42 }
 0x57b   :  { %6013 = vmatprep.subr.bf16.mxu0 %v12983_v62  ;;  %v4206_v62 = vld [vmem:[#allocation19 + $0x58] sm:$0xff]  ;;  %v13071_v2 = vcombine.high %v5349_v58, %v5353_v59  ;;  %v13070_v8 = vcombine.low %v5349_v58, %v5353_v59 }
 0x57c   :  { %v15756_v12 = vpop.f32.mrf.mxu1  ;;  %5037 = vmatmul.mubr.bf16.vlgmr.msra.gmra.mxu1 %v14873_v1  ;;  %v12845_v7 = vcombine.high %v4206_v62, %v4210_v63  ;;  %v4310_v39 = vld [vmem:[#allocation19 + $0x398] sm:$0xff] }
 0x57d   :  { %5087 = vmatpush1.bf16.msra.mxu1 %v12892_v3  ;;  %5118 = vmatprep.mubr.bf16.mxu1 %v14873_v1  ;;  %v5341_v3 = vld [vmem:[%s17627_s10 + $0x340] sm:$0xff] }
 0x57e   :  { %v15766_v19 = vpop.f32.mrf.mxu1  ;;  %5088 = vmatprep.subr.bf16.mxu1 %v12885_v4  ;;  %6014 = vmatpush1.bf16.msra.mxu0 %v12982_v0  ;;  %v5345_v4 = vld [vmem:[%s17627_s10 + $0x360] sm:$0xff]  ;;  %v12852_v0 = vcombine.low %v4214_v54, %v4218_v55 }
 0x57f   :  { %6015 = vmatprep.subr.bf16.mxu0 %v12975_v11  ;;  %v4198_v11 = vld [vmem:[#allocation19 + $0x18] sm:$0xff]  ;;  %v13063_v17 = vcombine.high %v5341_v3, %v5345_v4  ;;  %v13062_v25 = vcombine.low %v5341_v3, %v5345_v4 }
 0x580   :  { %v3252_v30 = vpop.f32.mrf.mxu1  ;;  %v12837_v23 = vcombine.high %v4198_v11, %v4202_v15 }
 0x581   :  { %5089 = vmatpush1.bf16.msra.mxu1 %v12884_v18  ;;  %v5333_v18 = vld [vmem:[%s17627_s10 + $0x300] sm:$0xff] }
 0x582   :  { %v3253_v36 = vpop.f32.mrf.mxu1  ;;  %5090 = vmatprep.subr.bf16.mxu1 %v12877_v21  ;;  %6016 = vmatpush1.bf16.msra.mxu0 %v12974_v22  ;;  %v5337_v21 = vld [vmem:[%s17627_s10 + $0x320] sm:$0xff]  ;;  %v12844_v22 = vcombine.low %v4206_v62, %v4210_v63 }
 0x583   :  { %6017 = vmatprep.subr.bf16.mxu0 %v12967_v26  ;;  %v4318_v26 = vld [vmem:[#allocation19 + $0x3d8] sm:$0xff]  ;;  %v13055_v31 = vcombine.high %v5333_v18, %v5337_v21  ;;  %v12836_v36 = vcombine.low %v4198_v11, %v4202_v15  ;;  %v13054_v42 = vcombine.low %v5333_v18, %v5337_v21 }
 0x584   :  { %v4322_v30 = vld [vmem:[#allocation19 + $0x3f8] sm:$0xff] }
 0x585   :  { %5091 = vmatpush1.bf16.msra.mxu1 %v12876_v35  ;;  %v5329_v35 = vld [vmem:[%s17627_s10 + $0x2e0] sm:$0xff]  ;;  %v12956_v54 = vcombine.low %v4318_v26, %v4322_v30 }
 0x586   :  { %5092 = vmatprep.subr.bf16.mxu1 %v12869_v37  ;;  %6018 = vmatpush1.bf16.msra.mxu0 %v12966_v38  ;;  %v15804_v37 = vld [vmem:[#allocation16] sm:$0xff]  ;;  %v12957_v38 = vcombine.high %v4318_v26, %v4322_v30  ;;  %v13047_v44 = vcombine.high %v5325_v33, %v5329_v35  ;;  %v13046_v59 = vcombine.low %v5325_v33, %v5329_v35 }
 0x587   :  { %6019 = vmatprep.subr.bf16.mxu0 %v12959_v43  ;;  %v4314_v43 = vld [vmem:[#allocation19 + $0x3b8] sm:$0xff]  ;;  %v1963_v62 = vrot.slane %v15804_v37, %v15093_v53 }
 0x588   :  { %v12949_v58 = vcombine.high %v4310_v39, %v4314_v43  ;;  %v5309_v63 = vld [vmem:[%s17627_s10 + $0x240] sm:$0xff]  ;;  %v12948_v3 = vcombine.low %v4310_v39, %v4314_v43 }
 0x589   :  { %5093 = vmatpush1.bf16.msra.mxu1 %v12868_v47  ;;  %v15814_v47 = vld [vmem:[%s17627_s10 + $0x1f0] sm:$0xff]  ;;  %v4298_v11 = vld [vmem:[#allocation19 + $0x338] sm:$0xff] }
 0x58a   :  { %5094 = vmatprep.subr.bf16.mxu1 %v12861_v48  ;;  %6020 = vmatpush1.bf16.msra.mxu0 %v12958_v51  ;;  %v5317_v48 = vld [vmem:[%s17627_s10 + $0x280] sm:$0xff]  ;;  %v13018_v55 = vcombine.low %v15809_v46, %v15814_v47 }
 0x58b   :  { %6021 = vmatprep.subr.bf16.mxu0 %v13079_v56  ;;  %v5321_v51 = vld [vmem:[%s17627_s10 + $0x2a0] sm:$0xff]  ;;  %v1959_v56 = vrot.slane %v15804_v37, %v15090_v52 }
 0x58c   :  { %v5301_v21 = vld [vmem:[%s17627_s10 + $0x200] sm:$0xff] }
 0x58d   :  { %5095 = vmatpush1.bf16.msra.mxu1 %v12860_v60  ;;  %v4302_v60 = vld [vmem:[#allocation19 + $0x358] sm:$0xff]  ;;  %v15835_v4 = vadd.f32 %v15541_v14, %v1959_v56 }
 0x58e   :  { %5096 = vmatprep.subr.bf16.mxu1 %v12853_v57  ;;  %6022 = vmatpush2.bf16.msra.mxu0 %v13078_v61  ;;  %v4306_v57 = vld [vmem:[#allocation19 + $0x378] sm:$0xff]  ;;  %v13039_v61 = vcombine.high %v5317_v48, %v5321_v51 }
 0x58f   :  { %6023 = vmatprep.subr.bf16.mxu0 %v13071_v2  ;;  %v5313_v2 = vld [vmem:[%s17627_s10 + $0x260] sm:$0xff]  ;;  %v4187_v18 = vadd.f32 %v15733_v28, %v15835_v4 }
 0x590   :  { %v13031_v15 = vcombine.high %v5309_v63, %v5313_v2  ;;  %v5305_v14 = vld [vmem:[%s17627_s10 + $0x220] sm:$0xff] }
 0x591   :  { %5097 = vmatpush1.bf16.msra.mxu1 %v12852_v0  ;;  %v12941_v0 = vcombine.high %v4302_v60, %v4306_v57  ;;  %v4286_v26 = vld [vmem:[#allocation19 + $0x2d8] sm:$0xff]  ;;  %v13023_v28 = vcombine.high %v5301_v21, %v5305_v14  ;;  %v5159_v33 = vmul.f32 0.5, %v4187_v18  ;;  %v5298_v18 = vld [vmem:[%s17627_s10 + $0x1e8] sm:$0xff] }
 0x592   :  { %5098 = vmatprep.subr.bf16.mxu1 %v12845_v7  ;;  %6024 = vmatpush2.bf16.msra.mxu0 %v13070_v8  ;;  %v13038_v7 = vcombine.low %v5317_v48, %v5321_v51  ;;  %v4294_v8 = vld [vmem:[#allocation19 + $0x318] sm:$0xff] }
 0x593   :  { %6025 = vmatprep.subr.bf16.mxu0 %v13063_v17  ;;  %v15838_v17 = vadd.f32 %v15551_v9, %v1963_v62  ;;  %v13030_v9 = vcombine.low %v5309_v63, %v5313_v2  ;;  %v4290_v30 = vld [vmem:[#allocation19 + $0x2f8] sm:$0xff]  ;;  %v12932_v35 = vcombine.low %v4294_v8, %v4298_v11  ;;  %14350 = vtanh.f32 %v5159_v33 }
 0x594   :  { %v12925_v39 = vcombine.high %v4286_v26, %v4290_v30  ;;  %v4282_v43 = vld [vmem:[#allocation19 + $0x2b8] sm:$0xff]  ;;  %v12924_v51 = vcombine.low %v4286_v26, %v4290_v30  ;;  %v5290_v26 = vld [vmem:[%s17627_s10 + $0x1a8] sm:$0xff] }
 0x595   :  { %5099 = vmatpush1.bf16.msra.mxu1 %v12844_v22  ;;  %v12940_v22 = vcombine.low %v4302_v60, %v4306_v57 }
 0x596   :  { %5100 = vmatprep.subr.bf16.mxu1 %v12837_v23  ;;  %6026 = vmatpush2.bf16.msra.mxu0 %v13062_v25  ;;  %v4188_v23 = vadd.f32 %v15736_v34, %v15838_v17  ;;  %v12933_v25 = vcombine.high %v4294_v8, %v4298_v11  ;;  %v13022_v34 = vcombine.low %v5301_v21, %v5305_v14 }
 0x597   :  { %6027 = vmatprep.subr.bf16.mxu0 %v13055_v31  ;;  %v1974_v31 = vsub.s32 4, %v15084_v49 }
 0x599   :  { %5101 = vmatpush1.bf16.msra.mxu1 %v12836_v36  ;;  %v1978_v36 = vsub.s32 5, %v15084_v49  ;;  %v1975_v48 = vrot.slane %v15804_v37, %v1974_v31 }
 0x59a   :  { %5102 = vmatprep.subr.bf16.mxu1 %v12957_v38  ;;  %6028 = vmatpush2.bf16.msra.mxu0 %v13054_v42  ;;  %v5160_v38 = vmul.f32 0.5, %v4188_v23  ;;  %v4278_v42 = vld [vmem:[#allocation19 + $0x298] sm:$0xff] }
 0x59b   :  { %6029 = vmatprep.subr.bf16.mxu0 %v13047_v44  ;;  %v13019_v44 = vcombine.high %v15809_v46, %v15814_v47  ;;  %v12917_v56 = vcombine.high %v4278_v42, %v4282_v43  ;;  %v15861_v60 = vadd.f32 %v15543_v5, %v1975_v48  ;;  %v5275_v46 = vld [vmem:[%s17627_s10 + $0x130] sm:$0xff]  ;;  %v5272_v47 = vld [vmem:[%s17627_s10 + $0x118] sm:$0xff] }
 0x59c   :  { %14352 = vtanh.f32 %v5160_v38  ;;  %v5278_v38 = vld [vmem:[%s17627_s10 + $0x148] sm:$0xff] }
 0x59d   :  { %5103 = vmatpush2.bf16.msra.mxu1 %v12956_v54  ;;  %v1979_v54 = vrot.slane %v15804_v37, %v1978_v36 }
 0x59e   :  { %5104 = vmatprep.subr.bf16.mxu1 %v12949_v58  ;;  %6030 = vmatpush2.bf16.msra.mxu0 %v13046_v59  ;;  %v4270_v58 = vld [vmem:[#allocation19 + $0x258] sm:$0xff] }
 0x59f   :  { %6031 = vmatprep.subr.bf16.mxu0 %v13039_v61  ;;  %v4274_v59 = vld [vmem:[#allocation19 + $0x278] sm:$0xff]  ;;  %v12916_v61 = vcombine.low %v4278_v42, %v4282_v43  ;;  %v15864_v62 = vadd.f32 %v15553_v10, %v1979_v54  ;;  %v5294_v10 = vld [vmem:[%s17627_s10 + $0x1c8] sm:$0xff] }
 0x5a0   :  { %v12909_v2 = vcombine.high %v4270_v58, %v4274_v59  ;;  %v12908_v11 = vcombine.low %v4270_v58, %v4274_v59  ;;  %v14351_v14 = vpop.eup %14350  ;;  %v13017_v23 = vcombine.high %v5294_v10, %v5298_v18  ;;  %v5270_v59 = vld [vmem:[%s17627_s10 + $0x108] sm:$0xff] }
 0x5a1   :  { %5105 = vmatpush2.bf16.msra.mxu1 %v12948_v3  ;;  %v5163_v30 = vadd.f32 1.0, %v14351_v14  ;;  %v5246_v14 = vld [vmem:[%s17627_s10 + $0x48] sm:$0xff] }
 0x5a2   :  { %5106 = vmatprep.subr.bf16.mxu1 %v12941_v0  ;;  %6032 = vmatpush2.bf16.msra.mxu0 %v13038_v7  ;;  %v4262_v0 = vld [vmem:[#allocation19 + $0x218] sm:$0xff] }
 0x5a3   :  { %6033 = vmatprep.subr.bf16.mxu0 %v13031_v15  ;;  %v4266_v7 = vld [vmem:[#allocation19 + $0x238] sm:$0xff] }
 0x5a4   :  { %v12901_v15 = vcombine.high %v4262_v0, %v4266_v7 }
 0x5a5   :  { %5107 = vmatpush2.bf16.msra.mxu1 %v12940_v22  ;;  %v12900_v22 = vcombine.low %v4262_v0, %v4266_v7  ;;  %v5262_v7 = vld [vmem:[%s17627_s10 + $0xc8] sm:$0xff] }
 0x5a6   :  { %5108 = vmatprep.subr.bf16.mxu1 %v12933_v25  ;;  %6034 = vmatpush2.bf16.msra.mxu0 %v13030_v9  ;;  %v5286_v9 = vld [vmem:[%s17627_s10 + $0x188] sm:$0xff] }
 0x5a7   :  { %6035 = vmatprep.subr.bf16.mxu0 %v13023_v28  ;;  %v13016_v28 = vcombine.low %v5294_v10, %v5298_v18  ;;  %v5258_v10 = vld [vmem:[%s17627_s10 + $0xa8] sm:$0xff] }
 0x5a9   :  { %5109 = vmatpush2.bf16.msra.mxu1 %v12932_v35  ;;  %v14353_v25 = vpop.eup %14352  ;;  %v13009_v35 = vcombine.high %v5286_v9, %v5290_v26 }
 0x5aa   :  { %5110 = vmatprep.subr.bf16.mxu1 %v12925_v39  ;;  %6036 = vmatpush2.bf16.msra.mxu0 %v13022_v34  ;;  %v5164_v33 = vadd.f32 1.0, %v14353_v25  ;;  %v5282_v39 = vld [vmem:[%s17627_s10 + $0x168] sm:$0xff]  ;;  %v5165_v34 = vmul.f32 0.5, %v5163_v30 }
 0x5ab   :  { %6087 = vmatprep.subr.bf16.mxu0 %v13019_v44  ;;  %v13008_v44 = vcombine.low %v5286_v9, %v5290_v26  ;;  %v5238_v9 = vld [vmem:[%s17627_s10 + $0x8] sm:$0xff] }
 0x5ac   :  { %v5166_v48 = vmul.f32 0.5, %v5164_v33  ;;  %v5242_v26 = vld [vmem:[%s17627_s10 + $0x28] sm:$0xff] }
 0x5ad   :  { %v4139_v57 = vpop.f32.mrf.mxu0  ;;  %5111 = vmatpush2.bf16.msra.mxu1 %v12924_v51  ;;  %v5358_v33 = vld [vmem:[%s17627_s10 + $0x3c8] sm:$0xff] }
 0x5ae   :  { %v4191_v63 = vadd.f32 %v4139_v57, %v15861_v60  ;;  %5112 = vmatprep.subr.bf16.mxu1 %v12917_v56  ;;  %v13001_v56 = vcombine.high %v5278_v38, %v5282_v39  ;;  %v5274_v57 = vld [vmem:[%s17627_s10 + $0x128] sm:$0xff] }
 0x5af   :  { %v4141_v3 = vpop.f32.mrf.mxu0  ;;  %v12993_v0 = vcombine.high %v5270_v59, %v5274_v57 }
 0x5b0   :  { %14354 = vtanh.f32 %v4191_v63  ;;  %v4192_v8 = vadd.f32 %v4141_v3, %v15864_v62 }
 0x5b1   :  { %5113 = vmatpush2.bf16.msra.mxu1 %v12916_v61  ;;  %v4143_v5 = vpop.f32.mrf.mxu0 }
 0x5b2   :  { %14356 = vtanh.f32 %v4192_v8  ;;  %5114 = vmatprep.subr.bf16.mxu1 %v12909_v2  ;;  %v13000_v2 = vcombine.low %v5278_v38, %v5282_v39  ;;  %v5266_v8 = vld [vmem:[%s17627_s10 + $0xe8] sm:$0xff]  ;;  %v1970_v38 = vsub.s32 3, %v15084_v49  ;;  %v12960_v39 = vcombine.low %v5238_v9, %v5242_v26 }
 0x5b3   :  { %v4144_v21 = vpop.f32.mrf.mxu0  ;;  %v12985_v5 = vcombine.high %v5262_v7, %v5266_v8  ;;  %v12984_v18 = vcombine.low %v5262_v7, %v5266_v8 }
 0x5b5   :  { %5115 = vmatpush2.bf16.msra.mxu1 %v12908_v11  ;;  %v12992_v11 = vcombine.low %v5270_v59, %v5274_v57 }
 0x5b6   :  { %5116 = vmatprep.subr.bf16.mxu1 %v12901_v15  ;;  %v5254_v15 = vld [vmem:[%s17627_s10 + $0x88] sm:$0xff] }
 0x5b7   :  { %v12977_v21 = vcombine.high %v5254_v15, %v5258_v10 }
 0x5b9   :  { %5117 = vmatpush2.bf16.msra.mxu1 %v12900_v22  ;;  %v5250_v22 = vld [vmem:[%s17627_s10 + $0x68] sm:$0xff] }
 0x5ba   :  { %6046 = vmatprep.subr.bf16.mxu1 %v13017_v23  ;;  %v12976_v23 = vcombine.low %v5254_v15, %v5258_v10  ;;  %v12969_v25 = vcombine.high %v5246_v14, %v5250_v22  ;;  %v12968_v30 = vcombine.low %v5246_v14, %v5250_v22  ;;  %v5318_v22 = vld [vmem:[%s17627_s10 + $0x288] sm:$0xff] }
 0x5bc   :  { %v15886_v42 = vpop.f32.mrf.mxu1  ;;  %5119 = vmatmul.mubr.bf16.vlgmr.msra.gmra.mxu1 %v14873_v1 }
 0x5bd   :  { %v14355_v43 = vpop.eup %14354  ;;  %6047 = vmatpush1.bf16.msra.mxu1 %v13016_v28  ;;  %v12961_v28 = vcombine.high %v5238_v9, %v5242_v26  ;;  %v5310_v26 = vld [vmem:[%s17627_s10 + $0x248] sm:$0xff] }
 0x5be   :  { %v15889_v51 = vmul.f32 %v14355_v43, %v5165_v34  ;;  %v4100_v54 = vpop.f32.mrf.mxu1  ;;  %6048 = vmatprep.subr.bf16.mxu1 %v13009_v35  ;;  %v5362_v35 = vld [vmem:[%s17627_s10 + $0x3e8] sm:$0xff]  ;;  %v1967_v43 = vrot.slane %v15804_v37, %v15087_v50 }
 0x5bf   :  { %v14357_v58 = vpop.eup %14356  ;;  %v13081_v34 = vcombine.high %v5358_v33, %v5362_v35 }
 0x5c0   :  { %v15897_v61 = vmul.f32 %v14357_v58, %v5166_v48  ;;  %v4102_v63 = vpop.f32.mrf.mxu1  ;;  %v5354_v48 = vld [vmem:[%s17627_s10 + $0x3a8] sm:$0xff]  ;;  %v13080_v58 = vcombine.low %v5358_v33, %v5362_v35  ;;  %v15942_v57 = vadd.f32 %v15625_v40, %v1967_v43 }
 0x5c1   :  { %6049 = vmatpush1.bf16.msra.mxu1 %v13008_v44  ;;  %v5350_v44 = vld [vmem:[%s17627_s10 + $0x388] sm:$0xff] }
 0x5c2   :  { %v4103_v3 = vpop.f32.mrf.mxu1  ;;  %6050 = vmatprep.subr.bf16.mxu1 %v13001_v56  ;;  %v1971_v56 = vrot.slane %v15804_v37, %v1970_v38  ;;  %v13073_v59 = vcombine.high %v5350_v44, %v5354_v48  ;;  %v5342_v63 = vld [vmem:[%s17627_s10 + $0x348] sm:$0xff]  ;;  %v13072_v7 = vcombine.low %v5350_v44, %v5354_v48 }
 0x5c3   :  { %v5306_v43 = vld [vmem:[%s17627_s10 + $0x228] sm:$0xff] }
 0x5c4   :  { %v15951_v3 = vadd.f32 %v15629_v45, %v1971_v56 }
 0x5c5   :  { %6051 = vmatpush1.bf16.msra.mxu1 %v13000_v2  ;;  %v5346_v2 = vld [vmem:[%s17627_s10 + $0x368] sm:$0xff] }
 0x5c6   :  { %6052 = vmatprep.subr.bf16.mxu1 %v12993_v0  ;;  %v4189_v0 = vadd.f32 %v15886_v42, %v15942_v57  ;;  %v13065_v8 = vcombine.high %v5342_v63, %v5346_v2  ;;  %v4190_v40 = vadd.f32 %v4100_v54, %v15951_v3  ;;  %v13064_v45 = vcombine.low %v5342_v63, %v5346_v2  ;;  %v5330_v54 = vld [vmem:[%s17627_s10 + $0x2e8] sm:$0xff]  ;;  %v15994_v63 = vld [vmem:[%s17627_s10 + $0x1d8] sm:$0xff] }
 0x5c7   :  { %v15999_v2 = vld [vmem:[%s17627_s10 + $0x1f8] sm:$0xff] }
 0x5c8   :  { %v5167_v15 = vmul.f32 0.5, %v4189_v0  ;;  %v5168_v42 = vmul.f32 0.5, %v4190_v40 }
 0x5c9   :  { %6053 = vmatpush1.bf16.msra.mxu1 %v12992_v11  ;;  %v5334_v11 = vld [vmem:[%s17627_s10 + $0x308] sm:$0xff] }
 0x5ca   :  { %6054 = vmatprep.subr.bf16.mxu1 %v12985_v5  ;;  %v5338_v5 = vld [vmem:[%s17627_s10 + $0x328] sm:$0xff]  ;;  %14358 = vtanh.f32 %v5167_v15 }
 0x5cb   :  { %v13057_v10 = vcombine.high %v5334_v11, %v5338_v5  ;;  %14360 = vtanh.f32 %v5168_v42 }
 0x5cd   :  { %6055 = vmatpush1.bf16.msra.mxu1 %v12984_v18  ;;  %v5326_v18 = vld [vmem:[%s17627_s10 + $0x2c8] sm:$0xff] }
 0x5ce   :  { %6056 = vmatprep.subr.bf16.mxu1 %v12977_v21  ;;  %v13056_v21 = vcombine.low %v5334_v11, %v5338_v5  ;;  %v13049_v14 = vcombine.high %v5326_v18, %v5330_v54  ;;  %v13021_v5 = vcombine.high %v15994_v63, %v15999_v2 }
 0x5d1   :  { %6057 = vmatpush1.bf16.msra.mxu1 %v12976_v23  ;;  %v5322_v23 = vld [vmem:[%s17627_s10 + $0x2a8] sm:$0xff] }
 0x5d2   :  { %6058 = vmatprep.subr.bf16.mxu1 %v12969_v25  ;;  %v13048_v25 = vcombine.low %v5326_v18, %v5330_v54  ;;  %v13041_v9 = vcombine.high %v5318_v22, %v5322_v23  ;;  %v13040_v33 = vcombine.low %v5318_v22, %v5322_v23 }
 0x5d5   :  { %6059 = vmatpush1.bf16.msra.mxu1 %v12968_v30  ;;  %v5314_v30 = vld [vmem:[%s17627_s10 + $0x268] sm:$0xff] }
 0x5d6   :  { %6060 = vmatprep.subr.bf16.mxu1 %v12961_v28  ;;  %v13033_v35 = vcombine.high %v5310_v26, %v5314_v30  ;;  %v13032_v44 = vcombine.low %v5310_v26, %v5314_v30 }
 0x5d7   :  { %v14359_v56 = vpop.eup %14358 }
 0x5d8   :  { %v5171_v40 = vadd.f32 1.0, %v14359_v56 }
 0x5d9   :  { %6061 = vmatpush1.bf16.msra.mxu1 %v12960_v39 }
 0x5da   :  { %6062 = vmatprep.subr.bf16.mxu1 %v13081_v34  ;;  %v5302_v34 = vld [vmem:[%s17627_s10 + $0x208] sm:$0xff]  ;;  %v5173_v42 = vmul.f32 0.5, %v5171_v40 }
 0x5db   :  { %v13024_v11 = vcombine.low %v5302_v34, %v5306_v43 }
 0x5dc   :  { %v5185_v22 = vmul.f32 0.0, %v5173_v42  ;;  %v16040_v42 = vld [vmem:[#allocation21] sm:$0xff] }
 0x5dd   :  { %6063 = vmatpush2.bf16.msra.mxu1 %v13080_v58  ;;  %v13025_v58 = vcombine.high %v5302_v34, %v5306_v43 }
 0x5de   :  { %6064 = vmatprep.subr.bf16.mxu1 %v13073_v59  ;;  %v1982_v59 = vsub.s32 6, %v15084_v49 }
 0x5e0   :  { %v1983_v15 = vrot.slane %v15804_v37, %v1982_v59 }
 0x5e1   :  { %6065 = vmatpush2.bf16.msra.mxu1 %v13072_v7  ;;  %v14361_v7 = vpop.eup %14360 }
 0x5e2   :  { %6066 = vmatprep.subr.bf16.mxu1 %v13065_v8  ;;  %v1986_v8 = vsub.s32 7, %v15084_v49  ;;  %v16011_v18 = vadd.f32 %v15693_v24, %v1983_v15  ;;  %v5292_v15 = vld [vmem:[%s17627_s10 + $0x1b8] sm:$0xff]  ;;  %v6300_v49 = vld [vmem:[#allocation19 + $0x308] sm:$0xff] }
 0x5e5   :  { %6067 = vmatpush2.bf16.msra.mxu1 %v13064_v45  ;;  %v5172_v45 = vadd.f32 1.0, %v14361_v7 }
 0x5e6   :  { %6068 = vmatprep.subr.bf16.mxu1 %v13057_v10  ;;  %v1987_v10 = vrot.slane %v15804_v37, %v1986_v8 }
 0x5e7   :  { %v5174_v54 = vmul.f32 0.5, %v5172_v45 }
 0x5e9   :  { %6069 = vmatpush2.bf16.msra.mxu1 %v13056_v21 }
 0x5ea   :  { %6070 = vmatprep.subr.bf16.mxu1 %v13049_v14  ;;  %v16014_v14 = vadd.f32 %v15698_v29, %v1987_v10  ;;  %v13020_v10 = vcombine.low %v15994_v63, %v15999_v2  ;;  %v5280_v63 = vld [vmem:[%s17627_s10 + $0x158] sm:$0xff] }
 0x5eb   :  { %v5284_v2 = vld [vmem:[%s17627_s10 + $0x178] sm:$0xff] }
 0x5ed   :  { %v15980_v28 = vpop.f32.mrf.mxu0  ;;  %6071 = vmatpush2.bf16.msra.mxu1 %v13048_v25 }
 0x5ee   :  { %6072 = vmatprep.subr.bf16.mxu1 %v13041_v9  ;;  %v5186_v9 = vmul.f32 0.0, %v5174_v54 }
 0x5ef   :  { %v15982_v39 = vpop.f32.mrf.mxu0 }
 0x5f0   :  { %v16022_v34 = vadd.f32 %v15897_v61, %v5186_v9  ;;  %v5287_v61 = vld [vmem:[%s17627_s10 + $0x190] sm:$0xff] }
 0x5f1   :  { %6073 = vmatpush2.bf16.msra.mxu1 %v13040_v33  ;;  %v5001_v48 = vpop.f32.mrf.mxu0  ;;  %v16019_v33 = vadd.f32 %v15889_v51, %v5185_v22 }
 0x5f2   :  { %6074 = vmatprep.subr.bf16.mxu1 %v13033_v35 }
 0x5f3   :  { %v5002_v0 = vpop.f32.mrf.mxu0 }
 0x5f5   :  { %6075 = vmatpush2.bf16.msra.mxu1 %v13032_v44 }
 0x5f6   :  { %6076 = vmatprep.subr.bf16.mxu1 %v13025_v58 }
 0x5f9   :  { %6077 = vmatpush2.bf16.msra.mxu1 %v13024_v11  ;;  %v5291_v11 = vld [vmem:[%s17627_s10 + $0x1b0] sm:$0xff] }
 0x5fa   :  { %6128 = vmatprep.subr.bf16.mxu1 %v13021_v5  ;;  %v5288_v5 = vld [vmem:[%s17627_s10 + $0x198] sm:$0xff]  ;;  %v13011_v22 = vcombine.high %v5287_v61, %v5291_v11  ;;  %v13010_v9 = vcombine.low %v5287_v61, %v5291_v11 }
 0x5fc   :  { %v4180_v21 = vpop.f32.mrf.mxu1 }
 0x5fd   :  { %v4193_v23 = vadd.f32 %v4180_v21, %v16011_v18  ;;  %v5279_v21 = vld [vmem:[%s17627_s10 + $0x150] sm:$0xff] }
 0x5fe   :  { %v4182_v25 = vpop.f32.mrf.mxu1 }
 0x5ff   :  { %v5177_v26 = vmul.f32 0.5, %v4193_v23  ;;  %v4194_v30 = vadd.f32 %v4182_v25, %v16014_v14  ;;  %v13013_v23 = vcombine.high %v5288_v5, %v5292_v15  ;;  %v5283_v25 = vld [vmem:[%s17627_s10 + $0x170] sm:$0xff] }
 0x600   :  { %v4184_v37 = vpop.f32.mrf.mxu1 }
 0x601   :  { %14362 = vtanh.f32 %v5177_v26  ;;  %v5178_v24 = vmul.f32 0.5, %v4194_v30  ;;  %v13012_v26 = vcombine.low %v5288_v5, %v5292_v15  ;;  %v2650_v30 = vrot.slane %v16040_v42, %v15090_v52 }
 0x602   :  { %v4185_v35 = vpop.f32.mrf.mxu1  ;;  %v13003_v37 = vcombine.high %v5279_v21, %v5283_v25 }
 0x603   :  { %14364 = vtanh.f32 %v5178_v24  ;;  %v13005_v24 = vcombine.high %v5280_v63, %v5284_v2  ;;  %v5271_v35 = vld [vmem:[%s17627_s10 + $0x110] sm:$0xff] }
 0x604   :  { %14366 = vtanh.f32 %v16019_v33  ;;  %v12994_v11 = vcombine.low %v5271_v35, %v5275_v46 }
 0x605   :  { %14368 = vtanh.f32 %v16022_v34 }
 0x60e   :  { %v14363_v29 = vpop.eup %14362 }
 0x60f   :  { %v5181_v43 = vadd.f32 1.0, %v14363_v29  ;;  %v2654_v29 = vrot.slane %v16040_v42, %v15093_v53 }
 0x610   :  { %v14365_v44 = vpop.eup %14364 }
 0x611   :  { %v5183_v48 = vmul.f32 0.5, %v5181_v43  ;;  %v5182_v56 = vadd.f32 1.0, %v14365_v44  ;;  %v14367_v58 = vpop.eup %14366  ;;  %v5135_v43 = vrot.slane %v15980_v28, 2  ;;  %v13002_v44 = vcombine.low %v5279_v21, %v5283_v25  ;;  %v5267_v28 = vld [vmem:[%s17627_s10 + $0xf0] sm:$0xff] }
 0x612   :  { %v14369_v7 = vpop.eup %14368  ;;  %v5255_v21 = vld [vmem:[%s17627_s10 + $0x90] sm:$0xff] }
 0x613   :  { %v5193_v0 = vmul.f32 %v14367_v58, %v5183_v48  ;;  %v5184_v51 = vmul.f32 0.5, %v5182_v56  ;;  %v13004_v48 = vcombine.low %v5280_v63, %v5284_v2  ;;  %v16079_v56 = vadd.f32 %v15627_v41, %v2650_v30  ;;  %v5268_v41 = vld [vmem:[%s17627_s10 + $0xf8] sm:$0xff] }
 0x614   :  { %v5136_v58 = vrot.slane %v15982_v39, 2  ;;  %v16095_v39 = vadd.f32 %v15631_v13, %v2654_v29  ;;  %v5259_v13 = vld [vmem:[%s17627_s10 + $0xb0] sm:$0xff] }
 0x615   :  { %5195 = vst [vmem:[#allocation2] sm:$0x3] %v5193_v0  ;;  %v5194_v40 = vmul.f32 %v14369_v7, %v5184_v51  ;;  %v16042_v54 = vpack.c.bf16 %v5193_v0, %v5193_v0  ;;  %v12995_v0 = vcombine.high %v5271_v35, %v5275_v46  ;;  %v5263_v7 = vld [vmem:[%s17627_s10 + $0xd0] sm:$0xff]  ;;  %v5151_v61 = vadd.f32 %v5135_v43, %v16079_v56  ;;  %v5248_v35 = vld [vmem:[%s17627_s10 + $0x58] sm:$0xff] }
 0x616   :  { %v5152_v15 = vadd.f32 %v5136_v58, %v16095_v39  ;;  %v12986_v63 = vcombine.low %v5263_v7, %v5267_v28  ;;  %v5252_v46 = vld [vmem:[%s17627_s10 + $0x78] sm:$0xff]  ;;  %v12978_v29 = vcombine.low %v5255_v21, %v5259_v13  ;;  %v5239_v58 = vld [vmem:[%s17627_s10 + $0x10] sm:$0xff] }
 0x617   :  { %5196 = vst [vmem:[#allocation2 + $0x8] sm:$0x3] %v5194_v40  ;;  %v5236_v45 = vpack.c.bf16 %v5194_v40, %v5194_v40  ;;  %v5264_v40 = vld [vmem:[%s17627_s10 + $0xd8] sm:$0xff]  ;;  %v5197_v25 = vmul.f32 0.5, %v5151_v61 }
 0x618   :  { %v12988_v2 = vcombine.low %v5264_v40, %v5268_v41 }
 0x619   :  { %6037 = vmatprep.mubr.bf16.mxu0 %v5236_v45  ;;  %6078 = vmatprep.mubr.bf16.mxu1 %v5236_v45  ;;  %14370 = vtanh.f32 %v5197_v25 }
 0x61a   :  { %6038 = vmatmul.mubr.bf16.vlgmr.msra.gmra.mxu0 %v16042_v54  ;;  %6079 = vmatmul.mubr.bf16.vlgmr.msra.gmra.mxu1 %v16042_v54 }
 0x61b   :  { %6088 = vmatpush1.bf16.msra.mxu0 %v13018_v55  ;;  %6129 = vmatpush1.bf16.msra.mxu1 %v13020_v10  ;;  %v5276_v55 = vld [vmem:[%s17627_s10 + $0x138] sm:$0xff]  ;;  %v12989_v10 = vcombine.high %v5264_v40, %v5268_v41 }
 0x61c   :  { %6119 = vmatprep.mubr.bf16.mxu0 %v5236_v45  ;;  %6160 = vmatprep.mubr.bf16.mxu1 %v5236_v45  ;;  %v12997_v51 = vcombine.high %v5272_v47, %v5276_v55  ;;  %v12996_v5 = vcombine.low %v5272_v47, %v5276_v55  ;;  %v12987_v45 = vcombine.high %v5263_v7, %v5267_v28 }
 0x61d   :  { %6089 = vmatprep.subr.bf16.mxu0 %v13011_v22  ;;  %6130 = vmatprep.subr.bf16.mxu1 %v13013_v23  ;;  %v5256_v22 = vld [vmem:[%s17627_s10 + $0x98] sm:$0xff]  ;;  %v2666_v47 = vrot.slane %v16040_v42, %v1974_v31  ;;  %v2670_v55 = vrot.slane %v16040_v42, %v1978_v36  ;;  %v5243_v31 = vld [vmem:[%s17627_s10 + $0x30] sm:$0xff] }
 0x61e   :  { %v5260_v23 = vld [vmem:[%s17627_s10 + $0xb8] sm:$0xff]  ;;  %v12962_v25 = vcombine.low %v5239_v58, %v5243_v31 }
 0x61f   :  { %6090 = vmatpush1.bf16.msra.mxu0 %v13010_v9  ;;  %6131 = vmatpush1.bf16.msra.mxu1 %v13012_v26  ;;  %v5198_v9 = vmul.f32 0.5, %v5152_v15  ;;  %v12979_v26 = vcombine.high %v5255_v21, %v5259_v13  ;;  %v12981_v30 = vcombine.high %v5256_v22, %v5260_v23  ;;  %v12980_v43 = vcombine.low %v5256_v22, %v5260_v23  ;;  %v5240_v36 = vld [vmem:[%s17627_s10 + $0x18] sm:$0xff] }
 0x620   :  { %6091 = vmatprep.subr.bf16.mxu0 %v13003_v37  ;;  %6132 = vmatprep.subr.bf16.mxu1 %v13005_v24  ;;  %v5247_v37 = vld [vmem:[%s17627_s10 + $0x50] sm:$0xff]  ;;  %v16142_v7 = vadd.f32 %v15695_v27, %v2666_v47  ;;  %v16145_v40 = vadd.f32 %v15700_v32, %v2670_v55  ;;  %v5360_v21 = vld [vmem:[%s17627_s10 + $0x3d8] sm:$0xff] }
 0x621   :  { %v5251_v24 = vld [vmem:[%s17627_s10 + $0x70] sm:$0xff]  ;;  %14372 = vtanh.f32 %v5198_v9  ;;  %v5364_v13 = vld [vmem:[%s17627_s10 + $0x3f8] sm:$0xff] }
 0x622   :  { %v12970_v61 = vcombine.low %v5247_v37, %v5251_v24  ;;  %v5359_v27 = vld [vmem:[%s17627_s10 + $0x3d0] sm:$0xff]  ;;  %v13084_v55 = vcombine.low %v5360_v21, %v5364_v13 }
 0x623   :  { %6092 = vmatpush1.bf16.msra.mxu0 %v13002_v44  ;;  %6133 = vmatpush1.bf16.msra.mxu1 %v13004_v48  ;;  %v12971_v44 = vcombine.high %v5247_v37, %v5251_v24  ;;  %v12973_v48 = vcombine.high %v5248_v35, %v5252_v46  ;;  %v5363_v32 = vld [vmem:[%s17627_s10 + $0x3f0] sm:$0xff]  ;;  %v5352_v24 = vld [vmem:[%s17627_s10 + $0x398] sm:$0xff] }
 0x624   :  { %6093 = vmatprep.subr.bf16.mxu0 %v12995_v0  ;;  %6134 = vmatprep.subr.bf16.mxu1 %v12997_v51  ;;  %v5244_v51 = vld [vmem:[%s17627_s10 + $0x38] sm:$0xff]  ;;  %v13083_v9 = vcombine.high %v5359_v27, %v5363_v32  ;;  %v5355_v37 = vld [vmem:[%s17627_s10 + $0x3b0] sm:$0xff]  ;;  %v13082_v47 = vcombine.low %v5359_v27, %v5363_v32 }
 0x625   :  { %v5340_v27 = vld [vmem:[%s17627_s10 + $0x338] sm:$0xff] }
 0x627   :  { %6094 = vmatpush1.bf16.msra.mxu0 %v12994_v11  ;;  %6135 = vmatpush1.bf16.msra.mxu1 %v12996_v5  ;;  %v12972_v11 = vcombine.low %v5248_v35, %v5252_v46  ;;  %v5356_v35 = vld [vmem:[%s17627_s10 + $0x3b8] sm:$0xff]  ;;  %v14371_v46 = vpop.eup %14370 }
 0x628   :  { %6095 = vmatprep.subr.bf16.mxu0 %v12987_v45  ;;  %6136 = vmatprep.subr.bf16.mxu1 %v12989_v10  ;;  %v12963_v45 = vcombine.high %v5239_v58, %v5243_v31  ;;  %v12965_v10 = vcombine.high %v5240_v36, %v5244_v51  ;;  %v5347_v58 = vld [vmem:[%s17627_s10 + $0x370] sm:$0xff]  ;;  %v5348_v31 = vld [vmem:[%s17627_s10 + $0x378] sm:$0xff] }
 0x62b   :  { %6096 = vmatpush1.bf16.msra.mxu0 %v12986_v63  ;;  %6137 = vmatpush1.bf16.msra.mxu1 %v12988_v2  ;;  %v12964_v63 = vcombine.low %v5240_v36, %v5244_v51  ;;  %v5201_v36 = vadd.f32 1.0, %v14371_v46  ;;  %v5332_v46 = vld [vmem:[%s17627_s10 + $0x2f8] sm:$0xff] }
 0x62c   :  { %6097 = vmatprep.subr.bf16.mxu0 %v12979_v26  ;;  %6138 = vmatprep.subr.bf16.mxu1 %v12981_v30  ;;  %v13085_v26 = vcombine.high %v5360_v21, %v5364_v13  ;;  %v5351_v30 = vld [vmem:[%s17627_s10 + $0x390] sm:$0xff] }
 0x62d   :  { %v5079_v0 = vpop.f32.mrf.mxu0  ;;  %v13074_v51 = vcombine.low %v5351_v30, %v5355_v37  ;;  %v5203_v32 = vmul.f32 0.5, %v5201_v36  ;;  %v5324_v36 = vld [vmem:[%s17627_s10 + $0x2b8] sm:$0xff] }
 0x62e   :  { %v5139_v28 = vrot.slane %v5079_v0, 2  ;;  %v5344_v0 = vld [vmem:[%s17627_s10 + $0x358] sm:$0xff] }
 0x62f   :  { %v5081_v41 = vpop.f32.mrf.mxu0  ;;  %6098 = vmatpush1.bf16.msra.mxu0 %v12978_v29  ;;  %6139 = vmatpush1.bf16.msra.mxu1 %v12980_v43  ;;  %v13075_v29 = vcombine.high %v5351_v30, %v5355_v37  ;;  %v13077_v43 = vcombine.high %v5352_v24, %v5356_v35  ;;  %v5327_v30 = vld [vmem:[%s17627_s10 + $0x2d0] sm:$0xff] }
 0x630   :  { %v5155_v5 = vadd.f32 %v5139_v28, %v16142_v7  ;;  %v5140_v15 = vrot.slane %v5081_v41, 2  ;;  %6099 = vmatprep.subr.bf16.mxu0 %v12971_v44  ;;  %6140 = vmatprep.subr.bf16.mxu1 %v12973_v48  ;;  %v5343_v44 = vld [vmem:[%s17627_s10 + $0x350] sm:$0xff]  ;;  %v14373_v48 = vpop.eup %14372  ;;  %v13076_v28 = vcombine.low %v5352_v24, %v5356_v35  ;;  %v5328_v35 = vld [vmem:[%s17627_s10 + $0x2d8] sm:$0xff] }
 0x631   :  { %v5083_v22 = vpop.f32.mrf.mxu0  ;;  %v5202_v41 = vadd.f32 1.0, %v14373_v48  ;;  %v5331_v24 = vld [vmem:[%s17627_s10 + $0x2f0] sm:$0xff]  ;;  %v13053_v48 = vcombine.high %v5328_v35, %v5332_v46 }
 0x632   :  { %14374 = vtanh.f32 %v5155_v5  ;;  %v5156_v23 = vadd.f32 %v5140_v15, %v16145_v40  ;;  %v13069_v5 = vcombine.high %v5344_v0, %v5348_v31  ;;  %v5335_v15 = vld [vmem:[%s17627_s10 + $0x310] sm:$0xff]  ;;  %v13066_v22 = vcombine.low %v5343_v44, %v5347_v58 }
 0x633   :  { %6100 = vmatpush1.bf16.msra.mxu0 %v12970_v61  ;;  %6141 = vmatpush1.bf16.msra.mxu1 %v12972_v11  ;;  %v5084_v2 = vpop.f32.mrf.mxu0  ;;  %v13067_v11 = vcombine.high %v5343_v44, %v5347_v58  ;;  %v13051_v44 = vcombine.high %v5327_v30, %v5331_v24  ;;  %v5319_v58 = vld [vmem:[%s17627_s10 + $0x290] sm:$0xff] }
 0x634   :  { %14376 = vtanh.f32 %v5156_v23  ;;  %6101 = vmatprep.subr.bf16.mxu0 %v12963_v45  ;;  %6142 = vmatprep.subr.bf16.mxu1 %v12965_v10  ;;  %v5339_v45 = vld [vmem:[%s17627_s10 + $0x330] sm:$0xff]  ;;  %v5336_v10 = vld [vmem:[%s17627_s10 + $0x318] sm:$0xff]  ;;  %v13068_v23 = vcombine.low %v5344_v0, %v5348_v31 }
 0x635   :  { %v5323_v0 = vld [vmem:[%s17627_s10 + $0x2b0] sm:$0xff]  ;;  %v5320_v31 = vld [vmem:[%s17627_s10 + $0x298] sm:$0xff] }
 0x637   :  { %6102 = vmatpush1.bf16.msra.mxu0 %v12962_v25  ;;  %6143 = vmatpush1.bf16.msra.mxu1 %v12964_v63  ;;  %v5204_v25 = vmul.f32 0.5, %v5202_v41  ;;  %v13043_v41 = vcombine.high %v5319_v58, %v5323_v0 }
 0x638   :  { %6103 = vmatprep.subr.bf16.mxu0 %v13083_v9  ;;  %6144 = vmatprep.subr.bf16.mxu1 %v13085_v26  ;;  %v13059_v9 = vcombine.high %v5335_v15, %v5339_v45  ;;  %v13061_v26 = vcombine.high %v5336_v10, %v5340_v27 }
 0x63b   :  { %6104 = vmatpush2.bf16.msra.mxu0 %v13082_v47  ;;  %6145 = vmatpush2.bf16.msra.mxu1 %v13084_v55 }
 0x63c   :  { %v16185_v61 = vpop.f32.mrf.mxu1  ;;  %6105 = vmatprep.subr.bf16.mxu0 %v13075_v29  ;;  %6146 = vmatprep.subr.bf16.mxu1 %v13077_v43  ;;  %v13058_v29 = vcombine.low %v5335_v15, %v5339_v45  ;;  %v13060_v43 = vcombine.low %v5336_v10, %v5340_v27  ;;  %v5315_v15 = vld [vmem:[%s17627_s10 + $0x270] sm:$0xff]  ;;  %v5312_v45 = vld [vmem:[%s17627_s10 + $0x258] sm:$0xff]  ;;  %v13042_v27 = vcombine.low %v5319_v58, %v5323_v0  ;;  %v6251_v0 = vld [vmem:[#allocation19 + $0x180] sm:$0xff] }
 0x63d   :  { %v5316_v10 = vld [vmem:[%s17627_s10 + $0x278] sm:$0xff] }
 0x63e   :  { %v16199_v21 = vpop.f32.mrf.mxu1 }
 0x63f   :  { %v14375_v13 = vpop.eup %14374  ;;  %6106 = vmatpush2.bf16.msra.mxu0 %v13074_v51  ;;  %6147 = vmatpush2.bf16.msra.mxu1 %v13076_v28  ;;  %v13050_v51 = vcombine.low %v5327_v30, %v5331_v24  ;;  %v13052_v28 = vcombine.low %v5328_v35, %v5332_v46  ;;  %v13036_v30 = vcombine.low %v5312_v45, %v5316_v10  ;;  %v6259_v35 = vld [vmem:[#allocation19 + $0x1c0] sm:$0xff] }
 0x640   :  { %v16201_v63 = vmul.f32 %v14375_v13, %v5203_v32  ;;  %v5042_v2 = vpop.f32.mrf.mxu1  ;;  %6107 = vmatprep.subr.bf16.mxu0 %v13067_v11  ;;  %6148 = vmatprep.subr.bf16.mxu1 %v13069_v5  ;;  %v13045_v11 = vcombine.high %v5320_v31, %v5324_v36  ;;  %v5311_v5 = vld [vmem:[%s17627_s10 + $0x250] sm:$0xff]  ;;  %v13044_v32 = vcombine.low %v5320_v31, %v5324_v36  ;;  %v6263_v46 = vld [vmem:[#allocation19 + $0x1e0] sm:$0xff] }
 0x641   :  { %v14377_v37 = vpop.eup %14376  ;;  %v13035_v13 = vcombine.high %v5311_v5, %v5315_v15  ;;  %v5304_v2 = vld [vmem:[%s17627_s10 + $0x218] sm:$0xff]  ;;  %v6255_v31 = vld [vmem:[#allocation19 + $0x1a0] sm:$0xff]  ;;  %v6252_v36 = vld [vmem:[#allocation19 + $0x188] sm:$0xff] }
 0x642   :  { %v16215_v47 = vmul.f32 %v14377_v37, %v5204_v25  ;;  %v5043_v55 = vpop.f32.mrf.mxu1  ;;  %v5307_v25 = vld [vmem:[%s17627_s10 + $0x230] sm:$0xff] }
 0x643   :  { %6108 = vmatpush2.bf16.msra.mxu0 %v13066_v22  ;;  %6149 = vmatpush2.bf16.msra.mxu1 %v13068_v23  ;;  %v13037_v22 = vcombine.high %v5312_v45, %v5316_v10  ;;  %v5303_v23 = vld [vmem:[%s17627_s10 + $0x210] sm:$0xff]  ;;  %v2658_v45 = vrot.slane %v16040_v42, %v15087_v50  ;;  %v6247_v10 = vld [vmem:[#allocation19 + $0x160] sm:$0xff] }
 0x644   :  { %6109 = vmatprep.subr.bf16.mxu0 %v13059_v9  ;;  %6150 = vmatprep.subr.bf16.mxu1 %v13061_v26  ;;  %v5308_v9 = vld [vmem:[%s17627_s10 + $0x238] sm:$0xff]  ;;  %v13034_v26 = vcombine.low %v5311_v5, %v5315_v15  ;;  %v13027_v37 = vcombine.high %v5303_v23, %v5307_v25  ;;  %v6260_v55 = vld [vmem:[#allocation19 + $0x1c8] sm:$0xff]  ;;  %v6243_v15 = vld [vmem:[#allocation19 + $0x140] sm:$0xff] }
 0x645   :  { %v13029_v24 = vcombine.high %v5304_v2, %v5308_v9  ;;  %v13127_v50 = vcombine.high %v6243_v15, %v6247_v10 }
 0x647   :  { %6110 = vmatpush2.bf16.msra.mxu0 %v13058_v29  ;;  %6151 = vmatpush2.bf16.msra.mxu1 %v13060_v43  ;;  %v6264_v29 = vld [vmem:[#allocation19 + $0x1e8] sm:$0xff]  ;;  %v13026_v43 = vcombine.low %v5303_v23, %v5307_v25  ;;  %v13134_v23 = vcombine.low %v6251_v0, %v6255_v31 }
 0x648   :  { %6111 = vmatprep.subr.bf16.mxu0 %v13051_v44  ;;  %6152 = vmatprep.subr.bf16.mxu1 %v13053_v48  ;;  %v13028_v44 = vcombine.low %v5304_v2, %v5308_v9  ;;  %v13143_v48 = vcombine.high %v6259_v35, %v6263_v46  ;;  %v13145_v58 = vcombine.high %v6260_v55, %v6264_v29  ;;  %v6235_v9 = vld [vmem:[#allocation19 + $0x100] sm:$0xff] }
 0x64b   :  { %6112 = vmatpush2.bf16.msra.mxu0 %v13050_v51  ;;  %6153 = vmatpush2.bf16.msra.mxu1 %v13052_v28  ;;  %v6256_v51 = vld [vmem:[#allocation19 + $0x1a8] sm:$0xff]  ;;  %v13142_v28 = vcombine.low %v6259_v35, %v6263_v46  ;;  %v13126_v35 = vcombine.low %v6243_v15, %v6247_v10 }
 0x64c   :  { %6113 = vmatprep.subr.bf16.mxu0 %v13043_v41  ;;  %6154 = vmatprep.subr.bf16.mxu1 %v13045_v11  ;;  %v13144_v41 = vcombine.low %v6260_v55, %v6264_v29  ;;  %v13135_v11 = vcombine.high %v6251_v0, %v6255_v31  ;;  %v13137_v5 = vcombine.high %v6252_v36, %v6256_v51 }
 0x64d   :  { %v13136_v25 = vcombine.low %v6252_v36, %v6256_v51  ;;  %v6219_v51 = vld [vmem:[#allocation19 + $0x80] sm:$0xff] }
 0x64f   :  { %6114 = vmatpush2.bf16.msra.mxu0 %v13042_v27  ;;  %6155 = vmatpush2.bf16.msra.mxu1 %v13044_v32  ;;  %v6244_v27 = vld [vmem:[#allocation19 + $0x148] sm:$0xff] }
 0x650   :  { %6115 = vmatprep.subr.bf16.mxu0 %v13035_v13  ;;  %6156 = vmatprep.subr.bf16.mxu1 %v13037_v22  ;;  %v6248_v32 = vld [vmem:[#allocation19 + $0x168] sm:$0xff]  ;;  %v2662_v13 = vrot.slane %v16040_v42, %v1970_v38  ;;  %v5137_v22 = vrot.slane %v16185_v61, 2  ;;  %v5138_v38 = vrot.slane %v16199_v21, 2  ;;  %v6231_v21 = vld [vmem:[#allocation19 + $0xe0] sm:$0xff] }
 0x651   :  { %v13129_v2 = vcombine.high %v6244_v27, %v6248_v32  ;;  %v13128_v46 = vcombine.low %v6244_v27, %v6248_v32  ;;  %v6211_v32 = vld [vmem:[#allocation19 + $0x40] sm:$0xff] }
 0x653   :  { %6116 = vmatpush2.bf16.msra.mxu0 %v13034_v26  ;;  %6157 = vmatpush2.bf16.msra.mxu1 %v13036_v30  ;;  %v16262_v26 = vadd.f32 %v15711_v16, %v2658_v45  ;;  %v6239_v30 = vld [vmem:[#allocation19 + $0x120] sm:$0xff] }
 0x654   :  { %6117 = vmatprep.subr.bf16.mxu0 %v13027_v37  ;;  %6158 = vmatprep.subr.bf16.mxu1 %v13029_v24  ;;  %v6236_v37 = vld [vmem:[#allocation19 + $0x108] sm:$0xff]  ;;  %v13119_v55 = vcombine.high %v6235_v9, %v6239_v30  ;;  %v6227_v16 = vld [vmem:[#allocation19 + $0xc0] sm:$0xff] }
 0x655   :  { %v6240_v24 = vld [vmem:[#allocation19 + $0x128] sm:$0xff]  ;;  %v5153_v61 = vadd.f32 %v5137_v22, %v16262_v26  ;;  %v13111_v31 = vcombine.high %v6227_v16, %v6231_v21  ;;  %v13110_v15 = vcombine.low %v6227_v16, %v6231_v21  ;;  %v6327_v16 = vld [vmem:[#allocation19 + $0x3e0] sm:$0xff] }
 0x656   :  { %v13121_v29 = vcombine.high %v6236_v37, %v6240_v24  ;;  %v13120_v0 = vcombine.low %v6236_v37, %v6240_v24  ;;  %v6212_v22 = vld [vmem:[#allocation19 + $0x48] sm:$0xff] }
 0x657   :  { %6118 = vmatpush2.bf16.msra.mxu0 %v13026_v43  ;;  %6159 = vmatpush2.bf16.msra.mxu1 %v13028_v44  ;;  %v6228_v44 = vld [vmem:[#allocation19 + $0xc8] sm:$0xff] }
 0x658   :  { %6977 = vmatprep.subr.bf16.mxu0 %v13143_v48  ;;  %7018 = vmatprep.subr.bf16.mxu1 %v13145_v58  ;;  %v6232_v48 = vld [vmem:[#allocation19 + $0xe8] sm:$0xff]  ;;  %v5205_v58 = vmul.f32 0.5, %v5153_v61 }
 0x659   :  { %v13113_v36 = vcombine.high %v6228_v44, %v6232_v48  ;;  %v13112_v45 = vcombine.low %v6228_v44, %v6232_v48  ;;  %v6204_v37 = vld [vmem:[#allocation19 + $0x8] sm:$0xff] }
 0x65a   :  { %6120 = vmatmul.mubr.bf16.vlgmr.msra.gmra.mxu0 %v16042_v54  ;;  %6161 = vmatmul.mubr.bf16.vlgmr.msra.gmra.mxu1 %v16042_v54  ;;  %v16266_v54 = vadd.f32 %v15713_v20, %v2662_v13  ;;  %v13118_v20 = vcombine.low %v6235_v9, %v6239_v30  ;;  %14378 = vtanh.f32 %v5205_v58  ;;  %v6215_v13 = vld [vmem:[#allocation19 + $0x60] sm:$0xff]  ;;  %v6208_v24 = vld [vmem:[#allocation19 + $0x28] sm:$0xff] }
 0x65b   :  { %6978 = vmatpush1.bf16.msra.mxu0 %v13142_v28  ;;  %7019 = vmatpush1.bf16.msra.mxu1 %v13144_v41  ;;  %v6223_v41 = vld [vmem:[#allocation19 + $0xa0] sm:$0xff]  ;;  %v13094_v61 = vcombine.low %v6211_v32, %v6215_v13  ;;  %v6328_v21 = vld [vmem:[#allocation19 + $0x3e8] sm:$0xff]  ;;  %v13088_v48 = vcombine.low %v6204_v37, %v6208_v24 }
 0x65c   :  { %6979 = vmatprep.subr.bf16.mxu0 %v13135_v11  ;;  %7020 = vmatprep.subr.bf16.mxu1 %v13137_v5  ;;  %v5154_v43 = vadd.f32 %v5138_v38, %v16266_v54  ;;  %v6220_v11 = vld [vmem:[#allocation19 + $0x88] sm:$0xff]  ;;  %v13103_v10 = vcombine.high %v6219_v51, %v6223_v41  ;;  %v6203_v38 = vld [vmem:[#allocation19] sm:$0xff] }
 0x65d   :  { %v6224_v5 = vld [vmem:[#allocation19 + $0xa8] sm:$0xff]  ;;  %v6207_v30 = vld [vmem:[#allocation19 + $0x20] sm:$0xff] }
 0x65e   :  { %v5206_v28 = vmul.f32 0.5, %v5154_v43  ;;  %v13105_v27 = vcombine.high %v6220_v11, %v6224_v5  ;;  %v6324_v43 = vld [vmem:[#allocation19 + $0x3c8] sm:$0xff]  ;;  %v13086_v44 = vcombine.low %v6203_v38, %v6207_v30 }
 0x65f   :  { %6980 = vmatpush1.bf16.msra.mxu0 %v13134_v23  ;;  %7021 = vmatpush1.bf16.msra.mxu1 %v13136_v25  ;;  %v6216_v23 = vld [vmem:[#allocation19 + $0x68] sm:$0xff]  ;;  %v13102_v25 = vcombine.low %v6219_v51, %v6223_v41 }
 0x660   :  { %6981 = vmatprep.subr.bf16.mxu0 %v13127_v50  ;;  %7022 = vmatprep.subr.bf16.mxu1 %v13129_v2  ;;  %14380 = vtanh.f32 %v5206_v28  ;;  %v13104_v50 = vcombine.low %v6220_v11, %v6224_v5  ;;  %v13095_v2 = vcombine.high %v6211_v32, %v6215_v13  ;;  %v13097_v9 = vcombine.high %v6212_v22, %v6216_v23  ;;  %v6316_v51 = vld [vmem:[#allocation19 + $0x388] sm:$0xff] }
 0x661   :  { %v6320_v28 = vld [vmem:[#allocation19 + $0x3a8] sm:$0xff]  ;;  %v2674_v32 = vrot.slane %v16040_v42, %v1982_v59 }
 0x663   :  { %6982 = vmatpush1.bf16.msra.mxu0 %v13126_v35  ;;  %7023 = vmatpush1.bf16.msra.mxu1 %v13128_v46  ;;  %v13096_v35 = vcombine.low %v6212_v22, %v6216_v23  ;;  %v13087_v46 = vcombine.high %v6203_v38, %v6207_v30  ;;  %v6311_v22 = vld [vmem:[#allocation19 + $0x360] sm:$0xff]  ;;  %v6308_v23 = vld [vmem:[#allocation19 + $0x348] sm:$0xff]  ;;  %v13200_v38 = vcombine.low %v6316_v51, %v6320_v28 }
 0x664   :  { %6983 = vmatprep.subr.bf16.mxu0 %v13119_v55  ;;  %7024 = vmatprep.subr.bf16.mxu1 %v13121_v29  ;;  %v13089_v55 = vcombine.high %v6204_v37, %v6208_v24  ;;  %v6323_v29 = vld [vmem:[#allocation19 + $0x3c0] sm:$0xff]  ;;  %v16277_v59 = vadd.f32 %v15756_v12, %v2674_v32 }
 0x665   :  { %v13206_v5 = vcombine.low %v6323_v29, %v6327_v16 }
 0x667   :  { %6984 = vmatpush1.bf16.msra.mxu0 %v13118_v20  ;;  %7025 = vmatpush1.bf16.msra.mxu1 %v13120_v0  ;;  %v14379_v58 = vpop.eup %14378  ;;  %v13207_v20 = vcombine.high %v6323_v29, %v6327_v16  ;;  %v13209_v0 = vcombine.high %v6324_v43, %v6328_v21  ;;  %v6304_v29 = vld [vmem:[#allocation19 + $0x328] sm:$0xff] }
 0x668   :  { %6985 = vmatprep.subr.bf16.mxu0 %v13111_v31  ;;  %7026 = vmatprep.subr.bf16.mxu1 %v13113_v36  ;;  %v6315_v31 = vld [vmem:[#allocation19 + $0x380] sm:$0xff]  ;;  %v5209_v11 = vadd.f32 1.0, %v14379_v58 }
 0x669   :  { %v6319_v36 = vld [vmem:[#allocation19 + $0x3a0] sm:$0xff] }
 0x66b   :  { %6986 = vmatpush1.bf16.msra.mxu0 %v13110_v15  ;;  %7027 = vmatpush1.bf16.msra.mxu1 %v13112_v45  ;;  %v13208_v15 = vcombine.low %v6324_v43, %v6328_v21  ;;  %v13199_v45 = vcombine.high %v6315_v31, %v6319_v36 }
 0x66c   :  { %6987 = vmatprep.subr.bf16.mxu0 %v13103_v10  ;;  %7028 = vmatprep.subr.bf16.mxu1 %v13105_v27  ;;  %v13201_v10 = vcombine.high %v6316_v51, %v6320_v28  ;;  %v6307_v27 = vld [vmem:[#allocation19 + $0x340] sm:$0xff]  ;;  %v6292_v28 = vld [vmem:[#allocation19 + $0x2c8] sm:$0xff] }
 0x66d   :  { %v14381_v41 = vpop.eup %14380  ;;  %v13191_v37 = vcombine.high %v6307_v27, %v6311_v22  ;;  %v13190_v16 = vcombine.low %v6307_v27, %v6311_v22  ;;  %v6295_v51 = vld [vmem:[#allocation19 + $0x2e0] sm:$0xff] }
 0x66e   :  { %v5210_v13 = vadd.f32 1.0, %v14381_v41  ;;  %v6296_v41 = vld [vmem:[#allocation19 + $0x2e8] sm:$0xff] }
 0x66f   :  { %6988 = vmatpush1.bf16.msra.mxu0 %v13102_v25  ;;  %7029 = vmatpush1.bf16.msra.mxu1 %v13104_v50  ;;  %v6312_v25 = vld [vmem:[#allocation19 + $0x368] sm:$0xff]  ;;  %v2678_v50 = vrot.slane %v16040_v42, %v1986_v8  ;;  %v13177_v32 = vcombine.high %v6292_v28, %v6296_v41 }
 0x670   :  { %6989 = vmatprep.subr.bf16.mxu0 %v13095_v2  ;;  %7030 = vmatprep.subr.bf16.mxu1 %v13097_v9  ;;  %v5211_v2 = vmul.f32 0.5, %v5209_v11  ;;  %v13198_v9 = vcombine.low %v6315_v31, %v6319_v36  ;;  %v13193_v24 = vcombine.high %v6308_v23, %v6312_v25 }
 0x671   :  { %v16280_v8 = vadd.f32 %v15766_v19, %v2678_v50  ;;  %v6288_v50 = vld [vmem:[#allocation19 + $0x2a8] sm:$0xff] }
 0x672   :  { %v5223_v43 = vmul.f32 0.0, %v5211_v2  ;;  %v13176_v2 = vcombine.low %v6292_v28, %v6296_v41 }
 0x673   :  { %6990 = vmatpush1.bf16.msra.mxu0 %v13094_v61  ;;  %7031 = vmatpush1.bf16.msra.mxu1 %v13096_v35  ;;  %v6299_v61 = vld [vmem:[#allocation19 + $0x300] sm:$0xff]  ;;  %v5212_v35 = vmul.f32 0.5, %v5210_v13 }
 0x674   :  { %6991 = vmatprep.subr.bf16.mxu0 %v13087_v46  ;;  %7032 = vmatprep.subr.bf16.mxu1 %v13089_v55  ;;  %v6303_v55 = vld [vmem:[#allocation19 + $0x320] sm:$0xff] }
 0x675   :  { %v13183_v12 = vcombine.high %v6299_v61, %v6303_v55  ;;  %v5224_v31 = vmul.f32 0.0, %v5212_v35  ;;  %v6283_v13 = vld [vmem:[#allocation19 + $0x280] sm:$0xff] }
 0x677   :  { %6992 = vmatpush1.bf16.msra.mxu0 %v13086_v44  ;;  %7033 = vmatpush1.bf16.msra.mxu1 %v13088_v48  ;;  %v13192_v48 = vcombine.low %v6308_v23, %v6312_v25  ;;  %v16288_v22 = vadd.f32 %v16215_v47, %v5224_v31  ;;  %v6287_v23 = vld [vmem:[#allocation19 + $0x2a0] sm:$0xff]  ;;  %v6284_v25 = vld [vmem:[#allocation19 + $0x288] sm:$0xff]  ;;  %v6262_v31 = vld [vmem:[#allocation19 + $0x1d8] sm:$0xff] }
 0x678   :  { %6993 = vmatprep.subr.bf16.mxu0 %v13207_v20  ;;  %7034 = vmatprep.subr.bf16.mxu1 %v13209_v0  ;;  %v13185_v20 = vcombine.high %v6300_v49, %v6304_v29  ;;  %v6291_v0 = vld [vmem:[#allocation19 + $0x2c0] sm:$0xff]  ;;  %v6276_v47 = vld [vmem:[#allocation19 + $0x248] sm:$0xff]  ;;  %v13168_v35 = vcombine.low %v6284_v25, %v6288_v50 }
 0x679   :  { %v13175_v27 = vcombine.high %v6291_v0, %v6295_v51 }
 0x67b   :  { %6994 = vmatpush2.bf16.msra.mxu0 %v13206_v5  ;;  %7035 = vmatpush2.bf16.msra.mxu1 %v13208_v15  ;;  %v13182_v5 = vcombine.low %v6299_v61, %v6303_v55  ;;  %v16285_v15 = vadd.f32 %v16201_v63, %v5223_v43  ;;  %v13174_v63 = vcombine.low %v6291_v0, %v6295_v51  ;;  %v6265_v0 = vld [vmem:[#allocation19 + $0x1f0] sm:$0xff] }
 0x67c   :  { %v5120_v30 = vpop.f32.mrf.mxu1  ;;  %6995 = vmatprep.subr.bf16.mxu0 %v13199_v45  ;;  %7036 = vmatprep.subr.bf16.mxu1 %v13201_v10  ;;  %v13184_v10 = vcombine.low %v6300_v49, %v6304_v29  ;;  %v13166_v61 = vcombine.low %v6283_v13, %v6287_v23  ;;  %v6267_v49 = vld [vmem:[#allocation19 + $0x200] sm:$0xff] }
 0x67d   :  { %v5141_v46 = vrot.slane %v5120_v30, 2  ;;  %v6275_v30 = vld [vmem:[#allocation19 + $0x240] sm:$0xff] }
 0x67e   :  { %v5122_v42 = vpop.f32.mrf.mxu1  ;;  %v6271_v29 = vld [vmem:[#allocation19 + $0x220] sm:$0xff] }
 0x67f   :  { %v5157_v21 = vadd.f32 %v5141_v46, %v16277_v59  ;;  %v5142_v44 = vrot.slane %v5122_v42, 2  ;;  %6996 = vmatpush2.bf16.msra.mxu0 %v13198_v9  ;;  %7037 = vmatpush2.bf16.msra.mxu1 %v13200_v38  ;;  %v13167_v9 = vcombine.high %v6283_v13, %v6287_v23  ;;  %v13169_v38 = vcombine.high %v6284_v25, %v6288_v50  ;;  %v6268_v42 = vld [vmem:[#allocation19 + $0x208] sm:$0xff] }
 0x680   :  { %v5124_v58 = vpop.f32.mrf.mxu1  ;;  %6997 = vmatprep.subr.bf16.mxu0 %v13191_v37  ;;  %7038 = vmatprep.subr.bf16.mxu1 %v13193_v24  ;;  %v6279_v37 = vld [vmem:[#allocation19 + $0x260] sm:$0xff]  ;;  %v6280_v24 = vld [vmem:[#allocation19 + $0x268] sm:$0xff]  ;;  %v13150_v41 = vcombine.low %v6267_v49, %v6271_v29 }
 0x681   :  { %v5215_v36 = vmul.f32 0.5, %v5157_v21  ;;  %v5158_v19 = vadd.f32 %v5142_v44, %v16280_v8  ;;  %v13159_v46 = vcombine.high %v6275_v30, %v6279_v37  ;;  %v13161_v55 = vcombine.high %v6276_v47, %v6280_v24 }
 0x682   :  { %v5125_v11 = vpop.f32.mrf.mxu1  ;;  %v13158_v43 = vcombine.low %v6275_v30, %v6279_v37  ;;  %v13160_v21 = vcombine.low %v6276_v47, %v6280_v24 }
 0x683   :  { %14382 = vtanh.f32 %v5215_v36  ;;  %v5216_v45 = vmul.f32 0.5, %v5158_v19  ;;  %6998 = vmatpush2.bf16.msra.mxu0 %v13190_v16  ;;  %7039 = vmatpush2.bf16.msra.mxu1 %v13192_v48  ;;  %v6272_v16 = vld [vmem:[#allocation19 + $0x228] sm:$0xff]  ;;  %v13151_v48 = vcombine.high %v6267_v49, %v6271_v29  ;;  %v6266_v36 = vld [vmem:[#allocation19 + $0x1f8] sm:$0xff] }
 0x684   :  { %6999 = vmatprep.subr.bf16.mxu0 %v13183_v12  ;;  %7040 = vmatprep.subr.bf16.mxu1 %v13185_v20  ;;  %v13153_v58 = vcombine.high %v6268_v42, %v6272_v16  ;;  %v6261_v12 = vld [vmem:[#allocation19 + $0x1d0] sm:$0xff]  ;;  %v13152_v11 = vcombine.low %v6268_v42, %v6272_v16  ;;  %v13148_v47 = vcombine.low %v6262_v31, %v6266_v36  ;;  %v6246_v49 = vld [vmem:[#allocation19 + $0x158] sm:$0xff] }
 0x685   :  { %14384 = vtanh.f32 %v5216_v45  ;;  %v13147_v45 = vcombine.high %v6261_v12, %v6265_v0  ;;  %v13146_v37 = vcombine.low %v6261_v12, %v6265_v0  ;;  %v6250_v29 = vld [vmem:[#allocation19 + $0x178] sm:$0xff] }
 0x686   :  { %14386 = vtanh.f32 %v16285_v15  ;;  %v6242_v12 = vld [vmem:[#allocation19 + $0x138] sm:$0xff]  ;;  %v13132_v0 = vcombine.low %v6246_v49, %v6250_v29 }
 0x687   :  { %7000 = vmatpush2.bf16.msra.mxu0 %v13182_v5  ;;  %7041 = vmatpush2.bf16.msra.mxu1 %v13184_v10  ;;  %14388 = vtanh.f32 %v16288_v22  ;;  %v13149_v10 = vcombine.high %v6262_v31, %v6266_v36 }
 0x688   :  { %7001 = vmatprep.subr.bf16.mxu0 %v13175_v27  ;;  %7042 = vmatprep.subr.bf16.mxu1 %v13177_v32 }
 0x68b   :  { %7002 = vmatpush2.bf16.msra.mxu0 %v13174_v63  ;;  %7043 = vmatpush2.bf16.msra.mxu1 %v13176_v2  ;;  %v6253_v63 = vld [vmem:[#allocation19 + $0x190] sm:$0xff] }
 0x68c   :  { %7003 = vmatprep.subr.bf16.mxu0 %v13167_v9  ;;  %7044 = vmatprep.subr.bf16.mxu1 %v13169_v38  ;;  %v6257_v2 = vld [vmem:[#allocation19 + $0x1b0] sm:$0xff]  ;;  %v6254_v9 = vld [vmem:[#allocation19 + $0x198] sm:$0xff] }
 0x68d   :  { %v6258_v38 = vld [vmem:[#allocation19 + $0x1b8] sm:$0xff]  ;;  %v13138_v42 = vcombine.low %v6253_v63, %v6257_v2 }
 0x68e   :  { %v13140_v16 = vcombine.low %v6254_v9, %v6258_v38 }
 0x68f   :  { %7004 = vmatpush2.bf16.msra.mxu0 %v13166_v61  ;;  %7045 = vmatpush2.bf16.msra.mxu1 %v13168_v35  ;;  %v6245_v61 = vld [vmem:[#allocation19 + $0x150] sm:$0xff]  ;;  %v13139_v35 = vcombine.high %v6253_v63, %v6257_v2 }
 0x690   :  { %v14383_v44 = vpop.eup %14382  ;;  %7005 = vmatprep.subr.bf16.mxu0 %v13159_v46  ;;  %7046 = vmatprep.subr.bf16.mxu1 %v13161_v55  ;;  %v13141_v46 = vcombine.high %v6254_v9, %v6258_v38  ;;  %v6249_v55 = vld [vmem:[#allocation19 + $0x170] sm:$0xff] }
 0x691   :  { %v5219_v20 = vadd.f32 1.0, %v14383_v44  ;;  %v6237_v44 = vld [vmem:[#allocation19 + $0x110] sm:$0xff] }
 0x692   :  { %v14385_v19 = vpop.eup %14384  ;;  %v6213_v9 = vld [vmem:[#allocation19 + $0x50] sm:$0xff] }
 0x693   :  { %v5221_v51 = vmul.f32 0.5, %v5219_v20  ;;  %v5220_v28 = vadd.f32 1.0, %v14385_v19  ;;  %7006 = vmatpush2.bf16.msra.mxu0 %v13158_v43  ;;  %7047 = vmatpush2.bf16.msra.mxu1 %v13160_v21  ;;  %v14387_v5 = vpop.eup %14386  ;;  %v13131_v43 = vcombine.high %v6245_v61, %v6249_v55  ;;  %v13133_v21 = vcombine.high %v6246_v49, %v6250_v29  ;;  %v6229_v19 = vld [vmem:[#allocation19 + $0xd0] sm:$0xff]  ;;  %v6206_v29 = vld [vmem:[#allocation19 + $0x18] sm:$0xff] }
 0x694   :  { %7007 = vmatprep.subr.bf16.mxu0 %v13151_v48  ;;  %7048 = vmatprep.subr.bf16.mxu1 %v13153_v58  ;;  %v14389_v13 = vpop.eup %14388  ;;  %v6241_v48 = vld [vmem:[#allocation19 + $0x130] sm:$0xff]  ;;  %v6238_v58 = vld [vmem:[#allocation19 + $0x118] sm:$0xff]  ;;  %v13130_v20 = vcombine.low %v6245_v61, %v6249_v55 }
 0x695   :  { %v5231_v27 = vmul.f32 %v14387_v5, %v5221_v51  ;;  %v5222_v32 = vmul.f32 0.5, %v5220_v28  ;;  %v13123_v31 = vcombine.high %v6237_v44, %v6241_v48  ;;  %v13125_v36 = vcombine.high %v6238_v58, %v6242_v12  ;;  %v6233_v51 = vld [vmem:[#allocation19 + $0xf0] sm:$0xff]  ;;  %v6230_v28 = vld [vmem:[#allocation19 + $0xd8] sm:$0xff] }
 0x696   :  { %v13124_v5 = vcombine.low %v6238_v58, %v6242_v12  ;;  %v6217_v38 = vld [vmem:[#allocation19 + $0x70] sm:$0xff]  ;;  %v6326_v12 = vld [vmem:[#allocation19 + $0x3d8] sm:$0xff] }
 0x697   :  { %5233 = vst [vmem:[#allocation3 + $0x8] sm:$0xc0] %v5231_v27  ;;  %v5232_v23 = vmul.f32 %v14389_v13, %v5222_v32  ;;  %7008 = vmatpush2.bf16.msra.mxu0 %v13150_v41  ;;  %7049 = vmatpush2.bf16.msra.mxu1 %v13152_v11  ;;  %v6201_v25 = vpack.c.bf16 %v5231_v27, %v5231_v27  ;;  %v6234_v41 = vld [vmem:[#allocation19 + $0xf8] sm:$0xff]  ;;  %v6221_v27 = vld [vmem:[#allocation19 + $0x90] sm:$0xff] }
 0x698   :  { %7059 = vmatprep.subr.bf16.mxu0 %v13147_v45  ;;  %7100 = vmatprep.subr.bf16.mxu1 %v13149_v10  ;;  %v13122_v11 = vcombine.low %v6237_v44, %v6241_v48  ;;  %v13115_v45 = vcombine.high %v6229_v19, %v6233_v51  ;;  %v13117_v10 = vcombine.high %v6230_v28, %v6234_v41  ;;  %v6225_v32 = vld [vmem:[#allocation19 + $0xb0] sm:$0xff]  ;;  %v6222_v13 = vld [vmem:[#allocation19 + $0x98] sm:$0xff] }
 0x699   :  { %5234 = vst [vmem:[#allocation3] sm:$0xc0] %v5232_v23  ;;  %v6202_v50 = vpack.c.bf16 %v5232_v23, %v5232_v23  ;;  %v16292_v24 = vrot.slane %v6201_v25, 3  ;;  %v6226_v23 = vld [vmem:[#allocation19 + $0xb8] sm:$0xff]  ;;  %v13114_v25 = vcombine.low %v6229_v19, %v6233_v51  ;;  %v13107_v63 = vcombine.high %v6221_v27, %v6225_v32  ;;  %v6205_v55 = vld [vmem:[#allocation19 + $0x10] sm:$0xff] }
 0x69a   :  { %v13109_v2 = vcombine.high %v6222_v13, %v6226_v23  ;;  %v13108_v61 = vcombine.low %v6222_v13, %v6226_v23  ;;  %v6209_v49 = vld [vmem:[#allocation19 + $0x30] sm:$0xff]  ;;  %v6310_v23 = vld [vmem:[#allocation19 + $0x358] sm:$0xff] }
 0x69b   :  { %v6334_v30 = vrot.slane %v6202_v50, 3  ;;  %v13116_v50 = vcombine.low %v6230_v28, %v6234_v41  ;;  %v6325_v48 = vld [vmem:[#allocation19 + $0x3d0] sm:$0xff]  ;;  %v6318_v41 = vld [vmem:[#allocation19 + $0x398] sm:$0xff] }
 0x69c   :  { %v6329_v58 = vld [vmem:[#allocation19 + $0x3f0] sm:$0xff] }
 0x69d   :  { %7009 = vmatprep.mubr.bf16.mxu0 %v6334_v30  ;;  %7050 = vmatprep.mubr.bf16.mxu1 %v6334_v30  ;;  %v6317_v51 = vld [vmem:[#allocation19 + $0x390] sm:$0xff] }
 0x69e   :  { %7010 = vmatmul.mubr.bf16.vlgmr.msra.gmra.mxu0 %v16292_v24  ;;  %7051 = vmatmul.mubr.bf16.vlgmr.msra.gmra.mxu1 %v16292_v24  ;;  %v6321_v28 = vld [vmem:[#allocation19 + $0x3b0] sm:$0xff] }
 0x69f   :  { %7060 = vmatpush1.bf16.msra.mxu0 %v13146_v37  ;;  %7101 = vmatpush1.bf16.msra.mxu1 %v13148_v47  ;;  %v6218_v37 = vld [vmem:[#allocation19 + $0x78] sm:$0xff]  ;;  %v13106_v47 = vcombine.low %v6221_v27, %v6225_v32  ;;  %v6309_v32 = vld [vmem:[#allocation19 + $0x350] sm:$0xff] }
 0x6a0   :  { %7091 = vmatprep.mubr.bf16.mxu0 %v6334_v30  ;;  %7132 = vmatprep.mubr.bf16.mxu1 %v6334_v30  ;;  %v6214_v30 = vld [vmem:[#allocation19 + $0x58] sm:$0xff]  ;;  %v6313_v13 = vld [vmem:[#allocation19 + $0x370] sm:$0xff] }
 0x6a1   :  { %7061 = vmatprep.subr.bf16.mxu0 %v13139_v35  ;;  %7102 = vmatprep.subr.bf16.mxu1 %v13141_v46  ;;  %v13099_v35 = vcombine.high %v6213_v9, %v6217_v38  ;;  %v13101_v46 = vcombine.high %v6214_v30, %v6218_v37 }
 0x6a3   :  { %7062 = vmatpush1.bf16.msra.mxu0 %v13138_v42  ;;  %7103 = vmatpush1.bf16.msra.mxu1 %v13140_v16  ;;  %v6210_v42 = vld [vmem:[#allocation19 + $0x38] sm:$0xff]  ;;  %v13098_v16 = vcombine.low %v6213_v9, %v6217_v38  ;;  %v6301_v38 = vld [vmem:[#allocation19 + $0x310] sm:$0xff] }
 0x6a4   :  { %7063 = vmatprep.subr.bf16.mxu0 %v13131_v43  ;;  %7104 = vmatprep.subr.bf16.mxu1 %v13133_v21  ;;  %v13100_v43 = vcombine.low %v6214_v30, %v6218_v37  ;;  %v13091_v21 = vcombine.high %v6205_v55, %v6209_v49  ;;  %v13093_v44 = vcombine.high %v6206_v29, %v6210_v42  ;;  %v6305_v30 = vld [vmem:[#allocation19 + $0x330] sm:$0xff]  ;;  %v6302_v37 = vld [vmem:[#allocation19 + $0x318] sm:$0xff] }
 0x6a7   :  { %7064 = vmatpush1.bf16.msra.mxu0 %v13130_v20  ;;  %7105 = vmatpush1.bf16.msra.mxu1 %v13132_v0  ;;  %v6330_v20 = vld [vmem:[#allocation19 + $0x3f8] sm:$0xff]  ;;  %v13090_v0 = vcombine.low %v6205_v55, %v6209_v49  ;;  %v6293_v49 = vld [vmem:[#allocation19 + $0x2d0] sm:$0xff] }
 0x6a8   :  { %7065 = vmatprep.subr.bf16.mxu0 %v13123_v31  ;;  %7106 = vmatprep.subr.bf16.mxu1 %v13125_v36  ;;  %v13092_v31 = vcombine.low %v6206_v29, %v6210_v42  ;;  %v13211_v36 = vcombine.high %v6325_v48, %v6329_v58  ;;  %v13213_v19 = vcombine.high %v6326_v12, %v6330_v20  ;;  %v6297_v29 = vld [vmem:[#allocation19 + $0x2f0] sm:$0xff]  ;;  %v6294_v42 = vld [vmem:[#allocation19 + $0x2d8] sm:$0xff] }
 0x6ab   :  { %7066 = vmatpush1.bf16.msra.mxu0 %v13122_v11  ;;  %7107 = vmatpush1.bf16.msra.mxu1 %v13124_v5  ;;  %v6322_v11 = vld [vmem:[#allocation19 + $0x3b8] sm:$0xff]  ;;  %v13210_v5 = vcombine.low %v6325_v48, %v6329_v58  ;;  %v6285_v58 = vld [vmem:[#allocation19 + $0x290] sm:$0xff] }
 0x6ac   :  { %7067 = vmatprep.subr.bf16.mxu0 %v13115_v45  ;;  %7108 = vmatprep.subr.bf16.mxu1 %v13117_v10  ;;  %v13212_v45 = vcombine.low %v6326_v12, %v6330_v20  ;;  %v13203_v10 = vcombine.high %v6317_v51, %v6321_v28  ;;  %v13205_v27 = vcombine.high %v6318_v41, %v6322_v11  ;;  %v6289_v12 = vld [vmem:[#allocation19 + $0x2b0] sm:$0xff]  ;;  %v6286_v20 = vld [vmem:[#allocation19 + $0x298] sm:$0xff] }
 0x6af   :  { %7068 = vmatpush1.bf16.msra.mxu0 %v13114_v25  ;;  %7109 = vmatpush1.bf16.msra.mxu1 %v13116_v50  ;;  %v6314_v25 = vld [vmem:[#allocation19 + $0x378] sm:$0xff]  ;;  %v13202_v50 = vcombine.low %v6317_v51, %v6321_v28  ;;  %v6277_v28 = vld [vmem:[#allocation19 + $0x250] sm:$0xff] }
 0x6b0   :  { %7069 = vmatprep.subr.bf16.mxu0 %v13107_v63  ;;  %7110 = vmatprep.subr.bf16.mxu1 %v13109_v2  ;;  %v13204_v63 = vcombine.low %v6318_v41, %v6322_v11  ;;  %v13195_v2 = vcombine.high %v6309_v32, %v6313_v13  ;;  %v13197_v9 = vcombine.high %v6310_v23, %v6314_v25  ;;  %v6281_v41 = vld [vmem:[#allocation19 + $0x270] sm:$0xff]  ;;  %v6278_v11 = vld [vmem:[#allocation19 + $0x258] sm:$0xff] }
 0x6b3   :  { %7070 = vmatpush1.bf16.msra.mxu0 %v13106_v47  ;;  %7111 = vmatpush1.bf16.msra.mxu1 %v13108_v61  ;;  %v6306_v47 = vld [vmem:[#allocation19 + $0x338] sm:$0xff]  ;;  %v13194_v61 = vcombine.low %v6309_v32, %v6313_v13  ;;  %v6269_v13 = vld [vmem:[#allocation19 + $0x210] sm:$0xff] }
 0x6b4   :  { %7071 = vmatprep.subr.bf16.mxu0 %v13099_v35  ;;  %7112 = vmatprep.subr.bf16.mxu1 %v13101_v46  ;;  %v13196_v35 = vcombine.low %v6310_v23, %v6314_v25  ;;  %v13187_v46 = vcombine.high %v6301_v38, %v6305_v30  ;;  %v13189_v55 = vcombine.high %v6302_v37, %v6306_v47  ;;  %v6273_v23 = vld [vmem:[#allocation19 + $0x230] sm:$0xff]  ;;  %v6270_v25 = vld [vmem:[#allocation19 + $0x218] sm:$0xff] }
 0x6b7   :  { %7072 = vmatpush1.bf16.msra.mxu0 %v13098_v16  ;;  %7113 = vmatpush1.bf16.msra.mxu1 %v13100_v43  ;;  %v6298_v16 = vld [vmem:[#allocation19 + $0x2f8] sm:$0xff]  ;;  %v13186_v43 = vcombine.low %v6301_v38, %v6305_v30 }
 0x6b8   :  { %7073 = vmatprep.subr.bf16.mxu0 %v13091_v21  ;;  %7114 = vmatprep.subr.bf16.mxu1 %v13093_v44  ;;  %v13188_v21 = vcombine.low %v6302_v37, %v6306_v47  ;;  %v13179_v44 = vcombine.high %v6293_v49, %v6297_v29  ;;  %v13181_v48 = vcombine.high %v6294_v42, %v6298_v16  ;;  %v7319_v30 = vld [vmem:[%s17627_s10 + $0x1c0] sm:$0xff]  ;;  %v7320_v47 = vld [vmem:[%s17627_s10 + $0x1c8] sm:$0xff] }
 0x6b9   :  { %v7323_v37 = vld [vmem:[%s17627_s10 + $0x1e0] sm:$0xff] }
 0x6bb   :  { %7074 = vmatpush1.bf16.msra.mxu0 %v13090_v0  ;;  %7115 = vmatpush1.bf16.msra.mxu1 %v13092_v31  ;;  %v6290_v0 = vld [vmem:[#allocation19 + $0x2b8] sm:$0xff]  ;;  %v13178_v31 = vcombine.low %v6293_v49, %v6297_v29 }
 0x6bc   :  { %7075 = vmatprep.subr.bf16.mxu0 %v13211_v36  ;;  %7116 = vmatprep.subr.bf16.mxu1 %v13213_v19  ;;  %v13180_v36 = vcombine.low %v6294_v42, %v6298_v16  ;;  %v13171_v19 = vcombine.high %v6285_v58, %v6289_v12  ;;  %v13173_v51 = vcombine.high %v6286_v20, %v6290_v0  ;;  %v7311_v29 = vld [vmem:[%s17627_s10 + $0x180] sm:$0xff]  ;;  %v7312_v16 = vld [vmem:[%s17627_s10 + $0x188] sm:$0xff] }
 0x6bd   :  { %v7315_v42 = vld [vmem:[%s17627_s10 + $0x1a0] sm:$0xff] }
 0x6bf   :  { %7076 = vmatpush2.bf16.msra.mxu0 %v13210_v5  ;;  %7117 = vmatpush2.bf16.msra.mxu1 %v13212_v45  ;;  %v6282_v5 = vld [vmem:[#allocation19 + $0x278] sm:$0xff]  ;;  %v13170_v45 = vcombine.low %v6285_v58, %v6289_v12 }
 0x6c0   :  { %7077 = vmatprep.subr.bf16.mxu0 %v13203_v10  ;;  %7118 = vmatprep.subr.bf16.mxu1 %v13205_v27  ;;  %v13172_v10 = vcombine.low %v6286_v20, %v6290_v0  ;;  %v13163_v27 = vcombine.high %v6277_v28, %v6281_v41  ;;  %v13165_v32 = vcombine.high %v6278_v11, %v6282_v5 }
 0x6c1   :  { %v13263_v0 = vcombine.high %v7311_v29, %v7315_v42 }
 0x6c3   :  { %7078 = vmatpush2.bf16.msra.mxu0 %v13202_v50  ;;  %7119 = vmatpush2.bf16.msra.mxu1 %v13204_v63  ;;  %v6274_v50 = vld [vmem:[#allocation19 + $0x238] sm:$0xff]  ;;  %v13162_v63 = vcombine.low %v6277_v28, %v6281_v41  ;;  %v7308_v28 = vld [vmem:[%s17627_s10 + $0x168] sm:$0xff] }
 0x6c4   :  { %7079 = vmatprep.subr.bf16.mxu0 %v13195_v2  ;;  %7120 = vmatprep.subr.bf16.mxu1 %v13197_v9  ;;  %v13164_v2 = vcombine.low %v6278_v11, %v6282_v5  ;;  %v13155_v9 = vcombine.high %v6269_v13, %v6273_v23  ;;  %v13157_v38 = vcombine.high %v6270_v25, %v6274_v50 }
 0x6c5   :  { %v13262_v5 = vcombine.low %v7311_v29, %v7315_v42  ;;  %v7279_v29 = vld [vmem:[%s17627_s10 + $0x80] sm:$0xff] }
 0x6c6   :  { %v7283_v42 = vld [vmem:[%s17627_s10 + $0xa0] sm:$0xff] }
 0x6c7   :  { %7080 = vmatpush2.bf16.msra.mxu0 %v13194_v61  ;;  %7121 = vmatpush2.bf16.msra.mxu1 %v13196_v35  ;;  %v7324_v61 = vld [vmem:[%s17627_s10 + $0x1e8] sm:$0xff]  ;;  %v13154_v35 = vcombine.low %v6269_v13, %v6273_v23  ;;  %v7295_v23 = vld [vmem:[%s17627_s10 + $0x100] sm:$0xff] }
 0x6c8   :  { %7081 = vmatprep.subr.bf16.mxu0 %v13187_v46  ;;  %7122 = vmatprep.subr.bf16.mxu1 %v13189_v55  ;;  %v13156_v46 = vcombine.low %v6270_v25, %v6274_v50  ;;  %v13271_v55 = vcombine.high %v7319_v30, %v7323_v37  ;;  %v13273_v49 = vcombine.high %v7320_v47, %v7324_v61  ;;  %v7296_v25 = vld [vmem:[%s17627_s10 + $0x108] sm:$0xff] }
 0x6c9   :  { %v13272_v58 = vcombine.low %v7320_v47, %v7324_v61  ;;  %v7300_v50 = vld [vmem:[%s17627_s10 + $0x128] sm:$0xff] }
 0x6ca   :  { %v7288_v47 = vld [vmem:[%s17627_s10 + $0xc8] sm:$0xff] }
 0x6cb   :  { %7082 = vmatpush2.bf16.msra.mxu0 %v13186_v43  ;;  %7123 = vmatpush2.bf16.msra.mxu1 %v13188_v21  ;;  %v7316_v43 = vld [vmem:[%s17627_s10 + $0x1a8] sm:$0xff] }
 0x6cc   :  { %7083 = vmatprep.subr.bf16.mxu0 %v13179_v44  ;;  %7124 = vmatprep.subr.bf16.mxu1 %v13181_v48  ;;  %v13270_v48 = vcombine.low %v7319_v30, %v7323_v37  ;;  %v7287_v30 = vld [vmem:[%s17627_s10 + $0xc0] sm:$0xff]  ;;  %v7292_v61 = vld [vmem:[%s17627_s10 + $0xe8] sm:$0xff] }
 0x6cd   :  { %v7291_v37 = vld [vmem:[%s17627_s10 + $0xe0] sm:$0xff] }
 0x6cf   :  { %7084 = vmatpush2.bf16.msra.mxu0 %v13178_v31  ;;  %7125 = vmatpush2.bf16.msra.mxu1 %v13180_v36  ;;  %v13265_v31 = vcombine.high %v7312_v16, %v7316_v43  ;;  %v7303_v36 = vld [vmem:[%s17627_s10 + $0x140] sm:$0xff] }
 0x6d0   :  { %7085 = vmatprep.subr.bf16.mxu0 %v13171_v19  ;;  %7126 = vmatprep.subr.bf16.mxu1 %v13173_v51  ;;  %v7307_v19 = vld [vmem:[%s17627_s10 + $0x160] sm:$0xff]  ;;  %v7304_v51 = vld [vmem:[%s17627_s10 + $0x148] sm:$0xff] }
 0x6d1   :  { %v13257_v13 = vcombine.high %v7304_v51, %v7308_v28 }
 0x6d3   :  { %7086 = vmatpush2.bf16.msra.mxu0 %v13170_v45  ;;  %7127 = vmatpush2.bf16.msra.mxu1 %v13172_v10  ;;  %v13264_v45 = vcombine.low %v7312_v16, %v7316_v43  ;;  %v7280_v16 = vld [vmem:[%s17627_s10 + $0x88] sm:$0xff] }
 0x6d4   :  { %7087 = vmatprep.subr.bf16.mxu0 %v13163_v27  ;;  %7128 = vmatprep.subr.bf16.mxu1 %v13165_v32  ;;  %v13255_v32 = vcombine.high %v7303_v36, %v7307_v19  ;;  %v7284_v43 = vld [vmem:[%s17627_s10 + $0xa8] sm:$0xff] }
 0x6d7   :  { %7088 = vmatpush2.bf16.msra.mxu0 %v13162_v63  ;;  %7129 = vmatpush2.bf16.msra.mxu1 %v13164_v2  ;;  %v13254_v63 = vcombine.low %v7303_v36, %v7307_v19  ;;  %v13256_v2 = vcombine.low %v7304_v51, %v7308_v28  ;;  %v7271_v36 = vld [vmem:[%s17627_s10 + $0x40] sm:$0xff]  ;;  %v7272_v51 = vld [vmem:[%s17627_s10 + $0x48] sm:$0xff] }
 0x6d8   :  { %7089 = vmatprep.subr.bf16.mxu0 %v13155_v9  ;;  %7130 = vmatprep.subr.bf16.mxu1 %v13157_v38  ;;  %v13249_v38 = vcombine.high %v7296_v25, %v7300_v50  ;;  %v7275_v19 = vld [vmem:[%s17627_s10 + $0x60] sm:$0xff]  ;;  %v7276_v28 = vld [vmem:[%s17627_s10 + $0x68] sm:$0xff] }
 0x6da   :  { %v16320_v21 = vpop.f32.mrf.mxu0  ;;  %v16322_v44 = vpop.f32.mrf.mxu1 }
 0x6db   :  { %7090 = vmatpush2.bf16.msra.mxu0 %v13154_v35  ;;  %7131 = vmatpush2.bf16.msra.mxu1 %v13156_v46  ;;  %v13248_v46 = vcombine.low %v7296_v25, %v7300_v50 }
 0x6dc   :  { %v16324_v12 = vpop.f32.mrf.mxu0  ;;  %v16326_v20 = vpop.f32.mrf.mxu1  ;;  %8037 = vmatprep.subr.bf16.mxu0 %v13271_v55  ;;  %8078 = vmatprep.subr.bf16.mxu1 %v13273_v49  ;;  %v13239_v55 = vcombine.high %v7287_v30, %v7291_v37  ;;  %v13241_v49 = vcombine.high %v7288_v47, %v7292_v61 }
 0x6de   :  { %7092 = vmatmul.mubr.bf16.vlgmr.msra.gmra.mxu0 %v16292_v24  ;;  %7133 = vmatmul.mubr.bf16.vlgmr.msra.gmra.mxu1 %v16292_v24  ;;  %v6043_v41 = vpop.f32.mrf.mxu0  ;;  %v6084_v11 = vpop.f32.mrf.mxu1  ;;  %v7299_v24 = vld [vmem:[%s17627_s10 + $0x120] sm:$0xff] }
 0x6df   :  { %8038 = vmatpush1.bf16.msra.mxu0 %v13270_v48  ;;  %8079 = vmatpush1.bf16.msra.mxu1 %v13272_v58  ;;  %v13247_v9 = vcombine.high %v7295_v23, %v7299_v24  ;;  %v13246_v35 = vcombine.low %v7295_v23, %v7299_v24  ;;  %v13238_v48 = vcombine.low %v7287_v30, %v7291_v37 }
 0x6e0   :  { %v6044_v10 = vpop.f32.mrf.mxu0  ;;  %v6085_v27 = vpop.f32.mrf.mxu1  ;;  %8039 = vmatprep.subr.bf16.mxu0 %v13263_v0  ;;  %8080 = vmatprep.subr.bf16.mxu1 %v13265_v31  ;;  %v13240_v58 = vcombine.low %v7288_v47, %v7292_v61  ;;  %v13231_v0 = vcombine.high %v7279_v29, %v7283_v42  ;;  %v13233_v31 = vcombine.high %v7280_v16, %v7284_v43 }
 0x6e1   :  { %v13230_v41 = vcombine.low %v7279_v29, %v7283_v42  ;;  %v13232_v11 = vcombine.low %v7280_v16, %v7284_v43  ;;  %v7263_v10 = vld [vmem:[%s17627_s10] sm:$0xff]  ;;  %v13222_v23 = vcombine.low %v7271_v36, %v7275_v19  ;;  %v13224_v24 = vcombine.low %v7272_v51, %v7276_v28 }
 0x6e2   :  { %v7267_v27 = vld [vmem:[%s17627_s10 + $0x20] sm:$0xff] }
 0x6e3   :  { %8040 = vmatpush1.bf16.msra.mxu0 %v13262_v5  ;;  %8081 = vmatpush1.bf16.msra.mxu1 %v13264_v45  ;;  %v13223_v5 = vcombine.high %v7271_v36, %v7275_v19  ;;  %v13225_v45 = vcombine.high %v7272_v51, %v7276_v28  ;;  %v13215_v25 = vcombine.high %v7263_v10, %v7267_v27 }
 0x6e4   :  { %8041 = vmatprep.subr.bf16.mxu0 %v13255_v32  ;;  %8082 = vmatprep.subr.bf16.mxu1 %v13257_v13  ;;  %v7264_v32 = vld [vmem:[%s17627_s10 + $0x8] sm:$0xff]  ;;  %v13214_v30 = vcombine.low %v7263_v10, %v7267_v27 }
 0x6e5   :  { %v7268_v13 = vld [vmem:[%s17627_s10 + $0x28] sm:$0xff] }
 0x6e6   :  { %v13217_v50 = vcombine.high %v7264_v32, %v7268_v13  ;;  %v13216_v37 = vcombine.low %v7264_v32, %v7268_v13 }
 0x6e7   :  { %8042 = vmatpush1.bf16.msra.mxu0 %v13254_v63  ;;  %8083 = vmatpush1.bf16.msra.mxu1 %v13256_v2  ;;  %v7383_v63 = vld [vmem:[%s17627_s10 + $0x3c0] sm:$0xff] }
 0x6e8   :  { %8043 = vmatprep.subr.bf16.mxu0 %v13247_v9  ;;  %8084 = vmatprep.subr.bf16.mxu1 %v13249_v38  ;;  %v7387_v2 = vld [vmem:[%s17627_s10 + $0x3e0] sm:$0xff]  ;;  %v7384_v9 = vld [vmem:[%s17627_s10 + $0x3c8] sm:$0xff] }
 0x6e9   :  { %v7388_v38 = vld [vmem:[%s17627_s10 + $0x3e8] sm:$0xff]  ;;  %v13335_v47 = vcombine.high %v7383_v63, %v7387_v2  ;;  %v13334_v29 = vcombine.low %v7383_v63, %v7387_v2 }
 0x6ea   :  { %v13337_v61 = vcombine.high %v7384_v9, %v7388_v38  ;;  %v13336_v42 = vcombine.low %v7384_v9, %v7388_v38 }
 0x6eb   :  { %8044 = vmatpush1.bf16.msra.mxu0 %v13246_v35  ;;  %8085 = vmatpush1.bf16.msra.mxu1 %v13248_v46  ;;  %v7375_v35 = vld [vmem:[%s17627_s10 + $0x380] sm:$0xff] }
 0x6ec   :  { %8045 = vmatprep.subr.bf16.mxu0 %v13239_v55  ;;  %8086 = vmatprep.subr.bf16.mxu1 %v13241_v49  ;;  %v7379_v46 = vld [vmem:[%s17627_s10 + $0x3a0] sm:$0xff]  ;;  %v7376_v55 = vld [vmem:[%s17627_s10 + $0x388] sm:$0xff] }
 0x6ed   :  { %v7380_v49 = vld [vmem:[%s17627_s10 + $0x3a8] sm:$0xff]  ;;  %v13327_v16 = vcombine.high %v7375_v35, %v7379_v46  ;;  %v13326_v36 = vcombine.low %v7375_v35, %v7379_v46  ;;  %v6177_v46 = vrot.slane %v16320_v21, 6  ;;  %v7339_v21 = vld [vmem:[%s17627_s10 + $0x260] sm:$0xff] }
 0x6ee   :  { %v13329_v43 = vcombine.high %v7376_v55, %v7380_v49  ;;  %v13328_v19 = vcombine.low %v7376_v55, %v7380_v49  ;;  %v7348_v35 = vld [vmem:[%s17627_s10 + $0x2a8] sm:$0xff] }
 0x6ef   :  { %8046 = vmatpush1.bf16.msra.mxu0 %v13238_v48  ;;  %8087 = vmatpush1.bf16.msra.mxu1 %v13240_v58  ;;  %v7367_v48 = vld [vmem:[%s17627_s10 + $0x340] sm:$0xff] }
 0x6f0   :  { %8047 = vmatprep.subr.bf16.mxu0 %v13231_v0  ;;  %8088 = vmatprep.subr.bf16.mxu1 %v13233_v31  ;;  %v7371_v58 = vld [vmem:[%s17627_s10 + $0x360] sm:$0xff]  ;;  %v7368_v0 = vld [vmem:[%s17627_s10 + $0x348] sm:$0xff] }
 0x6f1   :  { %v7372_v31 = vld [vmem:[%s17627_s10 + $0x368] sm:$0xff]  ;;  %v13319_v51 = vcombine.high %v7367_v48, %v7371_v58  ;;  %v13318_v10 = vcombine.low %v7367_v48, %v7371_v58  ;;  %v6178_v58 = vrot.slane %v16324_v12, 6  ;;  %v7331_v12 = vld [vmem:[%s17627_s10 + $0x220] sm:$0xff] }
 0x6f2   :  { %v13321_v28 = vcombine.high %v7368_v0, %v7372_v31  ;;  %v13320_v27 = vcombine.low %v7368_v0, %v7372_v31  ;;  %v7336_v48 = vld [vmem:[%s17627_s10 + $0x248] sm:$0xff]  ;;  %v6193_v0 = vadd.f32 %v6177_v46, %v15835_v4 }
 0x6f3   :  { %8048 = vmatpush1.bf16.msra.mxu0 %v13230_v41  ;;  %8089 = vmatpush1.bf16.msra.mxu1 %v13232_v11  ;;  %v7359_v41 = vld [vmem:[%s17627_s10 + $0x300] sm:$0xff] }
 0x6f4   :  { %8049 = vmatprep.subr.bf16.mxu0 %v13223_v5  ;;  %8090 = vmatprep.subr.bf16.mxu1 %v13225_v45  ;;  %v7363_v11 = vld [vmem:[%s17627_s10 + $0x320] sm:$0xff]  ;;  %v7360_v5 = vld [vmem:[%s17627_s10 + $0x308] sm:$0xff] }
 0x6f5   :  { %v7364_v45 = vld [vmem:[%s17627_s10 + $0x328] sm:$0xff]  ;;  %v13311_v32 = vcombine.high %v7359_v41, %v7363_v11  ;;  %v13310_v63 = vcombine.low %v7359_v41, %v7363_v11  ;;  %v7327_v41 = vld [vmem:[%s17627_s10 + $0x200] sm:$0xff] }
 0x6f6   :  { %v13313_v13 = vcombine.high %v7360_v5, %v7364_v45  ;;  %v13312_v2 = vcombine.low %v7360_v5, %v7364_v45  ;;  %v7328_v5 = vld [vmem:[%s17627_s10 + $0x208] sm:$0xff] }
 0x6f7   :  { %8050 = vmatpush1.bf16.msra.mxu0 %v13222_v23  ;;  %8091 = vmatpush1.bf16.msra.mxu1 %v13224_v24  ;;  %v7351_v23 = vld [vmem:[%s17627_s10 + $0x2c0] sm:$0xff]  ;;  %v7332_v45 = vld [vmem:[%s17627_s10 + $0x228] sm:$0xff] }
 0x6f8   :  { %8051 = vmatprep.subr.bf16.mxu0 %v13215_v25  ;;  %8092 = vmatprep.subr.bf16.mxu1 %v13217_v50  ;;  %v7355_v24 = vld [vmem:[%s17627_s10 + $0x2e0] sm:$0xff]  ;;  %v7352_v25 = vld [vmem:[%s17627_s10 + $0x2c8] sm:$0xff] }
 0x6f9   :  { %v7356_v50 = vld [vmem:[%s17627_s10 + $0x2e8] sm:$0xff]  ;;  %v13303_v9 = vcombine.high %v7351_v23, %v7355_v24  ;;  %v13302_v55 = vcombine.low %v7351_v23, %v7355_v24  ;;  %v13279_v24 = vcombine.high %v7327_v41, %v7331_v12 }
 0x6fa   :  { %v13305_v38 = vcombine.high %v7352_v25, %v7356_v50  ;;  %v13304_v49 = vcombine.low %v7352_v25, %v7356_v50  ;;  %v13281_v25 = vcombine.high %v7328_v5, %v7332_v45  ;;  %v16509_v50 = vld [vmem:[%s17627_s10 + $0x1d0] sm:$0xff] }
 0x6fb   :  { %8052 = vmatpush1.bf16.msra.mxu0 %v13214_v30  ;;  %8093 = vmatpush1.bf16.msra.mxu1 %v13216_v37  ;;  %v7343_v30 = vld [vmem:[%s17627_s10 + $0x280] sm:$0xff]  ;;  %v6179_v37 = vrot.slane %v16322_v44, 6  ;;  %v6180_v44 = vrot.slane %v16326_v20, 6  ;;  %v7340_v20 = vld [vmem:[%s17627_s10 + $0x268] sm:$0xff] }
 0x6fc   :  { %8053 = vmatprep.subr.bf16.mxu0 %v13335_v47  ;;  %8094 = vmatprep.subr.bf16.mxu1 %v13337_v61  ;;  %v7347_v47 = vld [vmem:[%s17627_s10 + $0x2a0] sm:$0xff]  ;;  %v7344_v61 = vld [vmem:[%s17627_s10 + $0x288] sm:$0xff] }
 0x6fd   :  { %v13294_v31 = vcombine.low %v7343_v30, %v7347_v47 }
 0x6ff   :  { %8054 = vmatpush2.bf16.msra.mxu0 %v13334_v29  ;;  %8095 = vmatpush2.bf16.msra.mxu1 %v13336_v42  ;;  %v13295_v29 = vcombine.high %v7343_v30, %v7347_v47  ;;  %v13297_v42 = vcombine.high %v7344_v61, %v7348_v35  ;;  %v13278_v30 = vcombine.low %v7327_v41, %v7331_v12 }
 0x700   :  { %8055 = vmatprep.subr.bf16.mxu0 %v13327_v16  ;;  %8096 = vmatprep.subr.bf16.mxu1 %v13329_v43  ;;  %v7335_v16 = vld [vmem:[%s17627_s10 + $0x240] sm:$0xff]  ;;  %v6195_v43 = vadd.f32 %v6179_v37, %v15942_v57  ;;  %v13280_v37 = vcombine.low %v7328_v5, %v7332_v45 }
 0x702   :  { %v7181_v11 = vmul.f32 0.5, %v6195_v43 }
 0x703   :  { %8056 = vmatpush2.bf16.msra.mxu0 %v13326_v36  ;;  %8097 = vmatpush2.bf16.msra.mxu1 %v13328_v19  ;;  %v13296_v36 = vcombine.low %v7344_v61, %v7348_v35  ;;  %v6196_v19 = vadd.f32 %v6180_v44, %v15951_v3 }
 0x704   :  { %8057 = vmatprep.subr.bf16.mxu0 %v13319_v51  ;;  %8098 = vmatprep.subr.bf16.mxu1 %v13321_v28  ;;  %v13287_v51 = vcombine.high %v7335_v16, %v7339_v21  ;;  %v13289_v28 = vcombine.high %v7336_v48, %v7340_v20  ;;  %14390 = vtanh.f32 %v7181_v11 }
 0x705   :  { %v7182_v23 = vmul.f32 0.5, %v6196_v19 }
 0x707   :  { %8058 = vmatpush2.bf16.msra.mxu0 %v13318_v10  ;;  %8099 = vmatpush2.bf16.msra.mxu1 %v13320_v27  ;;  %v6194_v10 = vadd.f32 %v6178_v58, %v15838_v17  ;;  %v7173_v27 = vmul.f32 0.5, %v6193_v0 }
 0x708   :  { %8059 = vmatprep.subr.bf16.mxu0 %v13311_v32  ;;  %8100 = vmatprep.subr.bf16.mxu1 %v13313_v13  ;;  %v13286_v32 = vcombine.low %v7335_v16, %v7339_v21  ;;  %v13288_v13 = vcombine.low %v7336_v48, %v7340_v20 }
 0x709   :  { %14392 = vtanh.f32 %v7173_v27 }
 0x70a   :  { %14394 = vtanh.f32 %v7182_v23 }
 0x70b   :  { %8060 = vmatpush2.bf16.msra.mxu0 %v13310_v63  ;;  %8101 = vmatpush2.bf16.msra.mxu1 %v13312_v2  ;;  %v16514_v63 = vld [vmem:[%s17627_s10 + $0x1f0] sm:$0xff]  ;;  %v16519_v2 = vld [vmem:[%s17627_s10 + $0x1d8] sm:$0xff] }
 0x70c   :  { %8061 = vmatprep.subr.bf16.mxu0 %v13303_v9  ;;  %8102 = vmatprep.subr.bf16.mxu1 %v13305_v38  ;;  %v16524_v9 = vld [vmem:[%s17627_s10 + $0x1f8] sm:$0xff]  ;;  %v7174_v38 = vmul.f32 0.5, %v6194_v10  ;;  %v13275_v47 = vcombine.high %v16509_v50, %v16514_v63 }
 0x70d   :  { %v13277_v61 = vcombine.high %v16519_v2, %v16524_v9 }
 0x70e   :  { %14396 = vtanh.f32 %v7174_v38 }
 0x70f   :  { %8062 = vmatpush2.bf16.msra.mxu0 %v13302_v55  ;;  %8103 = vmatpush2.bf16.msra.mxu1 %v13304_v49 }
 0x710   :  { %8063 = vmatprep.subr.bf16.mxu0 %v13295_v29  ;;  %8104 = vmatprep.subr.bf16.mxu1 %v13297_v42 }
 0x713   :  { %8064 = vmatpush2.bf16.msra.mxu0 %v13294_v31  ;;  %8105 = vmatpush2.bf16.msra.mxu1 %v13296_v36  ;;  %v14391_v36 = vpop.eup %14390 }
 0x714   :  { %8065 = vmatprep.subr.bf16.mxu0 %v13287_v51  ;;  %8106 = vmatprep.subr.bf16.mxu1 %v13289_v28  ;;  %v7185_v41 = vadd.f32 1.0, %v14391_v36  ;;  %v7317_v36 = vld [vmem:[%s17627_s10 + $0x1b0] sm:$0xff] }
 0x716   :  { %v14393_v19 = vpop.eup %14392  ;;  %v7187_v27 = vmul.f32 0.5, %v7185_v41  ;;  %v13274_v41 = vcombine.low %v16509_v50, %v16514_v63  ;;  %v7306_v50 = vld [vmem:[%s17627_s10 + $0x158] sm:$0xff] }
 0x717   :  { %8066 = vmatpush2.bf16.msra.mxu0 %v13286_v32  ;;  %8107 = vmatpush2.bf16.msra.mxu1 %v13288_v13  ;;  %v14395_v28 = vpop.eup %14394  ;;  %v7177_v5 = vadd.f32 1.0, %v14393_v19  ;;  %v7201_v13 = vrot.slane %v16019_v33, 6  ;;  %v7314_v19 = vld [vmem:[%s17627_s10 + $0x198] sm:$0xff] }
 0x718   :  { %8067 = vmatprep.subr.bf16.mxu0 %v13279_v24  ;;  %8108 = vmatprep.subr.bf16.mxu1 %v13281_v25  ;;  %v7186_v45 = vadd.f32 1.0, %v14395_v28  ;;  %v7310_v63 = vld [vmem:[%s17627_s10 + $0x178] sm:$0xff] }
 0x719   :  { %v7179_v23 = vmul.f32 0.5, %v7177_v5  ;;  %v7205_v38 = vmul.f32 %v7201_v13, %v7187_v27  ;;  %v7305_v5 = vld [vmem:[%s17627_s10 + $0x150] sm:$0xff]  ;;  %v13261_v13 = vcombine.high %v7306_v50, %v7310_v63 }
 0x71a   :  { %v6121_v35 = vpop.f32.mrf.mxu0  ;;  %v6162_v46 = vpop.f32.mrf.mxu1  ;;  %v7188_v25 = vmul.f32 0.5, %v7186_v45  ;;  %v7309_v27 = vld [vmem:[%s17627_s10 + $0x170] sm:$0xff] }
 0x71b   :  { %v6181_v55 = vrot.slane %v6121_v35, 6  ;;  %8068 = vmatpush2.bf16.msra.mxu0 %v13278_v30  ;;  %8109 = vmatpush2.bf16.msra.mxu1 %v13280_v37  ;;  %v6183_v42 = vrot.slane %v6162_v46, 6  ;;  %v14397_v12 = vpop.eup %14396  ;;  %v7202_v37 = vrot.slane %v16022_v34, 6 }
 0x71c   :  { %v6123_v49 = vpop.f32.mrf.mxu0  ;;  %v6164_v44 = vpop.f32.mrf.mxu1  ;;  %8119 = vmatprep.subr.bf16.mxu0 %v13275_v47  ;;  %8160 = vmatprep.subr.bf16.mxu1 %v13277_v61  ;;  %v7178_v32 = vadd.f32 1.0, %v14397_v12 }
 0x71d   :  { %v6197_v29 = vadd.f32 %v6181_v55, %v15861_v60  ;;  %v6182_v16 = vrot.slane %v6123_v49, 6  ;;  %v6184_v20 = vrot.slane %v6164_v44, 6  ;;  %v6199_v31 = vadd.f32 %v6183_v42, %v16011_v18 }
 0x71e   :  { %v6125_v43 = vpop.f32.mrf.mxu0  ;;  %v6166_v21 = vpop.f32.mrf.mxu1  ;;  %v7180_v47 = vmul.f32 0.5, %v7178_v32  ;;  %v7206_v46 = vmul.f32 %v7202_v37, %v7188_v25  ;;  %v13259_v32 = vcombine.high %v7305_v5, %v7309_v27  ;;  %v7298_v25 = vld [vmem:[%s17627_s10 + $0x118] sm:$0xff]  ;;  %v13260_v37 = vcombine.low %v7306_v50, %v7310_v63  ;;  %v7269_v50 = vld [vmem:[%s17627_s10 + $0x30] sm:$0xff] }
 0x71f   :  { %14398 = vtanh.f32 %v6197_v29  ;;  %v6198_v48 = vadd.f32 %v6182_v16, %v15864_v62  ;;  %v6200_v51 = vadd.f32 %v6184_v20, %v16014_v14  ;;  %v7191_v11 = vmul.f32 0.5, %v6199_v31  ;;  %v7313_v31 = vld [vmem:[%s17627_s10 + $0x190] sm:$0xff]  ;;  %v7266_v63 = vld [vmem:[%s17627_s10 + $0x18] sm:$0xff] }
 0x720   :  { %v6126_v58 = vpop.f32.mrf.mxu0  ;;  %v6167_v0 = vpop.f32.mrf.mxu1  ;;  %v13267_v45 = vcombine.high %v7313_v31, %v7317_v36 }
 0x721   :  { %14400 = vtanh.f32 %v6198_v48  ;;  %v7192_v10 = vmul.f32 0.5, %v6200_v51  ;;  %v7318_v51 = vld [vmem:[%s17627_s10 + $0x1b8] sm:$0xff] }
 0x722   :  { %14402 = vtanh.f32 %v7191_v11  ;;  %v13276_v11 = vcombine.low %v16519_v2, %v16524_v9  ;;  %v13266_v2 = vcombine.low %v7313_v31, %v7317_v36  ;;  %v13268_v9 = vcombine.low %v7314_v19, %v7318_v51 }
 0x723   :  { %14404 = vtanh.f32 %v7192_v10  ;;  %v13269_v10 = vcombine.high %v7314_v19, %v7318_v51  ;;  %v7273_v19 = vld [vmem:[%s17627_s10 + $0x50] sm:$0xff] }
 0x724   :  { %v7277_v51 = vld [vmem:[%s17627_s10 + $0x70] sm:$0xff] }
 0x72c   :  { %v14399_v24 = vpop.eup %14398 }
 0x72d   :  { %v7207_v30 = vmul.f32 %v14399_v24, %v7179_v23  ;;  %v7297_v23 = vld [vmem:[%s17627_s10 + $0x110] sm:$0xff] }
 0x72e   :  { %v14401_v61 = vpop.eup %14400  ;;  %v7301_v24 = vld [vmem:[%s17627_s10 + $0x130] sm:$0xff] }
 0x72f   :  { %v16536_v35 = vadd.f32 %v7207_v30, %v7205_v38  ;;  %v7208_v55 = vmul.f32 %v14401_v61, %v7180_v47  ;;  %v14403_v33 = vpop.eup %14402  ;;  %v7302_v38 = vld [vmem:[%s17627_s10 + $0x138] sm:$0xff]  ;;  %v13258_v30 = vcombine.low %v7305_v5, %v7309_v27  ;;  %v13251_v47 = vcombine.high %v7297_v23, %v7301_v24  ;;  %v7265_v27 = vld [vmem:[%s17627_s10 + $0x10] sm:$0xff] }
 0x730   :  { %v14405_v44 = vpop.eup %14404  ;;  %v7195_v29 = vadd.f32 1.0, %v14403_v33  ;;  %v13253_v61 = vcombine.high %v7298_v25, %v7302_v38  ;;  %v7290_v33 = vld [vmem:[%s17627_s10 + $0xd8] sm:$0xff] }
 0x731   :  { %14406 = vtanh.f32 %v16536_v35  ;;  %v16539_v49 = vadd.f32 %v7208_v55, %v7206_v46  ;;  %v7196_v42 = vadd.f32 1.0, %v14405_v44  ;;  %v7289_v46 = vld [vmem:[%s17627_s10 + $0xd0] sm:$0xff]  ;;  %v7294_v44 = vld [vmem:[%s17627_s10 + $0xf8] sm:$0xff] }
 0x732   :  { %v7197_v16 = vmul.f32 0.5, %v7195_v29  ;;  %v7293_v55 = vld [vmem:[%s17627_s10 + $0xf0] sm:$0xff]  ;;  %v13250_v29 = vcombine.low %v7297_v23, %v7301_v24  ;;  %v13219_v24 = vcombine.high %v7265_v27, %v7269_v50 }
 0x733   :  { %14408 = vtanh.f32 %v16539_v49  ;;  %v7198_v34 = vmul.f32 0.5, %v7196_v42  ;;  %v13252_v42 = vcombine.low %v7298_v25, %v7302_v38  ;;  %v7385_v38 = vld [vmem:[%s17627_s10 + $0x3d0] sm:$0xff] }
 0x73e   :  { %v14407_v43 = vpop.eup %14406 }
 0x73f   :  { %v7213_v21 = vmul.f32 %v14407_v43, %v7197_v16  ;;  %v13243_v16 = vcombine.high %v7289_v46, %v7293_v55  ;;  %v13245_v43 = vcombine.high %v7290_v33, %v7294_v44 }
 0x740   :  { %v14409_v48 = vpop.eup %14408 }
 0x741   :  { %7215 = vst [vmem:[#allocation2] sm:$0xc] %v7213_v21  ;;  %v7214_v20 = vmul.f32 %v14409_v48, %v7198_v34  ;;  %v7261_v58 = vpack.c.bf16 %v7213_v21, %v7213_v21  ;;  %v7281_v21 = vld [vmem:[%s17627_s10 + $0x90] sm:$0xff]  ;;  %v7282_v48 = vld [vmem:[%s17627_s10 + $0x98] sm:$0xff] }
 0x742   :  { %v7285_v34 = vld [vmem:[%s17627_s10 + $0xb0] sm:$0xff] }
 0x743   :  { %7216 = vst [vmem:[#allocation2 + $0x8] sm:$0xc] %v7214_v20  ;;  %v7262_v0 = vpack.c.bf16 %v7214_v20, %v7214_v20  ;;  %v16558_v12 = vrot.slane %v7261_v58, 1  ;;  %v7286_v20 = vld [vmem:[%s17627_s10 + $0xb8] sm:$0xff]  ;;  %v13242_v58 = vcombine.low %v7289_v46, %v7293_v55  ;;  %v13235_v31 = vcombine.high %v7281_v21, %v7285_v34 }
 0x744   :  { %v13237_v36 = vcombine.high %v7282_v48, %v7286_v20  ;;  %v13236_v5 = vcombine.low %v7282_v48, %v7286_v20  ;;  %v7390_v46 = vld [vmem:[%s17627_s10 + $0x3f8] sm:$0xff]  ;;  %v7381_v48 = vld [vmem:[%s17627_s10 + $0x3b0] sm:$0xff] }
 0x745   :  { %v7394_v28 = vrot.slane %v7262_v0, 1  ;;  %v13244_v0 = vcombine.low %v7290_v33, %v7294_v44  ;;  %v13218_v44 = vcombine.low %v7265_v27, %v7269_v50  ;;  %v7378_v20 = vld [vmem:[%s17627_s10 + $0x398] sm:$0xff]  ;;  %v7361_v50 = vld [vmem:[%s17627_s10 + $0x310] sm:$0xff] }
 0x747   :  { %8069 = vmatprep.mubr.bf16.mxu0 %v7394_v28  ;;  %8110 = vmatprep.mubr.bf16.mxu1 %v7394_v28 }
 0x748   :  { %8070 = vmatmul.mubr.bf16.vlgmr.msra.gmra.mxu0 %v16558_v12  ;;  %8111 = vmatmul.mubr.bf16.vlgmr.msra.gmra.mxu1 %v16558_v12 }
 0x749   :  { %8120 = vmatpush1.bf16.msra.mxu0 %v13274_v41  ;;  %8161 = vmatpush1.bf16.msra.mxu1 %v13276_v11  ;;  %v7278_v41 = vld [vmem:[%s17627_s10 + $0x78] sm:$0xff]  ;;  %v13234_v11 = vcombine.low %v7281_v21, %v7285_v34 }
 0x74a   :  { %8151 = vmatprep.mubr.bf16.mxu0 %v7394_v28  ;;  %8192 = vmatprep.mubr.bf16.mxu1 %v7394_v28  ;;  %v7274_v28 = vld [vmem:[%s17627_s10 + $0x58] sm:$0xff] }
 0x74b   :  { %8121 = vmatprep.subr.bf16.mxu0 %v13267_v45  ;;  %8162 = vmatprep.subr.bf16.mxu1 %v13269_v10  ;;  %v13227_v45 = vcombine.high %v7273_v19, %v7277_v51  ;;  %v13229_v10 = vcombine.high %v7274_v28, %v7278_v41  ;;  %v13228_v23 = vcombine.low %v7274_v28, %v7278_v41  ;;  %v7373_v28 = vld [vmem:[%s17627_s10 + $0x370] sm:$0xff]  ;;  %v7370_v41 = vld [vmem:[%s17627_s10 + $0x358] sm:$0xff] }
 0x74d   :  { %8122 = vmatpush1.bf16.msra.mxu0 %v13266_v2  ;;  %8163 = vmatpush1.bf16.msra.mxu1 %v13268_v9  ;;  %v7270_v2 = vld [vmem:[%s17627_s10 + $0x38] sm:$0xff] }
 0x74e   :  { %8123 = vmatprep.subr.bf16.mxu0 %v13259_v32  ;;  %8164 = vmatprep.subr.bf16.mxu1 %v13261_v13  ;;  %v13226_v13 = vcombine.low %v7273_v19, %v7277_v51  ;;  %v13221_v25 = vcombine.high %v7266_v63, %v7270_v2  ;;  %v7369_v51 = vld [vmem:[%s17627_s10 + $0x350] sm:$0xff] }
 0x751   :  { %8124 = vmatpush1.bf16.msra.mxu0 %v13258_v30  ;;  %8165 = vmatpush1.bf16.msra.mxu1 %v13260_v37 }
 0x752   :  { %8125 = vmatprep.subr.bf16.mxu0 %v13251_v47  ;;  %8166 = vmatprep.subr.bf16.mxu1 %v13253_v61  ;;  %v7389_v47 = vld [vmem:[%s17627_s10 + $0x3f0] sm:$0xff]  ;;  %v7386_v61 = vld [vmem:[%s17627_s10 + $0x3d8] sm:$0xff] }
 0x755   :  { %8126 = vmatpush1.bf16.msra.mxu0 %v13250_v29  ;;  %8167 = vmatpush1.bf16.msra.mxu1 %v13252_v42  ;;  %v13220_v29 = vcombine.low %v7266_v63, %v7270_v2  ;;  %v13339_v42 = vcombine.high %v7385_v38, %v7389_v47  ;;  %v7365_v63 = vld [vmem:[%s17627_s10 + $0x330] sm:$0xff]  ;;  %v7362_v2 = vld [vmem:[%s17627_s10 + $0x318] sm:$0xff] }
 0x756   :  { %8127 = vmatprep.subr.bf16.mxu0 %v13243_v16  ;;  %8168 = vmatprep.subr.bf16.mxu1 %v13245_v43  ;;  %v13341_v16 = vcombine.high %v7386_v61, %v7390_v46  ;;  %v7377_v43 = vld [vmem:[%s17627_s10 + $0x390] sm:$0xff] }
 0x759   :  { %8128 = vmatpush1.bf16.msra.mxu0 %v13242_v58  ;;  %8169 = vmatpush1.bf16.msra.mxu1 %v13244_v0  ;;  %v7382_v58 = vld [vmem:[%s17627_s10 + $0x3b8] sm:$0xff]  ;;  %v13338_v0 = vcombine.low %v7385_v38, %v7389_v47  ;;  %v7353_v47 = vld [vmem:[%s17627_s10 + $0x2d0] sm:$0xff] }
 0x75a   :  { %8129 = vmatprep.subr.bf16.mxu0 %v13235_v31  ;;  %8170 = vmatprep.subr.bf16.mxu1 %v13237_v36  ;;  %v13340_v31 = vcombine.low %v7386_v61, %v7390_v46  ;;  %v13331_v36 = vcombine.high %v7377_v43, %v7381_v48  ;;  %v13333_v19 = vcombine.high %v7378_v20, %v7382_v58  ;;  %v7357_v61 = vld [vmem:[%s17627_s10 + $0x2f0] sm:$0xff]  ;;  %v7354_v46 = vld [vmem:[%s17627_s10 + $0x2d8] sm:$0xff] }
 0x75d   :  { %8130 = vmatpush1.bf16.msra.mxu0 %v13234_v11  ;;  %8171 = vmatpush1.bf16.msra.mxu1 %v13236_v5  ;;  %v7374_v11 = vld [vmem:[%s17627_s10 + $0x378] sm:$0xff]  ;;  %v13330_v5 = vcombine.low %v7377_v43, %v7381_v48  ;;  %v7349_v43 = vld [vmem:[%s17627_s10 + $0x2b0] sm:$0xff]  ;;  %v13306_v48 = vcombine.low %v7353_v47, %v7357_v61 }
 0x75e   :  { %v16634_v9 = vpop.f32.mrf.mxu0  ;;  %v16636_v32 = vpop.f32.mrf.mxu1  ;;  %8131 = vmatprep.subr.bf16.mxu0 %v13227_v45  ;;  %8172 = vmatprep.subr.bf16.mxu1 %v13229_v10  ;;  %v13332_v45 = vcombine.low %v7378_v20, %v7382_v58  ;;  %v13323_v10 = vcombine.high %v7369_v51, %v7373_v28  ;;  %v13325_v27 = vcombine.high %v7370_v41, %v7374_v11 }
 0x760   :  { %v16641_v30 = vpop.f32.mrf.mxu0  ;;  %v16643_v37 = vpop.f32.mrf.mxu1 }
 0x761   :  { %8132 = vmatpush1.bf16.msra.mxu0 %v13226_v13  ;;  %8173 = vmatpush1.bf16.msra.mxu1 %v13228_v23  ;;  %v7366_v13 = vld [vmem:[%s17627_s10 + $0x338] sm:$0xff]  ;;  %v13322_v23 = vcombine.low %v7369_v51, %v7373_v28 }
 0x762   :  { %v7015_v55 = vpop.f32.mrf.mxu0  ;;  %v7056_v33 = vpop.f32.mrf.mxu1  ;;  %8133 = vmatprep.subr.bf16.mxu0 %v13219_v24  ;;  %8174 = vmatprep.subr.bf16.mxu1 %v13221_v25  ;;  %v13324_v24 = vcombine.low %v7370_v41, %v7374_v11  ;;  %v13315_v25 = vcombine.high %v7361_v50, %v7365_v63  ;;  %v13317_v38 = vcombine.high %v7362_v2, %v7366_v13  ;;  %v7342_v51 = vld [vmem:[%s17627_s10 + $0x278] sm:$0xff] }
 0x763   :  { %v7358_v55 = vld [vmem:[%s17627_s10 + $0x2f8] sm:$0xff]  ;;  %v13314_v33 = vcombine.low %v7361_v50, %v7365_v63 }
 0x764   :  { %v7016_v21 = vpop.f32.mrf.mxu0  ;;  %v7057_v34 = vpop.f32.mrf.mxu1  ;;  %v13308_v20 = vcombine.low %v7354_v46, %v7358_v55  ;;  %v7334_v50 = vld [vmem:[%s17627_s10 + $0x238] sm:$0xff] }
 0x765   :  { %8134 = vmatpush1.bf16.msra.mxu0 %v13218_v44  ;;  %8175 = vmatpush1.bf16.msra.mxu1 %v13220_v29  ;;  %v13316_v44 = vcombine.low %v7362_v2, %v7366_v13  ;;  %v13307_v29 = vcombine.high %v7353_v47, %v7357_v61  ;;  %v7346_v21 = vld [vmem:[%s17627_s10 + $0x298] sm:$0xff]  ;;  %v8296_v47 = vld [vmem:[#allocation19 + $0x1e8] sm:$0xff] }
 0x766   :  { %8135 = vmatprep.subr.bf16.mxu0 %v13339_v42  ;;  %8176 = vmatprep.subr.bf16.mxu1 %v13341_v16  ;;  %v13309_v42 = vcombine.high %v7354_v46, %v7358_v55  ;;  %v7345_v16 = vld [vmem:[%s17627_s10 + $0x290] sm:$0xff]  ;;  %v7350_v34 = vld [vmem:[%s17627_s10 + $0x2b8] sm:$0xff] }
 0x767   :  { %v13299_v58 = vcombine.high %v7345_v16, %v7349_v43  ;;  %v13298_v28 = vcombine.low %v7345_v16, %v7349_v43  ;;  %v13300_v41 = vcombine.low %v7346_v21, %v7350_v34  ;;  %v8288_v16 = vld [vmem:[#allocation19 + $0x1a8] sm:$0xff] }
 0x769   :  { %8136 = vmatpush2.bf16.msra.mxu0 %v13338_v0  ;;  %8177 = vmatpush2.bf16.msra.mxu1 %v13340_v31  ;;  %v13301_v0 = vcombine.high %v7346_v21, %v7350_v34  ;;  %v7337_v31 = vld [vmem:[%s17627_s10 + $0x250] sm:$0xff] }
 0x76a   :  { %8137 = vmatprep.subr.bf16.mxu0 %v13331_v36  ;;  %8178 = vmatprep.subr.bf16.mxu1 %v13333_v19  ;;  %v7341_v36 = vld [vmem:[%s17627_s10 + $0x270] sm:$0xff]  ;;  %v7338_v19 = vld [vmem:[%s17627_s10 + $0x258] sm:$0xff] }
 0x76b   :  { %v13291_v11 = vcombine.high %v7337_v31, %v7341_v36  ;;  %v13290_v63 = vcombine.low %v7337_v31, %v7341_v36  ;;  %v13292_v2 = vcombine.low %v7338_v19, %v7342_v51  ;;  %v8280_v31 = vld [vmem:[#allocation19 + $0x168] sm:$0xff] }
 0x76d   :  { %8138 = vmatpush2.bf16.msra.mxu0 %v13330_v5  ;;  %8179 = vmatpush2.bf16.msra.mxu1 %v13332_v45  ;;  %v13293_v5 = vcombine.high %v7338_v19, %v7342_v51  ;;  %v7329_v45 = vld [vmem:[%s17627_s10 + $0x210] sm:$0xff] }
 0x76e   :  { %8139 = vmatprep.subr.bf16.mxu0 %v13323_v10  ;;  %8180 = vmatprep.subr.bf16.mxu1 %v13325_v27  ;;  %v7333_v10 = vld [vmem:[%s17627_s10 + $0x230] sm:$0xff]  ;;  %v7330_v27 = vld [vmem:[%s17627_s10 + $0x218] sm:$0xff] }
 0x76f   :  { %v13283_v13 = vcombine.high %v7329_v45, %v7333_v10  ;;  %v13282_v61 = vcombine.low %v7329_v45, %v7333_v10  ;;  %v13284_v46 = vcombine.low %v7330_v27, %v7334_v50  ;;  %v8272_v45 = vld [vmem:[#allocation19 + $0x128] sm:$0xff]  ;;  %v7151_v10 = vrot.slane %v16636_v32, 4 }
 0x770   :  { %v7150_v32 = vrot.slane %v16641_v30, 4 }
 0x771   :  { %8140 = vmatpush2.bf16.msra.mxu0 %v13322_v23  ;;  %8181 = vmatpush2.bf16.msra.mxu1 %v13324_v24  ;;  %v13285_v23 = vcombine.high %v7330_v27, %v7334_v50  ;;  %v8291_v24 = vld [vmem:[#allocation19 + $0x1c0] sm:$0xff] }
 0x772   :  { %8141 = vmatprep.subr.bf16.mxu0 %v13315_v25  ;;  %8182 = vmatprep.subr.bf16.mxu1 %v13317_v38  ;;  %v8295_v25 = vld [vmem:[#allocation19 + $0x1e0] sm:$0xff]  ;;  %v8292_v38 = vld [vmem:[#allocation19 + $0x1c8] sm:$0xff] }
 0x773   :  { %v13399_v55 = vcombine.high %v8291_v24, %v8295_v25  ;;  %v13398_v43 = vcombine.low %v8291_v24, %v8295_v25  ;;  %v13400_v21 = vcombine.low %v8292_v38, %v8296_v47  ;;  %v8263_v24 = vld [vmem:[#allocation19 + $0xe0] sm:$0xff]  ;;  %v8260_v25 = vld [vmem:[#allocation19 + $0xc8] sm:$0xff] }
 0x775   :  { %8142 = vmatpush2.bf16.msra.mxu0 %v13314_v33  ;;  %8183 = vmatpush2.bf16.msra.mxu1 %v13316_v44  ;;  %v13401_v33 = vcombine.high %v8292_v38, %v8296_v47  ;;  %v8283_v44 = vld [vmem:[#allocation19 + $0x180] sm:$0xff]  ;;  %v8264_v38 = vld [vmem:[#allocation19 + $0xe8] sm:$0xff]  ;;  %v7167_v47 = vadd.f32 %v7151_v10, %v16262_v26 }
 0x776   :  { %8143 = vmatprep.subr.bf16.mxu0 %v13307_v29  ;;  %8184 = vmatprep.subr.bf16.mxu1 %v13309_v42  ;;  %v8287_v29 = vld [vmem:[#allocation19 + $0x1a0] sm:$0xff]  ;;  %v8284_v42 = vld [vmem:[#allocation19 + $0x188] sm:$0xff] }
 0x777   :  { %v13391_v34 = vcombine.high %v8283_v44, %v8287_v29  ;;  %v13390_v36 = vcombine.low %v8283_v44, %v8287_v29  ;;  %v13392_v19 = vcombine.low %v8284_v42, %v8288_v16  ;;  %v8251_v44 = vld [vmem:[#allocation19 + $0x80] sm:$0xff] }
 0x778   :  { %v8255_v29 = vld [vmem:[#allocation19 + $0xa0] sm:$0xff] }
 0x779   :  { %8144 = vmatpush2.bf16.msra.mxu0 %v13306_v48  ;;  %8185 = vmatpush2.bf16.msra.mxu1 %v13308_v20  ;;  %v13393_v48 = vcombine.high %v8284_v42, %v8288_v16  ;;  %v8275_v20 = vld [vmem:[#allocation19 + $0x140] sm:$0xff]  ;;  %v8252_v42 = vld [vmem:[#allocation19 + $0x88] sm:$0xff] }
 0x77a   :  { %8145 = vmatprep.subr.bf16.mxu0 %v13299_v58  ;;  %8186 = vmatprep.subr.bf16.mxu1 %v13301_v0  ;;  %v8279_v58 = vld [vmem:[#allocation19 + $0x160] sm:$0xff]  ;;  %v8276_v0 = vld [vmem:[#allocation19 + $0x148] sm:$0xff] }
 0x77b   :  { %v13383_v51 = vcombine.high %v8275_v20, %v8279_v58  ;;  %v13382_v27 = vcombine.low %v8275_v20, %v8279_v58  ;;  %v13384_v50 = vcombine.low %v8276_v0, %v8280_v31  ;;  %v8256_v16 = vld [vmem:[#allocation19 + $0xa8] sm:$0xff]  ;;  %v13359_v20 = vcombine.high %v8251_v44, %v8255_v29  ;;  %v8235_v10 = vld [vmem:[#allocation19] sm:$0xff] }
 0x77c   :  { %v13361_v58 = vcombine.high %v8252_v42, %v8256_v16 }
 0x77d   :  { %8146 = vmatpush2.bf16.msra.mxu0 %v13298_v28  ;;  %8187 = vmatpush2.bf16.msra.mxu1 %v13300_v41  ;;  %v13385_v28 = vcombine.high %v8276_v0, %v8280_v31  ;;  %v8267_v41 = vld [vmem:[#allocation19 + $0x100] sm:$0xff] }
 0x77e   :  { %8147 = vmatprep.subr.bf16.mxu0 %v13291_v11  ;;  %8188 = vmatprep.subr.bf16.mxu1 %v13293_v5  ;;  %v8271_v11 = vld [vmem:[#allocation19 + $0x120] sm:$0xff]  ;;  %v8268_v5 = vld [vmem:[#allocation19 + $0x108] sm:$0xff] }
 0x77f   :  { %v8243_v0 = vld [vmem:[#allocation19 + $0x40] sm:$0xff] }
 0x781   :  { %8148 = vmatpush2.bf16.msra.mxu0 %v13290_v63  ;;  %8189 = vmatpush2.bf16.msra.mxu1 %v13292_v2  ;;  %v13375_v63 = vcombine.high %v8267_v41, %v8271_v11  ;;  %v13377_v2 = vcombine.high %v8268_v5, %v8272_v45 }
 0x782   :  { %8149 = vmatprep.subr.bf16.mxu0 %v13283_v13  ;;  %8190 = vmatprep.subr.bf16.mxu1 %v13285_v23  ;;  %v8259_v13 = vld [vmem:[#allocation19 + $0xc0] sm:$0xff]  ;;  %v7152_v23 = vrot.slane %v16643_v37, 4 }
 0x783   :  { %v13366_v30 = vcombine.low %v8259_v13, %v8263_v24 }
 0x784   :  { %v7168_v37 = vadd.f32 %v7152_v23, %v16266_v54 }
 0x785   :  { %8150 = vmatpush2.bf16.msra.mxu0 %v13282_v61  ;;  %8191 = vmatpush2.bf16.msra.mxu1 %v13284_v46  ;;  %v13374_v61 = vcombine.low %v8267_v41, %v8271_v11  ;;  %v13376_v46 = vcombine.low %v8268_v5, %v8272_v45  ;;  %v13358_v41 = vcombine.low %v8251_v44, %v8255_v29 }
 0x786   :  { %9009 = vmatprep.subr.bf16.mxu0 %v13399_v55  ;;  %9050 = vmatprep.subr.bf16.mxu1 %v13401_v33  ;;  %v13367_v55 = vcombine.high %v8259_v13, %v8263_v24  ;;  %v13369_v33 = vcombine.high %v8260_v25, %v8264_v38  ;;  %v7226_v31 = vmul.f32 0.5, %v7168_v37  ;;  %v13360_v11 = vcombine.low %v8252_v42, %v8256_v16 }
 0x788   :  { %8152 = vmatmul.mubr.bf16.vlgmr.msra.gmra.mxu0 %v16558_v12  ;;  %8193 = vmatmul.mubr.bf16.vlgmr.msra.gmra.mxu1 %v16558_v12  ;;  %v7149_v12 = vrot.slane %v16634_v9, 4 }
 0x789   :  { %9010 = vmatpush1.bf16.msra.mxu0 %v13398_v43  ;;  %9051 = vmatpush1.bf16.msra.mxu1 %v13400_v21  ;;  %v7225_v43 = vmul.f32 0.5, %v7167_v47  ;;  %v7166_v21 = vadd.f32 %v7150_v32, %v16095_v39  ;;  %v8355_v47 = vld [vmem:[#allocation19 + $0x3c0] sm:$0xff] }
 0x78a   :  { %9011 = vmatprep.subr.bf16.mxu0 %v13391_v34  ;;  %9052 = vmatprep.subr.bf16.mxu1 %v13393_v48  ;;  %v7165_v9 = vadd.f32 %v7149_v12, %v16079_v56  ;;  %v13368_v34 = vcombine.low %v8260_v25, %v8264_v38  ;;  %v8240_v12 = vld [vmem:[#allocation19 + $0x28] sm:$0xff] }
 0x78b   :  { %14410 = vtanh.f32 %v7225_v43 }
 0x78c   :  { %v7217_v48 = vmul.f32 0.5, %v7165_v9  ;;  %v8356_v9 = vld [vmem:[#allocation19 + $0x3c8] sm:$0xff] }
 0x78d   :  { %9012 = vmatpush1.bf16.msra.mxu0 %v13390_v36  ;;  %9053 = vmatpush1.bf16.msra.mxu1 %v13392_v19  ;;  %v8247_v36 = vld [vmem:[#allocation19 + $0x60] sm:$0xff]  ;;  %v8244_v19 = vld [vmem:[#allocation19 + $0x48] sm:$0xff] }
 0x78e   :  { %9013 = vmatprep.subr.bf16.mxu0 %v13383_v51  ;;  %9054 = vmatprep.subr.bf16.mxu1 %v13385_v28  ;;  %v8248_v51 = vld [vmem:[#allocation19 + $0x68] sm:$0xff]  ;;  %v7218_v28 = vmul.f32 0.5, %v7166_v21  ;;  %14412 = vtanh.f32 %v7217_v48  ;;  %v13351_v5 = vcombine.high %v8243_v0, %v8247_v36  ;;  %v13350_v13 = vcombine.low %v8243_v0, %v8247_v36  ;;  %v8347_v48 = vld [vmem:[#allocation19 + $0x380] sm:$0xff] }
 0x78f   :  { %v13353_v45 = vcombine.high %v8244_v19, %v8248_v51  ;;  %14414 = vtanh.f32 %v7226_v31  ;;  %v13352_v23 = vcombine.low %v8244_v19, %v8248_v51  ;;  %v8351_v31 = vld [vmem:[#allocation19 + $0x3a0] sm:$0xff]  ;;  %v8348_v36 = vld [vmem:[#allocation19 + $0x388] sm:$0xff] }
 0x790   :  { %14416 = vtanh.f32 %v7218_v28  ;;  %v8352_v19 = vld [vmem:[#allocation19 + $0x3a8] sm:$0xff] }
 0x791   :  { %9014 = vmatpush1.bf16.msra.mxu0 %v13382_v27  ;;  %9055 = vmatpush1.bf16.msra.mxu1 %v13384_v50  ;;  %v8239_v27 = vld [vmem:[#allocation19 + $0x20] sm:$0xff]  ;;  %v8236_v50 = vld [vmem:[#allocation19 + $0x8] sm:$0xff] }
 0x792   :  { %9015 = vmatprep.subr.bf16.mxu0 %v13375_v63  ;;  %9056 = vmatprep.subr.bf16.mxu1 %v13377_v2  ;;  %v13343_v25 = vcombine.high %v8235_v10, %v8239_v27  ;;  %v13345_v38 = vcombine.high %v8236_v50, %v8240_v12  ;;  %v13342_v16 = vcombine.low %v8235_v10, %v8239_v27  ;;  %v8339_v10 = vld [vmem:[#allocation19 + $0x340] sm:$0xff] }
 0x793   :  { %v13344_v43 = vcombine.low %v8236_v50, %v8240_v12  ;;  %v8343_v12 = vld [vmem:[#allocation19 + $0x360] sm:$0xff] }
 0x795   :  { %9016 = vmatpush1.bf16.msra.mxu0 %v13374_v61  ;;  %9057 = vmatpush1.bf16.msra.mxu1 %v13376_v46  ;;  %v8359_v46 = vld [vmem:[#allocation19 + $0x3e0] sm:$0xff] }
 0x796   :  { %9017 = vmatprep.subr.bf16.mxu0 %v13367_v55  ;;  %9058 = vmatprep.subr.bf16.mxu1 %v13369_v33  ;;  %v8360_v55 = vld [vmem:[#allocation19 + $0x3e8] sm:$0xff] }
 0x798   :  { %v14411_v28 = vpop.eup %14410 }
 0x799   :  { %9018 = vmatpush1.bf16.msra.mxu0 %v13366_v30  ;;  %9059 = vmatpush1.bf16.msra.mxu1 %v13368_v34  ;;  %v13463_v30 = vcombine.high %v8355_v47, %v8359_v46  ;;  %v13465_v34 = vcombine.high %v8356_v9, %v8360_v55 }
 0x79a   :  { %9019 = vmatprep.subr.bf16.mxu0 %v13359_v20  ;;  %9060 = vmatprep.subr.bf16.mxu1 %v13361_v58 }
 0x79b   :  { %v14413_v27 = vpop.eup %14412 }
 0x79d   :  { %9020 = vmatpush1.bf16.msra.mxu0 %v13358_v41  ;;  %9061 = vmatpush1.bf16.msra.mxu1 %v13360_v11  ;;  %v13462_v41 = vcombine.low %v8355_v47, %v8359_v46  ;;  %v13464_v11 = vcombine.low %v8356_v9, %v8360_v55  ;;  %v8331_v9 = vld [vmem:[#allocation19 + $0x300] sm:$0xff] }
 0x79e   :  { %v7093_v63 = vpop.f32.mrf.mxu0  ;;  %v7134_v2 = vpop.f32.mrf.mxu1  ;;  %9021 = vmatprep.subr.bf16.mxu0 %v13351_v5  ;;  %9062 = vmatprep.subr.bf16.mxu1 %v13353_v45  ;;  %v13455_v5 = vcombine.high %v8347_v48, %v8351_v31  ;;  %v13457_v45 = vcombine.high %v8348_v36, %v8352_v19 }
 0x79f   :  { %v7153_v24 = vrot.slane %v7093_v63, 4  ;;  %v7155_v44 = vrot.slane %v7134_v2, 4  ;;  %v8340_v63 = vld [vmem:[#allocation19 + $0x348] sm:$0xff] }
 0x7a0   :  { %v7095_v32 = vpop.f32.mrf.mxu0  ;;  %v7136_v61 = vpop.f32.mrf.mxu1  ;;  %v8344_v2 = vld [vmem:[#allocation19 + $0x368] sm:$0xff] }
 0x7a1   :  { %v7169_v33 = vadd.f32 %v7153_v24, %v16142_v7  ;;  %v7154_v37 = vrot.slane %v7095_v32, 4  ;;  %9022 = vmatpush1.bf16.msra.mxu0 %v13350_v13  ;;  %9063 = vmatpush1.bf16.msra.mxu1 %v13352_v23  ;;  %v7156_v20 = vrot.slane %v7136_v61, 4  ;;  %v7171_v51 = vadd.f32 %v7155_v44, %v16277_v59  ;;  %v14415_v13 = vpop.eup %14414  ;;  %v8335_v44 = vld [vmem:[#allocation19 + $0x320] sm:$0xff] }
 0x7a2   :  { %v7097_v29 = vpop.f32.mrf.mxu0  ;;  %v7138_v42 = vpop.f32.mrf.mxu1  ;;  %9023 = vmatprep.subr.bf16.mxu0 %v13343_v25  ;;  %9064 = vmatprep.subr.bf16.mxu1 %v13345_v38  ;;  %v7229_v23 = vadd.f32 1.0, %v14411_v28  ;;  %v13454_v25 = vcombine.low %v8347_v48, %v8351_v31  ;;  %v13456_v38 = vcombine.low %v8348_v36, %v8352_v19  ;;  %v7221_v32 = vadd.f32 1.0, %v14413_v27  ;;  %v8327_v36 = vld [vmem:[#allocation19 + $0x2e0] sm:$0xff]  ;;  %v8324_v19 = vld [vmem:[#allocation19 + $0x2c8] sm:$0xff] }
 0x7a3   :  { %14418 = vtanh.f32 %v7169_v33  ;;  %v7170_v21 = vadd.f32 %v7154_v37, %v16145_v40  ;;  %v7172_v50 = vadd.f32 %v7156_v20, %v16280_v8  ;;  %v7235_v24 = vmul.f32 0.5, %v7171_v51  ;;  %v14417_v47 = vpop.eup %14416  ;;  %v8332_v37 = vld [vmem:[#allocation19 + $0x308] sm:$0xff] }
 0x7a4   :  { %v7098_v58 = vpop.f32.mrf.mxu0  ;;  %v7139_v0 = vpop.f32.mrf.mxu1  ;;  %v13447_v61 = vcombine.high %v8339_v10, %v8343_v12  ;;  %v13449_v46 = vcombine.high %v8340_v63, %v8344_v2  ;;  %v7230_v55 = vadd.f32 1.0, %v14415_v13  ;;  %v8336_v29 = vld [vmem:[#allocation19 + $0x328] sm:$0xff]  ;;  %v7231_v42 = vmul.f32 0.5, %v7229_v23  ;;  %v8319_v23 = vld [vmem:[#allocation19 + $0x2a0] sm:$0xff] }
 0x7a5   :  { %14420 = vtanh.f32 %v7170_v21  ;;  %9024 = vmatpush1.bf16.msra.mxu0 %v13342_v16  ;;  %9065 = vmatpush1.bf16.msra.mxu1 %v13344_v43  ;;  %v7236_v33 = vmul.f32 0.5, %v7172_v50  ;;  %v7222_v16 = vadd.f32 1.0, %v14417_v47  ;;  %v13446_v43 = vcombine.low %v8339_v10, %v8343_v12  ;;  %v8323_v58 = vld [vmem:[#allocation19 + $0x2c0] sm:$0xff]  ;;  %v8328_v51 = vld [vmem:[#allocation19 + $0x2e8] sm:$0xff] }
 0x7a6   :  { %9025 = vmatprep.subr.bf16.mxu0 %v13463_v30  ;;  %9066 = vmatprep.subr.bf16.mxu1 %v13465_v34  ;;  %14422 = vtanh.f32 %v7235_v24  ;;  %v13448_v21 = vcombine.low %v8340_v63, %v8344_v2  ;;  %v7223_v30 = vmul.f32 0.5, %v7221_v32  ;;  %v7245_v34 = vrot.slane %v16285_v15, 2  ;;  %v8315_v63 = vld [vmem:[#allocation19 + $0x280] sm:$0xff]  ;;  %v8316_v24 = vld [vmem:[#allocation19 + $0x288] sm:$0xff] }
 0x7a7   :  { %v13439_v48 = vcombine.high %v8331_v9, %v8335_v44  ;;  %v13441_v20 = vcombine.high %v8332_v37, %v8336_v29  ;;  %v7232_v31 = vmul.f32 0.5, %v7230_v55  ;;  %14424 = vtanh.f32 %v7236_v33  ;;  %v8308_v55 = vld [vmem:[#allocation19 + $0x248] sm:$0xff] }
 0x7a8   :  { %v7249_v28 = vmul.f32 %v7245_v34, %v7231_v42  ;;  %v13440_v15 = vcombine.low %v8332_v37, %v8336_v29  ;;  %v13431_v50 = vcombine.high %v8323_v58, %v8327_v36  ;;  %v13433_v12 = vcombine.high %v8324_v19, %v8328_v51  ;;  %v8312_v33 = vld [vmem:[#allocation19 + $0x268] sm:$0xff] }
 0x7a9   :  { %9026 = vmatpush2.bf16.msra.mxu0 %v13462_v41  ;;  %9067 = vmatpush2.bf16.msra.mxu1 %v13464_v11  ;;  %v7224_v11 = vmul.f32 0.5, %v7222_v16  ;;  %v13432_v47 = vcombine.low %v8324_v19, %v8328_v51  ;;  %v13423_v32 = vcombine.high %v8315_v63, %v8319_v23  ;;  %v13422_v37 = vcombine.low %v8315_v63, %v8319_v23  ;;  %v8304_v34 = vld [vmem:[#allocation19 + $0x228] sm:$0xff]  ;;  %v8293_v19 = vld [vmem:[#allocation19 + $0x1d0] sm:$0xff] }
 0x7aa   :  { %9027 = vmatprep.subr.bf16.mxu0 %v13455_v5  ;;  %9068 = vmatprep.subr.bf16.mxu1 %v13457_v45  ;;  %v7246_v5 = vrot.slane %v16288_v22, 2  ;;  %v13438_v45 = vcombine.low %v8331_v9, %v8335_v44  ;;  %v8311_v9 = vld [vmem:[#allocation19 + $0x260] sm:$0xff]  ;;  %v13417_v16 = vcombine.high %v8308_v55, %v8312_v33 }
 0x7ac   :  { %v7250_v2 = vmul.f32 %v7246_v5, %v7232_v31 }
 0x7ad   :  { %9028 = vmatpush2.bf16.msra.mxu0 %v13454_v25  ;;  %9069 = vmatpush2.bf16.msra.mxu1 %v13456_v38  ;;  %v8320_v25 = vld [vmem:[#allocation19 + $0x2a8] sm:$0xff]  ;;  %v13430_v38 = vcombine.low %v8323_v58, %v8327_v36 }
 0x7ae   :  { %9029 = vmatprep.subr.bf16.mxu0 %v13447_v61  ;;  %9070 = vmatprep.subr.bf16.mxu1 %v13449_v46  ;;  %v13425_v61 = vcombine.high %v8316_v24, %v8320_v25  ;;  %v8307_v46 = vld [vmem:[#allocation19 + $0x240] sm:$0xff]  ;;  %v13424_v29 = vcombine.low %v8316_v24, %v8320_v25 }
 0x7af   :  { %v13415_v42 = vcombine.high %v8307_v46, %v8311_v9  ;;  %v13414_v58 = vcombine.low %v8307_v46, %v8311_v9 }
 0x7b0   :  { %v14419_v0 = vpop.eup %14418 }
 0x7b1   :  { %v7251_v41 = vmul.f32 %v14419_v0, %v7223_v30  ;;  %9030 = vmatpush2.bf16.msra.mxu0 %v13446_v43  ;;  %9071 = vmatpush2.bf16.msra.mxu1 %v13448_v21  ;;  %v8299_v43 = vld [vmem:[#allocation19 + $0x200] sm:$0xff]  ;;  %v8300_v30 = vld [vmem:[#allocation19 + $0x208] sm:$0xff]  ;;  %v13416_v0 = vcombine.low %v8308_v55, %v8312_v33 }
 0x7b2   :  { %v14421_v10 = vpop.eup %14420  ;;  %9031 = vmatprep.subr.bf16.mxu0 %v13439_v48  ;;  %9072 = vmatprep.subr.bf16.mxu1 %v13441_v20  ;;  %v8303_v21 = vld [vmem:[#allocation19 + $0x220] sm:$0xff]  ;;  %v13409_v36 = vcombine.high %v8300_v30, %v8304_v34 }
 0x7b3   :  { %v16754_v27 = vadd.f32 %v7251_v41, %v7249_v28  ;;  %v7252_v13 = vmul.f32 %v14421_v10, %v7224_v11  ;;  %v14423_v44 = vpop.eup %14422  ;;  %v13407_v31 = vcombine.high %v8299_v43, %v8303_v21  ;;  %v8297_v28 = vld [vmem:[#allocation19 + $0x1f0] sm:$0xff]  ;;  %v8294_v41 = vld [vmem:[#allocation19 + $0x1d8] sm:$0xff]  ;;  %v13408_v10 = vcombine.low %v8300_v30, %v8304_v34 }
 0x7b4   :  { %v14425_v48 = vpop.eup %14424  ;;  %v7239_v20 = vadd.f32 1.0, %v14423_v44  ;;  %v8298_v11 = vld [vmem:[#allocation19 + $0x1f8] sm:$0xff]  ;;  %v13402_v9 = vcombine.low %v8293_v19, %v8297_v28  ;;  %v8277_v44 = vld [vmem:[#allocation19 + $0x150] sm:$0xff] }
 0x7b5   :  { %14426 = vtanh.f32 %v16754_v27  ;;  %v16757_v22 = vadd.f32 %v7252_v13, %v7250_v2  ;;  %9032 = vmatpush2.bf16.msra.mxu0 %v13438_v45  ;;  %9073 = vmatpush2.bf16.msra.mxu1 %v13440_v15  ;;  %v7240_v51 = vadd.f32 1.0, %v14425_v48  ;;  %v13406_v15 = vcombine.low %v8299_v43, %v8303_v21  ;;  %v8282_v43 = vld [vmem:[#allocation19 + $0x178] sm:$0xff] }
 0x7b6   :  { %9033 = vmatprep.subr.bf16.mxu0 %v13431_v50  ;;  %9074 = vmatprep.subr.bf16.mxu1 %v13433_v12  ;;  %v7241_v5 = vmul.f32 0.5, %v7239_v20  ;;  %v13403_v12 = vcombine.high %v8293_v19, %v8297_v28  ;;  %v13405_v63 = vcombine.high %v8294_v41, %v8298_v11  ;;  %v13404_v55 = vcombine.low %v8294_v41, %v8298_v11  ;;  %v8269_v20 = vld [vmem:[#allocation19 + $0x110] sm:$0xff] }
 0x7b7   :  { %14428 = vtanh.f32 %v16757_v22  ;;  %v7242_v2 = vmul.f32 0.5, %v7240_v51  ;;  %v8261_v41 = vld [vmem:[#allocation19 + $0xd0] sm:$0xff] }
 0x7b8   :  { %v8265_v11 = vld [vmem:[#allocation19 + $0xf0] sm:$0xff] }
 0x7b9   :  { %9034 = vmatpush2.bf16.msra.mxu0 %v13430_v38  ;;  %9075 = vmatpush2.bf16.msra.mxu1 %v13432_v47  ;;  %v8285_v38 = vld [vmem:[#allocation19 + $0x190] sm:$0xff] }
 0x7ba   :  { %9035 = vmatprep.subr.bf16.mxu0 %v13423_v32  ;;  %9076 = vmatprep.subr.bf16.mxu1 %v13425_v61  ;;  %v8289_v47 = vld [vmem:[#allocation19 + $0x1b0] sm:$0xff]  ;;  %v8286_v32 = vld [vmem:[#allocation19 + $0x198] sm:$0xff] }
 0x7bb   :  { %v8290_v61 = vld [vmem:[#allocation19 + $0x1b8] sm:$0xff]  ;;  %v13394_v21 = vcombine.low %v8285_v38, %v8289_v47 }
 0x7bc   :  { %v13396_v30 = vcombine.low %v8286_v32, %v8290_v61 }
 0x7bd   :  { %9036 = vmatpush2.bf16.msra.mxu0 %v13422_v37  ;;  %9077 = vmatpush2.bf16.msra.mxu1 %v13424_v29  ;;  %v13395_v37 = vcombine.high %v8285_v38, %v8289_v47  ;;  %v13397_v29 = vcombine.high %v8286_v32, %v8290_v61  ;;  %v8245_v32 = vld [vmem:[#allocation19 + $0x50] sm:$0xff] }
 0x7be   :  { %9037 = vmatprep.subr.bf16.mxu0 %v13415_v42  ;;  %9078 = vmatprep.subr.bf16.mxu1 %v13417_v16  ;;  %v8281_v42 = vld [vmem:[#allocation19 + $0x170] sm:$0xff]  ;;  %v8278_v16 = vld [vmem:[#allocation19 + $0x158] sm:$0xff] }
 0x7bf   :  { %v13387_v34 = vcombine.high %v8277_v44, %v8281_v42  ;;  %v13389_v48 = vcombine.high %v8278_v16, %v8282_v43  ;;  %v13388_v19 = vcombine.low %v8278_v16, %v8282_v43  ;;  %v8249_v61 = vld [vmem:[#allocation19 + $0x70] sm:$0xff]  ;;  %v8238_v43 = vld [vmem:[#allocation19 + $0x18] sm:$0xff] }
 0x7c0   :  { %v8241_v16 = vld [vmem:[#allocation19 + $0x30] sm:$0xff] }
 0x7c1   :  { %9038 = vmatpush2.bf16.msra.mxu0 %v13414_v58  ;;  %9079 = vmatpush2.bf16.msra.mxu1 %v13416_v0  ;;  %v8273_v58 = vld [vmem:[#allocation19 + $0x130] sm:$0xff]  ;;  %v8270_v0 = vld [vmem:[#allocation19 + $0x118] sm:$0xff] }
 0x7c2   :  { %v14427_v45 = vpop.eup %14426  ;;  %9039 = vmatprep.subr.bf16.mxu0 %v13407_v31  ;;  %9080 = vmatprep.subr.bf16.mxu1 %v13409_v36  ;;  %v8274_v31 = vld [vmem:[#allocation19 + $0x138] sm:$0xff]  ;;  %v13386_v36 = vcombine.low %v8277_v44, %v8281_v42  ;;  %v13379_v51 = vcombine.high %v8269_v20, %v8273_v58  ;;  %v8237_v42 = vld [vmem:[#allocation19 + $0x10] sm:$0xff] }
 0x7c3   :  { %v7257_v50 = vmul.f32 %v14427_v45, %v7241_v5  ;;  %v13381_v28 = vcombine.high %v8270_v0, %v8274_v31  ;;  %v8262_v5 = vld [vmem:[#allocation19 + $0xd8] sm:$0xff] }
 0x7c4   :  { %v14429_v13 = vpop.eup %14428  ;;  %v8266_v45 = vld [vmem:[#allocation19 + $0xf8] sm:$0xff] }
 0x7c5   :  { %7259 = vst [vmem:[#allocation3 + $0x8] sm:$0x30] %v7257_v50  ;;  %v7258_v23 = vmul.f32 %v14429_v13, %v7242_v2  ;;  %9040 = vmatpush2.bf16.msra.mxu0 %v13406_v15  ;;  %9081 = vmatpush2.bf16.msra.mxu1 %v13408_v10  ;;  %v8233_v24 = vpack.c.bf16 %v7257_v50, %v7257_v50  ;;  %v8257_v2 = vld [vmem:[#allocation19 + $0xb0] sm:$0xff]  ;;  %v8254_v13 = vld [vmem:[#allocation19 + $0x98] sm:$0xff] }
 0x7c6   :  { %9091 = vmatprep.subr.bf16.mxu0 %v13403_v12  ;;  %9132 = vmatprep.subr.bf16.mxu1 %v13405_v63  ;;  %v13378_v15 = vcombine.low %v8269_v20, %v8273_v58  ;;  %v13380_v10 = vcombine.low %v8270_v0, %v8274_v31  ;;  %v13371_v50 = vcombine.high %v8261_v41, %v8265_v11  ;;  %v8253_v63 = vld [vmem:[#allocation19 + $0x90] sm:$0xff]  ;;  %v8358_v31 = vld [vmem:[#allocation19 + $0x3d8] sm:$0xff] }
 0x7c7   :  { %7260 = vst [vmem:[#allocation3] sm:$0x30] %v7258_v23  ;;  %v8234_v25 = vpack.c.bf16 %v7258_v23, %v7258_v23  ;;  %v16760_v33 = vrot.slane %v8233_v24, 2  ;;  %v13373_v12 = vcombine.high %v8262_v5, %v8266_v45  ;;  %v8258_v23 = vld [vmem:[#allocation19 + $0xb8] sm:$0xff]  ;;  %v13370_v24 = vcombine.low %v8261_v41, %v8265_v11  ;;  %v8357_v58 = vld [vmem:[#allocation19 + $0x3d0] sm:$0xff] }
 0x7c8   :  { %v13363_v38 = vcombine.high %v8253_v63, %v8257_v2  ;;  %v13365_v47 = vcombine.high %v8254_v13, %v8258_v23  ;;  %v13364_v44 = vcombine.low %v8254_v13, %v8258_v23  ;;  %v8361_v0 = vld [vmem:[#allocation19 + $0x3f0] sm:$0xff]  ;;  %v8342_v23 = vld [vmem:[#allocation19 + $0x358] sm:$0xff] }
 0x7c9   :  { %v8366_v46 = vrot.slane %v8234_v25, 2  ;;  %v13372_v25 = vcombine.low %v8262_v5, %v8266_v45  ;;  %v8349_v11 = vld [vmem:[#allocation19 + $0x390] sm:$0xff]  ;;  %v8350_v45 = vld [vmem:[#allocation19 + $0x398] sm:$0xff] }
 0x7ca   :  { %v8353_v5 = vld [vmem:[#allocation19 + $0x3b0] sm:$0xff] }
 0x7cb   :  { %9041 = vmatprep.mubr.bf16.mxu0 %v8366_v46  ;;  %9082 = vmatprep.mubr.bf16.mxu1 %v8366_v46  ;;  %v8345_v13 = vld [vmem:[#allocation19 + $0x370] sm:$0xff] }
 0x7cc   :  { %9042 = vmatmul.mubr.bf16.vlgmr.msra.gmra.mxu0 %v16760_v33  ;;  %9083 = vmatmul.mubr.bf16.vlgmr.msra.gmra.mxu1 %v16760_v33 }
 0x7cd   :  { %9092 = vmatpush1.bf16.msra.mxu0 %v13402_v9  ;;  %9133 = vmatpush1.bf16.msra.mxu1 %v13404_v55  ;;  %v8250_v9 = vld [vmem:[#allocation19 + $0x78] sm:$0xff]  ;;  %v13362_v55 = vcombine.low %v8253_v63, %v8257_v2  ;;  %v8341_v2 = vld [vmem:[#allocation19 + $0x350] sm:$0xff] }
 0x7ce   :  { %9123 = vmatprep.mubr.bf16.mxu0 %v8366_v46  ;;  %9164 = vmatprep.mubr.bf16.mxu1 %v8366_v46  ;;  %v8246_v46 = vld [vmem:[#allocation19 + $0x58] sm:$0xff] }
 0x7cf   :  { %9093 = vmatprep.subr.bf16.mxu0 %v13395_v37  ;;  %9134 = vmatprep.subr.bf16.mxu1 %v13397_v29  ;;  %v13355_v37 = vcombine.high %v8245_v32, %v8249_v61  ;;  %v13357_v29 = vcombine.high %v8246_v46, %v8250_v9 }
 0x7d1   :  { %9094 = vmatpush1.bf16.msra.mxu0 %v13394_v21  ;;  %9135 = vmatpush1.bf16.msra.mxu1 %v13396_v30  ;;  %v8242_v21 = vld [vmem:[#allocation19 + $0x38] sm:$0xff]  ;;  %v13354_v30 = vcombine.low %v8245_v32, %v8249_v61  ;;  %v8333_v61 = vld [vmem:[#allocation19 + $0x310] sm:$0xff] }
 0x7d2   :  { %9095 = vmatprep.subr.bf16.mxu0 %v13387_v34  ;;  %9136 = vmatprep.subr.bf16.mxu1 %v13389_v48  ;;  %v13356_v34 = vcombine.low %v8246_v46, %v8250_v9  ;;  %v13347_v48 = vcombine.high %v8237_v42, %v8241_v16  ;;  %v13349_v20 = vcombine.high %v8238_v43, %v8242_v21  ;;  %v8337_v46 = vld [vmem:[#allocation19 + $0x330] sm:$0xff]  ;;  %v8334_v9 = vld [vmem:[#allocation19 + $0x318] sm:$0xff] }
 0x7d5   :  { %9096 = vmatpush1.bf16.msra.mxu0 %v13386_v36  ;;  %9137 = vmatpush1.bf16.msra.mxu1 %v13388_v19  ;;  %v8362_v36 = vld [vmem:[#allocation19 + $0x3f8] sm:$0xff]  ;;  %v13346_v19 = vcombine.low %v8237_v42, %v8241_v16  ;;  %v8325_v16 = vld [vmem:[#allocation19 + $0x2d0] sm:$0xff] }
 0x7d6   :  { %9097 = vmatprep.subr.bf16.mxu0 %v13379_v51  ;;  %9138 = vmatprep.subr.bf16.mxu1 %v13381_v28  ;;  %v13348_v51 = vcombine.low %v8238_v43, %v8242_v21  ;;  %v13467_v28 = vcombine.high %v8357_v58, %v8361_v0  ;;  %v13469_v41 = vcombine.high %v8358_v31, %v8362_v36  ;;  %v8329_v43 = vld [vmem:[#allocation19 + $0x2f0] sm:$0xff]  ;;  %v8326_v21 = vld [vmem:[#allocation19 + $0x2d8] sm:$0xff] }
 0x7d9   :  { %9098 = vmatpush1.bf16.msra.mxu0 %v13378_v15  ;;  %9139 = vmatpush1.bf16.msra.mxu1 %v13380_v10  ;;  %v8354_v15 = vld [vmem:[#allocation19 + $0x3b8] sm:$0xff]  ;;  %v13466_v10 = vcombine.low %v8357_v58, %v8361_v0  ;;  %v8317_v0 = vld [vmem:[#allocation19 + $0x290] sm:$0xff] }
 0x7da   :  { %9099 = vmatprep.subr.bf16.mxu0 %v13371_v50  ;;  %9140 = vmatprep.subr.bf16.mxu1 %v13373_v12  ;;  %v13468_v50 = vcombine.low %v8358_v31, %v8362_v36  ;;  %v13459_v12 = vcombine.high %v8349_v11, %v8353_v5  ;;  %v13461_v63 = vcombine.high %v8350_v45, %v8354_v15  ;;  %v8321_v31 = vld [vmem:[#allocation19 + $0x2b0] sm:$0xff]  ;;  %v8318_v36 = vld [vmem:[#allocation19 + $0x298] sm:$0xff] }
 0x7dd   :  { %9100 = vmatpush1.bf16.msra.mxu0 %v13370_v24  ;;  %9141 = vmatpush1.bf16.msra.mxu1 %v13372_v25  ;;  %v8346_v24 = vld [vmem:[#allocation19 + $0x378] sm:$0xff]  ;;  %v13458_v25 = vcombine.low %v8349_v11, %v8353_v5  ;;  %v8309_v5 = vld [vmem:[#allocation19 + $0x250] sm:$0xff] }
 0x7de   :  { %9101 = vmatprep.subr.bf16.mxu0 %v13363_v38  ;;  %9142 = vmatprep.subr.bf16.mxu1 %v13365_v47  ;;  %v13460_v38 = vcombine.low %v8350_v45, %v8354_v15  ;;  %v13451_v47 = vcombine.high %v8341_v2, %v8345_v13  ;;  %v13453_v32 = vcombine.high %v8342_v23, %v8346_v24  ;;  %v8313_v45 = vld [vmem:[#allocation19 + $0x270] sm:$0xff]  ;;  %v8310_v15 = vld [vmem:[#allocation19 + $0x258] sm:$0xff] }
 0x7e1   :  { %9102 = vmatpush1.bf16.msra.mxu0 %v13362_v55  ;;  %9143 = vmatpush1.bf16.msra.mxu1 %v13364_v44  ;;  %v8338_v55 = vld [vmem:[#allocation19 + $0x338] sm:$0xff]  ;;  %v13450_v44 = vcombine.low %v8341_v2, %v8345_v13  ;;  %v8301_v13 = vld [vmem:[#allocation19 + $0x210] sm:$0xff] }
 0x7e2   :  { %9103 = vmatprep.subr.bf16.mxu0 %v13355_v37  ;;  %9144 = vmatprep.subr.bf16.mxu1 %v13357_v29  ;;  %v13452_v37 = vcombine.low %v8342_v23, %v8346_v24  ;;  %v13443_v29 = vcombine.high %v8333_v61, %v8337_v46  ;;  %v13445_v42 = vcombine.high %v8334_v9, %v8338_v55  ;;  %v8305_v23 = vld [vmem:[#allocation19 + $0x230] sm:$0xff]  ;;  %v8302_v24 = vld [vmem:[#allocation19 + $0x218] sm:$0xff] }
 0x7e5   :  { %9104 = vmatpush1.bf16.msra.mxu0 %v13354_v30  ;;  %9145 = vmatpush1.bf16.msra.mxu1 %v13356_v34  ;;  %v8330_v30 = vld [vmem:[#allocation19 + $0x2f8] sm:$0xff]  ;;  %v13442_v34 = vcombine.low %v8333_v61, %v8337_v46 }
 0x7e6   :  { %9105 = vmatprep.subr.bf16.mxu0 %v13347_v48  ;;  %9146 = vmatprep.subr.bf16.mxu1 %v13349_v20  ;;  %v13444_v48 = vcombine.low %v8334_v9, %v8338_v55  ;;  %v13435_v20 = vcombine.high %v8325_v16, %v8329_v43  ;;  %v13437_v58 = vcombine.high %v8326_v21, %v8330_v30  ;;  %v9351_v46 = vld [vmem:[%s17627_s10 + $0x1c0] sm:$0xff]  ;;  %v9352_v55 = vld [vmem:[%s17627_s10 + $0x1c8] sm:$0xff] }
 0x7e7   :  { %v9355_v9 = vld [vmem:[%s17627_s10 + $0x1e0] sm:$0xff] }
 0x7e9   :  { %9106 = vmatpush1.bf16.msra.mxu0 %v13346_v19  ;;  %9147 = vmatpush1.bf16.msra.mxu1 %v13348_v51  ;;  %v8322_v19 = vld [vmem:[#allocation19 + $0x2b8] sm:$0xff]  ;;  %v13434_v51 = vcombine.low %v8325_v16, %v8329_v43 }
 0x7ea   :  { %9107 = vmatprep.subr.bf16.mxu0 %v13467_v28  ;;  %9148 = vmatprep.subr.bf16.mxu1 %v13469_v41  ;;  %v13436_v28 = vcombine.low %v8326_v21, %v8330_v30  ;;  %v13427_v41 = vcombine.high %v8317_v0, %v8321_v31  ;;  %v13429_v11 = vcombine.high %v8318_v36, %v8322_v19  ;;  %v9343_v43 = vld [vmem:[%s17627_s10 + $0x180] sm:$0xff]  ;;  %v9344_v30 = vld [vmem:[%s17627_s10 + $0x188] sm:$0xff] }
 0x7eb   :  { %v9347_v21 = vld [vmem:[%s17627_s10 + $0x1a0] sm:$0xff] }
 0x7ed   :  { %9108 = vmatpush2.bf16.msra.mxu0 %v13466_v10  ;;  %9149 = vmatpush2.bf16.msra.mxu1 %v13468_v50  ;;  %v8314_v10 = vld [vmem:[#allocation19 + $0x278] sm:$0xff]  ;;  %v13426_v50 = vcombine.low %v8317_v0, %v8321_v31 }
 0x7ee   :  { %9109 = vmatprep.subr.bf16.mxu0 %v13459_v12  ;;  %9150 = vmatprep.subr.bf16.mxu1 %v13461_v63  ;;  %v13428_v12 = vcombine.low %v8318_v36, %v8322_v19  ;;  %v13419_v63 = vcombine.high %v8309_v5, %v8313_v45  ;;  %v13421_v2 = vcombine.high %v8310_v15, %v8314_v10 }
 0x7ef   :  { %v13519_v19 = vcombine.high %v9343_v43, %v9347_v21 }
 0x7f1   :  { %9110 = vmatpush2.bf16.msra.mxu0 %v13458_v25  ;;  %9151 = vmatpush2.bf16.msra.mxu1 %v13460_v38  ;;  %v8306_v25 = vld [vmem:[#allocation19 + $0x238] sm:$0xff]  ;;  %v13418_v38 = vcombine.low %v8309_v5, %v8313_v45  ;;  %v9340_v5 = vld [vmem:[%s17627_s10 + $0x168] sm:$0xff] }
 0x7f2   :  { %9111 = vmatprep.subr.bf16.mxu0 %v13451_v47  ;;  %9152 = vmatprep.subr.bf16.mxu1 %v13453_v32  ;;  %v13420_v47 = vcombine.low %v8310_v15, %v8314_v10  ;;  %v13411_v32 = vcombine.high %v8301_v13, %v8305_v23  ;;  %v13413_v61 = vcombine.high %v8302_v24, %v8306_v25 }
 0x7f3   :  { %v13518_v10 = vcombine.low %v9343_v43, %v9347_v21  ;;  %v9311_v43 = vld [vmem:[%s17627_s10 + $0x80] sm:$0xff] }
 0x7f4   :  { %v9315_v21 = vld [vmem:[%s17627_s10 + $0xa0] sm:$0xff] }
 0x7f5   :  { %9112 = vmatpush2.bf16.msra.mxu0 %v13450_v44  ;;  %9153 = vmatpush2.bf16.msra.mxu1 %v13452_v37  ;;  %v9356_v44 = vld [vmem:[%s17627_s10 + $0x1e8] sm:$0xff]  ;;  %v13410_v37 = vcombine.low %v8301_v13, %v8305_v23  ;;  %v9327_v23 = vld [vmem:[%s17627_s10 + $0x100] sm:$0xff] }
 0x7f6   :  { %9113 = vmatprep.subr.bf16.mxu0 %v13443_v29  ;;  %9154 = vmatprep.subr.bf16.mxu1 %v13445_v42  ;;  %v13412_v29 = vcombine.low %v8302_v24, %v8306_v25  ;;  %v13527_v42 = vcombine.high %v9351_v46, %v9355_v9  ;;  %v13529_v16 = vcombine.high %v9352_v55, %v9356_v44  ;;  %v9328_v24 = vld [vmem:[%s17627_s10 + $0x108] sm:$0xff] }
 0x7f7   :  { %v13528_v0 = vcombine.low %v9352_v55, %v9356_v44  ;;  %v9332_v25 = vld [vmem:[%s17627_s10 + $0x128] sm:$0xff] }
 0x7f8   :  { %v9320_v55 = vld [vmem:[%s17627_s10 + $0xc8] sm:$0xff] }
 0x7f9   :  { %9114 = vmatpush2.bf16.msra.mxu0 %v13442_v34  ;;  %9155 = vmatpush2.bf16.msra.mxu1 %v13444_v48  ;;  %v9348_v34 = vld [vmem:[%s17627_s10 + $0x1a8] sm:$0xff] }
 0x7fa   :  { %9115 = vmatprep.subr.bf16.mxu0 %v13435_v20  ;;  %9156 = vmatprep.subr.bf16.mxu1 %v13437_v58  ;;  %v13526_v58 = vcombine.low %v9351_v46, %v9355_v9  ;;  %v9319_v46 = vld [vmem:[%s17627_s10 + $0xc0] sm:$0xff]  ;;  %v9324_v44 = vld [vmem:[%s17627_s10 + $0xe8] sm:$0xff] }
 0x7fb   :  { %v9323_v9 = vld [vmem:[%s17627_s10 + $0xe0] sm:$0xff] }
 0x7fd   :  { %9116 = vmatpush2.bf16.msra.mxu0 %v13434_v51  ;;  %9157 = vmatpush2.bf16.msra.mxu1 %v13436_v28  ;;  %v13521_v51 = vcombine.high %v9344_v30, %v9348_v34  ;;  %v9335_v28 = vld [vmem:[%s17627_s10 + $0x140] sm:$0xff] }
 0x7fe   :  { %9117 = vmatprep.subr.bf16.mxu0 %v13427_v41  ;;  %9158 = vmatprep.subr.bf16.mxu1 %v13429_v11  ;;  %v9339_v41 = vld [vmem:[%s17627_s10 + $0x160] sm:$0xff]  ;;  %v9336_v11 = vld [vmem:[%s17627_s10 + $0x148] sm:$0xff] }
 0x7ff   :  { %v13513_v13 = vcombine.high %v9336_v11, %v9340_v5 }
 0x801   :  { %9118 = vmatpush2.bf16.msra.mxu0 %v13426_v50  ;;  %9159 = vmatpush2.bf16.msra.mxu1 %v13428_v12  ;;  %v13520_v50 = vcombine.low %v9344_v30, %v9348_v34  ;;  %v9312_v30 = vld [vmem:[%s17627_s10 + $0x88] sm:$0xff] }
 0x802   :  { %9119 = vmatprep.subr.bf16.mxu0 %v13419_v63  ;;  %9160 = vmatprep.subr.bf16.mxu1 %v13421_v2  ;;  %v13511_v2 = vcombine.high %v9335_v28, %v9339_v41  ;;  %v9316_v34 = vld [vmem:[%s17627_s10 + $0xa8] sm:$0xff] }
 0x805   :  { %9120 = vmatpush2.bf16.msra.mxu0 %v13418_v38  ;;  %9161 = vmatpush2.bf16.msra.mxu1 %v13420_v47  ;;  %v13510_v38 = vcombine.low %v9335_v28, %v9339_v41  ;;  %v13512_v47 = vcombine.low %v9336_v11, %v9340_v5  ;;  %v9303_v28 = vld [vmem:[%s17627_s10 + $0x40] sm:$0xff]  ;;  %v9304_v11 = vld [vmem:[%s17627_s10 + $0x48] sm:$0xff] }
 0x806   :  { %9121 = vmatprep.subr.bf16.mxu0 %v13411_v32  ;;  %9162 = vmatprep.subr.bf16.mxu1 %v13413_v61  ;;  %v13505_v61 = vcombine.high %v9328_v24, %v9332_v25  ;;  %v9307_v41 = vld [vmem:[%s17627_s10 + $0x60] sm:$0xff]  ;;  %v9308_v5 = vld [vmem:[%s17627_s10 + $0x68] sm:$0xff] }
 0x808   :  { %v16788_v48 = vpop.f32.mrf.mxu0  ;;  %v16790_v20 = vpop.f32.mrf.mxu1 }
 0x809   :  { %9122 = vmatpush2.bf16.msra.mxu0 %v13410_v37  ;;  %9163 = vmatpush2.bf16.msra.mxu1 %v13412_v29  ;;  %v13504_v29 = vcombine.low %v9328_v24, %v9332_v25 }
 0x80a   :  { %v16792_v31 = vpop.f32.mrf.mxu0  ;;  %v16794_v36 = vpop.f32.mrf.mxu1  ;;  %10069 = vmatprep.subr.bf16.mxu0 %v13527_v42  ;;  %10110 = vmatprep.subr.bf16.mxu1 %v13529_v16  ;;  %v13495_v42 = vcombine.high %v9319_v46, %v9323_v9  ;;  %v13497_v16 = vcombine.high %v9320_v55, %v9324_v44 }
 0x80c   :  { %9124 = vmatmul.mubr.bf16.vlgmr.msra.gmra.mxu0 %v16760_v33  ;;  %9165 = vmatmul.mubr.bf16.vlgmr.msra.gmra.mxu1 %v16760_v33  ;;  %v8075_v45 = vpop.f32.mrf.mxu0  ;;  %v8116_v15 = vpop.f32.mrf.mxu1  ;;  %v9331_v33 = vld [vmem:[%s17627_s10 + $0x120] sm:$0xff] }
 0x80d   :  { %10070 = vmatpush1.bf16.msra.mxu0 %v13526_v58  ;;  %10111 = vmatpush1.bf16.msra.mxu1 %v13528_v0  ;;  %v13503_v32 = vcombine.high %v9327_v23, %v9331_v33  ;;  %v13502_v37 = vcombine.low %v9327_v23, %v9331_v33  ;;  %v13494_v58 = vcombine.low %v9319_v46, %v9323_v9 }
 0x80e   :  { %v8076_v12 = vpop.f32.mrf.mxu0  ;;  %v8117_v63 = vpop.f32.mrf.mxu1  ;;  %10071 = vmatprep.subr.bf16.mxu0 %v13519_v19  ;;  %10112 = vmatprep.subr.bf16.mxu1 %v13521_v51  ;;  %v13496_v0 = vcombine.low %v9320_v55, %v9324_v44  ;;  %v13487_v19 = vcombine.high %v9311_v43, %v9315_v21  ;;  %v13489_v51 = vcombine.high %v9312_v30, %v9316_v34 }
 0x80f   :  { %v13486_v45 = vcombine.low %v9311_v43, %v9315_v21  ;;  %v13488_v15 = vcombine.low %v9312_v30, %v9316_v34  ;;  %v9295_v12 = vld [vmem:[%s17627_s10] sm:$0xff]  ;;  %v13478_v23 = vcombine.low %v9303_v28, %v9307_v41  ;;  %v13480_v33 = vcombine.low %v9304_v11, %v9308_v5 }
 0x810   :  { %v9299_v63 = vld [vmem:[%s17627_s10 + $0x20] sm:$0xff] }
 0x811   :  { %10072 = vmatpush1.bf16.msra.mxu0 %v13518_v10  ;;  %10113 = vmatpush1.bf16.msra.mxu1 %v13520_v50  ;;  %v13479_v10 = vcombine.high %v9303_v28, %v9307_v41  ;;  %v13481_v50 = vcombine.high %v9304_v11, %v9308_v5  ;;  %v13471_v24 = vcombine.high %v9295_v12, %v9299_v63 }
 0x812   :  { %10073 = vmatprep.subr.bf16.mxu0 %v13511_v2  ;;  %10114 = vmatprep.subr.bf16.mxu1 %v13513_v13  ;;  %v9296_v2 = vld [vmem:[%s17627_s10 + $0x8] sm:$0xff]  ;;  %v13470_v46 = vcombine.low %v9295_v12, %v9299_v63 }
 0x813   :  { %v9300_v13 = vld [vmem:[%s17627_s10 + $0x28] sm:$0xff] }
 0x814   :  { %v13473_v25 = vcombine.high %v9296_v2, %v9300_v13  ;;  %v13472_v9 = vcombine.low %v9296_v2, %v9300_v13 }
 0x815   :  { %10074 = vmatpush1.bf16.msra.mxu0 %v13510_v38  ;;  %10115 = vmatpush1.bf16.msra.mxu1 %v13512_v47  ;;  %v9415_v38 = vld [vmem:[%s17627_s10 + $0x3c0] sm:$0xff] }
 0x816   :  { %10075 = vmatprep.subr.bf16.mxu0 %v13503_v32  ;;  %10116 = vmatprep.subr.bf16.mxu1 %v13505_v61  ;;  %v9419_v47 = vld [vmem:[%s17627_s10 + $0x3e0] sm:$0xff]  ;;  %v9416_v32 = vld [vmem:[%s17627_s10 + $0x3c8] sm:$0xff] }
 0x817   :  { %v9420_v61 = vld [vmem:[%s17627_s10 + $0x3e8] sm:$0xff]  ;;  %v13591_v55 = vcombine.high %v9415_v38, %v9419_v47  ;;  %v13590_v43 = vcombine.low %v9415_v38, %v9419_v47 }
 0x818   :  { %v13593_v44 = vcombine.high %v9416_v32, %v9420_v61  ;;  %v13592_v21 = vcombine.low %v9416_v32, %v9420_v61 }
 0x819   :  { %10076 = vmatpush1.bf16.msra.mxu0 %v13502_v37  ;;  %10117 = vmatpush1.bf16.msra.mxu1 %v13504_v29  ;;  %v9407_v37 = vld [vmem:[%s17627_s10 + $0x380] sm:$0xff] }
 0x81a   :  { %10077 = vmatprep.subr.bf16.mxu0 %v13495_v42  ;;  %10118 = vmatprep.subr.bf16.mxu1 %v13497_v16  ;;  %v9411_v29 = vld [vmem:[%s17627_s10 + $0x3a0] sm:$0xff]  ;;  %v9408_v42 = vld [vmem:[%s17627_s10 + $0x388] sm:$0xff] }
 0x81b   :  { %v9412_v16 = vld [vmem:[%s17627_s10 + $0x3a8] sm:$0xff]  ;;  %v13583_v30 = vcombine.high %v9407_v37, %v9411_v29  ;;  %v13582_v28 = vcombine.low %v9407_v37, %v9411_v29  ;;  %v8209_v29 = vrot.slane %v16788_v48, 4  ;;  %v9371_v48 = vld [vmem:[%s17627_s10 + $0x260] sm:$0xff] }
 0x81c   :  { %v13585_v34 = vcombine.high %v9408_v42, %v9412_v16  ;;  %v13584_v41 = vcombine.low %v9408_v42, %v9412_v16  ;;  %v9380_v37 = vld [vmem:[%s17627_s10 + $0x2a8] sm:$0xff] }
 0x81d   :  { %10078 = vmatpush1.bf16.msra.mxu0 %v13494_v58  ;;  %10119 = vmatpush1.bf16.msra.mxu1 %v13496_v0  ;;  %v9399_v58 = vld [vmem:[%s17627_s10 + $0x340] sm:$0xff] }
 0x81e   :  { %10079 = vmatprep.subr.bf16.mxu0 %v13487_v19  ;;  %10120 = vmatprep.subr.bf16.mxu1 %v13489_v51  ;;  %v9403_v0 = vld [vmem:[%s17627_s10 + $0x360] sm:$0xff]  ;;  %v9400_v19 = vld [vmem:[%s17627_s10 + $0x348] sm:$0xff] }
 0x81f   :  { %v9404_v51 = vld [vmem:[%s17627_s10 + $0x368] sm:$0xff]  ;;  %v13575_v11 = vcombine.high %v9399_v58, %v9403_v0  ;;  %v13574_v12 = vcombine.low %v9399_v58, %v9403_v0  ;;  %v8210_v0 = vrot.slane %v16792_v31, 4  ;;  %v9363_v31 = vld [vmem:[%s17627_s10 + $0x220] sm:$0xff] }
 0x820   :  { %v13577_v5 = vcombine.high %v9400_v19, %v9404_v51  ;;  %v13576_v63 = vcombine.low %v9400_v19, %v9404_v51  ;;  %v9368_v58 = vld [vmem:[%s17627_s10 + $0x248] sm:$0xff]  ;;  %v8225_v19 = vadd.f32 %v8209_v29, %v15835_v4 }
 0x821   :  { %10080 = vmatpush1.bf16.msra.mxu0 %v13486_v45  ;;  %10121 = vmatpush1.bf16.msra.mxu1 %v13488_v15  ;;  %v9391_v45 = vld [vmem:[%s17627_s10 + $0x300] sm:$0xff] }
 0x822   :  { %10081 = vmatprep.subr.bf16.mxu0 %v13479_v10  ;;  %10122 = vmatprep.subr.bf16.mxu1 %v13481_v50  ;;  %v9395_v15 = vld [vmem:[%s17627_s10 + $0x320] sm:$0xff]  ;;  %v9392_v10 = vld [vmem:[%s17627_s10 + $0x308] sm:$0xff] }
 0x823   :  { %v9396_v50 = vld [vmem:[%s17627_s10 + $0x328] sm:$0xff]  ;;  %v13567_v2 = vcombine.high %v9391_v45, %v9395_v15  ;;  %v13566_v38 = vcombine.low %v9391_v45, %v9395_v15  ;;  %v9359_v45 = vld [vmem:[%s17627_s10 + $0x200] sm:$0xff] }
 0x824   :  { %v13569_v13 = vcombine.high %v9392_v10, %v9396_v50  ;;  %v13568_v47 = vcombine.low %v9392_v10, %v9396_v50  ;;  %v9360_v10 = vld [vmem:[%s17627_s10 + $0x208] sm:$0xff] }
 0x825   :  { %10082 = vmatpush1.bf16.msra.mxu0 %v13478_v23  ;;  %10123 = vmatpush1.bf16.msra.mxu1 %v13480_v33  ;;  %v9383_v23 = vld [vmem:[%s17627_s10 + $0x2c0] sm:$0xff]  ;;  %v9364_v50 = vld [vmem:[%s17627_s10 + $0x228] sm:$0xff] }
 0x826   :  { %10083 = vmatprep.subr.bf16.mxu0 %v13471_v24  ;;  %10124 = vmatprep.subr.bf16.mxu1 %v13473_v25  ;;  %v9387_v33 = vld [vmem:[%s17627_s10 + $0x2e0] sm:$0xff]  ;;  %v9384_v24 = vld [vmem:[%s17627_s10 + $0x2c8] sm:$0xff] }
 0x827   :  { %v9388_v25 = vld [vmem:[%s17627_s10 + $0x2e8] sm:$0xff]  ;;  %v13559_v32 = vcombine.high %v9383_v23, %v9387_v33  ;;  %v13558_v42 = vcombine.low %v9383_v23, %v9387_v33  ;;  %v13535_v33 = vcombine.high %v9359_v45, %v9363_v31 }
 0x828   :  { %v13561_v61 = vcombine.high %v9384_v24, %v9388_v25  ;;  %v13560_v16 = vcombine.low %v9384_v24, %v9388_v25  ;;  %v13537_v24 = vcombine.high %v9360_v10, %v9364_v50  ;;  %v16977_v25 = vld [vmem:[%s17627_s10 + $0x1d0] sm:$0xff] }
 0x829   :  { %10084 = vmatpush1.bf16.msra.mxu0 %v13470_v46  ;;  %10125 = vmatpush1.bf16.msra.mxu1 %v13472_v9  ;;  %v9375_v46 = vld [vmem:[%s17627_s10 + $0x280] sm:$0xff]  ;;  %v8211_v9 = vrot.slane %v16790_v20, 4  ;;  %v8212_v20 = vrot.slane %v16794_v36, 4  ;;  %v9372_v36 = vld [vmem:[%s17627_s10 + $0x268] sm:$0xff] }
 0x82a   :  { %10085 = vmatprep.subr.bf16.mxu0 %v13591_v55  ;;  %10126 = vmatprep.subr.bf16.mxu1 %v13593_v44  ;;  %v9379_v55 = vld [vmem:[%s17627_s10 + $0x2a0] sm:$0xff]  ;;  %v9376_v44 = vld [vmem:[%s17627_s10 + $0x288] sm:$0xff] }
 0x82b   :  { %v13550_v51 = vcombine.low %v9375_v46, %v9379_v55 }
 0x82d   :  { %10086 = vmatpush2.bf16.msra.mxu0 %v13590_v43  ;;  %10127 = vmatpush2.bf16.msra.mxu1 %v13592_v21  ;;  %v13551_v43 = vcombine.high %v9375_v46, %v9379_v55  ;;  %v13553_v21 = vcombine.high %v9376_v44, %v9380_v37  ;;  %v13534_v46 = vcombine.low %v9359_v45, %v9363_v31 }
 0x82e   :  { %10087 = vmatprep.subr.bf16.mxu0 %v13583_v30  ;;  %10128 = vmatprep.subr.bf16.mxu1 %v13585_v34  ;;  %v9367_v30 = vld [vmem:[%s17627_s10 + $0x240] sm:$0xff]  ;;  %v8227_v34 = vadd.f32 %v8211_v9, %v15942_v57  ;;  %v13536_v9 = vcombine.low %v9360_v10, %v9364_v50 }
 0x830   :  { %v9213_v15 = vmul.f32 0.5, %v8227_v34 }
 0x831   :  { %10088 = vmatpush2.bf16.msra.mxu0 %v13582_v28  ;;  %10129 = vmatpush2.bf16.msra.mxu1 %v13584_v41  ;;  %v13552_v28 = vcombine.low %v9376_v44, %v9380_v37  ;;  %v8228_v41 = vadd.f32 %v8212_v20, %v15951_v3 }
 0x832   :  { %10089 = vmatprep.subr.bf16.mxu0 %v13575_v11  ;;  %10130 = vmatprep.subr.bf16.mxu1 %v13577_v5  ;;  %v13543_v11 = vcombine.high %v9367_v30, %v9371_v48  ;;  %v13545_v5 = vcombine.high %v9368_v58, %v9372_v36  ;;  %14430 = vtanh.f32 %v9213_v15 }
 0x833   :  { %v9214_v23 = vmul.f32 0.5, %v8228_v41 }
 0x835   :  { %10090 = vmatpush2.bf16.msra.mxu0 %v13574_v12  ;;  %10131 = vmatpush2.bf16.msra.mxu1 %v13576_v63  ;;  %v8226_v12 = vadd.f32 %v8210_v0, %v15838_v17  ;;  %v9205_v63 = vmul.f32 0.5, %v8225_v19 }
 0x836   :  { %10091 = vmatprep.subr.bf16.mxu0 %v13567_v2  ;;  %10132 = vmatprep.subr.bf16.mxu1 %v13569_v13  ;;  %v13542_v2 = vcombine.low %v9367_v30, %v9371_v48  ;;  %v13544_v13 = vcombine.low %v9368_v58, %v9372_v36 }
 0x837   :  { %14432 = vtanh.f32 %v9205_v63 }
 0x838   :  { %14434 = vtanh.f32 %v9214_v23  ;;  %v9233_v23 = vrot.slane %v16536_v35, 6 }
 0x839   :  { %10092 = vmatpush2.bf16.msra.mxu0 %v13566_v38  ;;  %10133 = vmatpush2.bf16.msra.mxu1 %v13568_v47  ;;  %v16982_v38 = vld [vmem:[%s17627_s10 + $0x1f0] sm:$0xff]  ;;  %v16987_v47 = vld [vmem:[%s17627_s10 + $0x1d8] sm:$0xff] }
 0x83a   :  { %10093 = vmatprep.subr.bf16.mxu0 %v13559_v32  ;;  %10134 = vmatprep.subr.bf16.mxu1 %v13561_v61  ;;  %v16992_v32 = vld [vmem:[%s17627_s10 + $0x1f8] sm:$0xff]  ;;  %v9206_v61 = vmul.f32 0.5, %v8226_v12  ;;  %v13531_v55 = vcombine.high %v16977_v25, %v16982_v38 }
 0x83b   :  { %v13533_v44 = vcombine.high %v16987_v47, %v16992_v32 }
 0x83c   :  { %14436 = vtanh.f32 %v9206_v61 }
 0x83d   :  { %10094 = vmatpush2.bf16.msra.mxu0 %v13558_v42  ;;  %10135 = vmatpush2.bf16.msra.mxu1 %v13560_v16 }
 0x83e   :  { %10095 = vmatprep.subr.bf16.mxu0 %v13551_v43  ;;  %10136 = vmatprep.subr.bf16.mxu1 %v13553_v21 }
 0x841   :  { %10096 = vmatpush2.bf16.msra.mxu0 %v13550_v51  ;;  %10137 = vmatpush2.bf16.msra.mxu1 %v13552_v28  ;;  %v14431_v28 = vpop.eup %14430 }
 0x842   :  { %10097 = vmatprep.subr.bf16.mxu0 %v13543_v11  ;;  %10138 = vmatprep.subr.bf16.mxu1 %v13545_v5  ;;  %v9217_v45 = vadd.f32 1.0, %v14431_v28  ;;  %v9349_v28 = vld [vmem:[%s17627_s10 + $0x1b0] sm:$0xff] }
 0x844   :  { %v14433_v41 = vpop.eup %14432  ;;  %v9219_v63 = vmul.f32 0.5, %v9217_v45  ;;  %v13530_v45 = vcombine.low %v16977_v25, %v16982_v38  ;;  %v9338_v25 = vld [vmem:[%s17627_s10 + $0x158] sm:$0xff] }
 0x845   :  { %10098 = vmatpush2.bf16.msra.mxu0 %v13542_v2  ;;  %10139 = vmatpush2.bf16.msra.mxu1 %v13544_v13  ;;  %v14435_v5 = vpop.eup %14434  ;;  %v9209_v10 = vadd.f32 1.0, %v14433_v41  ;;  %v9346_v41 = vld [vmem:[%s17627_s10 + $0x198] sm:$0xff] }
 0x846   :  { %10099 = vmatprep.subr.bf16.mxu0 %v13535_v33  ;;  %10140 = vmatprep.subr.bf16.mxu1 %v13537_v24  ;;  %v9218_v50 = vadd.f32 1.0, %v14435_v5  ;;  %v9237_v61 = vmul.f32 %v9233_v23, %v9219_v63  ;;  %v9341_v63 = vld [vmem:[%s17627_s10 + $0x170] sm:$0xff]  ;;  %v9342_v38 = vld [vmem:[%s17627_s10 + $0x178] sm:$0xff] }
 0x847   :  { %v9211_v13 = vmul.f32 0.5, %v9209_v10  ;;  %v9337_v10 = vld [vmem:[%s17627_s10 + $0x150] sm:$0xff] }
 0x848   :  { %v8153_v37 = vpop.f32.mrf.mxu0  ;;  %v8194_v29 = vpop.f32.mrf.mxu1  ;;  %v9220_v24 = vmul.f32 0.5, %v9218_v50  ;;  %v9329_v23 = vld [vmem:[%s17627_s10 + $0x110] sm:$0xff] }
 0x849   :  { %v8213_v42 = vrot.slane %v8153_v37, 4  ;;  %10100 = vmatpush2.bf16.msra.mxu0 %v13534_v46  ;;  %10141 = vmatpush2.bf16.msra.mxu1 %v13536_v9  ;;  %v8215_v21 = vrot.slane %v8194_v29, 4  ;;  %v14437_v31 = vpop.eup %14436 }
 0x84a   :  { %v8155_v16 = vpop.f32.mrf.mxu0  ;;  %v8196_v20 = vpop.f32.mrf.mxu1  ;;  %10151 = vmatprep.subr.bf16.mxu0 %v13531_v55  ;;  %10192 = vmatprep.subr.bf16.mxu1 %v13533_v44  ;;  %v9210_v2 = vadd.f32 1.0, %v14437_v31  ;;  %v9234_v55 = vrot.slane %v16539_v49, 6 }
 0x84b   :  { %v8229_v43 = vadd.f32 %v8213_v42, %v15861_v60  ;;  %v8214_v30 = vrot.slane %v8155_v16, 4  ;;  %v8216_v36 = vrot.slane %v8196_v20, 4  ;;  %v8231_v51 = vadd.f32 %v8215_v21, %v16011_v18 }
 0x84c   :  { %v8157_v34 = vpop.f32.mrf.mxu0  ;;  %v8198_v48 = vpop.f32.mrf.mxu1  ;;  %v9212_v9 = vmul.f32 0.5, %v9210_v2  ;;  %v9238_v29 = vmul.f32 %v9234_v55, %v9220_v24  ;;  %v13515_v2 = vcombine.high %v9337_v10, %v9341_v63  ;;  %v9330_v24 = vld [vmem:[%s17627_s10 + $0x118] sm:$0xff] }
 0x84d   :  { %14438 = vtanh.f32 %v8229_v43  ;;  %v8230_v58 = vadd.f32 %v8214_v30, %v15864_v62  ;;  %v8232_v11 = vadd.f32 %v8216_v36, %v16014_v14  ;;  %v9223_v15 = vmul.f32 0.5, %v8231_v51  ;;  %v9345_v51 = vld [vmem:[%s17627_s10 + $0x190] sm:$0xff] }
 0x84e   :  { %v8158_v0 = vpop.f32.mrf.mxu0  ;;  %v8199_v19 = vpop.f32.mrf.mxu1  ;;  %v13523_v50 = vcombine.high %v9345_v51, %v9349_v28 }
 0x84f   :  { %14440 = vtanh.f32 %v8230_v58  ;;  %v9224_v12 = vmul.f32 0.5, %v8232_v11  ;;  %v9350_v11 = vld [vmem:[%s17627_s10 + $0x1b8] sm:$0xff] }
 0x850   :  { %14442 = vtanh.f32 %v9223_v15  ;;  %v13532_v15 = vcombine.low %v16987_v47, %v16992_v32  ;;  %v13522_v47 = vcombine.low %v9345_v51, %v9349_v28  ;;  %v13524_v32 = vcombine.low %v9346_v41, %v9350_v11 }
 0x851   :  { %14444 = vtanh.f32 %v9224_v12  ;;  %v13525_v12 = vcombine.high %v9346_v41, %v9350_v11  ;;  %v9305_v41 = vld [vmem:[%s17627_s10 + $0x50] sm:$0xff] }
 0x852   :  { %v9309_v11 = vld [vmem:[%s17627_s10 + $0x70] sm:$0xff] }
 0x85a   :  { %v14439_v33 = vpop.eup %14438 }
 0x85b   :  { %v9239_v46 = vmul.f32 %v14439_v33, %v9211_v13  ;;  %v13517_v13 = vcombine.high %v9338_v25, %v9342_v38  ;;  %v9333_v33 = vld [vmem:[%s17627_s10 + $0x130] sm:$0xff] }
 0x85c   :  { %v14441_v44 = vpop.eup %14440  ;;  %v13507_v55 = vcombine.high %v9329_v23, %v9333_v33 }
 0x85d   :  { %v17004_v37 = vadd.f32 %v9239_v46, %v9237_v61  ;;  %v9240_v42 = vmul.f32 %v14441_v44, %v9212_v9  ;;  %v14443_v35 = vpop.eup %14442  ;;  %v9334_v61 = vld [vmem:[%s17627_s10 + $0x138] sm:$0xff]  ;;  %v13514_v46 = vcombine.low %v9337_v10, %v9341_v63  ;;  %v13516_v9 = vcombine.low %v9338_v25, %v9342_v38  ;;  %v9297_v63 = vld [vmem:[%s17627_s10 + $0x10] sm:$0xff] }
 0x85e   :  { %v14445_v20 = vpop.eup %14444  ;;  %v9227_v43 = vadd.f32 1.0, %v14443_v35  ;;  %v13509_v44 = vcombine.high %v9330_v24, %v9334_v61  ;;  %v9322_v35 = vld [vmem:[%s17627_s10 + $0xd8] sm:$0xff]  ;;  %v9301_v25 = vld [vmem:[%s17627_s10 + $0x30] sm:$0xff] }
 0x85f   :  { %14446 = vtanh.f32 %v17004_v37  ;;  %v17007_v16 = vadd.f32 %v9240_v42, %v9238_v29  ;;  %v9228_v21 = vadd.f32 1.0, %v14445_v20  ;;  %v9321_v29 = vld [vmem:[%s17627_s10 + $0xd0] sm:$0xff]  ;;  %v9326_v20 = vld [vmem:[%s17627_s10 + $0xf8] sm:$0xff] }
 0x860   :  { %v9229_v30 = vmul.f32 0.5, %v9227_v43  ;;  %v9325_v42 = vld [vmem:[%s17627_s10 + $0xf0] sm:$0xff]  ;;  %v13506_v43 = vcombine.low %v9329_v23, %v9333_v33  ;;  %v9298_v38 = vld [vmem:[%s17627_s10 + $0x18] sm:$0xff]  ;;  %v13475_v33 = vcombine.high %v9297_v63, %v9301_v25 }
 0x861   :  { %14448 = vtanh.f32 %v17007_v16  ;;  %v9230_v58 = vmul.f32 0.5, %v9228_v21  ;;  %v13508_v21 = vcombine.low %v9330_v24, %v9334_v61  ;;  %v9417_v61 = vld [vmem:[%s17627_s10 + $0x3d0] sm:$0xff] }
 0x86c   :  { %v14447_v34 = vpop.eup %14446 }
 0x86d   :  { %v9245_v48 = vmul.f32 %v14447_v34, %v9229_v30  ;;  %v13499_v30 = vcombine.high %v9321_v29, %v9325_v42  ;;  %v13501_v34 = vcombine.high %v9322_v35, %v9326_v20 }
 0x86e   :  { %v14449_v49 = vpop.eup %14448 }
 0x86f   :  { %9247 = vst [vmem:[#allocation2] sm:$0x30] %v9245_v48  ;;  %v9246_v36 = vmul.f32 %v14449_v49, %v9230_v58  ;;  %v9293_v0 = vpack.c.bf16 %v9245_v48, %v9245_v48  ;;  %v9313_v48 = vld [vmem:[%s17627_s10 + $0x90] sm:$0xff]  ;;  %v9314_v49 = vld [vmem:[%s17627_s10 + $0x98] sm:$0xff] }
 0x870   :  { %v9317_v58 = vld [vmem:[%s17627_s10 + $0xb0] sm:$0xff] }
 0x871   :  { %9248 = vst [vmem:[#allocation2 + $0x8] sm:$0x30] %v9246_v36  ;;  %v9294_v19 = vpack.c.bf16 %v9246_v36, %v9246_v36  ;;  %v17026_v31 = vrot.slane %v9293_v0, 2  ;;  %v9318_v36 = vld [vmem:[%s17627_s10 + $0xb8] sm:$0xff]  ;;  %v13498_v0 = vcombine.low %v9321_v29, %v9325_v42  ;;  %v13491_v51 = vcombine.high %v9313_v48, %v9317_v58 }
 0x872   :  { %v13493_v28 = vcombine.high %v9314_v49, %v9318_v36  ;;  %v13492_v10 = vcombine.low %v9314_v49, %v9318_v36  ;;  %v9422_v29 = vld [vmem:[%s17627_s10 + $0x3f8] sm:$0xff]  ;;  %v9413_v49 = vld [vmem:[%s17627_s10 + $0x3b0] sm:$0xff] }
 0x873   :  { %v9426_v5 = vrot.slane %v9294_v19, 2  ;;  %v13500_v19 = vcombine.low %v9322_v35, %v9326_v20  ;;  %v13474_v20 = vcombine.low %v9297_v63, %v9301_v25  ;;  %v9410_v36 = vld [vmem:[%s17627_s10 + $0x398] sm:$0xff]  ;;  %v9393_v25 = vld [vmem:[%s17627_s10 + $0x310] sm:$0xff] }
 0x875   :  { %10101 = vmatprep.mubr.bf16.mxu0 %v9426_v5  ;;  %10142 = vmatprep.mubr.bf16.mxu1 %v9426_v5 }
 0x876   :  { %10102 = vmatmul.mubr.bf16.vlgmr.msra.gmra.mxu0 %v17026_v31  ;;  %10143 = vmatmul.mubr.bf16.vlgmr.msra.gmra.mxu1 %v17026_v31 }
 0x877   :  { %10152 = vmatpush1.bf16.msra.mxu0 %v13530_v45  ;;  %10193 = vmatpush1.bf16.msra.mxu1 %v13532_v15  ;;  %v9310_v45 = vld [vmem:[%s17627_s10 + $0x78] sm:$0xff]  ;;  %v13490_v15 = vcombine.low %v9313_v48, %v9317_v58 }
 0x878   :  { %10183 = vmatprep.mubr.bf16.mxu0 %v9426_v5  ;;  %10224 = vmatprep.mubr.bf16.mxu1 %v9426_v5  ;;  %v9306_v5 = vld [vmem:[%s17627_s10 + $0x58] sm:$0xff] }
 0x879   :  { %10153 = vmatprep.subr.bf16.mxu0 %v13523_v50  ;;  %10194 = vmatprep.subr.bf16.mxu1 %v13525_v12  ;;  %v13483_v50 = vcombine.high %v9305_v41, %v9309_v11  ;;  %v13485_v12 = vcombine.high %v9306_v5, %v9310_v45  ;;  %v13484_v23 = vcombine.low %v9306_v5, %v9310_v45  ;;  %v9405_v5 = vld [vmem:[%s17627_s10 + $0x370] sm:$0xff]  ;;  %v9402_v45 = vld [vmem:[%s17627_s10 + $0x358] sm:$0xff] }
 0x87b   :  { %10154 = vmatpush1.bf16.msra.mxu0 %v13522_v47  ;;  %10195 = vmatpush1.bf16.msra.mxu1 %v13524_v32  ;;  %v9302_v47 = vld [vmem:[%s17627_s10 + $0x38] sm:$0xff] }
 0x87c   :  { %10155 = vmatprep.subr.bf16.mxu0 %v13515_v2  ;;  %10196 = vmatprep.subr.bf16.mxu1 %v13517_v13  ;;  %v13482_v13 = vcombine.low %v9305_v41, %v9309_v11  ;;  %v13477_v24 = vcombine.high %v9298_v38, %v9302_v47  ;;  %v9401_v11 = vld [vmem:[%s17627_s10 + $0x350] sm:$0xff] }
 0x87f   :  { %10156 = vmatpush1.bf16.msra.mxu0 %v13514_v46  ;;  %10197 = vmatpush1.bf16.msra.mxu1 %v13516_v9 }
 0x880   :  { %10157 = vmatprep.subr.bf16.mxu0 %v13507_v55  ;;  %10198 = vmatprep.subr.bf16.mxu1 %v13509_v44  ;;  %v9421_v55 = vld [vmem:[%s17627_s10 + $0x3f0] sm:$0xff]  ;;  %v9418_v44 = vld [vmem:[%s17627_s10 + $0x3d8] sm:$0xff] }
 0x883   :  { %10158 = vmatpush1.bf16.msra.mxu0 %v13506_v43  ;;  %10199 = vmatpush1.bf16.msra.mxu1 %v13508_v21  ;;  %v13476_v43 = vcombine.low %v9298_v38, %v9302_v47  ;;  %v13595_v21 = vcombine.high %v9417_v61, %v9421_v55  ;;  %v9397_v38 = vld [vmem:[%s17627_s10 + $0x330] sm:$0xff]  ;;  %v9394_v47 = vld [vmem:[%s17627_s10 + $0x318] sm:$0xff] }
 0x884   :  { %10159 = vmatprep.subr.bf16.mxu0 %v13499_v30  ;;  %10200 = vmatprep.subr.bf16.mxu1 %v13501_v34  ;;  %v13597_v30 = vcombine.high %v9418_v44, %v9422_v29  ;;  %v9409_v34 = vld [vmem:[%s17627_s10 + $0x390] sm:$0xff] }
 0x887   :  { %10160 = vmatpush1.bf16.msra.mxu0 %v13498_v0  ;;  %10201 = vmatpush1.bf16.msra.mxu1 %v13500_v19  ;;  %v9414_v0 = vld [vmem:[%s17627_s10 + $0x3b8] sm:$0xff]  ;;  %v13594_v19 = vcombine.low %v9417_v61, %v9421_v55  ;;  %v9385_v55 = vld [vmem:[%s17627_s10 + $0x2d0] sm:$0xff] }
 0x888   :  { %10161 = vmatprep.subr.bf16.mxu0 %v13491_v51  ;;  %10202 = vmatprep.subr.bf16.mxu1 %v13493_v28  ;;  %v13596_v51 = vcombine.low %v9418_v44, %v9422_v29  ;;  %v13587_v28 = vcombine.high %v9409_v34, %v9413_v49  ;;  %v13589_v41 = vcombine.high %v9410_v36, %v9414_v0  ;;  %v9389_v44 = vld [vmem:[%s17627_s10 + $0x2f0] sm:$0xff]  ;;  %v9386_v29 = vld [vmem:[%s17627_s10 + $0x2d8] sm:$0xff] }
 0x88b   :  { %10162 = vmatpush1.bf16.msra.mxu0 %v13490_v15  ;;  %10203 = vmatpush1.bf16.msra.mxu1 %v13492_v10  ;;  %v9406_v15 = vld [vmem:[%s17627_s10 + $0x378] sm:$0xff]  ;;  %v13586_v10 = vcombine.low %v9409_v34, %v9413_v49  ;;  %v9381_v34 = vld [vmem:[%s17627_s10 + $0x2b0] sm:$0xff]  ;;  %v13562_v49 = vcombine.low %v9385_v55, %v9389_v44 }
 0x88c   :  { %v17102_v32 = vpop.f32.mrf.mxu0  ;;  %v17104_v2 = vpop.f32.mrf.mxu1  ;;  %10163 = vmatprep.subr.bf16.mxu0 %v13483_v50  ;;  %10204 = vmatprep.subr.bf16.mxu1 %v13485_v12  ;;  %v13588_v50 = vcombine.low %v9410_v36, %v9414_v0  ;;  %v13579_v12 = vcombine.high %v9401_v11, %v9405_v5  ;;  %v13581_v63 = vcombine.high %v9402_v45, %v9406_v15 }
 0x88e   :  { %v17109_v46 = vpop.f32.mrf.mxu0  ;;  %v17111_v9 = vpop.f32.mrf.mxu1 }
 0x88f   :  { %10164 = vmatpush1.bf16.msra.mxu0 %v13482_v13  ;;  %10205 = vmatpush1.bf16.msra.mxu1 %v13484_v23  ;;  %v9398_v13 = vld [vmem:[%s17627_s10 + $0x338] sm:$0xff]  ;;  %v13578_v23 = vcombine.low %v9401_v11, %v9405_v5 }
 0x890   :  { %v9047_v42 = vpop.f32.mrf.mxu0  ;;  %v9088_v35 = vpop.f32.mrf.mxu1  ;;  %10165 = vmatprep.subr.bf16.mxu0 %v13475_v33  ;;  %10206 = vmatprep.subr.bf16.mxu1 %v13477_v24  ;;  %v13580_v33 = vcombine.low %v9402_v45, %v9406_v15  ;;  %v13571_v24 = vcombine.high %v9393_v25, %v9397_v38  ;;  %v13573_v61 = vcombine.high %v9394_v47, %v9398_v13  ;;  %v9374_v11 = vld [vmem:[%s17627_s10 + $0x278] sm:$0xff] }
 0x891   :  { %v9390_v42 = vld [vmem:[%s17627_s10 + $0x2f8] sm:$0xff]  ;;  %v13570_v35 = vcombine.low %v9393_v25, %v9397_v38 }
 0x892   :  { %v9048_v48 = vpop.f32.mrf.mxu0  ;;  %v9089_v58 = vpop.f32.mrf.mxu1  ;;  %v13564_v36 = vcombine.low %v9386_v29, %v9390_v42  ;;  %v9366_v25 = vld [vmem:[%s17627_s10 + $0x238] sm:$0xff] }
 0x893   :  { %10166 = vmatpush1.bf16.msra.mxu0 %v13474_v20  ;;  %10207 = vmatpush1.bf16.msra.mxu1 %v13476_v43  ;;  %v13572_v20 = vcombine.low %v9394_v47, %v9398_v13  ;;  %v13563_v43 = vcombine.high %v9385_v55, %v9389_v44  ;;  %v9378_v48 = vld [vmem:[%s17627_s10 + $0x298] sm:$0xff]  ;;  %v10328_v55 = vld [vmem:[#allocation19 + $0x1e8] sm:$0xff] }
 0x894   :  { %10167 = vmatprep.subr.bf16.mxu0 %v13595_v21  ;;  %10208 = vmatprep.subr.bf16.mxu1 %v13597_v30  ;;  %v13565_v21 = vcombine.high %v9386_v29, %v9390_v42  ;;  %v9377_v30 = vld [vmem:[%s17627_s10 + $0x290] sm:$0xff]  ;;  %v9382_v58 = vld [vmem:[%s17627_s10 + $0x2b8] sm:$0xff] }
 0x895   :  { %v13555_v0 = vcombine.high %v9377_v30, %v9381_v34  ;;  %v13554_v5 = vcombine.low %v9377_v30, %v9381_v34  ;;  %v13556_v45 = vcombine.low %v9378_v48, %v9382_v58  ;;  %v10320_v30 = vld [vmem:[#allocation19 + $0x1a8] sm:$0xff] }
 0x897   :  { %10168 = vmatpush2.bf16.msra.mxu0 %v13594_v19  ;;  %10209 = vmatpush2.bf16.msra.mxu1 %v13596_v51  ;;  %v13557_v19 = vcombine.high %v9378_v48, %v9382_v58  ;;  %v9369_v51 = vld [vmem:[%s17627_s10 + $0x250] sm:$0xff] }
 0x898   :  { %10169 = vmatprep.subr.bf16.mxu0 %v13587_v28  ;;  %10210 = vmatprep.subr.bf16.mxu1 %v13589_v41  ;;  %v9373_v28 = vld [vmem:[%s17627_s10 + $0x270] sm:$0xff]  ;;  %v9370_v41 = vld [vmem:[%s17627_s10 + $0x258] sm:$0xff] }
 0x899   :  { %v13547_v15 = vcombine.high %v9369_v51, %v9373_v28  ;;  %v13546_v38 = vcombine.low %v9369_v51, %v9373_v28  ;;  %v13548_v47 = vcombine.low %v9370_v41, %v9374_v11  ;;  %v10312_v51 = vld [vmem:[#allocation19 + $0x168] sm:$0xff] }
 0x89b   :  { %10170 = vmatpush2.bf16.msra.mxu0 %v13586_v10  ;;  %10211 = vmatpush2.bf16.msra.mxu1 %v13588_v50  ;;  %v13549_v10 = vcombine.high %v9370_v41, %v9374_v11  ;;  %v9361_v50 = vld [vmem:[%s17627_s10 + $0x210] sm:$0xff] }
 0x89c   :  { %10171 = vmatprep.subr.bf16.mxu0 %v13579_v12  ;;  %10212 = vmatprep.subr.bf16.mxu1 %v13581_v63  ;;  %v9365_v12 = vld [vmem:[%s17627_s10 + $0x230] sm:$0xff]  ;;  %v9362_v63 = vld [vmem:[%s17627_s10 + $0x218] sm:$0xff] }
 0x89d   :  { %v13539_v13 = vcombine.high %v9361_v50, %v9365_v12  ;;  %v13538_v44 = vcombine.low %v9361_v50, %v9365_v12  ;;  %v13540_v29 = vcombine.low %v9362_v63, %v9366_v25  ;;  %v10304_v50 = vld [vmem:[#allocation19 + $0x128] sm:$0xff]  ;;  %v9183_v12 = vrot.slane %v17104_v2, 6 }
 0x89e   :  { %v9182_v2 = vrot.slane %v17109_v46, 6 }
 0x89f   :  { %10172 = vmatpush2.bf16.msra.mxu0 %v13578_v23  ;;  %10213 = vmatpush2.bf16.msra.mxu1 %v13580_v33  ;;  %v13541_v23 = vcombine.high %v9362_v63, %v9366_v25  ;;  %v10323_v33 = vld [vmem:[#allocation19 + $0x1c0] sm:$0xff] }
 0x8a0   :  { %10173 = vmatprep.subr.bf16.mxu0 %v13571_v24  ;;  %10214 = vmatprep.subr.bf16.mxu1 %v13573_v61  ;;  %v10327_v24 = vld [vmem:[#allocation19 + $0x1e0] sm:$0xff]  ;;  %v10324_v61 = vld [vmem:[#allocation19 + $0x1c8] sm:$0xff] }
 0x8a1   :  { %v13655_v42 = vcombine.high %v10323_v33, %v10327_v24  ;;  %v13654_v34 = vcombine.low %v10323_v33, %v10327_v24  ;;  %v13656_v48 = vcombine.low %v10324_v61, %v10328_v55  ;;  %v10295_v33 = vld [vmem:[#allocation19 + $0xe0] sm:$0xff]  ;;  %v10292_v24 = vld [vmem:[#allocation19 + $0xc8] sm:$0xff] }
 0x8a3   :  { %10174 = vmatpush2.bf16.msra.mxu0 %v13570_v35  ;;  %10215 = vmatpush2.bf16.msra.mxu1 %v13572_v20  ;;  %v13657_v35 = vcombine.high %v10324_v61, %v10328_v55  ;;  %v10315_v20 = vld [vmem:[#allocation19 + $0x180] sm:$0xff]  ;;  %v10296_v61 = vld [vmem:[#allocation19 + $0xe8] sm:$0xff]  ;;  %v9199_v55 = vadd.f32 %v9183_v12, %v16262_v26 }
 0x8a4   :  { %10175 = vmatprep.subr.bf16.mxu0 %v13563_v43  ;;  %10216 = vmatprep.subr.bf16.mxu1 %v13565_v21  ;;  %v10319_v43 = vld [vmem:[#allocation19 + $0x1a0] sm:$0xff]  ;;  %v10316_v21 = vld [vmem:[#allocation19 + $0x188] sm:$0xff] }
 0x8a5   :  { %v13647_v58 = vcombine.high %v10315_v20, %v10319_v43  ;;  %v13646_v28 = vcombine.low %v10315_v20, %v10319_v43  ;;  %v13648_v41 = vcombine.low %v10316_v21, %v10320_v30  ;;  %v10283_v20 = vld [vmem:[#allocation19 + $0x80] sm:$0xff] }
 0x8a6   :  { %v10287_v43 = vld [vmem:[#allocation19 + $0xa0] sm:$0xff] }
 0x8a7   :  { %10176 = vmatpush2.bf16.msra.mxu0 %v13562_v49  ;;  %10217 = vmatpush2.bf16.msra.mxu1 %v13564_v36  ;;  %v13649_v49 = vcombine.high %v10316_v21, %v10320_v30  ;;  %v10307_v36 = vld [vmem:[#allocation19 + $0x140] sm:$0xff]  ;;  %v10284_v21 = vld [vmem:[#allocation19 + $0x88] sm:$0xff] }
 0x8a8   :  { %10177 = vmatprep.subr.bf16.mxu0 %v13555_v0  ;;  %10218 = vmatprep.subr.bf16.mxu1 %v13557_v19  ;;  %v10311_v0 = vld [vmem:[#allocation19 + $0x160] sm:$0xff]  ;;  %v10308_v19 = vld [vmem:[#allocation19 + $0x148] sm:$0xff] }
 0x8a9   :  { %v13639_v11 = vcombine.high %v10307_v36, %v10311_v0  ;;  %v13638_v63 = vcombine.low %v10307_v36, %v10311_v0  ;;  %v13640_v25 = vcombine.low %v10308_v19, %v10312_v51  ;;  %v10288_v30 = vld [vmem:[#allocation19 + $0xa8] sm:$0xff]  ;;  %v13615_v36 = vcombine.high %v10283_v20, %v10287_v43  ;;  %v10267_v12 = vld [vmem:[#allocation19] sm:$0xff] }
 0x8aa   :  { %v13617_v0 = vcombine.high %v10284_v21, %v10288_v30 }
 0x8ab   :  { %10178 = vmatpush2.bf16.msra.mxu0 %v13554_v5  ;;  %10219 = vmatpush2.bf16.msra.mxu1 %v13556_v45  ;;  %v13641_v5 = vcombine.high %v10308_v19, %v10312_v51  ;;  %v10299_v45 = vld [vmem:[#allocation19 + $0x100] sm:$0xff] }
 0x8ac   :  { %10179 = vmatprep.subr.bf16.mxu0 %v13547_v15  ;;  %10220 = vmatprep.subr.bf16.mxu1 %v13549_v10  ;;  %v10303_v15 = vld [vmem:[#allocation19 + $0x120] sm:$0xff]  ;;  %v10300_v10 = vld [vmem:[#allocation19 + $0x108] sm:$0xff] }
 0x8ad   :  { %v10275_v19 = vld [vmem:[#allocation19 + $0x40] sm:$0xff] }
 0x8af   :  { %10180 = vmatpush2.bf16.msra.mxu0 %v13546_v38  ;;  %10221 = vmatpush2.bf16.msra.mxu1 %v13548_v47  ;;  %v13631_v38 = vcombine.high %v10299_v45, %v10303_v15  ;;  %v13633_v47 = vcombine.high %v10300_v10, %v10304_v50 }
 0x8b0   :  { %10181 = vmatprep.subr.bf16.mxu0 %v13539_v13  ;;  %10222 = vmatprep.subr.bf16.mxu1 %v13541_v23  ;;  %v10291_v13 = vld [vmem:[#allocation19 + $0xc0] sm:$0xff]  ;;  %v9184_v23 = vrot.slane %v17111_v9, 6 }
 0x8b1   :  { %v13622_v46 = vcombine.low %v10291_v13, %v10295_v33 }
 0x8b2   :  { %v9200_v9 = vadd.f32 %v9184_v23, %v16266_v54 }
 0x8b3   :  { %10182 = vmatpush2.bf16.msra.mxu0 %v13538_v44  ;;  %10223 = vmatpush2.bf16.msra.mxu1 %v13540_v29  ;;  %v13630_v44 = vcombine.low %v10299_v45, %v10303_v15  ;;  %v13632_v29 = vcombine.low %v10300_v10, %v10304_v50  ;;  %v13614_v45 = vcombine.low %v10283_v20, %v10287_v43 }
 0x8b4   :  { %11041 = vmatprep.subr.bf16.mxu0 %v13655_v42  ;;  %11082 = vmatprep.subr.bf16.mxu1 %v13657_v35  ;;  %v13623_v42 = vcombine.high %v10291_v13, %v10295_v33  ;;  %v13625_v35 = vcombine.high %v10292_v24, %v10296_v61  ;;  %v9258_v51 = vmul.f32 0.5, %v9200_v9  ;;  %v13616_v15 = vcombine.low %v10284_v21, %v10288_v30 }
 0x8b6   :  { %10184 = vmatmul.mubr.bf16.vlgmr.msra.gmra.mxu0 %v17026_v31  ;;  %10225 = vmatmul.mubr.bf16.vlgmr.msra.gmra.mxu1 %v17026_v31  ;;  %v9181_v31 = vrot.slane %v17102_v32, 6 }
 0x8b7   :  { %11042 = vmatpush1.bf16.msra.mxu0 %v13654_v34  ;;  %11083 = vmatpush1.bf16.msra.mxu1 %v13656_v48  ;;  %v9257_v34 = vmul.f32 0.5, %v9199_v55  ;;  %v9198_v48 = vadd.f32 %v9182_v2, %v16095_v39  ;;  %v10387_v55 = vld [vmem:[#allocation19 + $0x3c0] sm:$0xff] }
 0x8b8   :  { %11043 = vmatprep.subr.bf16.mxu0 %v13647_v58  ;;  %11084 = vmatprep.subr.bf16.mxu1 %v13649_v49  ;;  %v9197_v32 = vadd.f32 %v9181_v31, %v16079_v56  ;;  %v13624_v58 = vcombine.low %v10292_v24, %v10296_v61  ;;  %v10272_v31 = vld [vmem:[#allocation19 + $0x28] sm:$0xff] }
 0x8b9   :  { %14450 = vtanh.f32 %v9257_v34 }
 0x8ba   :  { %v9249_v49 = vmul.f32 0.5, %v9197_v32  ;;  %v10388_v32 = vld [vmem:[#allocation19 + $0x3c8] sm:$0xff] }
 0x8bb   :  { %11044 = vmatpush1.bf16.msra.mxu0 %v13646_v28  ;;  %11085 = vmatpush1.bf16.msra.mxu1 %v13648_v41  ;;  %v10279_v28 = vld [vmem:[#allocation19 + $0x60] sm:$0xff]  ;;  %v10276_v41 = vld [vmem:[#allocation19 + $0x48] sm:$0xff] }
 0x8bc   :  { %11045 = vmatprep.subr.bf16.mxu0 %v13639_v11  ;;  %11086 = vmatprep.subr.bf16.mxu1 %v13641_v5  ;;  %v10280_v11 = vld [vmem:[#allocation19 + $0x68] sm:$0xff]  ;;  %v9250_v5 = vmul.f32 0.5, %v9198_v48  ;;  %14452 = vtanh.f32 %v9249_v49  ;;  %v13607_v10 = vcombine.high %v10275_v19, %v10279_v28  ;;  %v13606_v13 = vcombine.low %v10275_v19, %v10279_v28  ;;  %v10379_v49 = vld [vmem:[#allocation19 + $0x380] sm:$0xff] }
 0x8bd   :  { %v13609_v50 = vcombine.high %v10276_v41, %v10280_v11  ;;  %14454 = vtanh.f32 %v9258_v51  ;;  %v13608_v23 = vcombine.low %v10276_v41, %v10280_v11  ;;  %v10383_v51 = vld [vmem:[#allocation19 + $0x3a0] sm:$0xff]  ;;  %v10380_v28 = vld [vmem:[#allocation19 + $0x388] sm:$0xff] }
 0x8be   :  { %14456 = vtanh.f32 %v9250_v5  ;;  %v10384_v41 = vld [vmem:[#allocation19 + $0x3a8] sm:$0xff] }
 0x8bf   :  { %11046 = vmatpush1.bf16.msra.mxu0 %v13638_v63  ;;  %11087 = vmatpush1.bf16.msra.mxu1 %v13640_v25  ;;  %v10271_v63 = vld [vmem:[#allocation19 + $0x20] sm:$0xff]  ;;  %v10268_v25 = vld [vmem:[#allocation19 + $0x8] sm:$0xff] }
 0x8c0   :  { %11047 = vmatprep.subr.bf16.mxu0 %v13631_v38  ;;  %11088 = vmatprep.subr.bf16.mxu1 %v13633_v47  ;;  %v13599_v24 = vcombine.high %v10267_v12, %v10271_v63  ;;  %v13601_v61 = vcombine.high %v10268_v25, %v10272_v31  ;;  %v13598_v30 = vcombine.low %v10267_v12, %v10271_v63  ;;  %v10371_v12 = vld [vmem:[#allocation19 + $0x340] sm:$0xff] }
 0x8c1   :  { %v13600_v34 = vcombine.low %v10268_v25, %v10272_v31  ;;  %v10375_v31 = vld [vmem:[#allocation19 + $0x360] sm:$0xff] }
 0x8c3   :  { %11048 = vmatpush1.bf16.msra.mxu0 %v13630_v44  ;;  %11089 = vmatpush1.bf16.msra.mxu1 %v13632_v29  ;;  %v10391_v29 = vld [vmem:[#allocation19 + $0x3e0] sm:$0xff] }
 0x8c4   :  { %11049 = vmatprep.subr.bf16.mxu0 %v13623_v42  ;;  %11090 = vmatprep.subr.bf16.mxu1 %v13625_v35  ;;  %v10392_v42 = vld [vmem:[#allocation19 + $0x3e8] sm:$0xff] }
 0x8c6   :  { %v14451_v5 = vpop.eup %14450 }
 0x8c7   :  { %11050 = vmatpush1.bf16.msra.mxu0 %v13622_v46  ;;  %11091 = vmatpush1.bf16.msra.mxu1 %v13624_v58  ;;  %v13719_v46 = vcombine.high %v10387_v55, %v10391_v29  ;;  %v13721_v58 = vcombine.high %v10388_v32, %v10392_v42 }
 0x8c8   :  { %11051 = vmatprep.subr.bf16.mxu0 %v13615_v36  ;;  %11092 = vmatprep.subr.bf16.mxu1 %v13617_v0 }
 0x8c9   :  { %v14453_v63 = vpop.eup %14452 }
 0x8cb   :  { %11052 = vmatpush1.bf16.msra.mxu0 %v13614_v45  ;;  %11093 = vmatpush1.bf16.msra.mxu1 %v13616_v15  ;;  %v13718_v45 = vcombine.low %v10387_v55, %v10391_v29  ;;  %v13720_v15 = vcombine.low %v10388_v32, %v10392_v42  ;;  %v10363_v32 = vld [vmem:[#allocation19 + $0x300] sm:$0xff] }
 0x8cc   :  { %v9125_v38 = vpop.f32.mrf.mxu0  ;;  %v9166_v47 = vpop.f32.mrf.mxu1  ;;  %11053 = vmatprep.subr.bf16.mxu0 %v13607_v10  ;;  %11094 = vmatprep.subr.bf16.mxu1 %v13609_v50  ;;  %v13711_v10 = vcombine.high %v10379_v49, %v10383_v51  ;;  %v13713_v50 = vcombine.high %v10380_v28, %v10384_v41 }
 0x8cd   :  { %v9185_v33 = vrot.slane %v9125_v38, 6  ;;  %v9187_v20 = vrot.slane %v9166_v47, 6  ;;  %v10372_v38 = vld [vmem:[#allocation19 + $0x348] sm:$0xff] }
 0x8ce   :  { %v9127_v2 = vpop.f32.mrf.mxu0  ;;  %v9168_v44 = vpop.f32.mrf.mxu1  ;;  %v10376_v47 = vld [vmem:[#allocation19 + $0x368] sm:$0xff] }
 0x8cf   :  { %v9201_v35 = vadd.f32 %v9185_v33, %v16142_v7  ;;  %v9186_v9 = vrot.slane %v9127_v2, 6  ;;  %11054 = vmatpush1.bf16.msra.mxu0 %v13606_v13  ;;  %11095 = vmatpush1.bf16.msra.mxu1 %v13608_v23  ;;  %v9188_v36 = vrot.slane %v9168_v44, 6  ;;  %v9203_v11 = vadd.f32 %v9187_v20, %v16277_v59  ;;  %v14455_v13 = vpop.eup %14454  ;;  %v10367_v20 = vld [vmem:[#allocation19 + $0x320] sm:$0xff] }
 0x8d0   :  { %v9129_v43 = vpop.f32.mrf.mxu0  ;;  %v9170_v21 = vpop.f32.mrf.mxu1  ;;  %11055 = vmatprep.subr.bf16.mxu0 %v13599_v24  ;;  %11096 = vmatprep.subr.bf16.mxu1 %v13601_v61  ;;  %v9261_v23 = vadd.f32 1.0, %v14451_v5  ;;  %v13710_v24 = vcombine.low %v10379_v49, %v10383_v51  ;;  %v13712_v61 = vcombine.low %v10380_v28, %v10384_v41  ;;  %v9253_v2 = vadd.f32 1.0, %v14453_v63  ;;  %v10359_v28 = vld [vmem:[#allocation19 + $0x2e0] sm:$0xff]  ;;  %v10356_v41 = vld [vmem:[#allocation19 + $0x2c8] sm:$0xff] }
 0x8d1   :  { %14458 = vtanh.f32 %v9201_v35  ;;  %v9202_v48 = vadd.f32 %v9186_v9, %v16145_v40  ;;  %v9204_v25 = vadd.f32 %v9188_v36, %v16280_v8  ;;  %v9267_v33 = vmul.f32 0.5, %v9203_v11  ;;  %v14457_v55 = vpop.eup %14456  ;;  %v10364_v9 = vld [vmem:[#allocation19 + $0x308] sm:$0xff] }
 0x8d2   :  { %v9130_v0 = vpop.f32.mrf.mxu0  ;;  %v9171_v19 = vpop.f32.mrf.mxu1  ;;  %v13703_v44 = vcombine.high %v10371_v12, %v10375_v31  ;;  %v13705_v29 = vcombine.high %v10372_v38, %v10376_v47  ;;  %v9262_v42 = vadd.f32 1.0, %v14455_v13  ;;  %v10368_v43 = vld [vmem:[#allocation19 + $0x328] sm:$0xff]  ;;  %v9263_v21 = vmul.f32 0.5, %v9261_v23  ;;  %v10351_v23 = vld [vmem:[#allocation19 + $0x2a0] sm:$0xff] }
 0x8d3   :  { %14460 = vtanh.f32 %v9202_v48  ;;  %11056 = vmatpush1.bf16.msra.mxu0 %v13598_v30  ;;  %11097 = vmatpush1.bf16.msra.mxu1 %v13600_v34  ;;  %v9268_v35 = vmul.f32 0.5, %v9204_v25  ;;  %v9254_v30 = vadd.f32 1.0, %v14457_v55  ;;  %v13702_v34 = vcombine.low %v10371_v12, %v10375_v31  ;;  %v10355_v0 = vld [vmem:[#allocation19 + $0x2c0] sm:$0xff]  ;;  %v10360_v11 = vld [vmem:[#allocation19 + $0x2e8] sm:$0xff] }
 0x8d4   :  { %11057 = vmatprep.subr.bf16.mxu0 %v13719_v46  ;;  %11098 = vmatprep.subr.bf16.mxu1 %v13721_v58  ;;  %14462 = vtanh.f32 %v9267_v33  ;;  %v13704_v48 = vcombine.low %v10372_v38, %v10376_v47  ;;  %v9255_v46 = vmul.f32 0.5, %v9253_v2  ;;  %v9277_v58 = vrot.slane %v16754_v27, 2  ;;  %v10347_v38 = vld [vmem:[#allocation19 + $0x280] sm:$0xff]  ;;  %v10348_v33 = vld [vmem:[#allocation19 + $0x288] sm:$0xff] }
 0x8d5   :  { %v13695_v49 = vcombine.high %v10363_v32, %v10367_v20  ;;  %v13697_v36 = vcombine.high %v10364_v9, %v10368_v43  ;;  %v9264_v51 = vmul.f32 0.5, %v9262_v42  ;;  %14464 = vtanh.f32 %v9268_v35  ;;  %v10340_v42 = vld [vmem:[#allocation19 + $0x248] sm:$0xff] }
 0x8d6   :  { %v9281_v5 = vmul.f32 %v9277_v58, %v9263_v21  ;;  %v13696_v27 = vcombine.low %v10364_v9, %v10368_v43  ;;  %v13687_v25 = vcombine.high %v10355_v0, %v10359_v28  ;;  %v13689_v31 = vcombine.high %v10356_v41, %v10360_v11  ;;  %v10344_v35 = vld [vmem:[#allocation19 + $0x268] sm:$0xff] }
 0x8d7   :  { %11058 = vmatpush2.bf16.msra.mxu0 %v13718_v45  ;;  %11099 = vmatpush2.bf16.msra.mxu1 %v13720_v15  ;;  %v9256_v15 = vmul.f32 0.5, %v9254_v30  ;;  %v13688_v55 = vcombine.low %v10356_v41, %v10360_v11  ;;  %v13679_v2 = vcombine.high %v10347_v38, %v10351_v23  ;;  %v13678_v9 = vcombine.low %v10347_v38, %v10351_v23  ;;  %v10336_v58 = vld [vmem:[#allocation19 + $0x228] sm:$0xff]  ;;  %v10325_v41 = vld [vmem:[#allocation19 + $0x1d0] sm:$0xff] }
 0x8d8   :  { %11059 = vmatprep.subr.bf16.mxu0 %v13711_v10  ;;  %11100 = vmatprep.subr.bf16.mxu1 %v13713_v50  ;;  %v9278_v10 = vrot.slane %v16757_v22, 2  ;;  %v13694_v50 = vcombine.low %v10363_v32, %v10367_v20  ;;  %v10343_v32 = vld [vmem:[#allocation19 + $0x260] sm:$0xff]  ;;  %v13673_v30 = vcombine.high %v10340_v42, %v10344_v35 }
 0x8da   :  { %v9282_v47 = vmul.f32 %v9278_v10, %v9264_v51 }
 0x8db   :  { %11060 = vmatpush2.bf16.msra.mxu0 %v13710_v24  ;;  %11101 = vmatpush2.bf16.msra.mxu1 %v13712_v61  ;;  %v10352_v24 = vld [vmem:[#allocation19 + $0x2a8] sm:$0xff]  ;;  %v13686_v61 = vcombine.low %v10355_v0, %v10359_v28 }
 0x8dc   :  { %11061 = vmatprep.subr.bf16.mxu0 %v13703_v44  ;;  %11102 = vmatprep.subr.bf16.mxu1 %v13705_v29  ;;  %v13681_v44 = vcombine.high %v10348_v33, %v10352_v24  ;;  %v10339_v29 = vld [vmem:[#allocation19 + $0x240] sm:$0xff]  ;;  %v13680_v43 = vcombine.low %v10348_v33, %v10352_v24 }
 0x8dd   :  { %v13671_v21 = vcombine.high %v10339_v29, %v10343_v32  ;;  %v13670_v0 = vcombine.low %v10339_v29, %v10343_v32 }
 0x8de   :  { %v14459_v19 = vpop.eup %14458 }
 0x8df   :  { %v9283_v45 = vmul.f32 %v14459_v19, %v9255_v46  ;;  %11062 = vmatpush2.bf16.msra.mxu0 %v13702_v34  ;;  %11103 = vmatpush2.bf16.msra.mxu1 %v13704_v48  ;;  %v10331_v34 = vld [vmem:[#allocation19 + $0x200] sm:$0xff]  ;;  %v10332_v46 = vld [vmem:[#allocation19 + $0x208] sm:$0xff]  ;;  %v13672_v19 = vcombine.low %v10340_v42, %v10344_v35 }
 0x8e0   :  { %v14461_v12 = vpop.eup %14460  ;;  %11063 = vmatprep.subr.bf16.mxu0 %v13695_v49  ;;  %11104 = vmatprep.subr.bf16.mxu1 %v13697_v36  ;;  %v10335_v48 = vld [vmem:[#allocation19 + $0x220] sm:$0xff]  ;;  %v13665_v28 = vcombine.high %v10332_v46, %v10336_v58 }
 0x8e1   :  { %v17222_v63 = vadd.f32 %v9283_v45, %v9281_v5  ;;  %v9284_v13 = vmul.f32 %v14461_v12, %v9256_v15  ;;  %v14463_v20 = vpop.eup %14462  ;;  %v13663_v51 = vcombine.high %v10331_v34, %v10335_v48  ;;  %v10329_v5 = vld [vmem:[#allocation19 + $0x1f0] sm:$0xff]  ;;  %v10326_v45 = vld [vmem:[#allocation19 + $0x1d8] sm:$0xff]  ;;  %v13664_v12 = vcombine.low %v10332_v46, %v10336_v58 }
 0x8e2   :  { %v14465_v49 = vpop.eup %14464  ;;  %v9271_v36 = vadd.f32 1.0, %v14463_v20  ;;  %v10330_v15 = vld [vmem:[#allocation19 + $0x1f8] sm:$0xff]  ;;  %v13658_v32 = vcombine.low %v10325_v41, %v10329_v5  ;;  %v10309_v20 = vld [vmem:[#allocation19 + $0x150] sm:$0xff] }
 0x8e3   :  { %14466 = vtanh.f32 %v17222_v63  ;;  %v17225_v22 = vadd.f32 %v9284_v13, %v9282_v47  ;;  %11064 = vmatpush2.bf16.msra.mxu0 %v13694_v50  ;;  %11105 = vmatpush2.bf16.msra.mxu1 %v13696_v27  ;;  %v9272_v11 = vadd.f32 1.0, %v14465_v49  ;;  %v13662_v27 = vcombine.low %v10331_v34, %v10335_v48  ;;  %v10314_v34 = vld [vmem:[#allocation19 + $0x178] sm:$0xff] }
 0x8e4   :  { %11065 = vmatprep.subr.bf16.mxu0 %v13687_v25  ;;  %11106 = vmatprep.subr.bf16.mxu1 %v13689_v31  ;;  %v9273_v10 = vmul.f32 0.5, %v9271_v36  ;;  %v13659_v31 = vcombine.high %v10325_v41, %v10329_v5  ;;  %v13661_v38 = vcombine.high %v10326_v45, %v10330_v15  ;;  %v13660_v42 = vcombine.low %v10326_v45, %v10330_v15  ;;  %v10301_v36 = vld [vmem:[#allocation19 + $0x110] sm:$0xff] }
 0x8e5   :  { %14468 = vtanh.f32 %v17225_v22  ;;  %v9274_v47 = vmul.f32 0.5, %v9272_v11  ;;  %v10293_v45 = vld [vmem:[#allocation19 + $0xd0] sm:$0xff] }
 0x8e6   :  { %v10297_v15 = vld [vmem:[#allocation19 + $0xf0] sm:$0xff] }
 0x8e7   :  { %11066 = vmatpush2.bf16.msra.mxu0 %v13686_v61  ;;  %11107 = vmatpush2.bf16.msra.mxu1 %v13688_v55  ;;  %v10317_v61 = vld [vmem:[#allocation19 + $0x190] sm:$0xff] }
 0x8e8   :  { %11067 = vmatprep.subr.bf16.mxu0 %v13679_v2  ;;  %11108 = vmatprep.subr.bf16.mxu1 %v13681_v44  ;;  %v10321_v55 = vld [vmem:[#allocation19 + $0x1b0] sm:$0xff]  ;;  %v10318_v2 = vld [vmem:[#allocation19 + $0x198] sm:$0xff] }
 0x8e9   :  { %v10322_v44 = vld [vmem:[#allocation19 + $0x1b8] sm:$0xff]  ;;  %v13650_v48 = vcombine.low %v10317_v61, %v10321_v55 }
 0x8ea   :  { %v13652_v46 = vcombine.low %v10318_v2, %v10322_v44 }
 0x8eb   :  { %11068 = vmatpush2.bf16.msra.mxu0 %v13678_v9  ;;  %11109 = vmatpush2.bf16.msra.mxu1 %v13680_v43  ;;  %v13651_v9 = vcombine.high %v10317_v61, %v10321_v55  ;;  %v13653_v43 = vcombine.high %v10318_v2, %v10322_v44  ;;  %v10277_v2 = vld [vmem:[#allocation19 + $0x50] sm:$0xff] }
 0x8ec   :  { %11069 = vmatprep.subr.bf16.mxu0 %v13671_v21  ;;  %11110 = vmatprep.subr.bf16.mxu1 %v13673_v30  ;;  %v10313_v21 = vld [vmem:[#allocation19 + $0x170] sm:$0xff]  ;;  %v10310_v30 = vld [vmem:[#allocation19 + $0x158] sm:$0xff] }
 0x8ed   :  { %v13643_v58 = vcombine.high %v10309_v20, %v10313_v21  ;;  %v13645_v49 = vcombine.high %v10310_v30, %v10314_v34  ;;  %v13644_v41 = vcombine.low %v10310_v30, %v10314_v34  ;;  %v10281_v44 = vld [vmem:[#allocation19 + $0x70] sm:$0xff]  ;;  %v10270_v34 = vld [vmem:[#allocation19 + $0x18] sm:$0xff] }
 0x8ee   :  { %v10273_v30 = vld [vmem:[#allocation19 + $0x30] sm:$0xff] }
 0x8ef   :  { %11070 = vmatpush2.bf16.msra.mxu0 %v13670_v0  ;;  %11111 = vmatpush2.bf16.msra.mxu1 %v13672_v19  ;;  %v10305_v0 = vld [vmem:[#allocation19 + $0x130] sm:$0xff]  ;;  %v10302_v19 = vld [vmem:[#allocation19 + $0x118] sm:$0xff] }
 0x8f0   :  { %v14467_v50 = vpop.eup %14466  ;;  %11071 = vmatprep.subr.bf16.mxu0 %v13663_v51  ;;  %11112 = vmatprep.subr.bf16.mxu1 %v13665_v28  ;;  %v10306_v51 = vld [vmem:[#allocation19 + $0x138] sm:$0xff]  ;;  %v13642_v28 = vcombine.low %v10309_v20, %v10313_v21  ;;  %v13635_v11 = vcombine.high %v10301_v36, %v10305_v0  ;;  %v10269_v21 = vld [vmem:[#allocation19 + $0x10] sm:$0xff] }
 0x8f1   :  { %v9289_v25 = vmul.f32 %v14467_v50, %v9273_v10  ;;  %v13637_v5 = vcombine.high %v10302_v19, %v10306_v51  ;;  %v10294_v10 = vld [vmem:[#allocation19 + $0xd8] sm:$0xff] }
 0x8f2   :  { %v14469_v13 = vpop.eup %14468  ;;  %v10298_v50 = vld [vmem:[#allocation19 + $0xf8] sm:$0xff] }
 0x8f3   :  { %9291 = vst [vmem:[#allocation3 + $0x8] sm:$0xc] %v9289_v25  ;;  %v9290_v23 = vmul.f32 %v14469_v13, %v9274_v47  ;;  %11072 = vmatpush2.bf16.msra.mxu0 %v13662_v27  ;;  %11113 = vmatpush2.bf16.msra.mxu1 %v13664_v12  ;;  %v10265_v33 = vpack.c.bf16 %v9289_v25, %v9289_v25  ;;  %v10289_v47 = vld [vmem:[#allocation19 + $0xb0] sm:$0xff]  ;;  %v10286_v13 = vld [vmem:[#allocation19 + $0x98] sm:$0xff] }
 0x8f4   :  { %11123 = vmatprep.subr.bf16.mxu0 %v13659_v31  ;;  %11164 = vmatprep.subr.bf16.mxu1 %v13661_v38  ;;  %v13634_v27 = vcombine.low %v10301_v36, %v10305_v0  ;;  %v13636_v12 = vcombine.low %v10302_v19, %v10306_v51  ;;  %v13627_v25 = vcombine.high %v10293_v45, %v10297_v15  ;;  %v10285_v38 = vld [vmem:[#allocation19 + $0x90] sm:$0xff]  ;;  %v10390_v51 = vld [vmem:[#allocation19 + $0x3d8] sm:$0xff] }
 0x8f5   :  { %9292 = vst [vmem:[#allocation3] sm:$0xc] %v9290_v23  ;;  %v10266_v24 = vpack.c.bf16 %v9290_v23, %v9290_v23  ;;  %v17228_v35 = vrot.slane %v10265_v33, 1  ;;  %v13629_v31 = vcombine.high %v10294_v10, %v10298_v50  ;;  %v10290_v23 = vld [vmem:[#allocation19 + $0xb8] sm:$0xff]  ;;  %v13626_v33 = vcombine.low %v10293_v45, %v10297_v15  ;;  %v10389_v0 = vld [vmem:[#allocation19 + $0x3d0] sm:$0xff] }
 0x8f6   :  { %v13619_v61 = vcombine.high %v10285_v38, %v10289_v47  ;;  %v13621_v55 = vcombine.high %v10286_v13, %v10290_v23  ;;  %v13620_v20 = vcombine.low %v10286_v13, %v10290_v23  ;;  %v10393_v19 = vld [vmem:[#allocation19 + $0x3f0] sm:$0xff]  ;;  %v10374_v23 = vld [vmem:[#allocation19 + $0x358] sm:$0xff] }
 0x8f7   :  { %v10398_v29 = vrot.slane %v10266_v24, 1  ;;  %v13628_v24 = vcombine.low %v10294_v10, %v10298_v50  ;;  %v10381_v15 = vld [vmem:[#allocation19 + $0x390] sm:$0xff]  ;;  %v10382_v50 = vld [vmem:[#allocation19 + $0x398] sm:$0xff] }
 0x8f8   :  { %v10385_v10 = vld [vmem:[#allocation19 + $0x3b0] sm:$0xff] }
 0x8f9   :  { %11073 = vmatprep.mubr.bf16.mxu0 %v10398_v29  ;;  %11114 = vmatprep.mubr.bf16.mxu1 %v10398_v29  ;;  %v10377_v13 = vld [vmem:[#allocation19 + $0x370] sm:$0xff] }
 0x8fa   :  { %11074 = vmatmul.mubr.bf16.vlgmr.msra.gmra.mxu0 %v17228_v35  ;;  %11115 = vmatmul.mubr.bf16.vlgmr.msra.gmra.mxu1 %v17228_v35 }
 0x8fb   :  { %11124 = vmatpush1.bf16.msra.mxu0 %v13658_v32  ;;  %11165 = vmatpush1.bf16.msra.mxu1 %v13660_v42  ;;  %v10282_v32 = vld [vmem:[#allocation19 + $0x78] sm:$0xff]  ;;  %v13618_v42 = vcombine.low %v10285_v38, %v10289_v47  ;;  %v10373_v47 = vld [vmem:[#allocation19 + $0x350] sm:$0xff] }
 0x8fc   :  { %11155 = vmatprep.mubr.bf16.mxu0 %v10398_v29  ;;  %11196 = vmatprep.mubr.bf16.mxu1 %v10398_v29  ;;  %v10278_v29 = vld [vmem:[#allocation19 + $0x58] sm:$0xff] }
 0x8fd   :  { %11125 = vmatprep.subr.bf16.mxu0 %v13651_v9  ;;  %11166 = vmatprep.subr.bf16.mxu1 %v13653_v43  ;;  %v13611_v9 = vcombine.high %v10277_v2, %v10281_v44  ;;  %v13613_v43 = vcombine.high %v10278_v29, %v10282_v32 }
 0x8ff   :  { %11126 = vmatpush1.bf16.msra.mxu0 %v13650_v48  ;;  %11167 = vmatpush1.bf16.msra.mxu1 %v13652_v46  ;;  %v10274_v48 = vld [vmem:[#allocation19 + $0x38] sm:$0xff]  ;;  %v13610_v46 = vcombine.low %v10277_v2, %v10281_v44  ;;  %v10365_v44 = vld [vmem:[#allocation19 + $0x310] sm:$0xff] }
 0x900   :  { %11127 = vmatprep.subr.bf16.mxu0 %v13643_v58  ;;  %11168 = vmatprep.subr.bf16.mxu1 %v13645_v49  ;;  %v13612_v58 = vcombine.low %v10278_v29, %v10282_v32  ;;  %v13603_v49 = vcombine.high %v10269_v21, %v10273_v30  ;;  %v13605_v36 = vcombine.high %v10270_v34, %v10274_v48  ;;  %v10369_v29 = vld [vmem:[#allocation19 + $0x330] sm:$0xff]  ;;  %v10366_v32 = vld [vmem:[#allocation19 + $0x318] sm:$0xff] }
 0x903   :  { %11128 = vmatpush1.bf16.msra.mxu0 %v13642_v28  ;;  %11169 = vmatpush1.bf16.msra.mxu1 %v13644_v41  ;;  %v10394_v28 = vld [vmem:[#allocation19 + $0x3f8] sm:$0xff]  ;;  %v13602_v41 = vcombine.low %v10269_v21, %v10273_v30  ;;  %v10357_v30 = vld [vmem:[#allocation19 + $0x2d0] sm:$0xff] }
 0x904   :  { %11129 = vmatprep.subr.bf16.mxu0 %v13635_v11  ;;  %11170 = vmatprep.subr.bf16.mxu1 %v13637_v5  ;;  %v13604_v11 = vcombine.low %v10270_v34, %v10274_v48  ;;  %v13723_v5 = vcombine.high %v10389_v0, %v10393_v19  ;;  %v13725_v45 = vcombine.high %v10390_v51, %v10394_v28  ;;  %v10361_v34 = vld [vmem:[#allocation19 + $0x2f0] sm:$0xff]  ;;  %v10358_v48 = vld [vmem:[#allocation19 + $0x2d8] sm:$0xff] }
 0x907   :  { %11130 = vmatpush1.bf16.msra.mxu0 %v13634_v27  ;;  %11171 = vmatpush1.bf16.msra.mxu1 %v13636_v12  ;;  %v10386_v27 = vld [vmem:[#allocation19 + $0x3b8] sm:$0xff]  ;;  %v13722_v12 = vcombine.low %v10389_v0, %v10393_v19  ;;  %v10349_v19 = vld [vmem:[#allocation19 + $0x290] sm:$0xff] }
 0x908   :  { %11131 = vmatprep.subr.bf16.mxu0 %v13627_v25  ;;  %11172 = vmatprep.subr.bf16.mxu1 %v13629_v31  ;;  %v13724_v25 = vcombine.low %v10390_v51, %v10394_v28  ;;  %v13715_v31 = vcombine.high %v10381_v15, %v10385_v10  ;;  %v13717_v38 = vcombine.high %v10382_v50, %v10386_v27  ;;  %v10353_v51 = vld [vmem:[#allocation19 + $0x2b0] sm:$0xff]  ;;  %v10350_v28 = vld [vmem:[#allocation19 + $0x298] sm:$0xff] }
 0x90b   :  { %11132 = vmatpush1.bf16.msra.mxu0 %v13626_v33  ;;  %11173 = vmatpush1.bf16.msra.mxu1 %v13628_v24  ;;  %v10378_v33 = vld [vmem:[#allocation19 + $0x378] sm:$0xff]  ;;  %v13714_v24 = vcombine.low %v10381_v15, %v10385_v10  ;;  %v10341_v10 = vld [vmem:[#allocation19 + $0x250] sm:$0xff] }
 0x90c   :  { %11133 = vmatprep.subr.bf16.mxu0 %v13619_v61  ;;  %11174 = vmatprep.subr.bf16.mxu1 %v13621_v55  ;;  %v13716_v61 = vcombine.low %v10382_v50, %v10386_v27  ;;  %v13707_v55 = vcombine.high %v10373_v47, %v10377_v13  ;;  %v13709_v2 = vcombine.high %v10374_v23, %v10378_v33  ;;  %v10345_v50 = vld [vmem:[#allocation19 + $0x270] sm:$0xff]  ;;  %v10342_v27 = vld [vmem:[#allocation19 + $0x258] sm:$0xff] }
 0x90f   :  { %11134 = vmatpush1.bf16.msra.mxu0 %v13618_v42  ;;  %11175 = vmatpush1.bf16.msra.mxu1 %v13620_v20  ;;  %v10370_v42 = vld [vmem:[#allocation19 + $0x338] sm:$0xff]  ;;  %v13706_v20 = vcombine.low %v10373_v47, %v10377_v13  ;;  %v10333_v13 = vld [vmem:[#allocation19 + $0x210] sm:$0xff] }
 0x910   :  { %11135 = vmatprep.subr.bf16.mxu0 %v13611_v9  ;;  %11176 = vmatprep.subr.bf16.mxu1 %v13613_v43  ;;  %v13708_v9 = vcombine.low %v10374_v23, %v10378_v33  ;;  %v13699_v43 = vcombine.high %v10365_v44, %v10369_v29  ;;  %v13701_v21 = vcombine.high %v10366_v32, %v10370_v42  ;;  %v10337_v23 = vld [vmem:[#allocation19 + $0x230] sm:$0xff]  ;;  %v10334_v33 = vld [vmem:[#allocation19 + $0x218] sm:$0xff] }
 0x913   :  { %11136 = vmatpush1.bf16.msra.mxu0 %v13610_v46  ;;  %11177 = vmatpush1.bf16.msra.mxu1 %v13612_v58  ;;  %v10362_v46 = vld [vmem:[#allocation19 + $0x2f8] sm:$0xff]  ;;  %v13698_v58 = vcombine.low %v10365_v44, %v10369_v29  ;;  %v13666_v29 = vcombine.low %v10333_v13, %v10337_v23 }
 0x914   :  { %11137 = vmatprep.subr.bf16.mxu0 %v13603_v49  ;;  %11178 = vmatprep.subr.bf16.mxu1 %v13605_v36  ;;  %v13700_v49 = vcombine.low %v10366_v32, %v10370_v42  ;;  %v13691_v36 = vcombine.high %v10357_v30, %v10361_v34  ;;  %v13693_v0 = vcombine.high %v10358_v48, %v10362_v46  ;;  %v14185_v42 = vld [vmem:[%s17632_s15 + $0x74] ss:$8 sps:$4 sm:$0xff]  }
 0x917   :  { %11138 = vmatpush1.bf16.msra.mxu0 %v13602_v41  ;;  %11179 = vmatpush1.bf16.msra.mxu1 %v13604_v11  ;;  %v10354_v41 = vld [vmem:[#allocation19 + $0x2b8] sm:$0xff]  ;;  %v13690_v11 = vcombine.low %v10357_v30, %v10361_v34 }
 0x918   :  { %11139 = vmatprep.subr.bf16.mxu0 %v13723_v5  ;;  %11180 = vmatprep.subr.bf16.mxu1 %v13725_v45  ;;  %v13692_v5 = vcombine.low %v10358_v48, %v10362_v46  ;;  %v13683_v45 = vcombine.high %v10349_v19, %v10353_v51  ;;  %v13685_v15 = vcombine.high %v10350_v28, %v10354_v41  ;;  %v14188_v34 = vld [vmem:[%s17632_s15 + $0x64] ss:$8 sps:$4 sm:$0xff]  }
 0x91b   :  { %11140 = vmatpush2.bf16.msra.mxu0 %v13722_v12  ;;  %11181 = vmatpush2.bf16.msra.mxu1 %v13724_v25  ;;  %v10346_v12 = vld [vmem:[#allocation19 + $0x278] sm:$0xff]  ;;  %v13682_v25 = vcombine.low %v10349_v19, %v10353_v51  ;;  %v14189_v19 = vld [vmem:[%s17632_s15 + $0x50] ss:$8 sps:$4 sm:$0xff]  }
 0x91c   :  { %11141 = vmatprep.subr.bf16.mxu0 %v13715_v31  ;;  %11182 = vmatprep.subr.bf16.mxu1 %v13717_v38  ;;  %v13684_v31 = vcombine.low %v10350_v28, %v10354_v41  ;;  %v13675_v38 = vcombine.high %v10341_v10, %v10345_v50  ;;  %v13677_v47 = vcombine.high %v10342_v27, %v10346_v12  ;;  %v14192_v51 = vld [vmem:[%s17632_s15 + $0x40] ss:$8 sps:$4 sm:$0xff]   ;;  %v14197_v28 = vld [vmem:[%s17632_s15 + $0x34] ss:$8 sps:$4 sm:$0xff]   ;;  %v14195_v41 = vld [vmem:[%s17632_s15 + $0x30] ss:$8 sps:$4 sm:$0xff]  }
 0x91f   :  { %11142 = vmatpush2.bf16.msra.mxu0 %v13714_v24  ;;  %11183 = vmatpush2.bf16.msra.mxu1 %v13716_v61  ;;  %v10338_v24 = vld [vmem:[#allocation19 + $0x238] sm:$0xff]  ;;  %v13674_v61 = vcombine.low %v10341_v10, %v10345_v50 }
 0x920   :  { %11143 = vmatprep.subr.bf16.mxu0 %v13707_v55  ;;  %11184 = vmatprep.subr.bf16.mxu1 %v13709_v2  ;;  %v13676_v55 = vcombine.low %v10342_v27, %v10346_v12  ;;  %v13667_v2 = vcombine.high %v10333_v13, %v10337_v23  ;;  %v13669_v44 = vcombine.high %v10334_v33, %v10338_v24  ;;  %v14206_v10 = vld [vmem:[%s17632_s15 + $0x4] ss:$8 sps:$4 sm:$0xff]   ;;  %v14204_v50 = vld [vmem:[%s17632_s15] ss:$8 sps:$4 sm:$0xff]   ;;  %v14209_v27 = vld [vmem:[%s17632_s15 + $0xf4] ss:$8 sps:$4 sm:$0xff]  }
 0x921   :  { %v13668_v32 = vcombine.low %v10334_v33, %v10338_v24  ;;  %v14231_v12 = vld [vmem:[%s17633_s16 + $0x70] ss:$8 sps:$4 sm:$0xff]   ;;  %v14212_v13 = vld [vmem:[%s17632_s15 + $0xe4] ss:$8 sps:$4 sm:$0xff]   ;;  %v14239_v23 = vld [vmem:[%s17633_s16 + $0x54] ss:$8 sps:$4 sm:$0xff]  }
 0x922   :  { %v14210_v33 = vld [vmem:[%s17632_s15 + $0xe0] ss:$8 sps:$4 sm:$0xff]   ;;  %v14237_v24 = vld [vmem:[%s17633_s16 + $0x50] ss:$8 sps:$4 sm:$0xff]  }
 0x923   :  { %11144 = vmatpush2.bf16.msra.mxu0 %v13706_v20  ;;  %11185 = vmatpush2.bf16.msra.mxu1 %v13708_v9 }
 0x924   :  { %11145 = vmatprep.subr.bf16.mxu0 %v13699_v43  ;;  %11186 = vmatprep.subr.bf16.mxu1 %v13701_v21  ;;  %v14183_v43 = vld [vmem:[%s17632_s15 + $0x70] ss:$8 sps:$4 sm:$0xff]  }
 0x927   :  { %11146 = vmatpush2.bf16.msra.mxu0 %v13698_v58  ;;  %11187 = vmatpush2.bf16.msra.mxu1 %v13700_v49  ;;  %v14186_v58 = vld [vmem:[%s17632_s15 + $0x60] ss:$8 sps:$4 sm:$0xff]  }
 0x928   :  { %11147 = vmatprep.subr.bf16.mxu0 %v13691_v36  ;;  %11188 = vmatprep.subr.bf16.mxu1 %v13693_v0  ;;  %v14191_v0 = vld [vmem:[%s17632_s15 + $0x54] ss:$8 sps:$4 sm:$0xff]  }
 0x92b   :  { %11148 = vmatpush2.bf16.msra.mxu0 %v13690_v11  ;;  %11189 = vmatpush2.bf16.msra.mxu1 %v13692_v5  ;;  %v14200_v11 = vld [vmem:[%s17632_s15 + $0x24] ss:$8 sps:$4 sm:$0xff]   ;;  %v14198_v5 = vld [vmem:[%s17632_s15 + $0x20] ss:$8 sps:$4 sm:$0xff]  }
 0x92c   :  { %11149 = vmatprep.subr.bf16.mxu0 %v13683_v45  ;;  %11190 = vmatprep.subr.bf16.mxu1 %v13685_v15  ;;  %v14203_v45 = vld [vmem:[%s17632_s15 + $0x14] ss:$8 sps:$4 sm:$0xff]   ;;  %v14201_v15 = vld [vmem:[%s17632_s15 + $0x10] ss:$8 sps:$4 sm:$0xff]  }
 0x92f   :  { %11150 = vmatpush2.bf16.msra.mxu0 %v13682_v25  ;;  %11191 = vmatpush2.bf16.msra.mxu1 %v13684_v31  ;;  %v14233_v25 = vld [vmem:[%s17633_s16 + $0x74] ss:$8 sps:$4 sm:$0xff]   ;;  %v14236_v31 = vld [vmem:[%s17633_s16 + $0x64] ss:$8 sps:$4 sm:$0xff]  }
 0x930   :  { %11151 = vmatprep.subr.bf16.mxu0 %v13675_v38  ;;  %11192 = vmatprep.subr.bf16.mxu1 %v13677_v47  ;;  %v14207_v38 = vld [vmem:[%s17632_s15 + $0xf0] ss:$8 sps:$4 sm:$0xff]   ;;  %v14234_v47 = vld [vmem:[%s17633_s16 + $0x60] ss:$8 sps:$4 sm:$0xff]  }
 0x933   :  { %11152 = vmatpush2.bf16.msra.mxu0 %v13674_v61  ;;  %11193 = vmatpush2.bf16.msra.mxu1 %v13676_v55  ;;  %v14215_v61 = vld [vmem:[%s17632_s15 + $0xd4] ss:$8 sps:$4 sm:$0xff]   ;;  %v14242_v55 = vld [vmem:[%s17633_s16 + $0x44] ss:$8 sps:$4 sm:$0xff]  }
 0x934   :  { %11153 = vmatprep.subr.bf16.mxu0 %v13667_v2  ;;  %11194 = vmatprep.subr.bf16.mxu1 %v13669_v44  ;;  %v14213_v2 = vld [vmem:[%s17632_s15 + $0xd0] ss:$8 sps:$4 sm:$0xff]   ;;  %v14240_v44 = vld [vmem:[%s17633_s16 + $0x40] ss:$8 sps:$4 sm:$0xff]  }
 0x936   :  { %v17235_v20 = vpop.f32.mrf.mxu0  ;;  %v17237_v9 = vpop.f32.mrf.mxu1 }
 0x937   :  { %11154 = vmatpush2.bf16.msra.mxu0 %v13666_v29  ;;  %11195 = vmatpush2.bf16.msra.mxu1 %v13668_v32  ;;  %v14218_v29 = vld [vmem:[%s17632_s15 + $0xc4] ss:$8 sps:$4 sm:$0xff]   ;;  %v14216_v32 = vld [vmem:[%s17632_s15 + $0xc0] ss:$8 sps:$4 sm:$0xff]  }
 0x938   :  { %v17242_v21 = vpop.f32.mrf.mxu0  ;;  %v17244_v30 = vpop.f32.mrf.mxu1  ;;  %11734 = vmatprep.subr.bf16.mxu1 %v14185_v42  ;;  %11533 = vmatprep.subr.bf16.mxu0 %v14233_v25  ;;  %v14221_v42 = vld [vmem:[%s17632_s15 + $0xb4] ss:$8 sps:$4 sm:$0xff]  }
 0x93a   :  { %11156 = vmatmul.mubr.bf16.vlgmr.msra.gmra.mxu0 %v17228_v35  ;;  %11197 = vmatmul.mubr.bf16.vlgmr.msra.gmra.mxu1 %v17228_v35  ;;  %v10107_v48 = vpop.f32.mrf.mxu0  ;;  %v10148_v46 = vpop.f32.mrf.mxu1  ;;  %v14194_v35 = vld [vmem:[%s17632_s15 + $0x44] ss:$8 sps:$4 sm:$0xff]  }
 0x93b   :  { %11735 = vmatpush1.bf16.msra.mxu1 %v14183_v43  ;;  %11534 = vmatpush1.bf16.msra.mxu0 %v14231_v12  ;;  %v10243_v43 = vrot.slane %v17237_v9, 2  ;;  %v14219_v48 = vld [vmem:[%s17632_s15 + $0xb0] ss:$8 sps:$4 sm:$0xff]   ;;  %v10244_v46 = vrot.slane %v17244_v30, 2  ;;  %v14227_v30 = vld [vmem:[%s17632_s15 + $0x94] ss:$8 sps:$4 sm:$0xff]  }
 0x93c   :  { %v10108_v49 = vpop.f32.mrf.mxu0  ;;  %v10149_v36 = vpop.f32.mrf.mxu1  ;;  %11736 = vmatprep.subr.bf16.mxu1 %v14188_v34  ;;  %11535 = vmatprep.subr.bf16.mxu0 %v14236_v31  ;;  %v10241_v34 = vrot.slane %v17235_v20, 2  ;;  %v14222_v20 = vld [vmem:[%s17632_s15 + $0xa0] ss:$8 sps:$4 sm:$0xff]   ;;  %v14245_v31 = vld [vmem:[%s17633_s16 + $0x34] ss:$8 sps:$4 sm:$0xff]  }
 0x93d   :  { %v10259_v49 = vadd.f32 %v10243_v43, %v15942_v57  ;;  %v10242_v36 = vrot.slane %v17242_v21, 2 }
 0x93e   :  { %v10257_v9 = vadd.f32 %v10241_v34, %v15835_v4  ;;  %v14225_v4 = vld [vmem:[%s17632_s15 + $0x90] ss:$8 sps:$4 sm:$0xff]  }
 0x93f   :  { %11737 = vmatpush1.bf16.msra.mxu1 %v14186_v58  ;;  %11536 = vmatpush1.bf16.msra.mxu0 %v14234_v47  ;;  %v14224_v58 = vld [vmem:[%s17632_s15 + $0xa4] ss:$8 sps:$4 sm:$0xff]  }
 0x940   :  { %11738 = vmatprep.subr.bf16.mxu1 %v14191_v0  ;;  %11537 = vmatprep.subr.bf16.mxu0 %v14239_v23  ;;  %v10260_v0 = vadd.f32 %v10244_v46, %v15951_v3  ;;  %v11213_v57 = vmul.f32 0.5, %v10257_v9  ;;  %v14230_v3 = vld [vmem:[%s17632_s15 + $0x84] ss:$8 sps:$4 sm:$0xff]   ;;  %v14243_v23 = vld [vmem:[%s17633_s16 + $0x30] ss:$8 sps:$4 sm:$0xff]  }
 0x942   :  { %v11222_v21 = vmul.f32 0.5, %v10260_v0  ;;  %v14252_v0 = vld [vmem:[%s17633_s16] ss:$8 sps:$4 sm:$0xff]  }
 0x943   :  { %11739 = vmatpush1.bf16.msra.mxu1 %v14189_v19  ;;  %11538 = vmatpush1.bf16.msra.mxu0 %v14237_v24  ;;  %v11221_v19 = vmul.f32 0.5, %v10259_v49  ;;  %v11241_v49 = vrot.slane %v17004_v37, 6 }
 0x944   :  { %11740 = vmatprep.subr.bf16.mxu1 %v14194_v35  ;;  %11539 = vmatprep.subr.bf16.mxu0 %v14242_v55  ;;  %v10258_v35 = vadd.f32 %v10242_v36, %v15838_v17  ;;  %v14228_v17 = vld [vmem:[%s17632_s15 + $0x80] ss:$8 sps:$4 sm:$0xff]   ;;  %v14254_v36 = vld [vmem:[%s17633_s16 + $0x4] ss:$8 sps:$4 sm:$0xff]  }
 0x945   :  { %14470 = vtanh.f32 %v11221_v19  ;;  %v14246_v55 = vld [vmem:[%s17633_s16 + $0x20] ss:$8 sps:$4 sm:$0xff]  }
 0x946   :  { %14472 = vtanh.f32 %v11213_v57  ;;  %v11242_v57 = vrot.slane %v17007_v16, 6  ;;  %v14260_v16 = vld [vmem:[%s17633_s16 + $0xe4] ss:$8 sps:$4 sm:$0xff]  }
 0x947   :  { %11741 = vmatpush1.bf16.msra.mxu1 %v14192_v51  ;;  %11540 = vmatpush1.bf16.msra.mxu0 %v14240_v44  ;;  %v11214_v51 = vmul.f32 0.5, %v10258_v35  ;;  %14474 = vtanh.f32 %v11222_v21  ;;  %v14257_v21 = vld [vmem:[%s17633_s16 + $0xf4] ss:$8 sps:$4 sm:$0xff]  }
 0x948   :  { %11742 = vmatprep.subr.bf16.mxu1 %v14197_v28  ;;  %11541 = vmatprep.subr.bf16.mxu0 %v14245_v31 }
 0x949   :  { %14476 = vtanh.f32 %v11214_v51 }
 0x94b   :  { %11743 = vmatpush1.bf16.msra.mxu1 %v14195_v41  ;;  %11542 = vmatpush1.bf16.msra.mxu0 %v14243_v23  ;;  %v14267_v23 = vld [vmem:[%s17633_s16 + $0xb0] ss:$8 sps:$4 sm:$0xff]  }
 0x94c   :  { %11744 = vmatprep.subr.bf16.mxu1 %v14200_v11 }
 0x94f   :  { %11745 = vmatpush1.bf16.msra.mxu1 %v14198_v5 }
 0x950   :  { %11746 = vmatprep.subr.bf16.mxu1 %v14203_v45 }
 0x953   :  { %11747 = vmatpush1.bf16.msra.mxu1 %v14201_v15 }
 0x954   :  { %11748 = vmatprep.subr.bf16.mxu1 %v14206_v10 }
 0x957   :  { %11749 = vmatpush1.bf16.msra.mxu1 %v14204_v50 }
 0x958   :  { %11750 = vmatprep.subr.bf16.mxu1 %v14209_v27 }
 0x95b   :  { %11751 = vmatpush2.bf16.msra.mxu1 %v14207_v38 }
 0x95c   :  { %11752 = vmatprep.subr.bf16.mxu1 %v14212_v13 }
 0x95f   :  { %11753 = vmatpush2.bf16.msra.mxu1 %v14210_v33  ;;  %v14471_v33 = vpop.eup %14470 }
 0x960   :  { %11754 = vmatprep.subr.bf16.mxu1 %v14215_v61  ;;  %v14473_v24 = vpop.eup %14472  ;;  %v11225_v44 = vadd.f32 1.0, %v14471_v33 }
 0x963   :  { %11755 = vmatpush2.bf16.msra.mxu1 %v14213_v2  ;;  %v14475_v2 = vpop.eup %14474 }
 0x964   :  { %11756 = vmatprep.subr.bf16.mxu1 %v14218_v29  ;;  %v11226_v43 = vadd.f32 1.0, %v14475_v2  ;;  %v14278_v2 = vld [vmem:[%s17633_s16 + $0x84] ss:$8 sps:$4 sm:$0xff]  }
 0x967   :  { %11757 = vmatpush2.bf16.msra.mxu1 %v14216_v32  ;;  %v11217_v32 = vadd.f32 1.0, %v14473_v24  ;;  %v14270_v24 = vld [vmem:[%s17633_s16 + $0xa0] ss:$8 sps:$4 sm:$0xff]  }
 0x968   :  { %11758 = vmatprep.subr.bf16.mxu1 %v14221_v42  ;;  %v14251_v42 = vld [vmem:[%s17633_s16 + $0x14] ss:$8 sps:$4 sm:$0xff]  }
 0x96b   :  { %11759 = vmatpush2.bf16.msra.mxu1 %v14219_v48  ;;  %v11227_v48 = vmul.f32 0.5, %v11225_v44 }
 0x96c   :  { %11760 = vmatprep.subr.bf16.mxu1 %v14224_v58  ;;  %v11219_v58 = vmul.f32 0.5, %v11217_v32 }
 0x96f   :  { %11761 = vmatpush2.bf16.msra.mxu1 %v14222_v20  ;;  %v11228_v20 = vmul.f32 0.5, %v11226_v43  ;;  %v14281_v43 = vld [vmem:[%s17634_s17 + $0x4] ss:$8 sps:$4 sm:$0xff]  }
 0x970   :  { %11762 = vmatprep.subr.bf16.mxu1 %v14227_v30  ;;  %v11245_v30 = vmul.f32 %v11241_v49, %v11227_v48 }
 0x973   :  { %11763 = vmatpush2.bf16.msra.mxu1 %v14225_v4 }
 0x974   :  { %11764 = vmatprep.subr.bf16.mxu1 %v14230_v3  ;;  %v11246_v3 = vmul.f32 %v11242_v57, %v11228_v20 }
 0x976   :  { %v10185_v28 = vpop.f32.mrf.mxu0  ;;  %v10226_v41 = vpop.f32.mrf.mxu1 }
 0x977   :  { %v10245_v11 = vrot.slane %v10185_v28, 2  ;;  %11765 = vmatpush2.bf16.msra.mxu1 %v14228_v17  ;;  %v10247_v10 = vrot.slane %v10226_v41, 2  ;;  %v14255_v17 = vld [vmem:[%s17633_s16 + $0xf0] ss:$8 sps:$4 sm:$0xff]   ;;  %v14258_v41 = vld [vmem:[%s17633_s16 + $0xe0] ss:$8 sps:$4 sm:$0xff]  }
 0x978   :  { %v10187_v5 = vpop.f32.mrf.mxu0  ;;  %v10228_v45 = vpop.f32.mrf.mxu1 }
 0x979   :  { %v10261_v15 = vadd.f32 %v10245_v11, %v15861_v60  ;;  %v10246_v50 = vrot.slane %v10187_v5, 2  ;;  %v10248_v38 = vrot.slane %v10228_v45, 2  ;;  %v10263_v60 = vadd.f32 %v10247_v10, %v16011_v18  ;;  %v14477_v18 = vpop.eup %14476  ;;  %v14263_v5 = vld [vmem:[%s17633_s16 + $0xd4] ss:$8 sps:$4 sm:$0xff]   ;;  %v14261_v45 = vld [vmem:[%s17633_s16 + $0xd0] ss:$8 sps:$4 sm:$0xff]  }
 0x97a   :  { %v10189_v27 = vpop.f32.mrf.mxu0  ;;  %v10230_v12 = vpop.f32.mrf.mxu1  ;;  %v11218_v46 = vadd.f32 1.0, %v14477_v18 }
 0x97b   :  { %14478 = vtanh.f32 %v10261_v15  ;;  %v10262_v25 = vadd.f32 %v10246_v50, %v15864_v62  ;;  %v14248_v62 = vld [vmem:[%s17633_s16 + $0x24] ss:$8 sps:$4 sm:$0xff]   ;;  %v10264_v61 = vadd.f32 %v10248_v38, %v16014_v14  ;;  %v11231_v29 = vmul.f32 0.5, %v10263_v60  ;;  %v14249_v14 = vld [vmem:[%s17633_s16 + $0x10] ss:$8 sps:$4 sm:$0xff]  }
 0x97c   :  { %v10190_v47 = vpop.f32.mrf.mxu0  ;;  %v10231_v13 = vpop.f32.mrf.mxu1  ;;  %11543 = vmatprep.subr.bf16.mxu0 %v14248_v62  ;;  %v11220_v35 = vmul.f32 0.5, %v11218_v46  ;;  %v14266_v50 = vld [vmem:[%s17633_s16 + $0xc4] ss:$8 sps:$4 sm:$0xff]   ;;  %v14264_v12 = vld [vmem:[%s17633_s16 + $0xc0] ss:$8 sps:$4 sm:$0xff]  }
 0x97d   :  { %14480 = vtanh.f32 %v10262_v25  ;;  %11544 = vmatpush1.bf16.msra.mxu0 %v14246_v55  ;;  %v11232_v34 = vmul.f32 0.5, %v10264_v61  ;;  %v14269_v47 = vld [vmem:[%s17633_s16 + $0xb4] ss:$8 sps:$4 sm:$0xff]   ;;  %v14272_v62 = vld [vmem:[%s17633_s16 + $0xa4] ss:$8 sps:$4 sm:$0xff]  }
 0x97e   :  { %14482 = vtanh.f32 %v11231_v29  ;;  %11545 = vmatprep.subr.bf16.mxu0 %v14251_v42  ;;  %v14273_v61 = vld [vmem:[%s17633_s16 + $0x90] ss:$8 sps:$4 sm:$0xff]   ;;  %v14275_v55 = vld [vmem:[%s17633_s16 + $0x94] ss:$8 sps:$4 sm:$0xff]   ;;  %v14276_v29 = vld [vmem:[%s17633_s16 + $0x80] ss:$8 sps:$4 sm:$0xff]  }
 0x97f   :  { %14484 = vtanh.f32 %v11232_v34 }
 0x981   :  { %11546 = vmatpush1.bf16.msra.mxu0 %v14249_v14 }
 0x982   :  { %11547 = vmatprep.subr.bf16.mxu0 %v14254_v36 }
 0x985   :  { %11548 = vmatpush1.bf16.msra.mxu0 %v14252_v0 }
 0x986   :  { %11549 = vmatprep.subr.bf16.mxu0 %v14257_v21 }
 0x988   :  { %v14479_v9 = vpop.eup %14478 }
 0x989   :  { %v11247_v19 = vmul.f32 %v14479_v9, %v11219_v58  ;;  %11550 = vmatpush2.bf16.msra.mxu0 %v14255_v17 }
 0x98a   :  { %v14481_v4 = vpop.eup %14480  ;;  %11551 = vmatprep.subr.bf16.mxu0 %v14260_v16 }
 0x98b   :  { %v11249_v37 = vadd.f32 %v11247_v19, %v11245_v30  ;;  %v11248_v51 = vmul.f32 %v14481_v4, %v11220_v35  ;;  %v14483_v11 = vpop.eup %14482 }
 0x98c   :  { %v14485_v15 = vpop.eup %14484  ;;  %v11235_v10 = vadd.f32 1.0, %v14483_v11 }
 0x98d   :  { %14486 = vtanh.f32 %v11249_v37  ;;  %v11250_v28 = vadd.f32 %v11248_v51, %v11246_v3  ;;  %11552 = vmatpush2.bf16.msra.mxu0 %v14258_v41  ;;  %v11236_v27 = vadd.f32 1.0, %v14485_v15 }
 0x98e   :  { %11553 = vmatprep.subr.bf16.mxu0 %v14263_v5  ;;  %v11237_v25 = vmul.f32 0.5, %v11235_v10 }
 0x98f   :  { %14488 = vtanh.f32 %v11250_v28  ;;  %v11238_v13 = vmul.f32 0.5, %v11236_v27 }
 0x991   :  { %11554 = vmatpush2.bf16.msra.mxu0 %v14261_v45 }
 0x992   :  { %11555 = vmatprep.subr.bf16.mxu0 %v14266_v50 }
 0x995   :  { %11556 = vmatpush2.bf16.msra.mxu0 %v14264_v12 }
 0x996   :  { %11557 = vmatprep.subr.bf16.mxu0 %v14269_v47 }
 0x999   :  { %11558 = vmatpush2.bf16.msra.mxu0 %v14267_v23 }
 0x99a   :  { %v14487_v31 = vpop.eup %14486  ;;  %11559 = vmatprep.subr.bf16.mxu0 %v14272_v62 }
 0x99b   :  { %v11253_v38 = vmul.f32 %v14487_v31, %v11237_v25 }
 0x99c   :  { %v14489_v60 = vpop.eup %14488 }
 0x99d   :  { %11255 = vst [vmem:[#allocation2] sm:$0xc0] %v11253_v38  ;;  %v11254_v33 = vmul.f32 %v14489_v60, %v11238_v13  ;;  %11560 = vmatpush2.bf16.msra.mxu0 %v14270_v24 }
 0x99e   :  { %11561 = vmatprep.subr.bf16.mxu0 %v14275_v55 }
 0x99f   :  { %11256 = vst [vmem:[#allocation2 + $0x8] sm:$0xc0] %v11254_v33 }
 0x9a1   :  { %11562 = vmatpush2.bf16.msra.mxu0 %v14273_v61 }
 0x9a2   :  { %11563 = vmatprep.subr.bf16.mxu0 %v14278_v2 }
 0x9a4   :  { %v11301_v44 = vld [vmem:[#allocation2] sm:$0xff] }
 0x9a5   :  { %v11303_v42 = vpack.c.bf16 %v11301_v44, %v11301_v44  ;;  %11564 = vmatpush2.bf16.msra.mxu0 %v14276_v29 }
 0x9a6   :  { %v11302_v18 = vld [vmem:[#allocation2 + $0x8] sm:$0xff]  ;;  %11801 = vmatprep.subr.bf16.mxu0 %v14281_v43 }
 0x9a7   :  { %v11304_v32 = vpack.c.bf16 %v11302_v18, %v11302_v18 }
 0x9a9   :  { %11766 = vmatprep.mubr.bf16.mxu1 %v11304_v32 }
 0x9aa   :  { %11767 = vmatmul.mubr.bf16.vlgmr.msra.gmra.mxu1 %v11303_v42 }
 0x9ba   :  { %v11075_v34 = vpop.f32.mrf.mxu0  ;;  %v11116_v14 = vpop.f32.mrf.mxu1 }
 0x9bb   :  { %v11207_v20 = vadd.f32 %v11116_v14, %v16262_v26  ;;  %v11205_v0 = vadd.f32 %v11075_v34, %v16079_v56 }
 0x9bc   :  { %v11077_v48 = vpop.f32.mrf.mxu0  ;;  %v11118_v46 = vpop.f32.mrf.mxu1 }
 0x9bd   :  { %v11208_v30 = vadd.f32 %v11118_v46, %v16266_v54  ;;  %v11265_v19 = vmul.f32 0.5, %v11207_v20  ;;  %v11206_v35 = vadd.f32 %v11077_v48, %v16095_v39  ;;  %v11257_v57 = vmul.f32 0.5, %v11205_v0  ;;  %v14282_v20 = vld [vmem:[%s17636_s19 + $0x70] ss:$8 sps:$4 sm:$0xff]   ;;  %v14287_v0 = vld [vmem:[%s17636_s19 + $0x64] ss:$8 sps:$4 sm:$0xff]  }
 0x9be   :  { %v11079_v58 = vpop.f32.mrf.mxu0  ;;  %v11120_v49 = vpop.f32.mrf.mxu1 }
 0x9bf   :  { %v11266_v4 = vmul.f32 0.5, %v11208_v30  ;;  %14490 = vtanh.f32 %v11265_v19  ;;  %v11258_v37 = vmul.f32 0.5, %v11206_v35  ;;  %v14279_v49 = vld [vmem:[%s17634_s17] ss:$8 sps:$4 sm:$0xff]   ;;  %v14290_v19 = vld [vmem:[%s17636_s19 + $0x54] ss:$8 sps:$4 sm:$0xff]  }
 0x9c0   :  { %v11080_v36 = vpop.f32.mrf.mxu0  ;;  %v11121_v9 = vpop.f32.mrf.mxu1  ;;  %14492 = vtanh.f32 %v11257_v57  ;;  %v14285_v30 = vld [vmem:[%s17636_s19 + $0x60] ss:$8 sps:$4 sm:$0xff]   ;;  %v14288_v35 = vld [vmem:[%s17636_s19 + $0x50] ss:$8 sps:$4 sm:$0xff]  }
 0x9c1   :  { %14494 = vtanh.f32 %v11266_v4  ;;  %v14284_v9 = vld [vmem:[%s17636_s19 + $0x74] ss:$8 sps:$4 sm:$0xff]   ;;  %v14291_v57 = vld [vmem:[%s17636_s19 + $0x40] ss:$8 sps:$4 sm:$0xff]  }
 0x9c2   :  { %14496 = vtanh.f32 %v11258_v37  ;;  %v14296_v4 = vld [vmem:[%s17636_s19 + $0x34] ss:$8 sps:$4 sm:$0xff]   ;;  %v14294_v37 = vld [vmem:[%s17636_s19 + $0x30] ss:$8 sps:$4 sm:$0xff]  }
 0x9cc   :  { %v14491_v16 = vpop.eup %14490 }
 0x9cd   :  { %v14493_v5 = vpop.eup %14492  ;;  %v11269_v10 = vadd.f32 1.0, %v14491_v16  ;;  %v14303_v16 = vld [vmem:[%s17636_s19] ss:$8 sps:$4 sm:$0xff]  }
 0x9ce   :  { %v14495_v15 = vpop.eup %14494  ;;  %v11261_v27 = vadd.f32 1.0, %v14493_v5 }
 0x9cf   :  { %v11270_v12 = vadd.f32 1.0, %v14495_v15  ;;  %v11271_v31 = vmul.f32 0.5, %v11269_v10  ;;  %v14310_v15 = vld [vmem:[%s17636_s19 + $0x84] ss:$8 sps:$4 sm:$0xff]   ;;  %v14308_v10 = vld [vmem:[%s17636_s19 + $0x80] ss:$8 sps:$4 sm:$0xff]  }
 0x9d0   :  { %v11263_v38 = vmul.f32 0.5, %v11261_v27  ;;  %v14316_v27 = vld [vmem:[%s17638_s21 + $0x64] ss:$8 sps:$4 sm:$0xff]  }
 0x9d1   :  { %v11272_v13 = vmul.f32 0.5, %v11270_v12  ;;  %v14314_v12 = vld [vmem:[%s17638_s21 + $0x60] ss:$8 sps:$4 sm:$0xff]  }
 0x9fa   :  { %v11157_v21 = vpop.f32.mrf.mxu0  ;;  %v11198_v3 = vpop.f32.mrf.mxu1 }
 0x9fb   :  { %v11209_v51 = vadd.f32 %v11157_v21, %v16142_v7  ;;  %v11211_v39 = vadd.f32 %v11198_v3, %v16277_v59  ;;  %v14497_v7 = vpop.eup %14496  ;;  %v11285_v59 = vrot.slane %v17222_v63, 2  ;;  %v14299_v3 = vld [vmem:[%s17636_s19 + $0x24] ss:$8 sps:$4 sm:$0xff]  }
 0x9fc   :  { %v11159_v17 = vpop.f32.mrf.mxu0  ;;  %v11200_v26 = vpop.f32.mrf.mxu1 }
 0x9fd   :  { %14498 = vtanh.f32 %v11209_v51  ;;  %v11210_v56 = vadd.f32 %v11159_v17, %v16145_v40  ;;  %v11212_v45 = vadd.f32 %v11200_v26, %v16280_v8  ;;  %v11275_v50 = vmul.f32 0.5, %v11211_v39  ;;  %v14297_v51 = vld [vmem:[%s17636_s19 + $0x20] ss:$8 sps:$4 sm:$0xff]   ;;  %v14305_v39 = vld [vmem:[%s17636_s19 + $0x4] ss:$8 sps:$4 sm:$0xff]  }
 0x9fe   :  { %v11161_v54 = vpop.f32.mrf.mxu0  ;;  %v11202_v28 = vpop.f32.mrf.mxu1  ;;  %v11262_v40 = vadd.f32 1.0, %v14497_v7  ;;  %v11289_v23 = vmul.f32 %v11285_v59, %v11271_v31  ;;  %v11286_v8 = vrot.slane %v17225_v22, 2  ;;  %v14313_v7 = vld [vmem:[%s17638_s21 + $0x74] ss:$8 sps:$4 sm:$0xff]   ;;  %v14317_v31 = vld [vmem:[%s17638_s21 + $0x50] ss:$8 sps:$4 sm:$0xff]  }
 0x9ff   :  { %14500 = vtanh.f32 %v11210_v56  ;;  %v11276_v25 = vmul.f32 0.5, %v11212_v45  ;;  %v14302_v56 = vld [vmem:[%s17636_s19 + $0x14] ss:$8 sps:$4 sm:$0xff]   ;;  %v14300_v54 = vld [vmem:[%s17636_s19 + $0x10] ss:$8 sps:$4 sm:$0xff]   ;;  %12163 = vmatprep.subr.bf16.mxu1 %v14313_v7 }
 0xa00   :  { %v11162_v41 = vpop.f32.mrf.mxu0  ;;  %v11203_v11 = vpop.f32.mrf.mxu1  ;;  %14502 = vtanh.f32 %v11275_v50  ;;  %v11264_v33 = vmul.f32 0.5, %v11262_v40  ;;  %v11290_v61 = vmul.f32 %v11286_v8, %v11272_v13  ;;  %v14311_v50 = vld [vmem:[%s17638_s21 + $0x70] ss:$8 sps:$4 sm:$0xff]   ;;  %v14322_v40 = vld [vmem:[%s17638_s21 + $0x44] ss:$8 sps:$4 sm:$0xff]  }
 0xa01   :  { %14504 = vtanh.f32 %v11276_v25  ;;  %v11866_v41 = vld [vmem:[%s17636_s19 + $0x90] sm:$0x77]  ;;  %12164 = vmatpush1.bf16.msra.mxu1 %v14311_v50  ;;  %v14328_v13 = vld [vmem:[%s17638_s21 + $0x24] ss:$8 sps:$4 sm:$0xff]  }
 0xa02   :  { %v13812_v11 = vcombine.high %v11866_v41, %v11866_v41  ;;  %v13811_v5 = vcombine.low %v11866_v41, %v11866_v41  ;;  %12165 = vmatprep.subr.bf16.mxu1 %v14316_v27  ;;  %v14319_v25 = vld [vmem:[%s17638_s21 + $0x54] ss:$8 sps:$4 sm:$0xff]   ;;  %v14334_v8 = vld [vmem:[%s17638_s21 + $0x4] ss:$8 sps:$4 sm:$0xff]  }
 0xa03   :  { %v14325_v59 = vld [vmem:[%s17638_s21 + $0x34] ss:$8 sps:$4 sm:$0xff]  }
 0xa04   :  { %v11978_v45 = vsel %vm2380_vm4, %v13811_v5, 0 }
 0xa05   :  { %12166 = vmatpush1.bf16.msra.mxu1 %v14314_v12  ;;  %v14348_v12 = vld [vmem:[#allocation27 + $0x48] ss:$0 sps:$4 sm:$0x77]  }
 0xa06   :  { %12167 = vmatprep.subr.bf16.mxu1 %v14319_v25  ;;  %v12295_v25 = vsel %vm2380_vm4, %v14348_v12, 0 }
 0xa09   :  { %12168 = vmatpush1.bf16.msra.mxu1 %v14317_v31  ;;  %v14349_v31 = vld [vmem:[#allocation27 + $0x40] sm:$0xff]  }
 0xa0a   :  { %v14499_v47 = vpop.eup %14498  ;;  %12169 = vmatprep.subr.bf16.mxu1 %v14322_v40  ;;  %v12047_v40 = vld [vmem:[#allocation25] sm:$0x3] }
 0xa0b   :  { %v11291_v60 = vmul.f32 %v14499_v47, %v11263_v38  ;;  %v14320_v38 = vld [vmem:[%s17638_s21 + $0x40] ss:$8 sps:$4 sm:$0xff]   ;;  %v14323_v47 = vld [vmem:[%s17638_s21 + $0x30] ss:$8 sps:$4 sm:$0xff]  }
 0xa0c   :  { %v14501_v62 = vpop.eup %14500 }
 0xa0d   :  { %v11293_v24 = vadd.f32 %v11291_v60, %v11289_v23  ;;  %v11292_v55 = vmul.f32 %v14501_v62, %v11264_v33  ;;  %v14503_v44 = vpop.eup %14502  ;;  %12170 = vmatpush1.bf16.msra.mxu1 %v14320_v38  ;;  %v14326_v23 = vld [vmem:[%s17638_s21 + $0x20] ss:$8 sps:$4 sm:$0xff]   ;;  %v14331_v60 = vld [vmem:[%s17638_s21 + $0x14] ss:$8 sps:$4 sm:$0xff]   ;;  %v14329_v33 = vld [vmem:[%s17638_s21 + $0x10] ss:$8 sps:$4 sm:$0xff]   ;;  %v12052_v38 = vrot.slane %v12047_v40, %v15090_v52 }
 0xa0e   :  { %v14505_v29 = vpop.eup %14504  ;;  %v11279_v18 = vadd.f32 1.0, %v14503_v44  ;;  %12171 = vmatprep.subr.bf16.mxu1 %v14325_v59  ;;  %v14332_v62 = vld [vmem:[%s17638_s21] ss:$8 sps:$4 sm:$0xff]   ;;  %v12056_v59 = vrot.slane %v12047_v40, %v15093_v53 }
 0xa0f   :  { %14506 = vtanh.f32 %v11293_v24  ;;  %v11294_v2 = vadd.f32 %v11292_v55, %v11290_v61  ;;  %v11280_v32 = vadd.f32 1.0, %v14505_v29 }
 0xa10   :  { %v11281_v63 = vmul.f32 0.5, %v11279_v18 }
 0xa11   :  { %14508 = vtanh.f32 %v11294_v2  ;;  %v11282_v34 = vmul.f32 0.5, %v11280_v32  ;;  %12172 = vmatpush1.bf16.msra.mxu1 %v14323_v47  ;;  %v11830_v2 = vld [vmem:[#allocation22] sm:$0x3] }
 0xa12   :  { %12173 = vmatprep.subr.bf16.mxu1 %v14328_v13  ;;  %v11835_v18 = vrot.slane %v11830_v2, %v15090_v52 }
 0xa15   :  { %12174 = vmatpush1.bf16.msra.mxu1 %v14326_v23 }
 0xa16   :  { %12175 = vmatprep.subr.bf16.mxu1 %v14331_v60 }
 0xa19   :  { %12176 = vmatpush1.bf16.msra.mxu1 %v14329_v33 }
 0xa1a   :  { %12177 = vmatprep.subr.bf16.mxu1 %v14334_v8 }
 0xa1c   :  { %v14507_v42 = vpop.eup %14506 }
 0xa1d   :  { %v11297_v43 = vmul.f32 %v14507_v42, %v11281_v63  ;;  %12178 = vmatpush1.bf16.msra.mxu1 %v14332_v62 }
 0xa1e   :  { %v14509_v14 = vpop.eup %14508 }
 0xa1f   :  { %11299 = vst [vmem:[#allocation3 + $0x8] sm:$0x3] %v11297_v43  ;;  %v11298_v48 = vmul.f32 %v14509_v14, %v11282_v34  ;;  %v11839_v43 = vrot.slane %v11830_v2, %v15093_v53 }
 0xa21   :  { %11300 = vst [vmem:[#allocation3] sm:$0x3] %v11298_v48 }
 0xa26   :  { %v11337_v22 = vld [vmem:[#allocation3 + $0x8] sm:$0xff] }
 0xa27   :  { %v11339_v36 = vpack.c.bf16 %v11337_v22, %v11337_v22 }
 0xa28   :  { %v11338_v46 = vld [vmem:[#allocation3] sm:$0xff] }
 0xa29   :  { %v11340_v58 = vpack.c.bf16 %v11338_v46, %v11338_v46 }
 0xa2b   :  { %11565 = vmatprep.mubr.bf16.mxu0 %v11340_v58 }
 0xa2c   :  { %11566 = vmatmul.mubr.bf16.vlgmr.msra.gmra.mxu0 %v11339_v36 }
 0xa2d   :  { %11802 = vmatpush1.bf16.msra.mxu0 %v14279_v49  ;;  %11819 = vmatprep.mubr.bf16.mxu0 %v14873_v1 }
 0xa2e   :  { %11983 = vmatprep.subr.bf16.mxu0 %v14284_v9 }
 0xa34   :  { %13792 = vmatmul.mubr.msk.bf16.vlgmr.msra.gmra.mxu0 %vm306_vm1, %v15075_v6  ;;  %v14293_v6 = vld [vmem:[%s17636_s19 + $0x44] ss:$8 sps:$4 sm:$0xff]  }
 0xa35   :  { %11984 = vmatpush1.bf16.msra.mxu0 %v14282_v20 }
 0xa36   :  { %11985 = vmatprep.subr.bf16.mxu0 %v14287_v0  ;;  %v12046_v0 = vld [vmem:[%s17638_s21 + $0x90] sm:$0x77] }
 0xa39   :  { %11986 = vmatpush1.bf16.msra.mxu0 %v14285_v30  ;;  %v13834_v30 = vcombine.high %v12046_v0, %v12046_v0 }
 0xa3a   :  { %11987 = vmatprep.subr.bf16.mxu0 %v14290_v19  ;;  %v13833_v19 = vcombine.low %v12046_v0, %v12046_v0 }
 0xa3b   :  { %13835 = vmatprep.subr.msk.bf16.mxu1 %vm2380_vm4, %v13834_v30 }
 0xa3d   :  { %11988 = vmatpush1.bf16.msra.mxu0 %v14288_v35  ;;  %v12158_v35 = vsel %vm2380_vm4, %v13833_v19, 0 }
 0xa3e   :  { %11989 = vmatprep.subr.bf16.mxu0 %v14293_v6  ;;  %12192 = vmatpush2.bf16.msra.mxu1 %v12158_v35  ;;  %v14339_v6 = vld [vmem:[%s17638_s21 + $0x84] ss:$8 sps:$4 sm:$0xff]  }
 0xa3f   :  { %12193 = vmatprep.subr.bf16.mxu1 %v14339_v6 }
 0xa41   :  { %11990 = vmatpush1.bf16.msra.mxu0 %v14291_v57  ;;  %v14337_v57 = vld [vmem:[%s17638_s21 + $0x80] ss:$8 sps:$4 sm:$0xff]  }
 0xa42   :  { %11991 = vmatprep.subr.bf16.mxu0 %v14296_v4  ;;  %12194 = vmatpush2.bf16.msra.mxu1 %v14337_v57  ;;  %v14340_v4 = vld [vmem:[#allocation27 + $0x38] sm:$0xff]  }
 0xa45   :  { %11992 = vmatpush1.bf16.msra.mxu0 %v14294_v37  ;;  %v14341_v37 = vld [vmem:[#allocation27 + $0x30] sm:$0xff]  }
 0xa46   :  { %11993 = vmatprep.subr.bf16.mxu0 %v14299_v3  ;;  %v14343_v3 = vld [vmem:[#allocation27 + $0x20] sm:$0xff]  }
 0xa49   :  { %11994 = vmatpush1.bf16.msra.mxu0 %v14297_v51  ;;  %v14344_v51 = vld [vmem:[#allocation27 + $0x18] sm:$0xff]  }
 0xa4a   :  { %11995 = vmatprep.subr.bf16.mxu0 %v14302_v56  ;;  %v14347_v56 = vld [vmem:[#allocation27] sm:$0xff]  }
 0xa4d   :  { %11996 = vmatpush1.bf16.msra.mxu0 %v14300_v54  ;;  %v11867_v54 = vld [vmem:[#allocation24] sm:$0x3] }
 0xa4e   :  { %11997 = vmatprep.subr.bf16.mxu0 %v14305_v39  ;;  %v11876_v39 = vrot.slane %v11867_v54, %v15093_v53 }
 0xa51   :  { %11998 = vmatpush1.bf16.msra.mxu0 %v14303_v16 }
 0xa52   :  { %13813 = vmatprep.subr.msk.bf16.mxu0 %vm2380_vm4, %v13812_v11 }
 0xa55   :  { %12012 = vmatpush2.bf16.msra.mxu0 %v11978_v45 }
 0xa56   :  { %12013 = vmatprep.subr.bf16.mxu0 %v14310_v15 }
 0xa59   :  { %12014 = vmatpush2.bf16.msra.mxu0 %v14308_v10 }
 0xa5a   :  { %12297 = vmatprep.subr.bf16.mxu0 %v14873_v1 }
 0xa6a   :  { %v17497_v21 = vpop.f32.mrf.mxu1 }
 0xa6c   :  { %v17505_v17 = vpop.f32.mrf.mxu1 }
 0xa6e   :  { %v11772_v26 = vpop.f32.mrf.mxu1 }
 0xa6f   :  { %v14346_v26 = vld [vmem:[#allocation27 + $0x8] sm:$0xff]  }
 0xa70   :  { %v11773_v28 = vpop.f32.mrf.mxu1 }
 0xa71   :  { %v11872_v28 = vrot.slane %v11867_v54, %v15090_v52 }
 0xaec   :  { %v11567_v24 = vpop.f32.mrf.mxu0 }
 0xaed   :  { %v11769_v29 = vadd.f32 %v17497_v21, %v11567_v24  ;;  %v14342_v21 = vld [vmem:[#allocation27 + $0x28] sm:$0xff]  }
 0xaee   :  { %v11569_v61 = vpop.f32.mrf.mxu0 }
 0xaef   :  { %v11771_v63 = vadd.f32 %v17505_v17, %v11569_v61  ;;  %v14345_v17 = vld [vmem:[#allocation27 + $0x10] sm:$0xff]  }
 0xaf0   :  { %v11571_v55 = vpop.f32.mrf.mxu0 }
 0xaf2   :  { %v11572_v44 = vpop.f32.mrf.mxu0 }
 0xaf4   :  { %v11821_v32 = vpop.f32.mrf.mxu0 }
 0xaf5   :  { %v11828_v42 = vadd.f32 %v11821_v32, %v11769_v29 }
 0xaf6   :  { %v11823_v34 = vpop.f32.mrf.mxu0 }
 0xaf7   :  { %v11842_v14 = vadd.f32 %v11835_v18, %v11828_v42  ;;  %v11829_v48 = vadd.f32 %v11823_v34, %v11771_v63 }
 0xaf8   :  { %v11825_v22 = vpop.f32.mrf.mxu0 }
 0xaf9   :  { %v11843_v46 = vadd.f32 %v11839_v43, %v11829_v48  ;;  %v11844_v58 = vmax.f32 %v11842_v14, 0.0 }
 0xafa   :  { %v11826_v49 = vpop.f32.mrf.mxu0 }
 0xafb   :  { %v11845_v36 = vmax.f32 %v11843_v46, 0.0  ;;  %v11846_v20 = vpack.c.bf16 %v11844_v58, %v11844_v58 }
 0xafd   :  { %v11847_v9 = vpack.c.bf16 %v11845_v36, %v11845_v36 }
 0xaff   :  { %13814 = vmatprep.mubr.msk.bf16.mxu0 %vm2376_vm5, %v11847_v9 }
 0xb00   :  { %12016 = vmatmul.mubr.bf16.vlgmr.msra.gmra.mxu0 %v11846_v20 }
 0xb01   :  { %12298 = vmatpush1.bf16.msra.mxu0 %v14340_v4 }
 0xb02   :  { %12299 = vmatprep.subr.bf16.mxu0 %v14873_v1 }
 0xb05   :  { %12300 = vmatpush1.bf16.msra.mxu0 %v14341_v37 }
 0xb06   :  { %12301 = vmatprep.subr.bf16.mxu0 %v14873_v1 }
 0xb09   :  { %12302 = vmatpush1.bf16.msra.mxu0 %v14342_v21 }
 0xb0a   :  { %12303 = vmatprep.subr.bf16.mxu0 %v14873_v1 }
 0xb0d   :  { %12304 = vmatpush1.bf16.msra.mxu0 %v14343_v3 }
 0xb0e   :  { %12305 = vmatprep.subr.bf16.mxu0 %v14873_v1 }
 0xb11   :  { %12306 = vmatpush1.bf16.msra.mxu0 %v14344_v51 }
 0xb12   :  { %12307 = vmatprep.subr.bf16.mxu0 %v14873_v1 }
 0xb15   :  { %12308 = vmatpush1.bf16.msra.mxu0 %v14345_v17 }
 0xb16   :  { %12309 = vmatprep.subr.bf16.mxu0 %v14873_v1 }
 0xb19   :  { %12310 = vmatpush1.bf16.msra.mxu0 %v14346_v26 }
 0xb1a   :  { %12311 = vmatprep.subr.bf16.mxu0 %v14873_v1 }
 0xb1d   :  { %12312 = vmatpush1.bf16.msra.mxu0 %v14347_v56 }
 0xb1e   :  { %12325 = vmatprep.subr.bf16.mxu0 %v14873_v1 }
 0xb21   :  { %12326 = vmatpush2.bf16.msra.mxu0 %v12295_v25 }
 0xb22   :  { %12327 = vmatprep.subr.bf16.mxu0 %v14873_v1  ;;  %v13837_v1 = vld [vmem:[%s17641_s24] ss:$0 sm:$0xff] }
 0xb25   :  { %12328 = vmatpush2.bf16.msra.mxu0 %v14349_v31 }
 0xbc0   :  { %v12017_v16 = vpop.f32.mrf.mxu0 }
 0xbc1   :  { %v12018_v41 = vadd.f32 %v12017_v16, %v11872_v28 }
 0xbc2   :  { %v12019_v11 = vpop.f32.mrf.mxu0 }
 0xbc3   :  { %v12020_v5 = vadd.f32 %v12019_v11, %v11876_v39  ;;  %v12024_v45 = vmax.f32 %v12018_v41, 0.0 }
 0xbc4   :  { %v12021_v15 = vpop.f32.mrf.mxu0 }
 0xbc5   :  { %v12025_v10 = vmax.f32 %v12020_v5, 0.0  ;;  %v12026_v27 = vpack.c.bf16 %v12024_v45, %v12024_v45 }
 0xbc6   :  { %v12022_v50 = vpop.f32.mrf.mxu0 }
 0xbc7   :  { %v12027_v7 = vpack.c.bf16 %v12025_v10, %v12025_v10 }
 0xbc9   :  { %13836 = vmatprep.mubr.msk.bf16.mxu1 %vm2376_vm5, %v12027_v7 }
 0xbca   :  { %12196 = vmatmul.mubr.bf16.vlgmr.msra.gmra.mxu1 %v12026_v27 }
 0xc8a   :  { %v12197_v47 = vpop.f32.mrf.mxu1 }
 0xc8b   :  { %v12198_v13 = vadd.f32 %v12197_v47, %v12052_v38 }
 0xc8c   :  { %v12199_v23 = vpop.f32.mrf.mxu1 }
 0xc8d   :  { %v12200_v60 = vadd.f32 %v12199_v23, %v12056_v59  ;;  %v12204_v33 = vmax.f32 %v12198_v13, 0.0 }
 0xc8e   :  { %v12201_v8 = vpop.f32.mrf.mxu1 }
 0xc8f   :  { %v12205_v62 = vmax.f32 %v12200_v60, 0.0  ;;  %v12206_v55 = vpack.c.bf16 %v12204_v33, %v12204_v33 }
 0xc90   :  { %v12202_v24 = vpop.f32.mrf.mxu1 }
 0xc91   :  { %v12207_v61 = vpack.c.bf16 %v12205_v62, %v12205_v62 }
 0xc93   :  { %13848 = vmatprep.mubr.msk.bf16.mxu0 %vm2376_vm5, %v12207_v61 }
 0xc94   :  { %12330 = vmatmul.mubr.bf16.vlgmr.msra.gmra.mxu0 %v12206_v55 }
 0xd54   :  { %v12331_v52 = vpop.f32.mrf.mxu0 }
 0xd55   :  { %v12332_v2 = vadd.f32 %v13837_v1, %v12331_v52 }
 0xd56   :  { %v12333_v53 = vpop.f32.mrf.mxu0 }
 0xd57   :  { %14510 = vtanh.f32 %v12332_v2 }
 0xd58   :  { %v12334_v44 = vpop.f32.mrf.mxu0 }
 0xd5a   :  { %v12335_v29 = vpop.f32.mrf.mxu0 }
 0xd64   :  { %v14511_v18 = vpop.eup %14510 }
 0xd65   :  { %12338 = vst [vmem:[#allocation28] sm:$0xff] %v14511_v18 }
 0xd66   :  { %14823 = shalt.err (!%p14820_p9)
}
 0xd67   :  { %12348 = dma.vmem_to_hbm [thread:$0]  %s12346_s12, 128, %s17642_s25, [#allocation6]  }
 0xd68   :  { %14848 = dma.done.wait [#allocation6], 128  }
 0xd69   :  { %14849 = vsyncadd [#allocation6], 4294967168 }
 0xd6a   :  { %12352 = vsyncpa [#allocation5], 1 }
 0xd6b   :  { %12353 = vsyncpa [#allocation8], 1 }
 0xd6c   :  { %12354 = vsyncpa [#allocation11], 1 }
 0xd6d   :  { %12355 = vsyncpa [#allocation14], 1 }
 0xd6e   :  { %12356 = vsyncpa [#allocation17], 1 }
 0xd6f   :  { %12357 = vsyncpa [#allocation20], 1 }
 0xd70   :  { %12358 = vsyncpa [#allocation23], 1 }
 0xd71   :  { %12359 = vsyncpa [#allocation26], 1 }
 0xd72   :  { %12360 = vsyncpa [#allocation6], 1 }

</bundles_post_ra>
